<compile_context>
chip_gen: v5e
topology: v5e:2x2
jax: 0.10.0
libtpu: 0.0.40
codegen_flags: <defaults>
</compile_context>

<pallas_src>
import jax
import jax.numpy as jnp
from jax.experimental import pallas as pl
from jax.experimental.pallas import tpu as pltpu

EPS = 1e-5


def _make_kernel(true_p):
    """Kernel factory; true_p is the un-padded element count per channel."""
    inv_p = 1.0 / float(true_p)

    def kernel(x136_ref, x129_ref, gb_ref, w_ref, o_ref, z_ref):
        # x136_ref, x129_ref : (Cin, Pp)       float32   (Pp = padded P)
        # gb_ref             : (Cin, 2)        float32   [:,0]=gamma [:,1]=beta
        # w_ref              : (tile_co, Cin)  bfloat16
        # o_ref              : (tile_co, Pp)   float32
        # z_ref (scratch)    : (Cin, Pp)       bfloat16

        # BN / add / ReLU prologue computed once (first grid step only) and
        # materialized as bf16 in VMEM scratch; later Cout tiles reuse it.
        @pl.when(pl.program_id(0) == 0)
        def _():
            x = x136_ref[...]                                    # (C, Pp) f32
            mean = jnp.sum(x, axis=1, keepdims=True) * inv_p     # zeros in the
            # pad contribute 0 to the sum, so dividing by true_p is exact.
            col = jax.lax.broadcasted_iota(jnp.int32, x.shape, 1)
            xm = jnp.where(col < true_p, x - mean, 0.0)          # mask pad lanes
            var = jnp.sum(xm * xm, axis=1, keepdims=True) * inv_p

            # Fold BN into one FMA per element: bn = x * scale + shift.
            scale = gb_ref[:, 0:1] * jax.lax.rsqrt(var + EPS)    # (C, 1)
            shift = gb_ref[:, 1:2] - mean * scale                # (C, 1)

            z = jnp.maximum(x129_ref[...] + (x * scale + shift), 0.0)
            z_ref[...] = z.astype(jnp.bfloat16)

        # 1x1 conv == (Cout_tile, Cin) @ (Cin, Pp); bf16 MXU inputs, f32 acc.
        o_ref[...] = jnp.dot(
            w_ref[...], z_ref[...], preferred_element_type=jnp.float32
        ).astype(o_ref.dtype)

    return kernel


def bn_add_relu_conv1x1(x136_nchw, x129_nchw, gamma, beta, conv_w, *, co_tiles=1):
    """x136_nchw, x129_nchw: (N, C, H, W); gamma/beta: (C,); conv_w: (Cout, Cin, 1, 1)."""
    n, c, h, w = x136_nchw.shape
    cout = conv_w.shape[0]
    p = n * h * w

    # NCHW -> (C, P).  Free reshape when N == 1 (the module's case); one
    # transpose only in the general N > 1 fallback.
    def to_cp(x):
        if n == 1:
            return x.reshape(c, p)
        return jnp.transpose(x, (1, 0, 2, 3)).reshape(c, p)

    x136_cp = to_cp(x136_nchw)
    x129_cp = to_cp(x129_nchw)

    # Lane-dense P: zero-pad to a multiple of 128 so vector loads/stores are
    # unmasked.  The pad columns are garbage in the output and sliced off.
    p_pad = max(128, ((p + 127) // 128) * 128)
    if p_pad != p:
        x136_cp = jnp.pad(x136_cp, ((0, 0), (0, p_pad - p)))
        x129_cp = jnp.pad(x129_cp, ((0, 0), (0, p_pad - p)))

    # gamma/beta packed into one small block; conv weight carried as bf16
    # (the matmul feeds the MXU in bf16 anyway) -> ~half the weight DMA bytes.
    gb = jnp.stack([gamma, beta], axis=1).astype(jnp.float32)     # (C, 2)
    w_mat = conv_w.reshape(cout, c).astype(jnp.bfloat16)          # (Cout, Cin)

    # Default grid=(1,) — v5e/v6e have a single TensorCore, so a Cout split is
    # pure per-step overhead there.  co_tiles > 1 still works correctly (the
    # prologue is hoisted into scratch, axis is "arbitrary").
    if co_tiles < 1 or cout % co_tiles != 0 or (cout // co_tiles) % 8 != 0:
        co_tiles = 1
    tile_co = cout // co_tiles

    out_cp = pl.pallas_call(
        _make_kernel(p),
        out_shape=jax.ShapeDtypeStruct((cout, p_pad), jnp.float32),
        grid=(co_tiles,),
        in_specs=[
            pl.BlockSpec((c, p_pad), lambda j: (0, 0)),        # x136 (whole array)
            pl.BlockSpec((c, p_pad), lambda j: (0, 0)),        # x129 (whole array)
            pl.BlockSpec((c, 2), lambda j: (0, 0)),            # gamma|beta packed
            pl.BlockSpec((tile_co, c), lambda j: (j, 0)),      # bf16 weight tile
        ],
        out_specs=pl.BlockSpec((tile_co, p_pad), lambda j: (j, 0)),
        scratch_shapes=[pltpu.VMEM((c, p_pad), jnp.bfloat16)], # hoisted z
        compiler_params=pltpu.CompilerParams(
            # scratch z is carried across Cout tiles -> sequential axis.
            dimension_semantics=("arbitrary",),
        ),
    )(x136_cp, x129_cp, gb, w_mat)

    out_cp = out_cp[:, :p]
    # (Cout, P) -> NCHW.  Free reshape for N == 1.
    if n == 1:
        return out_cp.reshape(1, cout, h, w)
    return jnp.transpose(out_cp.reshape(cout, n, h, w), (1, 0, 2, 3))


if __name__ == "__main__":
    N, C, H, W = 1, 432, 14, 14

    key = jax.random.PRNGKey(0)
    k_x136, k_x129, k_gamma, k_beta, k_w = jax.random.split(key, 5)

    x136 = jax.random.normal(k_x136, (N, C, H, W), dtype=jnp.float32)
    x129 = jax.random.normal(k_x129, (N, C, H, W), dtype=jnp.float32)

    # Deterministic synthetic parameters (shapes from the module __init__).
    gamma = jax.random.normal(k_gamma, (C,), dtype=jnp.float32) * 0.1 + 1.0
    beta = jax.random.normal(k_beta, (C,), dtype=jnp.float32) * 0.1
    conv_w = jax.random.normal(k_w, (C, C, 1, 1), dtype=jnp.float32) * (1.0 / (C**0.5))

    out = bn_add_relu_conv1x1(x136, x129, gamma, beta, conv_w)
    jax.block_until_ready(out)

    # Pure-JAX reference (BatchNorm in train mode = batch stats, f32 path).
    mean = jnp.mean(x136, axis=(0, 2, 3), keepdims=True)
    var = jnp.var(x136, axis=(0, 2, 3), keepdims=True)
    bn = (x136 - mean) / jnp.sqrt(var + EPS) * gamma.reshape(1, C, 1, 1) + beta.reshape(
        1, C, 1, 1
    )
    z = jnp.maximum(x129 + bn, 0.0)
    ref = jnp.einsum("nchw,oc->nohw", z, conv_w.reshape(C, C))
    # Tolerance loosened because the matmul uses bf16 MXU inputs (f32
    # accumulation); BN / add / ReLU remain full f32.
    assert jnp.allclose(out, ref, atol=2e-2, rtol=2e-2), float(
        jnp.max(jnp.abs(out - ref))
    )

    print("KERNEL_OK")
</pallas_src>

<mosaic_0001>
module attributes {stable_mosaic.version = 11 : i64} {
  func.func @kernel(%arg0: i32, %arg1: memref<432x256xf32, #tpu.memory_space<vmem>>, %arg2: memref<432x256xf32, #tpu.memory_space<vmem>>, %arg3: memref<432x2xf32, #tpu.memory_space<vmem>>, %arg4: memref<432x432xbf16, #tpu.memory_space<vmem>>, %arg5: memref<432x256xf32, #tpu.memory_space<vmem>>, %arg6: memref<432x256xbf16, #tpu.memory_space<vmem>>) attributes {dimension_semantics = [#tpu.dimension_semantics<arbitrary>], iteration_bounds = array<i64: 1>, scalar_prefetch = 0 : i64, scratch_operands = 1 : i64, tpu.core_type = #tpu.core_type<tc>, window_params = [{pipeline_mode = #tpu.pipeline_mode<synchronous>, transform_indices = @transform_0, window_bounds = array<i64: 432, 256>}, {pipeline_mode = #tpu.pipeline_mode<synchronous>, transform_indices = @transform_1, window_bounds = array<i64: 432, 256>}, {pipeline_mode = #tpu.pipeline_mode<synchronous>, transform_indices = @transform_2, window_bounds = array<i64: 432, 2>}, {transform_indices = @transform_3, window_bounds = array<i64: 432, 432>}, {transform_indices = @transform_4, window_bounds = array<i64: 432, 256>}]} {
    %c0_i32 = arith.constant 0 : i32
    %0 = arith.cmpi eq, %arg0, %c0_i32 : i32
    %1 = arith.extui %0 : i1 to i32
    %c0_i32_0 = arith.constant 0 : i32
    %2 = arith.cmpi ne, %1, %c0_i32_0 : i32
    scf.if %2 {
      %c0_6 = arith.constant 0 : index
      %c0_7 = arith.constant 0 : index
      %7 = vector.load %arg1[%c0_6, %c0_7] : memref<432x256xf32, #tpu.memory_space<vmem>>, vector<432x256xf32>
      %cst_8 = arith.constant dense<0.000000e+00> : vector<432xf32>
      %8 = vector.multi_reduction <add>, %7, %cst_8 [1] : vector<432x256xf32> to vector<432xf32>
      %9 = vector.shape_cast %8 : vector<432xf32> to vector<432x1xf32>
      %cst_9 = arith.constant 0.00510204071 : f32
      %10 = vector.broadcast %cst_9 : f32 to vector<432x1xf32>
      %11 = arith.mulf %9, %10 : vector<432x1xf32>
      %12 = tpu.iota {dimensions = array<i32: 1>} : vector<432x256xi32>
      %c196_i32 = arith.constant 196 : i32
      %13 = vector.broadcast %c196_i32 : i32 to vector<432x256xi32>
      %14 = arith.cmpi slt, %12, %13 : vector<432x256xi32>
      %15 = vector.broadcast %11 : vector<432x1xf32> to vector<432x256xf32>
      %16 = arith.subf %7, %15 : vector<432x256xf32>
      %cst_10 = arith.constant 0.000000e+00 : f32
      %17 = vector.broadcast %cst_10 : f32 to vector<432x256xf32>
      %18 = arith.select %14, %16, %17 : vector<432x256xi1>, vector<432x256xf32>
      %19 = arith.mulf %18, %18 : vector<432x256xf32>
      %cst_11 = arith.constant dense<0.000000e+00> : vector<432xf32>
      %20 = vector.multi_reduction <add>, %19, %cst_11 [1] : vector<432x256xf32> to vector<432xf32>
      %21 = vector.shape_cast %20 : vector<432xf32> to vector<432x1xf32>
      %cst_12 = arith.constant 0.00510204071 : f32
      %22 = vector.broadcast %cst_12 : f32 to vector<432x1xf32>
      %23 = arith.mulf %21, %22 : vector<432x1xf32>
      %c0_13 = arith.constant 0 : index
      %c0_14 = arith.constant 0 : index
      %24 = vector.load %arg3[%c0_13, %c0_14] : memref<432x2xf32, #tpu.memory_space<vmem>>, vector<432x1xf32>
      %cst_15 = arith.constant 9.99999974E-6 : f32
      %25 = vector.broadcast %cst_15 : f32 to vector<432x1xf32>
      %26 = arith.addf %23, %25 : vector<432x1xf32>
      %27 = math.rsqrt %26 : vector<432x1xf32>
      %28 = arith.mulf %24, %27 : vector<432x1xf32>
      %c0_16 = arith.constant 0 : index
      %c1 = arith.constant 1 : index
      %29 = vector.load %arg3[%c0_16, %c1] : memref<432x2xf32, #tpu.memory_space<vmem>>, vector<432x1xf32>
      %30 = arith.mulf %11, %28 : vector<432x1xf32>
      %31 = arith.subf %29, %30 : vector<432x1xf32>
      %c0_17 = arith.constant 0 : index
      %c0_18 = arith.constant 0 : index
      %32 = vector.load %arg2[%c0_17, %c0_18] : memref<432x256xf32, #tpu.memory_space<vmem>>, vector<432x256xf32>
      %33 = vector.broadcast %28 : vector<432x1xf32> to vector<432x256xf32>
      %34 = arith.mulf %7, %33 : vector<432x256xf32>
      %35 = vector.broadcast %31 : vector<432x1xf32> to vector<432x256xf32>
      %36 = arith.addf %34, %35 : vector<432x256xf32>
      %37 = arith.addf %32, %36 : vector<432x256xf32>
      %cst_19 = arith.constant 0.000000e+00 : f32
      %38 = vector.broadcast %cst_19 : f32 to vector<432x256xf32>
      %39 = arith.maximumf %37, %38 : vector<432x256xf32>
      %40 = arith.truncf %39 : vector<432x256xf32> to vector<432x256xbf16>
      %c0_20 = arith.constant 0 : index
      %c0_21 = arith.constant 0 : index
      %41 = vector.load %arg6[%c0_20, %c0_21] : memref<432x256xbf16, #tpu.memory_space<vmem>>, vector<432x256xbf16>
      tpu.vector_store %arg6[%c0_20, %c0_21], %40 {strides = array<i32>} : memref<432x256xbf16, #tpu.memory_space<vmem>>, vector<432x256xbf16>,
    } else {
    }
    %c0 = arith.constant 0 : index
    %c0_1 = arith.constant 0 : index
    %3 = vector.load %arg4[%c0, %c0_1] : memref<432x432xbf16, #tpu.memory_space<vmem>>, vector<432x432xbf16>
    %c0_2 = arith.constant 0 : index
    %c0_3 = arith.constant 0 : index
    %4 = vector.load %arg6[%c0_2, %c0_3] : memref<432x256xbf16, #tpu.memory_space<vmem>>, vector<432x256xbf16>
    %cst = arith.constant dense<0.000000e+00> : vector<432x256xf32>
    %5 = tpu.matmul %3, %4, %cst {dimension_numbers = #tpu.dot_dimension_numbers<[1], [0], [0], [1], [0, 0, 1, 1], [], []>} : vector<432x432xbf16>, vector<432x256xbf16>, vector<432x256xf32> -> vector<432x256xf32>
    %c0_4 = arith.constant 0 : index
    %c0_5 = arith.constant 0 : index
    %6 = vector.load %arg5[%c0_4, %c0_5] : memref<432x256xf32, #tpu.memory_space<vmem>>, vector<432x256xf32>
    tpu.vector_store %arg5[%c0_4, %c0_5], %5 {strides = array<i32>} : memref<432x256xf32, #tpu.memory_space<vmem>>, vector<432x256xf32>,
    return
  }
  func.func @transform_0(%arg0: i32) -> (i32, i32) {
    %c0_i32 = arith.constant 0 : i32
    %c0_i32_0 = arith.constant 0 : i32
    %c0_i32_1 = arith.constant 0 : i32
    return %c0_i32, %c0_i32_0 : i32, i32
  }
  func.func @transform_1(%arg0: i32) -> (i32, i32) {
    %c0_i32 = arith.constant 0 : i32
    %c0_i32_0 = arith.constant 0 : i32
    %c0_i32_1 = arith.constant 0 : i32
    return %c0_i32, %c0_i32_0 : i32, i32
  }
  func.func @transform_2(%arg0: i32) -> (i32, i32) {
    %c0_i32 = arith.constant 0 : i32
    %c0_i32_0 = arith.constant 0 : i32
    %c0_i32_1 = arith.constant 0 : i32
    return %c0_i32, %c0_i32_0 : i32, i32
  }
  func.func @transform_3(%arg0: i32) -> (i32, i32) {
    %c0_i32 = arith.constant 0 : i32
    %c0_i32_0 = arith.constant 0 : i32
    return %arg0, %c0_i32 : i32, i32
  }
  func.func @transform_4(%arg0: i32) -> (i32, i32) {
    %c0_i32 = arith.constant 0 : i32
    %c0_i32_0 = arith.constant 0 : i32
    return %arg0, %c0_i32 : i32, i32
  }
}

</mosaic_0001>

<bundles_post_ra>
// kernel: tpu_custom_call.1
= control target key start
LH: loop header
LB: loop body
LE: loop exit
PB: predicated region body
PF: predicated region fallthrough
CT: control target
= control target key end

     0   :  { %9 = vsyncpa [#allocation4], 0  ;;  %s10376_s0 = inlined_call_operand.hbm [shape: f32[432,256], index: 0, kind: input, shape index: {}]   ;;  %s10377_s1 = inlined_call_operand.hbm [shape: f32[432,256], index: 1, kind: input, shape index: {}]   ;;  %s10378_s2 = inlined_call_operand.vmem [shape: f32[432,2], index: 2, kind: input, shape index: {}]   ;;  %s10379_s3 = inlined_call_operand.hbm [shape: bf16[432,432], index: 3, kind: input, shape index: {}]   ;;  %s10380_s4 = inlined_call_operand.hbm [shape: f32[432,256], index: 4, kind: output, shape index: {}]  }
   0x1   :  { %10 = vsyncpa [#allocation7], 0 }
   0x2   :  { %11 = vsyncpa [#allocation5], 0  ;;  %s29_s17 = sshll.u32 %s10377_s1, 4  ;;  %s6748_s18 = smov [#allocation6]   ;;  %s30_s17 = int_to_ptr.hbm [resolvable:$true] %s29_s17 }
   0x3   :  { %s31_s19 = sshll.u32 %s6748_s18, 4  ;;  %s16_s22 = sshll.u32 %s10376_s0, 4  ;;  %s32_s19 = int_to_ptr.vmem [resolvable:$true] %s31_s19  ;;  %s17_s22 = int_to_ptr.hbm [resolvable:$true] %s16_s22 }
   0x4   :  { %s6749_s23 = smov 256   ;;  %s6750_s24 = smov 16  }
   0x5   :  { %37 = dma.hbm_to_vmem [thread:$0]  %s30_s17, 13824, %s32_s19, [#allocation7], %s6749_s23, %s6749_s23, %s6750_s24  }
   0x6   :  { %s6751_s25 = smov [#allocation3]   ;;  %s44_s1 = sshll.u32 %s10379_s3, 4  ;;  %s45_s1 = int_to_ptr.hbm [resolvable:$true] %s44_s1 }
   0x7   :  { %s18_s26 = sshll.u32 %s6751_s25, 4  ;;  %s6752_s0 = smov [#allocation8]   ;;  %s19_s26 = int_to_ptr.vmem [resolvable:$true] %s18_s26 }
   0x8   :  { %24 = dma.hbm_to_vmem [thread:$0]  %s17_s22, 13824, %s19_s26, [#allocation4], %s6749_s23, %s6749_s23, %s6750_s24  }
   0x9   :  { %s46_s29 = sshll.u32 %s6752_s0, 4  ;;  %s47_s29 = int_to_ptr.vmem [resolvable:$true] %s46_s29 }
   0xa   :  { %52 = dma.hbm_to_vmem [thread:$0]  %s45_s1, 13824, %s47_s29, [#allocation7], %s6749_s23, %s6749_s23, %s6750_s24  }
   0xb   :  { %6742 = dma.done.wait [#allocation4], 13824  }
   0xc   :  { %6743 = vsyncadd [#allocation4], 4294953472 }
   0xd   :  { %6744 = dma.done.wait [#allocation7], 27648  }
   0xe   :  { %6745 = vsyncadd [#allocation7], 4294939648  ;;  %v6800_v0 = vld [vmem:[#allocation3 + $0x2e0] sm:$0xff]  ;;  %v6802_v1 = vld [vmem:[#allocation3 + $0x2e8] sm:$0xff]  ;;  %s6753_s11 = smov 1   ;;  %s5446_s29 = sshll.u32 %s10380_s4, 4  ;;  %s5447_s29 = int_to_ptr.hbm [resolvable:$true] %s5446_s29 }
   0xf   :  { %v6804_v2 = vld [vmem:[#allocation3 + $0x1e0] sm:$0xff]  ;;  %v316_v3 = vadd.f32 %v6802_v1, %v6800_v0  ;;  %v6808_v4 = vld [vmem:[#allocation3 + $0x1e8] sm:$0xff]  ;;  %v6818_v9 = vld [vmem:[#allocation3 + $0x2f0] sm:$0xff] }
  0x10   :  { %v6810_v5 = vld [vmem:[#allocation3 + $0xe0] sm:$0xff]  ;;  %v6812_v6 = vld [vmem:[#allocation3 + $0xe8] sm:$0xff]  ;;  %v268_v7 = vadd.f32 %v6808_v4, %v6804_v2  ;;  %v6820_v10 = vld [vmem:[#allocation3 + $0x2f8] sm:$0xff] }
  0x11   :  { %v220_v8 = vadd.f32 %v6812_v6, %v6810_v5  ;;  %317 = vadd.xlane.f32.xlu0 %v316_v3  ;;  %v6822_v11 = vld [vmem:[#allocation3 + $0x1f0] sm:$0xff]  ;;  %v6824_v12 = vld [vmem:[#allocation3 + $0x1f8] sm:$0xff]  ;;  %v319_v15 = vadd.f32 %v6820_v10, %v6818_v9  ;;  %v6836_v18 = vld [vmem:[#allocation3 + $0x2c0] sm:$0xff] }
  0x12   :  { %269 = vadd.xlane.f32.xlu2 %v268_v7  ;;  %v6826_v13 = vld [vmem:[#allocation3 + $0xf0] sm:$0xff]  ;;  %v6828_v14 = vld [vmem:[#allocation3 + $0xf8] sm:$0xff]  ;;  %v271_v16 = vadd.f32 %v6824_v12, %v6822_v11  ;;  %v6838_v19 = vld [vmem:[#allocation3 + $0x2c8] sm:$0xff] }
  0x13   :  { %221 = vadd.xlane.f32.xlu1 %v220_v8  ;;  %v223_v17 = vadd.f32 %v6828_v14, %v6826_v13  ;;  %v6840_v20 = vld [vmem:[#allocation3 + $0x2d0] sm:$0xff]  ;;  %v6842_v21 = vld [vmem:[#allocation3 + $0x2d8] sm:$0xff]  ;;  %v6844_v22 = vld [vmem:[#allocation3 + $0xc0] sm:$0xff]  ;;  %v310_v24 = vadd.f32 %v6838_v19, %v6836_v18 }
  0x14   :  { %v6846_v23 = vld [vmem:[#allocation3 + $0xc8] sm:$0xff]  ;;  %v313_v25 = vadd.f32 %v6842_v21, %v6840_v20  ;;  %v6854_v27 = vld [vmem:[#allocation3 + $0x1c0] sm:$0xff]  ;;  %v6856_v28 = vld [vmem:[#allocation3 + $0xd0] sm:$0xff] }
  0x15   :  { %v214_v26 = vadd.f32 %v6846_v23, %v6844_v22  ;;  %v6858_v29 = vld [vmem:[#allocation3 + $0xd8] sm:$0xff]  ;;  %v6860_v30 = vld [vmem:[#allocation3 + $0x1c8] sm:$0xff]  ;;  %v6862_v31 = vld [vmem:[#allocation3 + $0x1d0] sm:$0xff] }
  0x16   :  { %v6864_v32 = vld [vmem:[#allocation3 + $0x1d8] sm:$0xff]  ;;  %v217_v33 = vadd.f32 %v6858_v29, %v6856_v28  ;;  %v262_v34 = vadd.f32 %v6860_v30, %v6854_v27  ;;  %v6872_v36 = vld [vmem:[#allocation3 + $0x2b0] sm:$0xff]  ;;  %v6874_v37 = vld [vmem:[#allocation3 + $0x2a0] sm:$0xff] }
  0x17   :  { %v265_v35 = vadd.f32 %v6864_v32, %v6862_v31  ;;  %v6876_v38 = vld [vmem:[#allocation3 + $0x2a8] sm:$0xff]  ;;  %v6878_v39 = vld [vmem:[#allocation3 + $0x2b8] sm:$0xff]  ;;  %v6880_v40 = vld [vmem:[#allocation3 + $0xa0] sm:$0xff] }
  0x18   :  { %v6882_v41 = vld [vmem:[#allocation3 + $0xa8] sm:$0xff]  ;;  %v304_v42 = vadd.f32 %v6876_v38, %v6874_v37  ;;  %v307_v43 = vadd.f32 %v6878_v39, %v6872_v36  ;;  %v6890_v45 = vld [vmem:[#allocation3 + $0x1a0] sm:$0xff]  ;;  %v6892_v46 = vld [vmem:[#allocation3 + $0xb0] sm:$0xff] }
  0x19   :  { %320 = vadd.xlane.f32.xlu0 %v319_v15  ;;  %v208_v44 = vadd.f32 %v6882_v41, %v6880_v40  ;;  %v6894_v47 = vld [vmem:[#allocation3 + $0xb8] sm:$0xff]  ;;  %v6896_v48 = vld [vmem:[#allocation3 + $0x1a8] sm:$0xff]  ;;  %v6898_v49 = vld [vmem:[#allocation3 + $0x1b0] sm:$0xff] }
  0x1a   :  { %272 = vadd.xlane.f32.xlu2 %v271_v16  ;;  %v6900_v50 = vld [vmem:[#allocation3 + $0x1b8] sm:$0xff]  ;;  %v211_v51 = vadd.f32 %v6894_v47, %v6892_v46  ;;  %v256_v52 = vadd.f32 %v6896_v48, %v6890_v45  ;;  %v6908_v54 = vld [vmem:[#allocation3 + $0x290] sm:$0xff]  ;;  %v6910_v55 = vld [vmem:[#allocation3 + $0x280] sm:$0xff] }
  0x1b   :  { %224 = vadd.xlane.f32.xlu1 %v223_v17  ;;  %v259_v53 = vadd.f32 %v6900_v50, %v6898_v49  ;;  %10576 = vst [vmem:[#allocation13_spill] sm:$0xff] %v6908_v54  ;;  %v6912_v56 = vld [vmem:[#allocation3 + $0x288] sm:$0xff]  ;;  %v6914_v57 = vld [vmem:[#allocation3 + $0x298] sm:$0xff]  ;;  %v6916_v58 = vld [vmem:[#allocation3 + $0x80] sm:$0xff] }
  0x1c   :  { %v6918_v59 = vld [vmem:[#allocation3 + $0x88] sm:$0xff]  ;;  %v298_v60 = vadd.f32 %v6912_v56, %v6910_v55  ;;  %v301_v61 = vadd.f32 %v6914_v57, %v6908_v54  ;;  %v6926_v63 = vld [vmem:[#allocation3 + $0x180] sm:$0xff]  ;;  %v6928_v3 = vld [vmem:[#allocation3 + $0x90] sm:$0xff] }
  0x1d   :  { %v202_v62 = vadd.f32 %v6918_v59, %v6916_v58  ;;  %10577 = vst [vmem:[#allocation14_spill] sm:$0xff] %v6926_v63  ;;  %v6930_v7 = vld [vmem:[#allocation3 + $0x98] sm:$0xff]  ;;  %v6932_v8 = vld [vmem:[#allocation3 + $0x188] sm:$0xff]  ;;  %v6934_v15 = vld [vmem:[#allocation3 + $0x190] sm:$0xff] }
  0x1e   :  { %10578 = vst [vmem:[#allocation15_spill] sm:$0xff] %v6928_v3  ;;  %v6936_v16 = vld [vmem:[#allocation3 + $0x198] sm:$0xff]  ;;  %v205_v17 = vadd.f32 %v6930_v7, %v6928_v3 }
  0x1f   :  { %10579 = vst [vmem:[#allocation16_spill] sm:$0xff] %v6930_v7  ;;  %v7114_v7 = vld [vmem:[#allocation3 + $0x10] sm:$0xff] }
  0x20   :  { %10580 = vst [vmem:[#allocation17_spill] sm:$0xff] %v6932_v8 }
  0x21   :  { %311 = vadd.xlane.f32.xlu0 %v310_v24  ;;  %10581 = vst [vmem:[#allocation18_spill] sm:$0xff] %v6934_v15  ;;  %v250_v24 = vadd.f32 %v6932_v8, %v6926_v63  ;;  %v7094_v63 = vld [vmem:[#allocation3 + $0x218] sm:$0xff] }
  0x22   :  { %215 = vadd.xlane.f32.xlu2 %v214_v26  ;;  %10582 = vst [vmem:[#allocation19_spill] sm:$0xff] %v6936_v16  ;;  %v6944_v26 = vld [vmem:[#allocation3 + $0x270] sm:$0xff] }
  0x23   :  { %314 = vadd.xlane.f32.xlu1 %v313_v25  ;;  %v253_v25 = vadd.f32 %v6936_v16, %v6934_v15  ;;  %10583 = vst [vmem:[#allocation20_spill] sm:$0xff] %v6944_v26  ;;  %v7096_v15 = vld [vmem:[#allocation3] sm:$0xff] }
  0x24   :  { %10634 = vst [vmem:[#allocation71_spill] sm:$0xff] %v7094_v63  ;;  %v7112_v16 = vld [vmem:[#allocation3 + $0x100] sm:$0xff] }
  0x25   :  { %10635 = vst [vmem:[#allocation72_spill] sm:$0xff] %v7096_v15 }
  0x26   :  { %10639 = vst [vmem:[#allocation76_spill] sm:$0xff] %v7112_v16 }
  0x27   :  { %10640 = vst [vmem:[#allocation77_spill] sm:$0xff] %v7114_v7 }
  0x29   :  { %218 = vadd.xlane.f32.xlu0 %v217_v33  ;;  %v6946_v33 = vld [vmem:[#allocation3 + $0x260] sm:$0xff] }
  0x2a   :  { %266 = vadd.xlane.f32.xlu2 %v265_v35  ;;  %10584 = vst [vmem:[#allocation21_spill] sm:$0xff] %v6946_v33  ;;  %v6950_v35 = vld [vmem:[#allocation3 + $0x278] sm:$0xff] }
  0x2b   :  { %263 = vadd.xlane.f32.xlu1 %v262_v34  ;;  %v6948_v34 = vld [vmem:[#allocation3 + $0x268] sm:$0xff]  ;;  %10586 = vst [vmem:[#allocation23_spill] sm:$0xff] %v6950_v35 }
  0x2c   :  { %10585 = vst [vmem:[#allocation22_spill] sm:$0xff] %v6948_v34 }
  0x31   :  { %305 = vadd.xlane.f32.xlu0 %v304_v42  ;;  %v6952_v42 = vld [vmem:[#allocation3 + $0x340] sm:$0xff] }
  0x32   :  { %209 = vadd.xlane.f32.xlu2 %v208_v44  ;;  %10587 = vst [vmem:[#allocation24_spill] sm:$0xff] %v6952_v42  ;;  %v292_v44 = vadd.f32 %v6948_v34, %v6946_v33  ;;  %v6986_v33 = vld [vmem:[#allocation3 + $0x248] sm:$0xff]  ;;  %v394_v34 = vlaneseq }
  0x33   :  { %308 = vadd.xlane.f32.xlu1 %v307_v43  ;;  %v6954_v43 = vld [vmem:[#allocation3 + $0x348] sm:$0xff]  ;;  %10598 = vst [vmem:[#allocation35_spill] sm:$0xff] %v6986_v33 }
  0x34   :  { %10588 = vst [vmem:[#allocation25_spill] sm:$0xff] %v6954_v43 }
  0x39   :  { %212 = vadd.xlane.f32.xlu0 %v211_v51  ;;  %v295_v51 = vadd.f32 %v6950_v35, %v6944_v26  ;;  %v6982_v26 = vld [vmem:[#allocation3 + $0x168] sm:$0xff]  ;;  %v6988_v35 = vld [vmem:[#allocation3 + $0x170] sm:$0xff] }
  0x3a   :  { %260 = vadd.xlane.f32.xlu2 %v259_v53  ;;  %v6962_v53 = vld [vmem:[#allocation3 + $0x350] sm:$0xff]  ;;  %10596 = vst [vmem:[#allocation33_spill] sm:$0xff] %v6982_v26 }
  0x3b   :  { %257 = vadd.xlane.f32.xlu1 %v256_v52  ;;  %v334_v52 = vadd.f32 %v6954_v43, %v6952_v42  ;;  %10589 = vst [vmem:[#allocation26_spill] sm:$0xff] %v6962_v53  ;;  %v6984_v42 = vld [vmem:[#allocation3 + $0x240] sm:$0xff]  ;;  %v7092_v43 = vld [vmem:[#allocation3 + $0x208] sm:$0xff] }
  0x3c   :  { %10597 = vst [vmem:[#allocation34_spill] sm:$0xff] %v6984_v42 }
  0x3d   :  { %10599 = vst [vmem:[#allocation36_spill] sm:$0xff] %v6988_v35 }
  0x3e   :  { %10633 = vst [vmem:[#allocation70_spill] sm:$0xff] %v7092_v43 }
  0x41   :  { %299 = vadd.xlane.f32.xlu0 %v298_v60  ;;  %v6964_v60 = vld [vmem:[#allocation3 + $0x358] sm:$0xff] }
  0x42   :  { %203 = vadd.xlane.f32.xlu2 %v202_v62  ;;  %10590 = vst [vmem:[#allocation27_spill] sm:$0xff] %v6964_v60  ;;  %v6968_v62 = vld [vmem:[#allocation3 + $0x78] sm:$0xff] }
  0x43   :  { %302 = vadd.xlane.f32.xlu1 %v301_v61  ;;  %v6966_v61 = vld [vmem:[#allocation3 + $0x70] sm:$0xff]  ;;  %10592 = vst [vmem:[#allocation29_spill] sm:$0xff] %v6968_v62 }
  0x44   :  { %10591 = vst [vmem:[#allocation28_spill] sm:$0xff] %v6966_v61 }
  0x49   :  { %206 = vadd.xlane.f32.xlu0 %v205_v17  ;;  %v6970_v17 = vld [vmem:[#allocation3 + $0x60] sm:$0xff] }
  0x4a   :  { %254 = vadd.xlane.f32.xlu2 %v253_v25  ;;  %10593 = vst [vmem:[#allocation30_spill] sm:$0xff] %v6970_v17  ;;  %v337_v25 = vadd.f32 %v6964_v60, %v6962_v53  ;;  %v6990_v53 = vld [vmem:[#allocation3 + $0x178] sm:$0xff]  ;;  %v7006_v60 = vld [vmem:[#allocation3 + $0x320] sm:$0xff] }
  0x4b   :  { %251 = vadd.xlane.f32.xlu1 %v250_v24  ;;  %v6972_v24 = vld [vmem:[#allocation3 + $0x68] sm:$0xff]  ;;  %10600 = vst [vmem:[#allocation37_spill] sm:$0xff] %v6990_v53 }
  0x4c   :  { %10594 = vst [vmem:[#allocation31_spill] sm:$0xff] %v6972_v24 }
  0x4d   :  { %10605 = vst [vmem:[#allocation42_spill] sm:$0xff] %v7006_v60 }
  0x51   :  { %293 = vadd.xlane.f32.xlu0 %v292_v44  ;;  %v199_v44 = vadd.f32 %v6968_v62, %v6966_v61  ;;  %v7004_v62 = vld [vmem:[#allocation3 + $0x338] sm:$0xff] }
  0x52   :  { %335 = vadd.xlane.f32.xlu2 %v334_v52  ;;  %v6980_v52 = vld [vmem:[#allocation3 + $0x160] sm:$0xff]  ;;  %10604 = vst [vmem:[#allocation41_spill] sm:$0xff] %v7004_v62 }
  0x53   :  { %296 = vadd.xlane.f32.xlu1 %v295_v51  ;;  %v196_v51 = vadd.f32 %v6972_v24, %v6970_v17  ;;  %10595 = vst [vmem:[#allocation32_spill] sm:$0xff] %v6980_v52  ;;  %v244_v61 = vadd.f32 %v6982_v26, %v6980_v52  ;;  %v7000_v17 = vld [vmem:[#allocation3 + $0x258] sm:$0xff]  ;;  %v7002_v24 = vld [vmem:[#allocation3 + $0x330] sm:$0xff]  ;;  %v7008_v52 = vld [vmem:[#allocation3 + $0x328] sm:$0xff] }
  0x54   :  { %10602 = vst [vmem:[#allocation39_spill] sm:$0xff] %v7000_v17  ;;  %v7024_v26 = vld [vmem:[#allocation3 + $0x50] sm:$0xff] }
  0x55   :  { %10603 = vst [vmem:[#allocation40_spill] sm:$0xff] %v7002_v24 }
  0x56   :  { %10606 = vst [vmem:[#allocation43_spill] sm:$0xff] %v7008_v52 }
  0x57   :  { %10611 = vst [vmem:[#allocation48_spill] sm:$0xff] %v7024_v26 }
  0x59   :  { %338 = vadd.xlane.f32.xlu0 %v337_v25  ;;  %v286_v25 = vadd.f32 %v6986_v33, %v6984_v42  ;;  %v7022_v33 = vld [vmem:[#allocation3 + $0x148] sm:$0xff] }
  0x5a   :  { %200 = vadd.xlane.f32.xlu2 %v199_v44  ;;  %v247_v44 = vadd.f32 %v6990_v53, %v6988_v35  ;;  %v7018_v35 = vld [vmem:[#allocation3 + $0x40] sm:$0xff]  ;;  %v7020_v53 = vld [vmem:[#allocation3 + $0x48] sm:$0xff]  ;;  %10610 = vst [vmem:[#allocation47_spill] sm:$0xff] %v7022_v33 }
  0x5b   :  { %197 = vadd.xlane.f32.xlu1 %v196_v51  ;;  %v6998_v51 = vld [vmem:[#allocation3 + $0x250] sm:$0xff]  ;;  %10608 = vst [vmem:[#allocation45_spill] sm:$0xff] %v7018_v35 }
  0x5c   :  { %10601 = vst [vmem:[#allocation38_spill] sm:$0xff] %v6998_v51  ;;  %v289_v42 = vadd.f32 %v7000_v17, %v6998_v51  ;;  %v7026_v51 = vld [vmem:[#allocation3 + $0x58] sm:$0xff]  ;;  %v7042_v17 = vld [vmem:[#allocation3 + $0x220] sm:$0xff] }
  0x5d   :  { %10609 = vst [vmem:[#allocation46_spill] sm:$0xff] %v7020_v53 }
  0x5e   :  { %10612 = vst [vmem:[#allocation49_spill] sm:$0xff] %v7026_v51 }
  0x5f   :  { %10617 = vst [vmem:[#allocation54_spill] sm:$0xff] %v7042_v17 }
  0x61   :  { %245 = vadd.xlane.f32.xlu0 %v244_v61  ;;  %v331_v61 = vadd.f32 %v7004_v62, %v7002_v24  ;;  %v190_v24 = vadd.f32 %v7020_v53, %v7018_v35  ;;  %v7040_v62 = vld [vmem:[#allocation3 + $0x238] sm:$0xff]  ;;  %v7044_v35 = vld [vmem:[#allocation3 + $0x228] sm:$0xff]  ;;  %v7060_v53 = vld [vmem:[#allocation3 + $0x20] sm:$0xff] }
  0x62   :  { %287 = vadd.xlane.f32.xlu2 %v286_v25  ;;  %v328_v25 = vadd.f32 %v7008_v52, %v7006_v60  ;;  %v7036_v60 = vld [vmem:[#allocation3 + $0x150] sm:$0xff]  ;;  %v7038_v52 = vld [vmem:[#allocation3 + $0x158] sm:$0xff]  ;;  %10616 = vst [vmem:[#allocation53_spill] sm:$0xff] %v7040_v62 }
  0x63   :  { %248 = vadd.xlane.f32.xlu1 %v247_v44  ;;  %v7016_v44 = vld [vmem:[#allocation3 + $0x140] sm:$0xff]  ;;  %10614 = vst [vmem:[#allocation51_spill] sm:$0xff] %v7036_v60 }
  0x64   :  { %10607 = vst [vmem:[#allocation44_spill] sm:$0xff] %v7016_v44 }
  0x65   :  { %10615 = vst [vmem:[#allocation52_spill] sm:$0xff] %v7038_v52 }
  0x66   :  { %10618 = vst [vmem:[#allocation55_spill] sm:$0xff] %v7044_v35 }
  0x67   :  { %10623 = vst [vmem:[#allocation60_spill] sm:$0xff] %v7060_v53 }
  0x69   :  { %290 = vadd.xlane.f32.xlu0 %v289_v42  ;;  %v238_v42 = vadd.f32 %v7022_v33, %v7016_v44  ;;  %v241_v44 = vadd.f32 %v7038_v52, %v7036_v60  ;;  %v7058_v33 = vld [vmem:[#allocation3 + $0x318] sm:$0xff]  ;;  %v7062_v60 = vld [vmem:[#allocation3 + $0x28] sm:$0xff]  ;;  %v7078_v52 = vld [vmem:[#allocation3 + $0x130] sm:$0xff] }
  0x6a   :  { %332 = vadd.xlane.f32.xlu2 %v331_v61  ;;  %v193_v61 = vadd.f32 %v7026_v51, %v7024_v26  ;;  %v7054_v26 = vld [vmem:[#allocation3 + $0x300] sm:$0xff]  ;;  %v7056_v51 = vld [vmem:[#allocation3 + $0x308] sm:$0xff]  ;;  %10622 = vst [vmem:[#allocation59_spill] sm:$0xff] %v7058_v33 }
  0x6b   :  { %329 = vadd.xlane.f32.xlu1 %v328_v25  ;;  %v7034_v25 = vld [vmem:[#allocation3 + $0x230] sm:$0xff]  ;;  %10620 = vst [vmem:[#allocation57_spill] sm:$0xff] %v7054_v26 }
  0x6c   :  { %10613 = vst [vmem:[#allocation50_spill] sm:$0xff] %v7034_v25 }
  0x6d   :  { %10621 = vst [vmem:[#allocation58_spill] sm:$0xff] %v7056_v51 }
  0x6e   :  { %10624 = vst [vmem:[#allocation61_spill] sm:$0xff] %v7062_v60 }
  0x6f   :  { %10629 = vst [vmem:[#allocation66_spill] sm:$0xff] %v7078_v52 }
  0x71   :  { %191 = vadd.xlane.f32.xlu0 %v190_v24  ;;  %v283_v24 = vadd.f32 %v7040_v62, %v7034_v25  ;;  %v322_v25 = vadd.f32 %v7056_v51, %v7054_v26  ;;  %v7076_v62 = vld [vmem:[#allocation3 + $0x128] sm:$0xff]  ;;  %v7080_v26 = vld [vmem:[#allocation3 + $0x138] sm:$0xff] }
  0x72   :  { %239 = vadd.xlane.f32.xlu2 %v238_v42  ;;  %v280_v42 = vadd.f32 %v7044_v35, %v7042_v17  ;;  %v7072_v17 = vld [vmem:[#allocation3 + $0x30] sm:$0xff]  ;;  %v7074_v35 = vld [vmem:[#allocation3 + $0x38] sm:$0xff]  ;;  %10628 = vst [vmem:[#allocation65_spill] sm:$0xff] %v7076_v62 }
  0x73   :  { %194 = vadd.xlane.f32.xlu1 %v193_v61  ;;  %v7052_v61 = vld [vmem:[#allocation3 + $0x310] sm:$0xff]  ;;  %10626 = vst [vmem:[#allocation63_spill] sm:$0xff] %v7072_v17 }
  0x74   :  { %10619 = vst [vmem:[#allocation56_spill] sm:$0xff] %v7052_v61 }
  0x75   :  { %10627 = vst [vmem:[#allocation64_spill] sm:$0xff] %v7074_v35 }
  0x76   :  { %10630 = vst [vmem:[#allocation67_spill] sm:$0xff] %v7080_v26 }
  0x79   :  { %242 = vadd.xlane.f32.xlu0 %v241_v44  ;;  %v325_v44 = vadd.f32 %v7058_v33, %v7052_v61 }
  0x7a   :  { %284 = vadd.xlane.f32.xlu2 %v283_v24  ;;  %v184_v24 = vadd.f32 %v7062_v60, %v7060_v53  ;;  %v7088_v53 = vld [vmem:[#allocation3 + $0x210] sm:$0xff]  ;;  %v7090_v60 = vld [vmem:[#allocation3 + $0x200] sm:$0xff] }
  0x7b   :  { %281 = vadd.xlane.f32.xlu1 %v280_v42  ;;  %v7070_v42 = vld [vmem:[#allocation3 + $0x120] sm:$0xff]  ;;  %10631 = vst [vmem:[#allocation68_spill] sm:$0xff] %v7088_v53 }
  0x7c   :  { %10625 = vst [vmem:[#allocation62_spill] sm:$0xff] %v7070_v42 }
  0x7d   :  { %10632 = vst [vmem:[#allocation69_spill] sm:$0xff] %v7090_v60 }
  0x81   :  { %323 = vadd.xlane.f32.xlu0 %v322_v25  ;;  %v187_v25 = vadd.f32 %v7074_v35, %v7072_v17  ;;  %v7098_v17 = vld [vmem:[#allocation3 + $0x8] sm:$0xff] }
  0x82   :  { %185 = vadd.xlane.f32.xlu2 %v184_v24  ;;  %v235_v24 = vadd.f32 %v7080_v26, %v7078_v52  ;;  %10636 = vst [vmem:[#allocation73_spill] sm:$0xff] %v7098_v17  ;;  %v395_v52 = vand.u32 127, %v394_v34  ;;  %v7122_v34 = vld [vmem:[#allocation3 + $0x110] sm:$0xff] }
  0x83   :  { %326 = vadd.xlane.f32.xlu1 %v325_v44  ;;  %v232_v44 = vadd.f32 %v7076_v62, %v7070_v42  ;;  %10642 = vst [vmem:[#allocation79_spill] sm:$0xff] %v7122_v34 }
  0x84   :  { %v318_v51 = vpop.xlane.xlu0 %317 }
  0x85   :  { %v270_v61 = vpop.xlane.xlu2 %269  ;;  %v7108_v3 = vmul.f32 0.0051020407, %v318_v51 }
  0x86   :  { %v222_v33 = vpop.xlane.xlu1 %221 }
  0x87   :  { %10638 = vst [vmem:[#allocation75_spill] sm:$0xff] %v7108_v3  ;;  %v7110_v8 = vmul.f32 0.0051020407, %v222_v33 }
  0x89   :  { %188 = vadd.xlane.f32.xlu0 %v187_v25  ;;  %v274_v25 = vadd.f32 %v7092_v43, %v7090_v60  ;;  %v7116_v60 = vld [vmem:[#allocation3 + $0x18] sm:$0xff] }
  0x8a   :  { %236 = vadd.xlane.f32.xlu2 %v235_v24  ;;  %v178_v24 = vadd.f32 %v7098_v17, %v7096_v15  ;;  %v181_v15 = vadd.f32 %v7116_v60, %v7114_v7  ;;  %v491_v7 = vsub.f32 %v6800_v0, %v7108_v3 }
  0x8b   :  { %233 = vadd.xlane.f32.xlu1 %v232_v44  ;;  %v277_v44 = vadd.f32 %v7094_v63, %v7088_v53  ;;  %v7118_v53 = vadd.s32 128, %v395_v52  ;;  %v7120_v63 = vld [vmem:[#allocation3 + $0x108] sm:$0xff]  ;;  %v428_v52 = vsub.f32 %v6812_v6, %v7110_v8 }
  0x8c   :  { %v321_v42 = vpop.xlane.xlu0 %320  ;;  %10641 = vst [vmem:[#allocation78_spill] sm:$0xff] %v7120_v63  ;;  %v226_v17 = vadd.f32 %v7120_v63, %v7112_v16  ;;  %v7153_v63 = vmul.f32 0.0051020407, %v270_v61 }
  0x8d   :  { %v273_v62 = vpop.xlane.xlu2 %272  ;;  %v7106_v26 = vmul.f32 0.0051020407, %v321_v42  ;;  %v7124_v42 = vld [vmem:[#allocation3 + $0x118] sm:$0xff]  ;;  %vm398_vm0 = vcmp.lt.s32.totalorder %v7118_v53, 196 }
  0x8e   :  { %v225_v35 = vpop.xlane.xlu1 %224  ;;  %10643 = vst [vmem:[#allocation80_spill] sm:$0xff] %v7124_v42  ;;  %v229_v43 = vadd.f32 %v7124_v42, %v7122_v34  ;;  %v427_v34 = vsub.f32 %v6810_v5, %v7110_v8 }
  0x8f   :  { %10637 = vst [vmem:[#allocation74_spill] sm:$0xff] %v7106_v26  ;;  %v494_v33 = vsub.f32 %v6820_v10, %v7106_v26  ;;  %v493_v10 = vsub.f32 %v6818_v9, %v7106_v26  ;;  %v7147_v6 = vmul.f32 0.0051020407, %v225_v35  ;;  %v536_v9 = vsel %vm398_vm0, %v428_v52, 0.0 }
  0x90   :  { %v707_v26 = vmul.f32 %v491_v7, %v491_v7  ;;  %v644_v42 = vmul.f32 %v536_v9, %v536_v9  ;;  %v460_v52 = vsub.f32 %v6808_v4, %v7153_v63 }
  0x91   :  { %275 = vadd.xlane.f32.xlu0 %v274_v25  ;;  %v492_v25 = vsub.f32 %v6802_v1, %v7108_v3  ;;  %v7141_v1 = vmul.f32 0.0051020407, %v273_v62  ;;  %v602_v54 = vsel %vm398_vm0, %v494_v33, 0.0  ;;  %v709_v62 = vmul.f32 %v493_v10, %v493_v10 }
  0x92   :  { %179 = vadd.xlane.f32.xlu2 %v178_v24  ;;  %v710_v33 = vmul.f32 %v602_v54, %v602_v54  ;;  %v430_v5 = vsub.f32 %v6828_v14, %v7147_v6  ;;  %v459_v10 = vsub.f32 %v6804_v2, %v7153_v63 }
  0x93   :  { %278 = vadd.xlane.f32.xlu1 %v277_v44  ;;  %v600_v16 = vsel %vm398_vm0, %v492_v25, 0.0  ;;  %v462_v35 = vsub.f32 %v6824_v12, %v7141_v1  ;;  %v643_v25 = vmul.f32 %v427_v34, %v427_v34  ;;  %v461_v54 = vsub.f32 %v6822_v11, %v7141_v1 }
  0x94   :  { %v312_v51 = vpop.xlane.xlu0 %311  ;;  %v708_v0 = vmul.f32 %v600_v16, %v600_v16  ;;  %v429_v16 = vsub.f32 %v6826_v13, %v7147_v6  ;;  %v538_v4 = vsel %vm398_vm0, %v430_v5, 0.0  ;;  %v568_v11 = vsel %vm398_vm0, %v460_v52, 0.0 }
  0x95   :  { %v216_v24 = vpop.xlane.xlu2 %215  ;;  %v570_v14 = vsel %vm398_vm0, %v462_v35, 0.0  ;;  %v765_v34 = vadd.f32 %v644_v42, %v643_v25  ;;  %v646_v9 = vmul.f32 %v538_v4, %v538_v4 }
  0x96   :  { %v315_v44 = vpop.xlane.xlu1 %314  ;;  %v7167_v7 = vmul.f32 0.0051020407, %v216_v24  ;;  %v861_v12 = vadd.f32 %v708_v0, %v707_v26  ;;  %v677_v26 = vmul.f32 %v461_v54, %v461_v54  ;;  %v678_v13 = vmul.f32 %v570_v14, %v570_v14 }
  0x97   :  { %v645_v42 = vmul.f32 %v429_v16, %v429_v16 }
  0x98   :  { %v424_v2 = vsub.f32 %v6846_v23, %v7167_v7  ;;  %v423_v23 = vsub.f32 %v6844_v22, %v7167_v7 }
  0x99   :  { %182 = vadd.xlane.f32.xlu0 %v181_v15 }
  0x9a   :  { %230 = vadd.xlane.f32.xlu2 %v229_v43  ;;  %v864_v43 = vadd.f32 %v710_v33, %v709_v62  ;;  %v675_v33 = vmul.f32 %v459_v10, %v459_v10  ;;  %v532_v16 = vsel %vm398_vm0, %v424_v2, 0.0  ;;  %v639_v22 = vmul.f32 %v423_v23, %v423_v23 }
  0x9b   :  { %227 = vadd.xlane.f32.xlu1 %v226_v17  ;;  %v7163_v17 = vmul.f32 0.0051020407, %v312_v51  ;;  %v7177_v51 = vmul.f32 0.0051020407, %v315_v44  ;;  %v676_v44 = vmul.f32 %v568_v11, %v568_v11 }
  0x9c   :  { %v219_v3 = vpop.xlane.xlu0 %218 }
  0x9d   :  { %v267_v15 = vpop.xlane.xlu2 %266  ;;  %v488_v24 = vsub.f32 %v6838_v19, %v7163_v17  ;;  %v490_v25 = vsub.f32 %v6842_v21, %v7177_v51  ;;  %v487_v5 = vsub.f32 %v6836_v18, %v7163_v17  ;;  %v7189_v52 = vmul.f32 0.0051020407, %v219_v3 }
  0x9e   :  { %v264_v61 = vpop.xlane.xlu1 %263  ;;  %v7195_v54 = vmul.f32 0.0051020407, %v267_v15  ;;  %v813_v14 = vadd.f32 %v676_v44, %v675_v33  ;;  %v489_v21 = vsub.f32 %v6840_v20, %v7177_v51  ;;  %v640_v15 = vmul.f32 %v532_v16, %v532_v16 }
  0x9f   :  { %v596_v19 = vsel %vm398_vm0, %v488_v24, 0.0  ;;  %v7201_v18 = vmul.f32 0.0051020407, %v264_v61  ;;  %v598_v3 = vsel %vm398_vm0, %v490_v25, 0.0  ;;  %v426_v4 = vsub.f32 %v6858_v29, %v7189_v52 }
  0xa0   :  { %v704_v10 = vmul.f32 %v596_v19, %v596_v19  ;;  %v458_v11 = vsub.f32 %v6864_v32, %v7195_v54  ;;  %v705_v20 = vmul.f32 %v489_v21, %v489_v21  ;;  %v706_v61 = vmul.f32 %v598_v3, %v598_v3 }
  0xa1   :  { %862 = vadd.xlane.f32.xlu0 %v861_v12  ;;  %v768_v12 = vadd.f32 %v646_v9, %v645_v42  ;;  %v456_v9 = vsub.f32 %v6860_v30, %v7201_v18  ;;  %v425_v2 = vsub.f32 %v6856_v28, %v7189_v52  ;;  %v759_v44 = vadd.f32 %v640_v15, %v639_v22 }
  0xa2   :  { %766 = vadd.xlane.f32.xlu2 %v765_v34  ;;  %v703_v34 = vmul.f32 %v487_v5, %v487_v5  ;;  %v534_v29 = vsel %vm398_vm0, %v426_v4, 0.0  ;;  %v457_v32 = vsub.f32 %v6862_v31, %v7195_v54  ;;  %v566_v5 = vsel %vm398_vm0, %v458_v11, 0.0 }
  0xa3   :  { %865 = vadd.xlane.f32.xlu1 %v864_v43  ;;  %v816_v43 = vadd.f32 %v678_v13, %v677_v26  ;;  %v455_v30 = vsub.f32 %v6854_v27, %v7201_v18  ;;  %v564_v28 = vsel %vm398_vm0, %v456_v9, 0.0  ;;  %v642_v23 = vmul.f32 %v534_v29, %v534_v29 }
  0xa4   :  { %v306_v62 = vpop.xlane.xlu0 %305  ;;  %v855_v42 = vadd.f32 %v704_v10, %v703_v34  ;;  %v673_v31 = vmul.f32 %v457_v32, %v457_v32 }
  0xa5   :  { %v210_v35 = vpop.xlane.xlu2 %209  ;;  %v7213_v33 = vmul.f32 0.0051020407, %v306_v62  ;;  %v641_v62 = vmul.f32 %v425_v2, %v425_v2  ;;  %v671_v27 = vmul.f32 %v455_v30, %v455_v30 }
  0xa6   :  { %v309_v0 = vpop.xlane.xlu1 %308  ;;  %v7219_v25 = vmul.f32 0.0051020407, %v210_v35  ;;  %v674_v35 = vmul.f32 %v566_v5, %v566_v5 }
  0xa7   :  { %v7225_v19 = vmul.f32 0.0051020407, %v309_v0  ;;  %v672_v0 = vmul.f32 %v564_v28, %v564_v28  ;;  %v762_v34 = vadd.f32 %v642_v23, %v641_v62  ;;  %v483_v22 = vsub.f32 %v6874_v37, %v7213_v33 }
  0xa8   :  { %v420_v16 = vsub.f32 %v6882_v41, %v7219_v25  ;;  %v810_v4 = vadd.f32 %v674_v35, %v673_v31  ;;  %v419_v41 = vsub.f32 %v6880_v40, %v7219_v25 }
  0xa9   :  { %769 = vadd.xlane.f32.xlu0 %v768_v12  ;;  %v484_v12 = vsub.f32 %v6876_v38, %v7213_v33  ;;  %v486_v10 = vsub.f32 %v6878_v39, %v7225_v19  ;;  %v485_v39 = vsub.f32 %v6872_v36, %v7225_v19 }
  0xaa   :  { %817 = vadd.xlane.f32.xlu2 %v816_v43  ;;  %v858_v43 = vadd.f32 %v706_v61, %v705_v20  ;;  %v528_v20 = vsel %vm398_vm0, %v420_v16, 0.0  ;;  %v807_v61 = vadd.f32 %v672_v0, %v671_v27  ;;  %v635_v40 = vmul.f32 %v419_v41, %v419_v41 }
  0xab   :  { %814 = vadd.xlane.f32.xlu1 %v813_v14  ;;  %v592_v38 = vsel %vm398_vm0, %v484_v12, 0.0  ;;  %v594_v37 = vsel %vm398_vm0, %v486_v10, 0.0  ;;  %v701_v36 = vmul.f32 %v485_v39, %v485_v39 }
  0xac   :  { %v213_v26 = vpop.xlane.xlu0 %212  ;;  %v700_v9 = vmul.f32 %v592_v38, %v592_v38 }
  0xad   :  { %v261_v24 = vpop.xlane.xlu2 %260  ;;  %v7237_v15 = vmul.f32 0.0051020407, %v213_v26  ;;  %v699_v26 = vmul.f32 %v483_v22, %v483_v22 }
  0xae   :  { %v258_v13 = vpop.xlane.xlu1 %257  ;;  %v7243_v11 = vmul.f32 0.0051020407, %v261_v24  ;;  %v636_v24 = vmul.f32 %v528_v20, %v528_v20 }
  0xaf   :  { %v422_v2 = vsub.f32 %v6894_v47, %v7237_v15  ;;  %v421_v28 = vsub.f32 %v6892_v46, %v7237_v15 }
  0xb0   :  { %v753_v23 = vadd.f32 %v636_v24, %v635_v40 }
  0xb1   :  { %856 = vadd.xlane.f32.xlu0 %v855_v42  ;;  %v7249_v42 = vmul.f32 0.0051020407, %v258_v13  ;;  %v702_v13 = vmul.f32 %v594_v37, %v594_v37  ;;  %v530_v47 = vsel %vm398_vm0, %v422_v2, 0.0 }
  0xb2   :  { %760 = vadd.xlane.f32.xlu2 %v759_v44  ;;  %v454_v44 = vsub.f32 %v6900_v50, %v7243_v11  ;;  %v453_v50 = vsub.f32 %v6898_v49, %v7243_v11  ;;  %v638_v27 = vmul.f32 %v530_v47, %v530_v47 }
  0xb3   :  { %859 = vadd.xlane.f32.xlu1 %v858_v43  ;;  %v849_v43 = vadd.f32 %v700_v9, %v699_v26  ;;  %v452_v30 = vsub.f32 %v6896_v48, %v7249_v42  ;;  %v852_v12 = vadd.f32 %v702_v13, %v701_v36  ;;  %v451_v48 = vsub.f32 %v6890_v45, %v7249_v42  ;;  %v10645_v36 = vld [vmem:[#allocation16_spill] sm:$0xff] }
  0xb4   :  { %v300_v14 = vpop.xlane.xlu0 %299  ;;  %v562_v35 = vsel %vm398_vm0, %v454_v44, 0.0  ;;  %v669_v49 = vmul.f32 %v453_v50, %v453_v50 }
  0xb5   :  { %v204_v3 = vpop.xlane.xlu2 %203  ;;  %v7261_v62 = vmul.f32 0.0051020407, %v300_v14  ;;  %v560_v46 = vsel %vm398_vm0, %v452_v30, 0.0  ;;  %v637_v14 = vmul.f32 %v421_v28, %v421_v28  ;;  %v670_v0 = vmul.f32 %v562_v35, %v562_v35  ;;  %v10647_v35 = vld [vmem:[#allocation17_spill] sm:$0xff] }
  0xb6   :  { %v303_v21 = vpop.xlane.xlu1 %302  ;;  %v7267_v31 = vmul.f32 0.0051020407, %v204_v3  ;;  %v667_v45 = vmul.f32 %v451_v48, %v451_v48  ;;  %v10648_v48 = vld [vmem:[#allocation15_spill] sm:$0xff] }
  0xb7   :  { %v7273_v16 = vmul.f32 0.0051020407, %v303_v21  ;;  %v480_v3 = vsub.f32 %v6912_v56, %v7261_v62  ;;  %v668_v21 = vmul.f32 %v560_v46, %v560_v46  ;;  %v756_v38 = vadd.f32 %v638_v27, %v637_v14 }
  0xb8   :  { %v479_v20 = vsub.f32 %v6910_v55, %v7261_v62  ;;  %v804_v39 = vadd.f32 %v670_v0, %v669_v49  ;;  %v10649_v0 = vld [vmem:[#allocation18_spill] sm:$0xff] }
  0xb9   :  { %763 = vadd.xlane.f32.xlu0 %v762_v34  ;;  %v416_v34 = vsub.f32 %v6918_v59, %v7267_v31  ;;  %v482_v41 = vsub.f32 %v6914_v57, %v7273_v16  ;;  %v588_v56 = vsel %vm398_vm0, %v480_v3, 0.0  ;;  %v415_v59 = vsub.f32 %v6916_v58, %v7267_v31  ;;  %v10644_v57 = vld [vmem:[#allocation13_spill] sm:$0xff] }
  0xba   :  { %811 = vadd.xlane.f32.xlu2 %v810_v4  ;;  %v801_v9 = vadd.f32 %v668_v21, %v667_v45  ;;  %v481_v40 = vsub.f32 %v10644_v57, %v7273_v16  ;;  %v695_v2 = vmul.f32 %v479_v20, %v479_v20  ;;  %v696_v44 = vmul.f32 %v588_v56, %v588_v56  ;;  %v10653_v57 = vld [vmem:[#allocation25_spill] sm:$0xff] }
  0xbb   :  { %808 = vadd.xlane.f32.xlu1 %v807_v61  ;;  %v524_v26 = vsel %vm398_vm0, %v416_v34, 0.0  ;;  %v590_v55 = vsel %vm398_vm0, %v482_v41, 0.0  ;;  %v631_v58 = vmul.f32 %v415_v59, %v415_v59 }
  0xbc   :  { %v207_v29 = vpop.xlane.xlu0 %206  ;;  %v697_v28 = vmul.f32 %v481_v40, %v481_v40  ;;  %v843_v50 = vadd.f32 %v696_v44, %v695_v2 }
  0xbd   :  { %v255_v5 = vpop.xlane.xlu2 %254  ;;  %v7285_v61 = vmul.f32 0.0051020407, %v207_v29  ;;  %v632_v29 = vmul.f32 %v524_v26, %v524_v26  ;;  %v10652_v26 = vld [vmem:[#allocation22_spill] sm:$0xff] }
  0xbe   :  { %v252_v32 = vpop.xlane.xlu1 %251  ;;  %v7291_v37 = vmul.f32 0.0051020407, %v255_v5  ;;  %v10646_v5 = vld [vmem:[#allocation19_spill] sm:$0xff] }
  0xbf   :  { %v7297_v24 = vmul.f32 0.0051020407, %v252_v32  ;;  %v418_v13 = vsub.f32 %v10645_v36, %v7285_v61  ;;  %v698_v32 = vmul.f32 %v590_v55, %v590_v55  ;;  %v417_v46 = vsub.f32 %v10648_v48, %v7285_v61  ;;  %v10654_v36 = vld [vmem:[#allocation23_spill] sm:$0xff] }
  0xc0   :  { %v747_v27 = vadd.f32 %v632_v29, %v631_v58  ;;  %v449_v3 = vsub.f32 %v10649_v0, %v7291_v37 }
  0xc1   :  { %850 = vadd.xlane.f32.xlu0 %v849_v43  ;;  %v450_v43 = vsub.f32 %v10646_v5, %v7291_v37  ;;  %v526_v49 = vsel %vm398_vm0, %v418_v13, 0.0  ;;  %v846_v21 = vadd.f32 %v698_v32, %v697_v28  ;;  %v10655_v5 = vld [vmem:[#allocation21_spill] sm:$0xff] }
  0xc2   :  { %754 = vadd.xlane.f32.xlu2 %v753_v23  ;;  %v634_v56 = vmul.f32 %v526_v49, %v526_v49  ;;  %v665_v59 = vmul.f32 %v449_v3, %v449_v3  ;;  %v10659_v49 = vld [vmem:[#allocation20_spill] sm:$0xff] }
  0xc3   :  { %853 = vadd.xlane.f32.xlu1 %v852_v12  ;;  %v448_v12 = vsub.f32 %v10647_v35, %v7297_v24  ;;  %v558_v45 = vsel %vm398_vm0, %v450_v43, 0.0  ;;  %v10657_v35 = vld [vmem:[#allocation24_spill] sm:$0xff] }
  0xc4   :  { %v294_v10 = vpop.xlane.xlu0 %293 }
  0xc5   :  { %v336_v4 = vpop.xlane.xlu2 %335  ;;  %v7309_v14 = vmul.f32 0.0051020407, %v294_v10  ;;  %v556_v10 = vsel %vm398_vm0, %v448_v12, 0.0 }
  0xc6   :  { %v297_v22 = vpop.xlane.xlu1 %296  ;;  %v7315_v34 = vmul.f32 0.0051020407, %v336_v4  ;;  %v666_v4 = vmul.f32 %v558_v45, %v558_v45 }
  0xc7   :  { %v7321_v20 = vmul.f32 0.0051020407, %v297_v22  ;;  %v664_v22 = vmul.f32 %v556_v10, %v556_v10  ;;  %v475_v43 = vsub.f32 %v10655_v5, %v7309_v14 }
  0xc8   :  { %10650 = vst [vmem:[#allocation13_spill] sm:$0xff] %v7315_v34  ;;  %v504_v40 = vsub.f32 %v10653_v57, %v7315_v34  ;;  %v798_v32 = vadd.f32 %v666_v4, %v665_v59  ;;  %v503_v12 = vsub.f32 %v10657_v35, %v7315_v34 }
  0xc9   :  { %757 = vadd.xlane.f32.xlu0 %v756_v38  ;;  %v10651_v38 = vld [vmem:[#allocation14_spill] sm:$0xff]  ;;  %v478_v13 = vsub.f32 %v10654_v36, %v7321_v20  ;;  %v477_v0 = vsub.f32 %v10659_v49, %v7321_v20  ;;  %v691_v45 = vmul.f32 %v475_v43, %v475_v43  ;;  %v10666_v43 = vld [vmem:[#allocation28_spill] sm:$0xff] }
  0xca   :  { %805 = vadd.xlane.f32.xlu2 %v804_v39  ;;  %v447_v41 = vsub.f32 %v10651_v38, %v7297_v24  ;;  %v633_v39 = vmul.f32 %v417_v46, %v417_v46  ;;  %v612_v46 = vsel %vm398_vm0, %v504_v40, 0.0  ;;  %v719_v38 = vmul.f32 %v503_v12, %v503_v12  ;;  %v10663_v40 = vld [vmem:[#allocation31_spill] sm:$0xff] }
  0xcb   :  { %802 = vadd.xlane.f32.xlu1 %v801_v9  ;;  %v476_v9 = vsub.f32 %v10652_v26, %v7309_v14  ;;  %v693_v4 = vmul.f32 %v477_v0, %v477_v0 }
  0xcc   :  { %v339_v30 = vpop.xlane.xlu0 %338  ;;  %v663_v2 = vmul.f32 %v447_v41, %v447_v41  ;;  %v750_v29 = vadd.f32 %v634_v56, %v633_v39  ;;  %v10661_v41 = vld [vmem:[#allocation27_spill] sm:$0xff]  ;;  %v10662_v39 = vld [vmem:[#allocation29_spill] sm:$0xff] }
  0xcd   :  { %v201_v23 = vpop.xlane.xlu2 %200  ;;  %v7333_v28 = vmul.f32 0.0051020407, %v339_v30  ;;  %v586_v30 = vsel %vm398_vm0, %v478_v13, 0.0 }
  0xce   :  { %v198_v47 = vpop.xlane.xlu1 %197  ;;  %v7339_v48 = vmul.f32 0.0051020407, %v201_v23  ;;  %v720_v23 = vmul.f32 %v612_v46, %v612_v46  ;;  %v10668_v46 = vld [vmem:[#allocation30_spill] sm:$0xff] }
  0xcf   :  { %10656 = vst [vmem:[#allocation16_spill] sm:$0xff] %v7333_v28  ;;  %v7345_v3 = vmul.f32 0.0051020407, %v198_v47  ;;  %v506_v10 = vsub.f32 %v10661_v41, %v7333_v28  ;;  %v694_v47 = vmul.f32 %v586_v30, %v586_v30 }
  0xd0   :  { %10658 = vst [vmem:[#allocation19_spill] sm:$0xff] %v7339_v48  ;;  %v414_v56 = vsub.f32 %v10662_v39, %v7339_v48  ;;  %v879_v13 = vadd.f32 %v720_v23, %v719_v38  ;;  %v10671_v23 = vld [vmem:[#allocation35_spill] sm:$0xff] }
  0xd1   :  { %844 = vadd.xlane.f32.xlu0 %v843_v50  ;;  %v584_v50 = vsel %vm398_vm0, %v476_v9, 0.0  ;;  %10660 = vst [vmem:[#allocation17_spill] sm:$0xff] %v7345_v3  ;;  %v614_v5 = vsel %vm398_vm0, %v506_v10, 0.0  ;;  %v840_v12 = vadd.f32 %v694_v47, %v693_v4 }
  0xd2   :  { %748 = vadd.xlane.f32.xlu2 %v747_v27  ;;  %v795_v27 = vadd.f32 %v664_v22, %v663_v2  ;;  %v412_v2 = vsub.f32 %v10663_v40, %v7345_v3  ;;  %v10664_v22 = vld [vmem:[#allocation26_spill] sm:$0xff]  ;;  %v522_v35 = vsel %vm398_vm0, %v414_v56, 0.0  ;;  %v722_v30 = vmul.f32 %v614_v5, %v614_v5 }
  0xd3   :  { %847 = vadd.xlane.f32.xlu1 %v846_v21  ;;  %v692_v21 = vmul.f32 %v584_v50, %v584_v50 }
  0xd4   :  { %v246_v55 = vpop.xlane.xlu0 %245 }
  0xd5   :  { %v288_v44 = vpop.xlane.xlu2 %287  ;;  %v837_v57 = vadd.f32 %v692_v21, %v691_v45  ;;  %v7357_v36 = vmul.f32 0.0051020407, %v246_v55  ;;  %v520_v55 = vsel %vm398_vm0, %v412_v2, 0.0  ;;  %v10670_v21 = vld [vmem:[#allocation33_spill] sm:$0xff]  ;;  %v10673_v2 = vld [vmem:[#allocation32_spill] sm:$0xff] }
  0xd6   :  { %v249_v58 = vpop.xlane.xlu1 %248  ;;  %v7363_v50 = vmul.f32 0.0051020407, %v288_v44  ;;  %v630_v44 = vmul.f32 %v522_v35, %v522_v35 }
  0xd7   :  { %10665 = vst [vmem:[#allocation15_spill] sm:$0xff] %v7357_v36  ;;  %v7369_v49 = vmul.f32 0.0051020407, %v249_v58  ;;  %v444_v38 = vsub.f32 %v10670_v21, %v7357_v36  ;;  %v628_v58 = vmul.f32 %v520_v55, %v520_v55  ;;  %v10679_v21 = vld [vmem:[#allocation39_spill] sm:$0xff] }
  0xd8   :  { %10667 = vst [vmem:[#allocation18_spill] sm:$0xff] %v7363_v50  ;;  %v472_v41 = vsub.f32 %v10671_v23, %v7363_v50  ;;  %v10680_v23 = vld [vmem:[#allocation41_spill] sm:$0xff] }
  0xd9   :  { %751 = vadd.xlane.f32.xlu0 %v750_v29  ;;  %v505_v29 = vsub.f32 %v10664_v22, %v7333_v28  ;;  %10669 = vst [vmem:[#allocation14_spill] sm:$0xff] %v7369_v49  ;;  %v443_v22 = vsub.f32 %v10673_v2, %v7357_v36  ;;  %v552_v5 = vsel %vm398_vm0, %v444_v38, 0.0 }
  0xda   :  { %799 = vadd.xlane.f32.xlu2 %v798_v32  ;;  %v413_v32 = vsub.f32 %v10666_v43, %v7339_v48  ;;  %v10675_v43 = vld [vmem:[#allocation34_spill] sm:$0xff] }
  0xdb   :  { %796 = vadd.xlane.f32.xlu1 %v795_v27  ;;  %v411_v27 = vsub.f32 %v10668_v46, %v7345_v3  ;;  %v721_v0 = vmul.f32 %v505_v29, %v505_v29 }
  0xdc   :  { %v291_v59 = vpop.xlane.xlu0 %290  ;;  %v629_v45 = vmul.f32 %v413_v32, %v413_v32  ;;  %v471_v32 = vsub.f32 %v10675_v43, %v7363_v50 }
  0xdd   :  { %v333_v26 = vpop.xlane.xlu2 %332  ;;  %v627_v39 = vmul.f32 %v411_v27, %v411_v27  ;;  %v882_v47 = vadd.f32 %v722_v30, %v721_v0  ;;  %v7381_v29 = vmul.f32 0.0051020407, %v291_v59  ;;  %v10677_v27 = vld [vmem:[#allocation36_spill] sm:$0xff]  ;;  %v659_v30 = vmul.f32 %v443_v22, %v443_v22 }
  0xde   :  { %v330_v9 = vpop.xlane.xlu1 %329  ;;  %v7387_v35 = vmul.f32 0.0051020407, %v333_v26  ;;  %v445_v55 = vsub.f32 %v10677_v27, %v7369_v49 }
  0xdf   :  { %10674 = vst [vmem:[#allocation22_spill] sm:$0xff] %v7381_v29  ;;  %v741_v46 = vadd.f32 %v628_v58, %v627_v39  ;;  %v7393_v0 = vmul.f32 0.0051020407, %v330_v9  ;;  %v474_v38 = vsub.f32 %v10679_v21, %v7381_v29 }
  0xe0   :  { %10676 = vst [vmem:[#allocation25_spill] sm:$0xff] %v7387_v35  ;;  %v661_v58 = vmul.f32 %v445_v55, %v445_v55 }
  0xe1   :  { %838 = vadd.xlane.f32.xlu0 %v837_v57  ;;  %v10672_v57 = vld [vmem:[#allocation37_spill] sm:$0xff]  ;;  %10678 = vst [vmem:[#allocation23_spill] sm:$0xff] %v7393_v0 }
  0xe2   :  { %880 = vadd.xlane.f32.xlu2 %v879_v13  ;;  %v446_v40 = vsub.f32 %v10672_v57, %v7369_v49  ;;  %v744_v13 = vadd.f32 %v630_v44, %v629_v45  ;;  %v660_v45 = vmul.f32 %v552_v5, %v552_v5  ;;  %v687_v44 = vmul.f32 %v471_v32, %v471_v32  ;;  %v10682_v5 = vld [vmem:[#allocation38_spill] sm:$0xff] }
  0xe3   :  { %841 = vadd.xlane.f32.xlu1 %v840_v12  ;;  %v580_v12 = vsel %vm398_vm0, %v472_v41, 0.0  ;;  %v502_v41 = vsub.f32 %v10680_v23, %v7387_v35 }
  0xe4   :  { %v192_v10 = vpop.xlane.xlu0 %191  ;;  %v554_v59 = vsel %vm398_vm0, %v446_v40, 0.0  ;;  %v688_v26 = vmul.f32 %v580_v12, %v580_v12  ;;  %v789_v2 = vadd.f32 %v660_v45, %v659_v30  ;;  %v10681_v40 = vld [vmem:[#allocation43_spill] sm:$0xff]  ;;  %v582_v12 = vsel %vm398_vm0, %v474_v38, 0.0  ;;  %v10686_v45 = vld [vmem:[#allocation42_spill] sm:$0xff] }
  0xe5   :  { %v240_v56 = vpop.xlane.xlu2 %239  ;;  %v662_v9 = vmul.f32 %v554_v59, %v554_v59  ;;  %v500_v22 = vsub.f32 %v10681_v40, %v7393_v0  ;;  %v7405_v43 = vmul.f32 0.0051020407, %v192_v10  ;;  %v610_v59 = vsel %vm398_vm0, %v502_v41, 0.0  ;;  %v10688_v40 = vld [vmem:[#allocation46_spill] sm:$0xff]  ;;  %v10689_v41 = vld [vmem:[#allocation47_spill] sm:$0xff] }
  0xe6   :  { %v195_v4 = vpop.xlane.xlu1 %194  ;;  %v831_v32 = vadd.f32 %v688_v26, %v687_v44  ;;  %v7411_v55 = vmul.f32 0.0051020407, %v240_v56  ;;  %v499_v21 = vsub.f32 %v10686_v45, %v7393_v0  ;;  %v690_v26 = vmul.f32 %v582_v12, %v582_v12  ;;  %v10691_v12 = vld [vmem:[#allocation45_spill] sm:$0xff] }
  0xe7   :  { %10683 = vst [vmem:[#allocation21_spill] sm:$0xff] %v7405_v43  ;;  %v792_v30 = vadd.f32 %v662_v9, %v661_v58  ;;  %v7417_v23 = vmul.f32 0.0051020407, %v195_v4  ;;  %v608_v10 = vsel %vm398_vm0, %v500_v22, 0.0  ;;  %v718_v56 = vmul.f32 %v610_v59, %v610_v59  ;;  %v10690_v22 = vld [vmem:[#allocation49_spill] sm:$0xff] }
  0xe8   :  { %10685 = vst [vmem:[#allocation24_spill] sm:$0xff] %v7411_v55  ;;  %v440_v58 = vsub.f32 %v10689_v41, %v7411_v55  ;;  %v716_v4 = vmul.f32 %v608_v10, %v608_v10 }
  0xe9   :  { %883 = vadd.xlane.f32.xlu0 %v882_v47  ;;  %10687 = vst [vmem:[#allocation20_spill] sm:$0xff] %v7417_v23 }
  0xea   :  { %745 = vadd.xlane.f32.xlu2 %v744_v13  ;;  %v473_v13 = vsub.f32 %v10682_v5, %v7381_v29  ;;  %v408_v5 = vsub.f32 %v10688_v40, %v7405_v43  ;;  %v10693_v40 = vld [vmem:[#allocation44_spill] sm:$0xff]  ;;  %v548_v10 = vsel %vm398_vm0, %v440_v58, 0.0  ;;  %v10698_v58 = vld [vmem:[#allocation53_spill] sm:$0xff] }
  0xeb   :  { %742 = vadd.xlane.f32.xlu1 %v741_v46  ;;  %v10684_v46 = vld [vmem:[#allocation40_spill] sm:$0xff]  ;;  %v439_v41 = vsub.f32 %v10693_v40, %v7411_v55 }
  0xec   :  { %v243_v39 = vpop.xlane.xlu0 %242  ;;  %v501_v27 = vsub.f32 %v10684_v46, %v7387_v35  ;;  %v689_v44 = vmul.f32 %v473_v13, %v473_v13  ;;  %v715_v46 = vmul.f32 %v499_v21, %v499_v21  ;;  %v410_v13 = vsub.f32 %v10690_v22, %v7417_v23 }
  0xed   :  { %v285_v57 = vpop.xlane.xlu2 %284 }
  0xee   :  { %v282_v47 = vpop.xlane.xlu1 %281  ;;  %v717_v38 = vmul.f32 %v501_v27, %v501_v27  ;;  %v834_v35 = vadd.f32 %v690_v26, %v689_v44  ;;  %v7429_v27 = vmul.f32 0.0051020407, %v243_v39  ;;  %v7435_v21 = vmul.f32 0.0051020407, %v285_v57  ;;  %v10695_v26 = vld [vmem:[#allocation48_spill] sm:$0xff] }
  0xef   :  { %v873_v44 = vadd.f32 %v716_v4, %v715_v46  ;;  %v409_v22 = vsub.f32 %v10695_v26, %v7417_v23  ;;  %v7441_v0 = vmul.f32 0.0051020407, %v282_v47  ;;  %v518_v39 = vsel %vm398_vm0, %v410_v13, 0.0  ;;  %v10699_v13 = vld [vmem:[#allocation55_spill] sm:$0xff] }
  0xf0   :  { %10692 = vst [vmem:[#allocation27_spill] sm:$0xff] %v7429_v27  ;;  %v876_v59 = vadd.f32 %v718_v56, %v717_v38  ;;  %v656_v57 = vmul.f32 %v548_v10, %v548_v10  ;;  %v470_v46 = vsub.f32 %v10698_v58, %v7435_v21  ;;  %v626_v47 = vmul.f32 %v518_v39, %v518_v39 }
  0xf1   :  { %790 = vadd.xlane.f32.xlu0 %v789_v2  ;;  %10694 = vst [vmem:[#allocation29_spill] sm:$0xff] %v7435_v21  ;;  %v625_v26 = vmul.f32 %v409_v22, %v409_v22 }
  0xf2   :  { %832 = vadd.xlane.f32.xlu2 %v831_v32  ;;  %v407_v32 = vsub.f32 %v10691_v12, %v7405_v43  ;;  %10696 = vst [vmem:[#allocation31_spill] sm:$0xff] %v7441_v0  ;;  %v10697_v12 = vld [vmem:[#allocation52_spill] sm:$0xff]  ;;  %v578_v39 = vsel %vm398_vm0, %v470_v46, 0.0  ;;  %v10707_v46 = vld [vmem:[#allocation61_spill] sm:$0xff] }
  0xf3   :  { %793 = vadd.xlane.f32.xlu1 %v792_v30  ;;  %v516_v30 = vsel %vm398_vm0, %v408_v5, 0.0  ;;  %v655_v5 = vmul.f32 %v439_v41, %v439_v41  ;;  %v442_v40 = vsub.f32 %v10697_v12, %v7429_v27  ;;  %v10702_v12 = vld [vmem:[#allocation50_spill] sm:$0xff] }
  0xf4   :  { %v324_v9 = vpop.xlane.xlu0 %323  ;;  %v623_v38 = vmul.f32 %v407_v32, %v407_v32  ;;  %v624_v56 = vmul.f32 %v516_v30, %v516_v30  ;;  %v468_v32 = vsub.f32 %v10699_v13, %v7441_v0  ;;  %v10700_v30 = vld [vmem:[#allocation51_spill] sm:$0xff]  ;;  %v469_v58 = vsub.f32 %v10702_v12, %v7435_v21 }
  0xf5   :  { %v186_v2 = vpop.xlane.xlu2 %185  ;;  %v7453_v41 = vmul.f32 0.0051020407, %v324_v9  ;;  %v783_v10 = vadd.f32 %v656_v57, %v655_v5 }
  0xf6   :  { %v327_v45 = vpop.xlane.xlu1 %326  ;;  %v735_v23 = vadd.f32 %v624_v56, %v623_v38  ;;  %v7459_v22 = vmul.f32 0.0051020407, %v186_v2  ;;  %v738_v38 = vadd.f32 %v626_v47, %v625_v26  ;;  %v10704_v56 = vld [vmem:[#allocation54_spill] sm:$0xff]  ;;  %v576_v9 = vsel %vm398_vm0, %v468_v32, 0.0 }
  0xf7   :  { %10701 = vst [vmem:[#allocation26_spill] sm:$0xff] %v7453_v41  ;;  %v467_v13 = vsub.f32 %v10704_v56, %v7441_v0  ;;  %v7465_v43 = vmul.f32 0.0051020407, %v327_v45  ;;  %v686_v2 = vmul.f32 %v578_v39, %v578_v39  ;;  %v684_v45 = vmul.f32 %v576_v9, %v576_v9 }
  0xf8   :  { %10703 = vst [vmem:[#allocation28_spill] sm:$0xff] %v7459_v22  ;;  %v404_v26 = vsub.f32 %v10707_v46, %v7459_v22 }
  0xf9   :  { %835 = vadd.xlane.f32.xlu0 %v834_v35  ;;  %10705 = vst [vmem:[#allocation30_spill] sm:$0xff] %v7465_v43  ;;  %v683_v56 = vmul.f32 %v467_v13, %v467_v13  ;;  %v10712_v13 = vld [vmem:[#allocation60_spill] sm:$0xff] }
  0xfa   :  { %877 = vadd.xlane.f32.xlu2 %v876_v59  ;;  %v441_v59 = vsub.f32 %v10700_v30, %v7429_v27  ;;  %v10706_v30 = vld [vmem:[#allocation58_spill] sm:$0xff]  ;;  %v403_v9 = vsub.f32 %v10712_v13, %v7459_v22 }
  0xfb   :  { %874 = vadd.xlane.f32.xlu1 %v873_v44  ;;  %v550_v44 = vsel %vm398_vm0, %v442_v40, 0.0  ;;  %v685_v40 = vmul.f32 %v469_v58, %v469_v58  ;;  %v496_v12 = vsub.f32 %v10706_v30, %v7453_v41 }
  0xfc   :  { %v189_v4 = vpop.xlane.xlu0 %188  ;;  %v657_v5 = vmul.f32 %v441_v59, %v441_v59  ;;  %v658_v57 = vmul.f32 %v550_v44, %v550_v44  ;;  %v10709_v59 = vld [vmem:[#allocation59_spill] sm:$0xff]  ;;  %v619_v13 = vmul.f32 %v403_v9, %v403_v9  ;;  %v10720_v9 = vld [vmem:[#allocation66_spill] sm:$0xff] }
  0xfd   :  { %v237_v35 = vpop.xlane.xlu2 %236  ;;  %v7473_v21 = vmul.f32 0.0051020407, %v189_v4  ;;  %v498_v44 = vsub.f32 %v10709_v59, %v7465_v43  ;;  %v604_v30 = vsel %vm398_vm0, %v496_v12, 0.0  ;;  %v512_v4 = vsel %vm398_vm0, %v404_v26, 0.0  ;;  %v10715_v12 = vld [vmem:[#allocation64_spill] sm:$0xff] }
  0xfe   :  { %v234_v55 = vpop.xlane.xlu1 %233  ;;  %v786_v32 = vadd.f32 %v658_v57, %v657_v5  ;;  %v7479_v39 = vmul.f32 0.0051020407, %v237_v35  ;;  %v825_v5 = vadd.f32 %v684_v45, %v683_v56  ;;  %v10714_v57 = vld [vmem:[#allocation56_spill] sm:$0xff]  ;;  %v620_v22 = vmul.f32 %v512_v4, %v512_v4 }
  0xff   :  { %10708 = vst [vmem:[#allocation33_spill] sm:$0xff] %v7473_v21  ;;  %v7487_v46 = vmul.f32 0.0051020407, %v234_v55  ;;  %v497_v59 = vsub.f32 %v10714_v57, %v7465_v43  ;;  %v606_v35 = vsel %vm398_vm0, %v498_v44, 0.0  ;;  %v10716_v55 = vld [vmem:[#allocation67_spill] sm:$0xff] }
 0x100   :  { %10711 = vst [vmem:[#allocation35_spill] sm:$0xff] %v7479_v39  ;;  %v438_v26 = vsub.f32 %v10716_v55, %v7479_v39  ;;  %v10718_v44 = vld [vmem:[#allocation63_spill] sm:$0xff]  ;;  %v437_v4 = vsub.f32 %v10720_v9, %v7479_v39  ;;  %v729_v55 = vadd.f32 %v620_v22, %v619_v13  ;;  %v10724_v22 = vld [vmem:[#allocation70_spill] sm:$0xff] }
 0x101   :  { %736 = vadd.xlane.f32.xlu0 %v735_v23  ;;  %10713 = vst [vmem:[#allocation37_spill] sm:$0xff] %v7487_v46  ;;  %v713_v45 = vmul.f32 %v497_v59, %v497_v59 }
 0x102   :  { %784 = vadd.xlane.f32.xlu2 %v783_v10  ;;  %v10710_v10 = vld [vmem:[#allocation57_spill] sm:$0xff]  ;;  %v546_v59 = vsel %vm398_vm0, %v438_v26, 0.0 }
 0x103   :  { %739 = vadd.xlane.f32.xlu1 %v738_v38  ;;  %v495_v58 = vsub.f32 %v10710_v10, %v7453_v41  ;;  %v828_v38 = vadd.f32 %v686_v2, %v685_v40  ;;  %v712_v2 = vmul.f32 %v604_v30, %v604_v30  ;;  %v406_v10 = vsub.f32 %v10715_v12, %v7473_v21 }
 0x104   :  { %v276_v47 = vpop.xlane.xlu0 %275  ;;  %v714_v41 = vmul.f32 %v606_v35, %v606_v35  ;;  %v654_v9 = vmul.f32 %v546_v59, %v546_v59  ;;  %v10727_v59 = vld [vmem:[#allocation71_spill] sm:$0xff] }
 0x105   :  { %v180_v0 = vpop.xlane.xlu2 %179  ;;  %v711_v40 = vmul.f32 %v495_v58, %v495_v58  ;;  %v405_v58 = vsub.f32 %v10718_v44, %v7473_v21  ;;  %v7501_v30 = vmul.f32 0.0051020407, %v276_v47 }
 0x106   :  { %v279_v23 = vpop.xlane.xlu1 %278  ;;  %v7509_v35 = vmul.f32 0.0051020407, %v180_v0  ;;  %v870_v47 = vadd.f32 %v714_v41, %v713_v45 }
 0x107   :  { %10719 = vst [vmem:[#allocation32_spill] sm:$0xff] %v7501_v30  ;;  %v7515_v27 = vmul.f32 0.0051020407, %v279_v23  ;;  %v464_v13 = vsub.f32 %v10724_v22, %v7501_v30  ;;  %v10729_v22 = vld [vmem:[#allocation72_spill] sm:$0xff] }
 0x108   :  { %10721 = vst [vmem:[#allocation34_spill] sm:$0xff] %v7509_v35 }
 0x109   :  { %787 = vadd.xlane.f32.xlu0 %v786_v32  ;;  %v10717_v32 = vld [vmem:[#allocation65_spill] sm:$0xff]  ;;  %10723 = vst [vmem:[#allocation36_spill] sm:$0xff] %v7515_v27 }
 0x10a   :  { %829 = vadd.xlane.f32.xlu2 %v828_v38  ;;  %v436_v57 = vsub.f32 %v10717_v32, %v7487_v46  ;;  %v514_v38 = vsel %vm398_vm0, %v406_v10, 0.0  ;;  %v10722_v32 = vld [vmem:[#allocation62_spill] sm:$0xff]  ;;  %v653_v10 = vmul.f32 %v437_v4, %v437_v4 }
 0x10b   :  { %826 = vadd.xlane.f32.xlu1 %v825_v5  ;;  %v867_v5 = vadd.f32 %v712_v2, %v711_v40  ;;  %v435_v44 = vsub.f32 %v10722_v32, %v7487_v46  ;;  %v621_v40 = vmul.f32 %v405_v58, %v405_v58  ;;  %v622_v2 = vmul.f32 %v514_v38, %v514_v38  ;;  %v10725_v32 = vld [vmem:[#allocation73_spill] sm:$0xff] }
 0x10c   :  { %v183_v56 = vpop.xlane.xlu0 %182  ;;  %v544_v21 = vsel %vm398_vm0, %v436_v57, 0.0  ;;  %v400_v41 = vsub.f32 %v10725_v32, %v7509_v35  ;;  %v10726_v57 = vld [vmem:[#allocation69_spill] sm:$0xff]  ;;  %v780_v4 = vadd.f32 %v654_v9, %v653_v10  ;;  %v466_v46 = vsub.f32 %v10727_v59, %v7515_v27 }
 0x10d   :  { %v231_v12 = vpop.xlane.xlu2 %230  ;;  %v651_v0 = vmul.f32 %v435_v44, %v435_v44  ;;  %v652_v26 = vmul.f32 %v544_v21, %v544_v21  ;;  %v732_v39 = vadd.f32 %v622_v2, %v621_v40  ;;  %v463_v58 = vsub.f32 %v10726_v57, %v7501_v30  ;;  %v10731_v57 = vld [vmem:[#allocation68_spill] sm:$0xff] }
 0x10e   :  { %v228_v43 = vpop.xlane.xlu1 %227  ;;  %v7527_v44 = vmul.f32 0.0051020407, %v183_v56  ;;  %v399_v40 = vsub.f32 %v10729_v22, %v7509_v35  ;;  %v7531_v2 = vmul.f32 0.0051020407, %v231_v12  ;;  %v508_v10 = vsel %vm398_vm0, %v400_v41, 0.0 }
 0x10f   :  { %v679_v56 = vmul.f32 %v463_v58, %v463_v58  ;;  %v574_v12 = vsel %vm398_vm0, %v466_v46, 0.0  ;;  %v10733_v58 = vld [vmem:[#allocation80_spill] sm:$0xff] }
 0x110   :  { %10728 = vst [vmem:[#allocation39_spill] sm:$0xff] %v7527_v44  ;;  %v402_v41 = vsub.f32 %v7116_v60, %v7527_v44 }
 0x111   :  { %868 = vadd.xlane.f32.xlu0 %v867_v5  ;;  %10730 = vst [vmem:[#allocation41_spill] sm:$0xff] %v7531_v2 }
 0x112   :  { %730 = vadd.xlane.f32.xlu2 %v729_v55  ;;  %v572_v55 = vsel %vm398_vm0, %v464_v13, 0.0  ;;  %v465_v13 = vsub.f32 %v10731_v57, %v7515_v27  ;;  %v510_v57 = vsel %vm398_vm0, %v402_v41, 0.0 }
 0x113   :  { %871 = vadd.xlane.f32.xlu1 %v870_v47  ;;  %v680_v59 = vmul.f32 %v572_v55, %v572_v55 }
 0x114   :  { %v863_v45 = vpop.xlane.xlu0 %862  ;;  %v681_v55 = vmul.f32 %v465_v13, %v465_v13 }
 0x115   :  { %v931_v38 = vmul.f32 0.0051020407, %v863_v45  ;;  %v767_v5 = vpop.xlane.xlu2 %766  ;;  %v777_v45 = vadd.f32 %v652_v26, %v651_v0  ;;  %v615_v0 = vmul.f32 %v399_v40, %v399_v40  ;;  %v616_v26 = vmul.f32 %v508_v10, %v508_v10 }
 0x116   :  { %v866_v23 = vpop.xlane.xlu1 %865  ;;  %v899_v47 = vmul.f32 0.0051020407, %v767_v5 }
 0x117   :  { %v932_v21 = vmul.f32 0.0051020407, %v866_v23  ;;  %v7533_v32 = vadd.f32 1e-05, %v931_v38  ;;  %v7541_v23 = vmul.f32 0.0051020407, %v228_v43  ;;  %v434_v38 = vsub.f32 %v10733_v58, %v7531_v2 }
 0x118   :  { %v7537_v9 = vadd.f32 1e-05, %v899_v47  ;;  %v819_v47 = vadd.f32 %v680_v59, %v679_v56  ;;  %v723_v10 = vadd.f32 %v616_v26, %v615_v0  ;;  %v10736_v58 = vld [vmem:[#allocation79_spill] sm:$0xff]  ;;  %v10737_v59 = vld [vmem:[#allocation76_spill] sm:$0xff] }
 0x119   :  { %10732 = vst [vmem:[#allocation43_spill] sm:$0xff] %v7541_v23  ;;  %v7543_v5 = vadd.f32 1e-05, %v932_v21  ;;  %6380 = vrsqrt.f32 %v7533_v32  ;;  %733 = vadd.xlane.f32.xlu0 %v732_v39  ;;  %v682_v21 = vmul.f32 %v574_v12, %v574_v12  ;;  %v433_v13 = vsub.f32 %v10736_v58, %v7531_v2 }
 0x11a   :  { %781 = vadd.xlane.f32.xlu2 %v780_v4  ;;  %6382 = vrsqrt.f32 %v7537_v9  ;;  %v10734_v4 = vld [vmem:[#allocation78_spill] sm:$0xff]  ;;  %v618_v2 = vmul.f32 %v510_v57, %v510_v57  ;;  %vm1513_vm2 = vweird.f32 %v7533_v32  ;;  %vm1193_vm6 = vweird.f32 %v7537_v9 }
 0x11b   :  { %778 = vadd.xlane.f32.xlu1 %v777_v45  ;;  %6384 = vrsqrt.f32 %v7543_v5  ;;  %v432_v40 = vsub.f32 %v10734_v4, %v7541_v23  ;;  %v10735_v45 = vld [vmem:[#allocation77_spill] sm:$0xff]  ;;  %v542_v4 = vsel %vm398_vm0, %v434_v38, 0.0  ;;  %v822_v26 = vadd.f32 %v682_v21, %v681_v55 }
 0x11c   :  { %v770_v43 = vpop.xlane.xlu0 %769  ;;  %v401_v60 = vsub.f32 %v10735_v45, %v7527_v44  ;;  %vm1523_vm7 = vweird.f32 %v7543_v5 }
 0x11d   :  { %v900_v46 = vmul.f32 0.0051020407, %v770_v43  ;;  %v818_v22 = vpop.xlane.xlu2 %817  ;;  %v431_v43 = vsub.f32 %v10737_v59, %v7541_v23  ;;  %v540_v41 = vsel %vm398_vm0, %v432_v40, 0.0  ;;  %v650_v59 = vmul.f32 %v542_v4, %v542_v4 }
 0x11e   :  { %v815_v39 = vpop.xlane.xlu1 %814  ;;  %v617_v58 = vmul.f32 %v401_v60, %v401_v60  ;;  %v916_v21 = vmul.f32 0.0051020407, %v818_v22 }
 0x11f   :  { %v7562_v12 = vpop.eup %6380  ;;  %v7564_v56 = vadd.f32 1e-05, %v900_v46  ;;  %v915_v0 = vmul.f32 0.0051020407, %v815_v39  ;;  %v649_v46 = vmul.f32 %v433_v13, %v433_v13  ;;  %v647_v38 = vmul.f32 %v431_v43, %v431_v43 }
 0x120   :  { %v1508_v45 = vmul.f32 %v7562_v12, %v7533_v32  ;;  %v7574_v44 = vpop.eup %6382  ;;  %v7587_v43 = vadd.f32 1e-05, %v916_v21  ;;  %vm1514_vm1 = vweird.f32 %v7562_v12 }
 0x121   :  { %820 = vadd.xlane.f32.xlu0 %v819_v47  ;;  %v7576_v23 = vpop.eup %6384  ;;  %6386 = vrsqrt.f32 %v7564_v56  ;;  %v7580_v55 = vadd.f32 1e-05, %v915_v0  ;;  %v648_v47 = vmul.f32 %v540_v41, %v540_v41  ;;  %v1188_v40 = vmul.f32 %v7574_v44, %v7537_v9  ;;  %vm7608_vm3 = vmor %vm1513_vm2, %vm1514_vm1 }
 0x122   :  { %724 = vadd.xlane.f32.xlu2 %v723_v10  ;;  %v1509_v39 = vmul.f32 %v7562_v12, %v1508_v45  ;;  %v726_v10 = vadd.f32 %v618_v2, %v617_v58  ;;  %v1518_v13 = vmul.f32 %v7576_v23, %v7543_v5  ;;  %v774_v4 = vadd.f32 %v650_v59, %v649_v46 }
 0x123   :  { %823 = vadd.xlane.f32.xlu1 %v822_v26  ;;  %6388 = vrsqrt.f32 %v7580_v55  ;;  %v771_v45 = vadd.f32 %v648_v47, %v647_v38  ;;  %v1189_v22 = vmul.f32 %v7574_v44, %v1188_v40  ;;  %vm1194_vm4 = vweird.f32 %v7574_v44 }
 0x124   :  { %v857_v53 = vpop.xlane.xlu0 %856  ;;  %v1510_v26 = vmul.f32 0.5, %v1509_v39  ;;  %v1519_v41 = vmul.f32 %v7576_v23, %v1518_v13  ;;  %6390 = vrsqrt.f32 %v7587_v43  ;;  %vm1524_vm5 = vweird.f32 %v7576_v23  ;;  %vm7639_vm8 = vmor %vm1193_vm6, %vm1194_vm4 }
 0x125   :  { %v761_v57 = vpop.xlane.xlu2 %760  ;;  %v1190_v59 = vmul.f32 0.5, %v1189_v22  ;;  %v929_v35 = vmul.f32 0.0051020407, %v857_v53  ;;  %vm7643_vm9 = vmor %vm1523_vm7, %vm1524_vm5  ;;  %vm1203_vm11 = vweird.f32 %v7564_v56  ;;  %vm1353_vm14 = vweird.f32 %v7580_v55 }
 0x126   :  { %v860_v60 = vpop.xlane.xlu1 %859  ;;  %v1511_v2 = vsub.f32 1.5, %v1510_v26  ;;  %v1520_v47 = vmul.f32 0.5, %v1519_v41  ;;  %v897_v41 = vmul.f32 0.0051020407, %v761_v57  ;;  %vm1363_vm1 = vweird.f32 %v7587_v43 }
 0x127   :  { %v7589_v0 = vpop.eup %6386  ;;  %v930_v40 = vmul.f32 0.0051020407, %v860_v60  ;;  %v7606_v27 = vadd.f32 1e-05, %v929_v35 }
 0x128   :  { %v1198_v58 = vmul.f32 %v7589_v0, %v7564_v56  ;;  %v1512_v13 = vmul.f32 %v7562_v12, %v1511_v2  ;;  %v1521_v22 = vsub.f32 1.5, %v1520_v47  ;;  %vm1204_vm10 = vweird.f32 %v7589_v0 }
 0x129   :  { %727 = vadd.xlane.f32.xlu0 %v726_v10  ;;  %v7596_v38 = vpop.eup %6388  ;;  %v7612_v60 = vadd.f32 1e-05, %v930_v40  ;;  %6392 = vrsqrt.f32 %v7606_v27  ;;  %vm1205_vm12 = vmor %vm1203_vm11, %vm1204_vm10 }
 0x12a   :  { %775 = vadd.xlane.f32.xlu2 %v774_v4  ;;  %v1199_v10 = vmul.f32 %v7589_v0, %v1198_v58  ;;  %v1191_v4 = vsub.f32 1.5, %v1190_v59  ;;  %v1348_v26 = vmul.f32 %v7596_v38, %v7580_v55  ;;  %v985_v59 = vld [vmem:[%s10378_s2 + $0x170] sm:$0xff]  ;;  %v1516_v47 = vsel %vm7608_vm3, %v7562_v12, %v1512_v13 }
 0x12b   :  { %772 = vadd.xlane.f32.xlu1 %v771_v45  ;;  %v7603_v45 = vpop.eup %6390  ;;  %v1522_v53 = vmul.f32 %v7576_v23, %v1521_v22  ;;  %6394 = vrsqrt.f32 %v7612_v60  ;;  %v7632_v12 = vadd.f32 1e-05, %v897_v41  ;;  %v7634_v13 = vmul.f32 %v1516_v47, %v985_v59  ;;  %v953_v59 = vld [vmem:[%s10378_s2 + $0x70] sm:$0xff] }
 0x12c   :  { %v764_v46 = vpop.xlane.xlu0 %763  ;;  %v1200_v58 = vmul.f32 0.5, %v1199_v10  ;;  %v1349_v35 = vmul.f32 %v7596_v38, %v1348_v26  ;;  %v1358_v32 = vmul.f32 %v7603_v45, %v7587_v43  ;;  %v1192_v57 = vmul.f32 %v7574_v44, %v1191_v4 }
 0x12d   :  { %v812_v21 = vpop.xlane.xlu2 %811  ;;  %v898_v10 = vmul.f32 0.0051020407, %v764_v46  ;;  %10740 = vst [vmem:[#allocation38_spill] sm:$0xff] %v7634_v13  ;;  %6396 = vrsqrt.f32 %v7632_v12  ;;  %vm1354_vm13 = vweird.f32 %v7596_v38  ;;  %vm1364_vm15 = vweird.f32 %v7603_v45 }
 0x12e   :  { %v809_v39 = vpop.xlane.xlu1 %808  ;;  %v1201_v26 = vsub.f32 1.5, %v1200_v58  ;;  %v1350_v9 = vmul.f32 0.5, %v1349_v35  ;;  %v1359_v22 = vmul.f32 %v7603_v45, %v1358_v32  ;;  %v1196_v5 = vsel %vm7639_vm8, %v7574_v44, %v1192_v57  ;;  %v986_v35 = vld [vmem:[%s10378_s2 + $0x178] sm:$0xff]  ;;  %v10745_v32 = vld [vmem:[#allocation75_spill] sm:$0xff]  ;;  %vm7719_vm0 = vmor %vm1353_vm14, %vm1354_vm13 }
 0x12f   :  { %v913_v41 = vmul.f32 0.0051020407, %v809_v39  ;;  %v7655_v47 = vadd.f32 1e-05, %v898_v10  ;;  %v914_v58 = vmul.f32 0.0051020407, %v812_v21  ;;  %v1526_v39 = vsel %vm7643_vm9, %v7576_v23, %v1522_v53  ;;  %v7666_v4 = vpop.eup %6392  ;;  %vm1365_vm2 = vmor %vm1363_vm1, %vm1364_vm15 }
 0x130   :  { %v1687_v29 = vmul.f32 %v7634_v13, %v10745_v32  ;;  %v7671_v21 = vmul.f32 %v1196_v5, %v953_v59  ;;  %v954_v57 = vld [vmem:[%s10378_s2 + $0x78] sm:$0xff]  ;;  %v1202_v10 = vmul.f32 %v7589_v0, %v1201_v26  ;;  %v1351_v53 = vsub.f32 1.5, %v1350_v9 }
 0x131   :  { %v7677_v23 = vpop.eup %6394  ;;  %v1360_v46 = vmul.f32 0.5, %v1359_v22  ;;  %v7681_v32 = vadd.f32 1e-05, %v913_v41  ;;  %v7686_v59 = vmul.f32 %v1526_v39, %v986_v35  ;;  %6398 = vrsqrt.f32 %v7655_v47 }
 0x132   :  { %10746 = vst [vmem:[#allocation40_spill] sm:$0xff] %v7671_v21  ;;  %v7689_v5 = vadd.f32 1e-05, %v914_v58  ;;  %v1206_v26 = vsel %vm1205_vm12, %v7589_v0, %v1202_v10  ;;  %v1488_v9 = vmul.f32 %v7666_v4, %v7606_v27  ;;  %v1498_v41 = vmul.f32 %v7677_v23, %v7612_v60  ;;  %v10749_v0 = vld [vmem:[#allocation74_spill] sm:$0xff] }
 0x133   :  { %10747 = vst [vmem:[#allocation42_spill] sm:$0xff] %v7686_v59  ;;  %v7694_v22 = vmul.f32 %v1206_v26, %v954_v57  ;;  %v1655_v35 = vmul.f32 %v7671_v21, %v7110_v8  ;;  %v7701_v39 = vpop.eup %6396  ;;  %v1361_v58 = vsub.f32 1.5, %v1360_v46  ;;  %6400 = vrsqrt.f32 %v7681_v32 }
 0x134   :  { %v851_v2 = vpop.xlane.xlu0 %850  ;;  %v1688_v10 = vmul.f32 %v7686_v59, %v10749_v0  ;;  %v1352_v57 = vmul.f32 %v7596_v38, %v1351_v53  ;;  %6402 = vrsqrt.f32 %v7689_v5  ;;  %v1489_v8 = vmul.f32 %v7666_v4, %v1488_v9  ;;  %v969_v0 = vld [vmem:[%s10378_s2 + $0xf0] sm:$0xff] }
 0x135   :  { %v7624_v30 = vpop.xlane.xlu2 %754  ;;  %10748 = vst [vmem:[#allocation46_spill] sm:$0xff] %v7694_v22  ;;  %v1168_v55 = vmul.f32 %v7701_v39, %v7632_v12  ;;  %vm1493_vm3 = vweird.f32 %v7606_v27  ;;  %vm1494_vm4 = vweird.f32 %v7666_v4  ;;  %vm1504_vm5 = vweird.f32 %v7677_v23 }
 0x136   :  { %v854_v40 = vpop.xlane.xlu1 %853  ;;  %v1490_v21 = vmul.f32 0.5, %v1489_v8  ;;  %vm7799_vm6 = vmor %vm1493_vm3, %vm1494_vm4  ;;  %vm1503_vm7 = vweird.f32 %v7612_v60  ;;  %vm1173_vm8 = vweird.f32 %v7632_v12  ;;  %vm1174_vm9 = vweird.f32 %v7701_v39 }
 0x137   :  { %v928_v26 = vmul.f32 0.0051020407, %v854_v40  ;;  %v7715_v46 = vpop.eup %6398  ;;  %v1499_v40 = vmul.f32 %v7677_v23, %v1498_v41  ;;  %v1356_v41 = vsel %vm7719_vm0, %v7596_v38, %v1352_v57  ;;  %vm1183_vm10 = vweird.f32 %v7655_v47  ;;  %vm7814_vm11 = vmor %vm1503_vm7, %vm1504_vm5 }
 0x138   :  { %v1178_v53 = vmul.f32 %v7715_v46, %v7655_v47  ;;  %v1491_v49 = vsub.f32 1.5, %v1490_v21  ;;  %vm1175_vm12 = vmor %vm1173_vm8, %vm1174_vm9  ;;  %vm1184_vm13 = vweird.f32 %v7715_v46  ;;  %vm1333_vm0 = vweird.f32 %v7681_v32 }
 0x139   :  { %v7743_v43 = vadd.f32 1e-05, %v928_v26  ;;  %v1500_v57 = vmul.f32 0.5, %v1499_v40  ;;  %v1169_v26 = vmul.f32 %v7701_v39, %v1168_v55  ;;  %vm7889_vm15 = vmor %vm1183_vm10, %vm1184_vm13  ;;  %vm1343_vm1 = vweird.f32 %v7689_v5 }
 0x13b   :  { %v1501_v55 = vsub.f32 1.5, %v1500_v57  ;;  %v1170_v36 = vmul.f32 0.5, %v1169_v26  ;;  %vm1483_vm8 = vweird.f32 %v7743_v43 }
 0x13c   :  { %v7669_v44 = vpop.xlane.xlu0 %757 }
 0x13d   :  { %v7683_v56 = vpop.xlane.xlu2 %805  ;;  %1841 = vrot.lane.b32.xlu0 %v1687_v29, %s6753_s11  ;;  %v927_v29 = vmul.f32 0.0051020407, %v851_v2  ;;  %v1656_v2 = vmul.f32 %v7694_v22, %v7147_v6  ;;  %v7749_v22 = vpop.eup %6400  ;;  %v1171_v57 = vsub.f32 1.5, %v1170_v36 }
 0x13e   :  { %v803_v13 = vpop.xlane.xlu1 %802  ;;  %vm1334_vm14 = vweird.f32 %v7749_v22 }
 0x13f   :  { %v1172_v48 = vmul.f32 %v7701_v39, %v1171_v57 }
 0x141   :  { %v1176_v57 = vsel %vm1175_vm12, %v7701_v39, %v1172_v48 }
 0x142   :  { %1777 = vrot.lane.b32.xlu2 %v1655_v35, %s6753_s11  ;;  %v7726_v35 = vadd.f32 1e-05, %v927_v29  ;;  %v895_v29 = vmul.f32 0.0051020407, %v7624_v30  ;;  %v7758_v30 = vmul.f32 %v1356_v41, %v969_v0  ;;  %v911_v0 = vmul.f32 0.0051020407, %v803_v13 }
 0x144   :  { %1843 = vrot.lane.b32.xlu1 %v1688_v10, %s6753_s11  ;;  %v7729_v9 = vpop.xlane.xlu0 %844  ;;  %v1362_v10 = vmul.f32 %v7603_v45, %v1361_v58  ;;  %v7754_v58 = vpop.eup %6402  ;;  %6404 = vrsqrt.f32 %v7726_v35  ;;  %10752 = vst [vmem:[#allocation47_spill] sm:$0xff] %v7758_v30  ;;  %v7763_v8 = vadd.f32 1e-05, %v895_v29  ;;  %v1671_v41 = vmul.f32 %v7758_v30, %v7153_v63 }
 0x145   :  { %v7731_v6 = vpop.xlane.xlu2 %748  ;;  %1779 = vrot.lane.b32.xlu0 %v1656_v2, %s6753_s11  ;;  %v970_v2 = vld [vmem:[%s10378_s2 + $0xf8] sm:$0xff]  ;;  %6406 = vrsqrt.f32 %v7743_v43  ;;  %v1338_v40 = vmul.f32 %v7754_v58, %v7689_v5  ;;  %v7793_v26 = vadd.f32 1e-05, %v911_v0  ;;  %v983_v0 = vld [vmem:[%s10378_s2 + $0x160] sm:$0xff]  ;;  %vm1344_vm3 = vweird.f32 %v7754_v58 }
 0x146   :  { %v1366_v38 = vsel %vm1365_vm2, %v7603_v45, %v1362_v10  ;;  %v848_v59 = vpop.xlane.xlu1 %847  ;;  %v1328_v45 = vmul.f32 %v7749_v22, %v7681_v32  ;;  %v1179_v10 = vmul.f32 %v7715_v46, %v1178_v53  ;;  %6408 = vrsqrt.f32 %v7763_v8  ;;  %vm7903_vm2 = vmor %vm1333_vm0, %vm1334_vm14  ;;  %v952_v32 = vld [vmem:[%s10378_s2 + $0x68] sm:$0xff] }
 0x147   :  { %v7760_v50 = vmul.f32 %v1366_v38, %v970_v2  ;;  %v896_v2 = vmul.f32 0.0051020407, %v7669_v44  ;;  %6410 = vrsqrt.f32 %v7793_v26  ;;  %vm1345_vm4 = vmor %vm1343_vm1, %vm1344_vm3  ;;  %vm1473_vm5 = vweird.f32 %v7726_v35 }
 0x148   :  { %v1329_v63 = vmul.f32 %v7749_v22, %v1328_v45  ;;  %v7785_v13 = vmul.f32 0.5, %v1179_v10  ;;  %vm1153_vm10 = vweird.f32 %v7763_v8  ;;  %vm1313_vm0 = vweird.f32 %v7793_v26 }
 0x149   :  { %10753 = vst [vmem:[#allocation49_spill] sm:$0xff] %v7760_v50  ;;  %v1672_v29 = vmul.f32 %v7760_v50, %v7141_v1  ;;  %v1339_v1 = vmul.f32 %v7754_v58, %v1338_v40  ;;  %v1492_v50 = vmul.f32 %v7666_v4, %v1491_v49  ;;  %v7805_v40 = vadd.f32 1e-05, %v896_v2  ;;  %v984_v2 = vld [vmem:[%s10378_s2 + $0x168] sm:$0xff] }
 0x14a   :  { %v7777_v38 = vpop.eup %6404  ;;  %1809 = vrot.lane.b32.xlu2 %v1671_v41, %s6753_s11  ;;  %v1502_v41 = vmul.f32 %v7677_v23, %v1501_v55  ;;  %v1330_v49 = vmul.f32 0.5, %v1329_v63  ;;  %v1181_v27 = vsub.f32 1.5, %v7785_v13 }
 0x14b   :  { %v7791_v53 = vpop.eup %6406  ;;  %v1468_v10 = vmul.f32 %v7777_v38, %v7726_v35  ;;  %v1340_v55 = vmul.f32 0.5, %v1339_v1  ;;  %v1496_v63 = vsel %vm7799_vm6, %v7666_v4, %v1492_v50  ;;  %v951_v1 = vld [vmem:[%s10378_s2 + $0x60] sm:$0xff]  ;;  %6412 = vrsqrt.f32 %v7805_v40  ;;  %v981_v35 = vld [vmem:[%s10378_s2 + $0x150] sm:$0xff] }
 0x14c   :  { %1811 = vrot.lane.b32.xlu1 %v1672_v29, %s6753_s11  ;;  %v7789_v44 = vpop.xlane.xlu0 %751  ;;  %v912_v29 = vmul.f32 0.0051020407, %v7683_v56  ;;  %v1478_v56 = vmul.f32 %v7791_v53, %v7743_v43  ;;  %v7829_v30 = vpop.eup %6408  ;;  %v1506_v13 = vsel %vm7814_vm11, %v7677_v23, %v1502_v41  ;;  %v925_v4 = vmul.f32 0.0051020407, %v7729_v9 }
 0x14d   :  { %v7775_v21 = vpop.xlane.xlu2 %799  ;;  %v1469_v3 = vmul.f32 %v7777_v38, %v1468_v10  ;;  %v926_v41 = vmul.f32 0.0051020407, %v848_v59  ;;  %v7853_v45 = vmul.f32 %v1496_v63, %v983_v0  ;;  %v7855_v36 = vmul.f32 %v1506_v13, %v984_v2 }
 0x14e   :  { %v7821_v60 = vpop.xlane.xlu1 %796  ;;  %v7848_v50 = vadd.f32 1e-05, %v912_v29  ;;  %v1331_v28 = vsub.f32 1.5, %v1330_v49  ;;  %v1479_v12 = vmul.f32 %v7791_v53, %v1478_v56  ;;  %v1148_v10 = vmul.f32 %v7829_v30, %v7763_v8  ;;  %v7876_v56 = vpop.eup %6410 }
 0x14f   :  { %v7861_v34 = vmul.f32 %v1176_v57, %v951_v1  ;;  %v893_v9 = vmul.f32 0.0051020407, %v7731_v6  ;;  %v1685_v59 = vmul.f32 %v7853_v45, %v7163_v17  ;;  %v1686_v29 = vmul.f32 %v7855_v36, %v7177_v51 }
 0x150   :  { %v1341_v0 = vsub.f32 1.5, %v1340_v55  ;;  %6414 = vrsqrt.f32 %v7848_v50  ;;  %v7870_v48 = vadd.f32 1e-05, %v925_v4  ;;  %v1470_v6 = vmul.f32 0.5, %v1469_v3 }
 0x151   :  { %v1653_v39 = vmul.f32 %v7861_v34, %v7167_v7  ;;  %v7879_v2 = vadd.f32 1e-05, %v926_v41  ;;  %1837 = vrot.lane.b32.xlu0 %v1685_v59, %s6753_s11  ;;  %v7883_v17 = vpop.eup %6412  ;;  %v1480_v51 = vmul.f32 0.5, %v1479_v12  ;;  %v1149_v55 = vmul.f32 %v7829_v30, %v1148_v10 }
 0x152   :  { %1839 = vrot.lane.b32.xlu2 %v1686_v29, %s6753_s11  ;;  %v1182_v3 = vmul.f32 %v7715_v46, %v1181_v27  ;;  %v1332_v63 = vmul.f32 %v7749_v22, %v1331_v28  ;;  %v7899_v13 = vadd.f32 1e-05, %v893_v9  ;;  %v1308_v1 = vmul.f32 %v7876_v56, %v7793_v26  ;;  %v967_v27 = vld [vmem:[%s10378_s2 + $0xe0] sm:$0xff] }
 0x153   :  { %6416 = vrsqrt.f32 %v7870_v48  ;;  %v1342_v4 = vmul.f32 %v7754_v58, %v1341_v0  ;;  %v1471_v57 = vsub.f32 1.5, %v1470_v6  ;;  %v1481_v59 = vsub.f32 1.5, %v1480_v51  ;;  %v968_v6 = vld [vmem:[%s10378_s2 + $0xe8] sm:$0xff] }
 0x154   :  { %v7874_v49 = vpop.xlane.xlu0 %838  ;;  %1773 = vrot.lane.b32.xlu1 %v1653_v39, %s6753_s11  ;;  %6418 = vrsqrt.f32 %v7879_v2  ;;  %v1186_v12 = vsel %vm7889_vm15, %v7715_v46, %v1182_v3  ;;  %v1336_v10 = vsel %vm7903_vm2, %v7749_v22, %v1332_v63  ;;  %v1150_v29 = vmul.f32 0.5, %v1149_v55 }
 0x155   :  { %v7851_v23 = vpop.xlane.xlu2 %880  ;;  %v1158_v0 = vmul.f32 %v7883_v17, %v7805_v40  ;;  %v894_v39 = vmul.f32 0.0051020407, %v7789_v44  ;;  %6420 = vrsqrt.f32 %v7899_v13  ;;  %v909_v22 = vmul.f32 0.0051020407, %v7821_v60 }
 0x156   :  { %v842_v28 = vpop.xlane.xlu1 %841  ;;  %v7927_v9 = vpop.eup %6414  ;;  %v7941_v46 = vmul.f32 %v1186_v12, %v952_v32  ;;  %v7943_v7 = vmul.f32 %v1336_v10, %v967_v27  ;;  %vm1474_vm6 = vweird.f32 %v7777_v38  ;;  %v1309_v44 = vmul.f32 %v7876_v56, %v1308_v1 }
 0x157   :  { %v1346_v51 = vsel %vm1345_vm4, %v7754_v58, %v1342_v4  ;;  %v1318_v5 = vmul.f32 %v7927_v9, %v7848_v50  ;;  %vm1484_vm7 = vweird.f32 %v7791_v53  ;;  %v1151_v47 = vsub.f32 1.5, %v1150_v29  ;;  %vm7980_vm9 = vmor %vm1473_vm5, %vm1474_vm6 }
 0x158   :  { %v1654_v55 = vmul.f32 %v7941_v46, %v7189_v52  ;;  %v1669_v60 = vmul.f32 %v7943_v7, %v7201_v18  ;;  %v7955_v3 = vmul.f32 %v1346_v51, %v968_v6  ;;  %v1159_v1 = vmul.f32 %v7883_v17, %v1158_v0  ;;  %v982_v0 = vld [vmem:[%s10378_s2 + $0x158] sm:$0xff]  ;;  %vm1485_vm12 = vmor %vm1483_vm8, %vm1484_vm7 }
 0x159   :  { %v7957_v63 = vpop.eup %6416  ;;  %v7961_v32 = vadd.f32 1e-05, %v894_v39  ;;  %v7967_v4 = vadd.f32 1e-05, %v909_v22  ;;  %v1472_v18 = vmul.f32 %v7777_v38, %v1471_v57  ;;  %v1482_v12 = vmul.f32 %v7791_v53, %v1481_v59 }
 0x15a   :  { %v7965_v27 = vpop.eup %6418  ;;  %1775 = vrot.lane.b32.xlu0 %v1654_v55, %s6753_s11  ;;  %1805 = vrot.lane.b32.xlu2 %v1669_v60, %s6753_s11  ;;  %v1670_v52 = vmul.f32 %v7955_v3, %v7195_v54  ;;  %vm1154_vm11 = vweird.f32 %v7829_v30  ;;  %v1310_v54 = vmul.f32 0.5, %v1309_v44  ;;  %v1319_v57 = vmul.f32 %v7927_v9, %v1318_v5  ;;  %v949_v55 = vld [vmem:[%s10378_s2 + $0x50] sm:$0xff] }
 0x15b   :  { %v7986_v29 = vpop.eup %6420  ;;  %v1448_v43 = vmul.f32 %v7957_v63, %v7870_v48  ;;  %v910_v59 = vmul.f32 0.0051020407, %v7775_v21  ;;  %v1160_v6 = vmul.f32 0.5, %v1159_v1  ;;  %v1458_v22 = vmul.f32 %v7965_v27, %v7879_v2  ;;  %vm1155_vm13 = vmor %vm1153_vm10, %vm1154_vm11 }
 0x15c   :  { %v7963_v58 = vpop.xlane.xlu0 %883  ;;  %1807 = vrot.lane.b32.xlu1 %v1670_v52, %s6753_s11  ;;  %6422 = vrsqrt.f32 %v7961_v32  ;;  %v924_v21 = vmul.f32 0.0051020407, %v842_v28  ;;  %v1476_v51 = vsel %vm7980_vm9, %v7777_v38, %v1472_v18  ;;  %v1486_v5 = vsel %vm1485_vm12, %v7791_v53, %v1482_v12 }
 0x15d   :  { %v7918_v41 = vpop.xlane.xlu2 %745  ;;  %6424 = vrsqrt.f32 %v7967_v4  ;;  %v1152_v60 = vmul.f32 %v7829_v30, %v1151_v47  ;;  %v1128_v28 = vmul.f32 %v7986_v29, %v7899_v13  ;;  %v923_v1 = vmul.f32 0.0051020407, %v7874_v49 }
 0x15e   :  { %v8006_v44 = vpop.xlane.xlu1 %742  ;;  %v8024_v52 = vmul.f32 %v1476_v51, %v981_v35  ;;  %v8026_v38 = vmul.f32 %v1486_v5, %v982_v0  ;;  %vm1163_vm14 = vweird.f32 %v7805_v40  ;;  %v1449_v53 = vmul.f32 %v7957_v63, %v1448_v43  ;;  %v950_v40 = vld [vmem:[%s10378_s2 + $0x58] sm:$0xff] }
 0x15f   :  { %v8030_v18 = vadd.f32 1e-05, %v910_v59  ;;  %v1156_v47 = vsel %vm1155_vm13, %v7829_v30, %v1152_v60  ;;  %v8033_v12 = vadd.f32 1e-05, %v924_v21  ;;  %v1311_v35 = vsub.f32 1.5, %v1310_v54 }
 0x160   :  { %v1683_v8 = vmul.f32 %v8024_v52, %v7213_v33  ;;  %v1684_v49 = vmul.f32 %v8026_v38, %v7225_v19  ;;  %v8039_v10 = vmul.f32 %v1156_v47, %v949_v55  ;;  %v1161_v0 = vsub.f32 1.5, %v1160_v6 }
 0x161   :  { %vm1164_vm15 = vweird.f32 %v7883_v17  ;;  %v1320_v51 = vmul.f32 0.5, %v1319_v57  ;;  %v1459_v59 = vmul.f32 %v7965_v27, %v1458_v22  ;;  %v1129_v30 = vmul.f32 %v7986_v29, %v1128_v28 }
 0x162   :  { %10764 = vst [vmem:[#allocation45_spill] sm:$0xff] %v8039_v10  ;;  %v8042_v43 = vpop.eup %6422  ;;  %v8046_v21 = vadd.f32 1e-05, %v923_v1  ;;  %1833 = vrot.lane.b32.xlu0 %v1683_v8, %s6753_s11  ;;  %1835 = vrot.lane.b32.xlu2 %v1684_v49, %s6753_s11  ;;  %v1651_v33 = vmul.f32 %v8039_v10, %v7219_v25  ;;  %vm1314_vm1 = vweird.f32 %v7876_v56  ;;  %6426 = vrsqrt.f32 %v8030_v18  ;;  %vm8061_vm2 = vmor %vm1163_vm14, %vm1164_vm15  ;;  %v965_v8 = vld [vmem:[%s10378_s2 + $0xd0] sm:$0xff] }
 0x163   :  { %v8054_v54 = vpop.eup %6424  ;;  %vm1323_vm3 = vweird.f32 %v7848_v50  ;;  %v1450_v6 = vmul.f32 0.5, %v1449_v53  ;;  %6428 = vrsqrt.f32 %v8033_v12  ;;  %v937_v25 = vmul.f32 0.0051020407, %v7851_v23  ;;  %vm8080_vm4 = vmor %vm1313_vm0, %vm1314_vm1 }
 0x164   :  { %v8052_v19 = vpop.xlane.xlu0 %790  ;;  %1769 = vrot.lane.b32.xlu1 %v1651_v33, %s6753_s11  ;;  %v1321_v22 = vsub.f32 1.5, %v1320_v51  ;;  %v1138_v5 = vmul.f32 %v8042_v43, %v7961_v32  ;;  %v1162_v55 = vmul.f32 %v7883_v17, %v1161_v0  ;;  %v1312_v60 = vmul.f32 %v7876_v56, %v1311_v35 }
 0x165   :  { %v7999_v39 = vpop.xlane.xlu2 %832  ;;  %v1460_v1 = vmul.f32 0.5, %v1459_v59  ;;  %vm1453_vm5 = vweird.f32 %v7870_v48  ;;  %v1130_v53 = vmul.f32 0.5, %v1129_v30  ;;  %6430 = vrsqrt.f32 %v8046_v21 }
 0x166   :  { %v8086_v47 = vpop.xlane.xlu1 %793  ;;  %vm1324_vm6 = vweird.f32 %v7927_v9  ;;  %v1288_v26 = vmul.f32 %v8054_v54, %v7967_v4  ;;  %v1166_v49 = vsel %vm8061_vm2, %v7883_v17, %v1162_v55  ;;  %v1316_v35 = vsel %vm8080_vm4, %v7876_v56, %v1312_v60  ;;  %v966_v17 = vld [vmem:[%s10378_s2 + $0xd8] sm:$0xff] }
 0x167   :  { %vm1463_vm7 = vweird.f32 %v7879_v2  ;;  %v1451_v0 = vsub.f32 1.5, %v1450_v6  ;;  %v8101_v51 = vadd.f32 1e-05, %v937_v25  ;;  %v8103_v59 = vmul.f32 %v1166_v49, %v950_v40  ;;  %vm1325_vm9 = vmor %vm1323_vm3, %vm1324_vm6 }
 0x168   :  { %v8105_v30 = vpop.eup %6426  ;;  %vm1454_vm8 = vweird.f32 %v7957_v63  ;;  %v1139_v33 = vmul.f32 %v8042_v43, %v1138_v5  ;;  %v8109_v10 = vmul.f32 %v1316_v35, %v965_v8  ;;  %v1322_v56 = vmul.f32 %v7927_v9, %v1321_v22 }
 0x169   :  { %v8115_v57 = vpop.eup %6428  ;;  %v1461_v6 = vsub.f32 1.5, %v1460_v1  ;;  %v1131_v25 = vsub.f32 1.5, %v1130_v53  ;;  %v891_v40 = vmul.f32 0.0051020407, %v8006_v44  ;;  %v1652_v5 = vmul.f32 %v8103_v59, %v7237_v15  ;;  %vm8144_vm11 = vmor %vm1453_vm5, %vm1454_vm8 }
 0x16a   :  { %v1289_v55 = vmul.f32 %v8054_v54, %v1288_v26  ;;  %v938_v60 = vmul.f32 0.0051020407, %v7963_v58  ;;  %v1667_v22 = vmul.f32 %v8109_v10, %v7249_v42  ;;  %v1326_v23 = vsel %vm1325_vm9, %v7927_v9, %v1322_v56 }
 0x16b   :  { %v8129_v8 = vpop.eup %6430  ;;  %6432 = vrsqrt.f32 %v8101_v51  ;;  %v892_v50 = vmul.f32 0.0051020407, %v7918_v41  ;;  %1771 = vrot.lane.b32.xlu0 %v1652_v5, %s6753_s11  ;;  %v8134_v44 = vmul.f32 %v1326_v23, %v966_v17  ;;  %v1452_v1 = vmul.f32 %v7957_v63, %v1451_v0  ;;  %v979_v0 = vld [vmem:[%s10378_s2 + $0x140] sm:$0xff]  ;;  %v980_v5 = vld [vmem:[%s10378_s2 + $0x148] sm:$0xff] }
 0x16c   :  { %v8136_v15 = vpop.xlane.xlu0 %835  ;;  %vm1464_vm10 = vweird.f32 %v7965_v27  ;;  %v1140_v9 = vmul.f32 0.5, %v1139_v33  ;;  %v1298_v41 = vmul.f32 %v8105_v30, %v8030_v18  ;;  %v1438_v58 = vmul.f32 %v8115_v57, %v8033_v12  ;;  %1801 = vrot.lane.b32.xlu2 %v1667_v22, %s6753_s11 }
 0x16d   :  { %v8076_v28 = vpop.xlane.xlu2 %877  ;;  %vm1133_vm12 = vweird.f32 %v7899_v13  ;;  %vm1134_vm13 = vweird.f32 %v7986_v29  ;;  %v8155_v53 = vadd.f32 1e-05, %v891_v40  ;;  %v1668_v48 = vmul.f32 %v8134_v44, %v7243_v11  ;;  %vm8173_vm15 = vmor %vm1463_vm7, %vm1464_vm10 }
 0x16e   :  { %v1290_v26 = vmul.f32 0.5, %v1289_v55  ;;  %vm1143_vm14 = vweird.f32 %v7961_v32  ;;  %v1428_v49 = vmul.f32 %v8129_v8, %v8046_v21  ;;  %v8162_v35 = vadd.f32 1e-05, %v938_v60  ;;  %v8180_v56 = vpop.xlane.xlu1 %874  ;;  %v947_v55 = vld [vmem:[%s10378_s2 + $0x40] sm:$0xff]  ;;  %vm1135_vm0 = vmor %vm1133_vm12, %vm1134_vm13  ;;  %v948_v32 = vld [vmem:[%s10378_s2 + $0x48] sm:$0xff] }
 0x16f   :  { %v8177_v17 = vadd.f32 1e-05, %v892_v50  ;;  %1803 = vrot.lane.b32.xlu1 %v1668_v48, %s6753_s11  ;;  %v1456_v40 = vsel %vm8144_vm11, %v7957_v63, %v1452_v1  ;;  %v1462_v2 = vmul.f32 %v7965_v27, %v1461_v6  ;;  %v1132_v60 = vmul.f32 %v7986_v29, %v1131_v25 }
 0x170   :  { %v1141_v22 = vsub.f32 1.5, %v1140_v9  ;;  %vm1144_vm1 = vweird.f32 %v8042_v43  ;;  %v1299_v63 = vmul.f32 %v8105_v30, %v1298_v41  ;;  %v1439_v23 = vmul.f32 %v8115_v57, %v1438_v58 }
 0x171   :  { %v8200_v50 = vpop.eup %6432  ;;  %6434 = vrsqrt.f32 %v8155_v53  ;;  %v8203_v6 = vmul.f32 %v1456_v40, %v979_v0  ;;  %v1466_v25 = vsel %vm8173_vm15, %v7965_v27, %v1462_v2  ;;  %v1136_v13 = vsel %vm1135_vm0, %v7986_v29, %v1132_v60  ;;  %vm8230_vm4 = vmor %vm1143_vm14, %vm1144_vm1 }
 0x172   :  { %v1429_v1 = vmul.f32 %v8129_v8, %v1428_v49  ;;  %6436 = vrsqrt.f32 %v8162_v35  ;;  %v8211_v42 = vmul.f32 %v1466_v25, %v980_v5  ;;  %v8213_v9 = vmul.f32 %v1136_v13, %v947_v55  ;;  %v963_v25 = vld [vmem:[%s10378_s2 + $0xc0] sm:$0xff] }
 0x173   :  { %10773 = vst [vmem:[#allocation44_spill] sm:$0xff] %v8203_v6  ;;  %v1291_v41 = vsub.f32 1.5, %v1290_v26  ;;  %6438 = vrsqrt.f32 %v8177_v17  ;;  %v908_v58 = vmul.f32 0.0051020407, %v8086_v47  ;;  %v1681_v48 = vmul.f32 %v8203_v6, %v7261_v62 }
 0x174   :  { %v1300_v0 = vmul.f32 0.5, %v1299_v63  ;;  %v1568_v27 = vmul.f32 %v8200_v50, %v8101_v51  ;;  %v907_v29 = vmul.f32 0.0051020407, %v8052_v19  ;;  %v1682_v49 = vmul.f32 %v8211_v42, %v7273_v16  ;;  %v8237_v19 = vpop.xlane.xlu0 %736 }
 0x175   :  { %v8167_v33 = vpop.xlane.xlu2 %784  ;;  %vm1293_vm2 = vweird.f32 %v7967_v4  ;;  %vm1294_vm3 = vweird.f32 %v8054_v54  ;;  %1829 = vrot.lane.b32.xlu0 %v1681_v48, %s6753_s11  ;;  %v1649_v62 = vmul.f32 %v8213_v9, %v7267_v31  ;;  %vm1303_vm5 = vweird.f32 %v8030_v18 }
 0x176   :  { %v1440_v16 = vmul.f32 0.5, %v1439_v23  ;;  %v1430_v26 = vmul.f32 0.5, %v1429_v1  ;;  %1831 = vrot.lane.b32.xlu2 %v1682_v49, %s6753_s11  ;;  %v1142_v11 = vmul.f32 %v8042_v43, %v1141_v22  ;;  %vm1304_vm6 = vweird.f32 %v8105_v30  ;;  %vm8259_vm8 = vmor %vm1293_vm2, %vm1294_vm3 }
 0x177   :  { %v8245_v40 = vpop.eup %6434  ;;  %vm1433_vm7 = vweird.f32 %v8046_v21  ;;  %v8249_v31 = vadd.f32 1e-05, %v908_v58  ;;  %1765 = vrot.lane.b32.xlu1 %v1649_v62, %s6753_s11  ;;  %v1292_v5 = vmul.f32 %v8054_v54, %v1291_v41  ;;  %v1301_v60 = vsub.f32 1.5, %v1300_v0  ;;  %v740_v41 = vpop.xlane.xlu1 %739  ;;  %vm8297_vm10 = vmor %vm1303_vm5, %vm1304_vm6 }
 0x178   :  { %v8253_v2 = vpop.eup %6436  ;;  %v1569_v22 = vmul.f32 %v8200_v50, %v1568_v27  ;;  %v8264_v63 = vadd.f32 1e-05, %v907_v29  ;;  %v1146_v23 = vsel %vm8230_vm4, %v8042_v43, %v1142_v11  ;;  %vm1434_vm9 = vweird.f32 %v8129_v8 }
 0x179   :  { %v8274_v4 = vpop.eup %6438  ;;  %v921_v1 = vmul.f32 0.0051020407, %v7999_v39  ;;  %v8278_v58 = vmul.f32 %v1146_v23, %v948_v32  ;;  %v1296_v48 = vsel %vm8259_vm8, %v8054_v54, %v1292_v5  ;;  %v1441_v43 = vsub.f32 1.5, %v1440_v16  ;;  %vm8313_vm12 = vmor %vm1433_vm7, %vm1434_vm9 }
 0x17a   :  { %v1431_v0 = vsub.f32 1.5, %v1430_v26  ;;  %v1108_v27 = vmul.f32 %v8245_v40, %v8155_v53  ;;  %v922_v29 = vmul.f32 0.0051020407, %v8136_v15  ;;  %v1578_v49 = vmul.f32 %v8253_v2, %v8162_v35 }
 0x17b   :  { %10778 = vst [vmem:[#allocation48_spill] sm:$0xff] %v8278_v58  ;;  %6440 = vrsqrt.f32 %v8249_v31  ;;  %v1650_v39 = vmul.f32 %v8278_v58, %v7285_v61  ;;  %v8291_v47 = vmul.f32 %v1296_v48, %v963_v25  ;;  %v1570_v62 = vmul.f32 0.5, %v1569_v22  ;;  %v964_v61 = vld [vmem:[%s10378_s2 + $0xc8] sm:$0xff]  ;;  %v10808_v58 = vld [vmem:[#allocation15_spill] sm:$0xff] }
 0x17c   :  { %v1118_v15 = vmul.f32 %v8274_v4, %v8177_v17  ;;  %6442 = vrsqrt.f32 %v8264_v63  ;;  %v1302_v16 = vmul.f32 %v8105_v30, %v1301_v60  ;;  %vm1443_vm11 = vweird.f32 %v8033_v12 }
 0x17d   :  { %v8272_v13 = vpop.xlane.xlu2 %829  ;;  %10779 = vst [vmem:[#allocation52_spill] sm:$0xff] %v8291_v47  ;;  %v8317_v26 = vadd.f32 1e-05, %v921_v1  ;;  %1767 = vrot.lane.b32.xlu0 %v1650_v39, %s6753_s11  ;;  %v1665_v32 = vmul.f32 %v8291_v47, %v7297_v24  ;;  %v1109_v11 = vmul.f32 %v8245_v40, %v1108_v27  ;;  %v8323_v5 = vadd.f32 1e-05, %v922_v29  ;;  %v788_v24 = vpop.xlane.xlu0 %787 }
 0x17e   :  { %v1306_v55 = vsel %vm8297_vm10, %v8105_v30, %v1302_v16  ;;  %v1432_v21 = vmul.f32 %v8129_v8, %v1431_v0  ;;  %vm1444_vm13 = vweird.f32 %v8115_v57  ;;  %v1579_v60 = vmul.f32 %v8253_v2, %v1578_v49  ;;  %v977_v30 = vld [vmem:[%s10378_s2 + $0x130] sm:$0xff] }
 0x17f   :  { %v935_v22 = vmul.f32 0.0051020407, %v8180_v56  ;;  %1797 = vrot.lane.b32.xlu2 %v1665_v32, %s6753_s11  ;;  %v8333_v23 = vmul.f32 %v1306_v55, %v964_v61  ;;  %v1571_v25 = vsub.f32 1.5, %v1570_v62  ;;  %v1119_v1 = vmul.f32 %v8274_v4, %v1118_v15  ;;  %vm8364_vm1 = vmor %vm1443_vm11, %vm1444_vm13  ;;  %v827_v15 = vpop.xlane.xlu1 %826 }
 0x180   :  { %v1436_v48 = vsel %vm8313_vm12, %v8129_v8, %v1432_v21  ;;  %v1442_v0 = vmul.f32 %v8115_v57, %v1441_v43  ;;  %vm1573_vm14 = vweird.f32 %v8101_v51  ;;  %6444 = vrsqrt.f32 %v8317_v26  ;;  %v978_v8 = vld [vmem:[%s10378_s2 + $0x138] sm:$0xff] }
 0x181   :  { %10784 = vst [vmem:[#allocation53_spill] sm:$0xff] %v8333_v23  ;;  %v8343_v27 = vpop.eup %6440  ;;  %v936_v56 = vmul.f32 0.0051020407, %v8076_v28  ;;  %v1666_v29 = vmul.f32 %v8333_v23, %v7291_v37  ;;  %vm1574_vm15 = vweird.f32 %v8200_v50  ;;  %v1110_v39 = vmul.f32 0.5, %v1109_v11 }
 0x182   :  { %v8350_v49 = vpop.eup %6442  ;;  %vm1583_vm0 = vweird.f32 %v8162_v35  ;;  %6446 = vrsqrt.f32 %v8323_v5  ;;  %v1580_v28 = vmul.f32 0.5, %v1579_v60  ;;  %v8368_v54 = vadd.f32 1e-05, %v935_v22  ;;  %vm8384_vm3 = vmor %vm1573_vm14, %vm1574_vm15  ;;  %v992_v35 = vld [vmem:[%s10378_s2 + $0x1a8] sm:$0xff] }
 0x183   :  { %v890_v62 = vmul.f32 0.0051020407, %v740_v41  ;;  %1799 = vrot.lane.b32.xlu1 %v1666_v29, %s6753_s11  ;;  %v8371_v61 = vmul.f32 %v1436_v48, %v977_v30  ;;  %vm1113_vm2 = vweird.f32 %v8155_v53  ;;  %v1120_v16 = vmul.f32 0.5, %v1119_v1  ;;  %v945_v41 = vld [vmem:[%s10378_s2 + $0x30] sm:$0xff] }
 0x184   :  { %v1278_v18 = vmul.f32 %v8343_v27, %v8249_v31  ;;  %v1446_v12 = vsel %vm8364_vm1, %v8115_v57, %v1442_v0  ;;  %v1572_v32 = vmul.f32 %v8200_v50, %v1571_v25  ;;  %v1268_v11 = vmul.f32 %v8350_v49, %v8264_v63  ;;  %v991_v57 = vld [vmem:[%s10378_s2 + $0x1a0] sm:$0xff] }
 0x185   :  { %v8358_v43 = vpop.xlane.xlu2 %730  ;;  %10787 = vst [vmem:[#allocation55_spill] sm:$0xff] %v8371_v61  ;;  %v8390_v55 = vadd.f32 1e-05, %v936_v56  ;;  %v1679_v21 = vmul.f32 %v8371_v61, %v7309_v14  ;;  %v8394_v60 = vmul.f32 %v1446_v12, %v978_v8  ;;  %vm1114_vm4 = vweird.f32 %v8245_v40  ;;  %v869_v37 = vpop.xlane.xlu0 %868 }
 0x186   :  { %vm1584_vm5 = vweird.f32 %v8253_v2  ;;  %vm1123_vm6 = vweird.f32 %v8177_v17  ;;  %v1576_v51 = vsel %vm8384_vm3, %v8200_v50, %v1572_v32  ;;  %v8405_v22 = vpop.eup %6444  ;;  %v1111_v25 = vsub.f32 1.5, %v1110_v39  ;;  %vm1115_vm10 = vmor %vm1113_vm2, %vm1114_vm4 }
 0x187   :  { %10790 = vst [vmem:[#allocation51_spill] sm:$0xff] %v8394_v60  ;;  %6448 = vrsqrt.f32 %v8368_v54  ;;  %v8408_v14 = vadd.f32 1e-05, %v890_v62  ;;  %1825 = vrot.lane.b32.xlu0 %v1679_v21, %s6753_s11  ;;  %v1680_v1 = vmul.f32 %v8394_v60, %v7321_v20  ;;  %v1581_v48 = vsub.f32 1.5, %v1580_v28  ;;  %vm8432_vm8 = vmor %vm1583_vm0, %vm1584_vm5 }
 0x188   :  { %v8413_v30 = vpop.eup %6446  ;;  %v1121_v0 = vsub.f32 1.5, %v1120_v16  ;;  %v889_v56 = vmul.f32 0.0051020407, %v8237_v19  ;;  %v8416_v29 = vmul.f32 %v1576_v51, %v991_v57  ;;  %v1279_v50 = vmul.f32 %v8343_v27, %v1278_v18  ;;  %v10792_v19 = vld [vmem:[#allocation13_spill] sm:$0xff] }
 0x189   :  { %v1269_v39 = vmul.f32 %v8350_v49, %v1268_v11  ;;  %6450 = vrsqrt.f32 %v8390_v55  ;;  %v906_v8 = vmul.f32 0.0051020407, %v788_v24  ;;  %1827 = vrot.lane.b32.xlu2 %v1680_v1, %s6753_s11  ;;  %vm1124_vm7 = vweird.f32 %v8274_v4  ;;  %v872_v1 = vpop.xlane.xlu1 %871 }
 0x18a   :  { %10791 = vst [vmem:[#allocation50_spill] sm:$0xff] %v8416_v29  ;;  %v1408_v20 = vmul.f32 %v8405_v22, %v8317_v26  ;;  %v905_v28 = vmul.f32 0.0051020407, %v8167_v33  ;;  %v1693_v62 = vmul.f32 %v8416_v29, %v10792_v19  ;;  %vm1273_vm9 = vweird.f32 %v8264_v63  ;;  %vm8469_vm11 = vmor %vm1123_vm6, %vm1124_vm7  ;;  %v10810_v29 = vld [vmem:[#allocation14_spill] sm:$0xff] }
 0x18b   :  { %v1418_v24 = vmul.f32 %v8413_v30, %v8323_v5  ;;  %6452 = vrsqrt.f32 %v8408_v14  ;;  %v919_v18 = vmul.f32 0.0051020407, %v827_v15  ;;  %v8440_v33 = vadd.f32 1e-05, %v889_v56 }
 0x18c   :  { %v920_v12 = vmul.f32 0.0051020407, %v8272_v13  ;;  %1853 = vrot.lane.b32.xlu1 %v1693_v62, %s6753_s11  ;;  %v1582_v32 = vmul.f32 %v8253_v2, %v1581_v48  ;;  %v1112_v11 = vmul.f32 %v8245_v40, %v1111_v25  ;;  %v8460_v13 = vmul.f32 0.5, %v1279_v50  ;;  %v10802_v25 = vld [vmem:[#allocation19_spill] sm:$0xff] }
 0x18d   :  { %v8452_v21 = vpop.xlane.xlu2 %781  ;;  %v8454_v15 = vpop.eup %6448  ;;  %v1270_v57 = vmul.f32 0.5, %v1269_v39  ;;  %v8462_v51 = vadd.f32 1e-05, %v906_v8  ;;  %v1122_v48 = vmul.f32 %v8274_v4, %v1121_v0  ;;  %v1409_v56 = vmul.f32 %v8405_v22, %v1408_v20  ;;  %v946_v0 = vld [vmem:[%s10378_s2 + $0x38] sm:$0xff] }
 0x18e   :  { %v8474_v53 = vadd.f32 1e-05, %v905_v28  ;;  %v1586_v50 = vsel %vm8432_vm8, %v8253_v2, %v1582_v32  ;;  %v1116_v39 = vsel %vm1115_vm10, %v8245_v40, %v1112_v11  ;;  %v8485_v17 = vadd.f32 1e-05, %v919_v18  ;;  %v10799_v18 = vld [vmem:[#allocation16_spill] sm:$0xff]  ;;  %v10800_v32 = vld [vmem:[#allocation17_spill] sm:$0xff] }
 0x18f   :  { %v8483_v8 = vpop.eup %6450  ;;  %v8487_v19 = vmul.f32 %v1586_v50, %v992_v35  ;;  %v8489_v62 = vmul.f32 %v1116_v39, %v945_v41  ;;  %v1126_v20 = vsel %vm8469_vm11, %v8274_v4, %v1122_v48  ;;  %v1548_v2 = vmul.f32 %v8454_v15, %v8368_v54  ;;  %v734_v39 = vpop.xlane.xlu0 %733 }
 0x190   :  { %v1419_v40 = vmul.f32 %v8413_v30, %v1418_v24  ;;  %6454 = vrsqrt.f32 %v8440_v33  ;;  %v8498_v28 = vadd.f32 1e-05, %v920_v12  ;;  %v8507_v4 = vmul.f32 %v1126_v20, %v946_v0 }
 0x191   :  { %10797 = vst [vmem:[#allocation54_spill] sm:$0xff] %v8487_v19  ;;  %v8500_v16 = vpop.eup %6452  ;;  %6456 = vrsqrt.f32 %v8462_v51  ;;  %v1694_v35 = vmul.f32 %v8487_v19, %v10799_v18  ;;  %v1647_v41 = vmul.f32 %v8489_v62, %v10800_v32  ;;  %v1271_v11 = vsub.f32 1.5, %v1270_v57 }
 0x192   :  { %10798 = vst [vmem:[#allocation58_spill] sm:$0xff] %v8489_v62  ;;  %vm1274_vm12 = vweird.f32 %v8350_v49  ;;  %v1558_v24 = vmul.f32 %v8483_v8, %v8390_v55  ;;  %6458 = vrsqrt.f32 %v8474_v53  ;;  %v1410_v12 = vmul.f32 0.5, %v1409_v56 }
 0x193   :  { %10801 = vst [vmem:[#allocation61_spill] sm:$0xff] %v8507_v4  ;;  %6460 = vrsqrt.f32 %v8485_v17  ;;  %v933_v48 = vmul.f32 0.0051020407, %v869_v37  ;;  %1855 = vrot.lane.b32.xlu0 %v1694_v35, %s6753_s11  ;;  %1761 = vrot.lane.b32.xlu2 %v1647_v41, %s6753_s11  ;;  %v1648_v50 = vmul.f32 %v8507_v4, %v10802_v25  ;;  %vm1283_vm13 = vweird.f32 %v8249_v31  ;;  %vm8535_vm0 = vmor %vm1273_vm9, %vm1274_vm12  ;;  %v779_v41 = vpop.xlane.xlu1 %778 }
 0x194   :  { %v1549_v57 = vmul.f32 %v8454_v15, %v1548_v2  ;;  %v8520_v0 = vmul.f32 0.5, %v1419_v40  ;;  %v1098_v56 = vmul.f32 %v8500_v16, %v8408_v14  ;;  %v1281_v20 = vsub.f32 1.5, %v8460_v13 }
 0x195   :  { %vm1413_vm14 = vweird.f32 %v8317_v26  ;;  %6462 = vrsqrt.f32 %v8498_v28  ;;  %v934_v37 = vmul.f32 0.0051020407, %v872_v1  ;;  %1763 = vrot.lane.b32.xlu1 %v1648_v50, %s6753_s11  ;;  %vm1284_vm15 = vweird.f32 %v8343_v27  ;;  %v8542_v40 = vpop.xlane.xlu2 %724  ;;  %v975_v26 = vld [vmem:[%s10378_s2 + $0x120] sm:$0xff] }
 0x196   :  { %v8528_v18 = vpop.eup %6454  ;;  %vm1414_vm1 = vweird.f32 %v8405_v22  ;;  %v1559_v13 = vmul.f32 %v8483_v8, %v1558_v24  ;;  %v1272_v1 = vmul.f32 %v8350_v49, %v1271_v11  ;;  %v1411_v32 = vsub.f32 1.5, %v1410_v12  ;;  %v961_v24 = vld [vmem:[%s10378_s2 + $0xb0] sm:$0xff]  ;;  %vm1285_vm7 = vmor %vm1283_vm13, %vm1284_vm15 }
 0x197   :  { %v8544_v35 = vpop.eup %6456  ;;  %vm1554_vm2 = vweird.f32 %v8454_v15  ;;  %vm1423_vm3 = vweird.f32 %v8323_v5  ;;  %vm1424_vm4 = vweird.f32 %v8413_v30  ;;  %v8549_v63 = vadd.f32 1e-05, %v933_v48  ;;  %vm8596_vm9 = vmor %vm1413_vm14, %vm1414_vm1  ;;  %v821_v6 = vpop.xlane.xlu0 %820 }
 0x198   :  { %v8554_v25 = vpop.eup %6458  ;;  %v8556_v11 = vmul.f32 0.5, %v1549_v57  ;;  %vm1553_vm5 = vweird.f32 %v8368_v54  ;;  %v1421_v12 = vsub.f32 1.5, %v8520_v0  ;;  %vm1564_vm6 = vweird.f32 %v8483_v8  ;;  %v8573_v57 = vld [vmem:[%s10378_s2 + $0xb8] sm:$0xff]  ;;  %vm8658_vm14 = vmor %vm1423_vm3, %vm1424_vm4 }
 0x199   :  { %v1099_v50 = vmul.f32 %v8500_v16, %v1098_v56  ;;  %v8562_v62 = vpop.eup %6460  ;;  %v8564_v48 = vadd.f32 1e-05, %v934_v37  ;;  %v887_v4 = vmul.f32 0.0051020407, %v8358_v43  ;;  %v1276_v60 = vsel %vm8535_vm0, %v8350_v49, %v1272_v1  ;;  %vm8645_vm12 = vmor %vm1553_vm5, %vm1554_vm2 }
 0x19a   :  { %v1282_v0 = vmul.f32 %v8343_v27, %v1281_v20  ;;  %v1560_v56 = vmul.f32 0.5, %v1559_v13  ;;  %vm1563_vm8 = vweird.f32 %v8390_v55  ;;  %v1088_v43 = vmul.f32 %v8528_v18, %v8440_v33 }
 0x19b   :  { %v1258_v49 = vmul.f32 %v8544_v35, %v8462_v51  ;;  %v8585_v37 = vmul.f32 %v1276_v60, %v961_v24  ;;  %v8587_v2 = vpop.eup %6462  ;;  %6464 = vrsqrt.f32 %v8549_v63  ;;  %v888_v20 = vmul.f32 0.0051020407, %v734_v39  ;;  %vm8672_vm15 = vmor %vm1563_vm8, %vm1564_vm6 }
 0x19c   :  { %v1286_v1 = vsel %vm1285_vm7, %v8343_v27, %v1282_v0  ;;  %v1412_v31 = vmul.f32 %v8405_v22, %v1411_v32  ;;  %v1248_v60 = vmul.f32 %v8554_v25, %v8474_v53  ;;  %v1388_v24 = vmul.f32 %v8562_v62, %v8485_v17 }
 0x19d   :  { %10805 = vst [vmem:[#allocation59_spill] sm:$0xff] %v8585_v37  ;;  %v1663_v39 = vmul.f32 %v8585_v37, %v10808_v58  ;;  %v8607_v27 = vmul.f32 %v1286_v1, %v8573_v57  ;;  %v8612_v32 = vmul.f32 0.5, %v1099_v50  ;;  %6466 = vrsqrt.f32 %v8564_v48 }
 0x19e   :  { %v8615_v0 = vadd.f32 1e-05, %v887_v4  ;;  %v1416_v19 = vsel %vm8596_vm9, %v8405_v22, %v1412_v31  ;;  %v1259_v58 = vmul.f32 %v8544_v35, %v1258_v49  ;;  %v1398_v1 = vmul.f32 %v8587_v2, %v8498_v28  ;;  %v824_v31 = vpop.xlane.xlu1 %823 }
 0x19f   :  { %10809 = vst [vmem:[#allocation57_spill] sm:$0xff] %v8607_v27  ;;  %v903_v37 = vmul.f32 0.0051020407, %v779_v41  ;;  %1793 = vrot.lane.b32.xlu0 %v1663_v39, %s6753_s11  ;;  %v1664_v50 = vmul.f32 %v8607_v27, %v10810_v29  ;;  %v1551_v61 = vsub.f32 1.5, %v8556_v11  ;;  %v1561_v4 = vsub.f32 1.5, %v1560_v56  ;;  %v8637_v29 = vpop.xlane.xlu2 %775  ;;  %v976_v56 = vld [vmem:[%s10378_s2 + $0x128] sm:$0xff]  ;;  %v728_v54 = vpop.xlane.xlu0 %727 }
 0x1a0   :  { %v8627_v23 = vadd.f32 1e-05, %v888_v20  ;;  %v8629_v47 = vmul.f32 %v1416_v19, %v975_v26  ;;  %v1089_v22 = vmul.f32 %v8528_v18, %v1088_v43  ;;  %vm1093_vm10 = vweird.f32 %v8440_v33  ;;  %v10814_v43 = vld [vmem:[#allocation18_spill] sm:$0xff] }
 0x1a1   :  { %vm1094_vm11 = vweird.f32 %v8528_v18  ;;  %v1249_v41 = vmul.f32 %v8554_v25, %v1248_v60  ;;  %v1389_v49 = vmul.f32 %v8562_v62, %v1388_v24  ;;  %1795 = vrot.lane.b32.xlu2 %v1664_v50, %s6753_s11  ;;  %v8639_v11 = vpop.eup %6464  ;;  %vm1263_vm13 = vweird.f32 %v8462_v51 }
 0x1a2   :  { %10811 = vst [vmem:[#allocation60_spill] sm:$0xff] %v8629_v47  ;;  %6468 = vrsqrt.f32 %v8615_v0  ;;  %v1677_v20 = vmul.f32 %v8629_v47, %v10814_v43  ;;  %v1260_v13 = vmul.f32 0.5, %v1259_v58  ;;  %v1399_v60 = vmul.f32 %v8587_v2, %v1398_v1  ;;  %vm8743_vm6 = vmor %vm1093_vm10, %vm1094_vm11 }
 0x1a3   :  { %v8663_v24 = vadd.f32 1e-05, %v903_v37  ;;  %v1422_v39 = vmul.f32 %v8413_v30, %v1421_v12  ;;  %v8666_v26 = vpop.eup %6466  ;;  %6470 = vrsqrt.f32 %v8627_v23  ;;  %v904_v5 = vmul.f32 0.0051020407, %v8452_v21  ;;  %v989_v21 = vld [vmem:[%s10378_s2 + $0x190] sm:$0xff] }
 0x1a4   :  { %1821 = vrot.lane.b32.xlu1 %v1677_v20, %s6753_s11  ;;  %v1552_v37 = vmul.f32 %v8454_v15, %v1551_v61  ;;  %v1562_v12 = vmul.f32 %v8483_v8, %v1561_v4  ;;  %v1090_v58 = vmul.f32 0.5, %v1089_v22  ;;  %v8681_v1 = vmul.f32 0.5, %v1249_v41  ;;  %v990_v61 = vld [vmem:[%s10378_s2 + $0x198] sm:$0xff] }
 0x1a5   :  { %v1390_v43 = vmul.f32 0.5, %v1389_v49  ;;  %v1528_v55 = vmul.f32 %v8639_v11, %v8549_v63  ;;  %v917_v4 = vmul.f32 0.0051020407, %v821_v6  ;;  %v1426_v22 = vsel %vm8658_vm14, %v8413_v30, %v1422_v39 }
 0x1a6   :  { %v1556_v41 = vsel %vm8645_vm12, %v8454_v15, %v1552_v37  ;;  %v1566_v49 = vsel %vm8672_vm15, %v8483_v8, %v1562_v12  ;;  %vm1104_vm0 = vweird.f32 %v8500_v16  ;;  %v1261_v20 = vsub.f32 1.5, %v1260_v13 }
 0x1a7   :  { %v1400_v47 = vmul.f32 0.5, %v1399_v60  ;;  %v1538_v27 = vmul.f32 %v8666_v26, %v8564_v48  ;;  %6472 = vrsqrt.f32 %v8663_v24  ;;  %vm1254_vm1 = vweird.f32 %v8554_v25  ;;  %v8721_v37 = vpop.permute.xlu2 %1777 }
 0x1a8   :  { %v8707_v6 = vpop.eup %6468  ;;  %v8710_v30 = vadd.f32 1e-05, %v904_v5  ;;  %v8712_v15 = vmul.f32 %v1426_v22, %v976_v56  ;;  %v8714_v19 = vmul.f32 %v1556_v41, %v989_v21  ;;  %v8716_v8 = vmul.f32 %v1566_v49, %v990_v61  ;;  %v10821_v5 = vld [vmem:[#allocation22_spill] sm:$0xff]  ;;  %v10822_v21 = vld [vmem:[#allocation23_spill] sm:$0xff]  ;;  %v10823_v22 = vld [vmem:[#allocation25_spill] sm:$0xff] }
 0x1a9   :  { %vm1103_vm2 = vweird.f32 %v8408_v14  ;;  %v1091_v13 = vsub.f32 1.5, %v1090_v58  ;;  %v1251_v60 = vsub.f32 1.5, %v8681_v1  ;;  %v1529_v39 = vmul.f32 %v8639_v11, %v1528_v55  ;;  %v8723_v12 = vpop.eup %6470  ;;  %v959_v14 = vld [vmem:[%s10378_s2 + $0xa0] sm:$0xff] }
 0x1aa   :  { %10819 = vst [vmem:[#allocation56_spill] sm:$0xff] %v8712_v15  ;;  %v918_v50 = vmul.f32 0.0051020407, %v824_v31  ;;  %vm1253_vm3 = vweird.f32 %v8474_v53  ;;  %vm1394_vm4 = vweird.f32 %v8562_v62  ;;  %vm1264_vm5 = vweird.f32 %v8544_v35  ;;  %vm8810_vm12 = vmor %vm1103_vm2, %vm1104_vm0 }
 0x1ab   :  { %10820 = vst [vmem:[#allocation64_spill] sm:$0xff] %v8714_v19  ;;  %v8728_v56 = vadd.f32 1e-05, %v917_v4  ;;  %v1678_v58 = vmul.f32 %v8712_v15, %v10821_v5  ;;  %v1691_v1 = vmul.f32 %v8714_v19, %v10822_v21  ;;  %v1391_v55 = vsub.f32 1.5, %v1390_v43  ;;  %v773_v5 = vpop.xlane.xlu1 %772  ;;  %vm8761_vm8 = vmor %vm1263_vm13, %vm1264_vm5 }
 0x1ac   :  { %v1539_v31 = vmul.f32 %v8666_v26, %v1538_v27  ;;  %v1068_v61 = vmul.f32 %v8707_v6, %v8615_v0  ;;  %v1692_v41 = vmul.f32 %v8716_v8, %v10823_v22  ;;  %vm1393_vm7 = vweird.f32 %v8485_v17  ;;  %vm8833_vm14 = vmor %vm1253_vm3, %vm1254_vm1 }
 0x1ad   :  { %v8749_v43 = vmul.f32 %v8544_v35, %v1261_v20  ;;  %v1401_v27 = vsub.f32 1.5, %v1400_v47  ;;  %6474 = vrsqrt.f32 %v8710_v30  ;;  %v885_v49 = vmul.f32 0.0051020407, %v8542_v40  ;;  %1823 = vrot.lane.b32.xlu0 %v1678_v58, %s6753_s11  ;;  %1849 = vrot.lane.b32.xlu2 %v1691_v1, %s6753_s11  ;;  %v8755_v33 = vpop.eup %6472  ;;  %v943_v58 = vld [vmem:[%s10378_s2 + $0x20] sm:$0xff]  ;;  %vm8861_vm1 = vmor %vm1393_vm7, %vm1394_vm4 }
 0x1ae   :  { %vm1403_vm9 = vweird.f32 %v8498_v28  ;;  %v1530_v47 = vmul.f32 0.5, %v1529_v39  ;;  %v1078_v40 = vmul.f32 %v8723_v12, %v8627_v23  ;;  %v8768_v20 = vadd.f32 1e-05, %v918_v50  ;;  %1851 = vrot.lane.b32.xlu1 %v1692_v41, %s6753_s11 }
 0x1af   :  { %v1092_v51 = vmul.f32 %v8528_v18, %v1091_v13  ;;  %vm1404_vm10 = vweird.f32 %v8587_v2  ;;  %vm1533_vm11 = vweird.f32 %v8549_v63  ;;  %6476 = vrsqrt.f32 %v8728_v56  ;;  %v8802_v4 = vpop.permute.xlu2 %1809  ;;  %v10845_v63 = vld [vmem:[#allocation24_spill] sm:$0xff] }
 0x1b0   :  { %v886_v39 = vmul.f32 0.0051020407, %v728_v54  ;;  %v8779_v1 = vmul.f32 %v8562_v62, %v1391_v55  ;;  %v1540_v50 = vmul.f32 0.5, %v1539_v31  ;;  %v1069_v22 = vmul.f32 %v8707_v6, %v1068_v61  ;;  %v8796_v55 = vpop.permute.xlu0 %1841  ;;  %vm8876_vm2 = vmor %vm1403_vm9, %vm1404_vm10 }
 0x1b1   :  { %v1096_v41 = vsel %vm8743_vm6, %v8528_v18, %v1092_v51  ;;  %v1266_v13 = vsel %vm8761_vm8, %v8544_v35, %v8749_v43  ;;  %v8790_v19 = vmul.f32 %v8587_v2, %v1401_v27  ;;  %v8792_v15 = vadd.f32 1e-05, %v885_v49  ;;  %v10831_v49 = vld [vmem:[#allocation21_spill] sm:$0xff] }
 0x1b2   :  { %v8794_v54 = vmul.f32 %v1096_v41, %v943_v58  ;;  %v1531_v31 = vsub.f32 1.5, %v1530_v47  ;;  %v1228_v61 = vmul.f32 %v8755_v33, %v8663_v24  ;;  %v1079_v18 = vmul.f32 %v8723_v12, %v1078_v40  ;;  %v944_v47 = vld [vmem:[%s10378_s2 + $0x28] sm:$0xff] }
 0x1b3   :  { %6478 = vrsqrt.f32 %v8768_v20  ;;  %v8804_v35 = vpop.eup %6474  ;;  %vm1544_vm13 = vweird.f32 %v8666_v26  ;;  %v8815_v27 = vadd.f32 1e-05, %v886_v39  ;;  %v10832_v40 = vsub.f32 1.5, %v8612_v32 }
 0x1b4   :  { %10828 = vst [vmem:[#allocation67_spill] sm:$0xff] %v8794_v54  ;;  %v1645_v21 = vmul.f32 %v8794_v54, %v10831_v49  ;;  %v1252_v51 = vmul.f32 %v8554_v25, %v1251_v60  ;;  %v1541_v41 = vsub.f32 1.5, %v1540_v50  ;;  %vm1534_vm15 = vweird.f32 %v8639_v11 }
 0x1b5   :  { %v1102_v58 = vmul.f32 %v8500_v16, %v10832_v40  ;;  %v1070_v32 = vmul.f32 0.5, %v1069_v22  ;;  %v901_v49 = vmul.f32 0.0051020407, %v773_v5  ;;  %v8841_v40 = vld [vmem:[%s10378_s2 + $0xa8] sm:$0xff]  ;;  %v8843_v54 = vpop.eup %6476  ;;  %vm1543_vm0 = vweird.f32 %v8564_v48  ;;  %vm8895_vm3 = vmor %vm1533_vm11, %vm1534_vm15 }
 0x1b6   :  { %6480 = vrsqrt.f32 %v8792_v15  ;;  %v902_v53 = vmul.f32 0.0051020407, %v8637_v29  ;;  %1757 = vrot.lane.b32.xlu0 %v1645_v21, %s6753_s11  ;;  %v1256_v5 = vsel %vm8833_vm14, %v8554_v25, %v1252_v51  ;;  %v8855_v50 = vpop.permute.xlu1 %1843  ;;  %v1532_v29 = vmul.f32 %v8639_v11, %v1531_v31  ;;  %vm8957_vm7 = vmor %vm1543_vm0, %vm1544_vm13 }
 0x1b7   :  { %v1106_v60 = vsel %vm8810_vm12, %v8500_v16, %v1102_v58  ;;  %v1238_v43 = vmul.f32 %v8804_v35, %v8710_v30  ;;  %v8870_v21 = vmul.f32 %v1256_v5, %v959_v14  ;;  %v1229_v17 = vmul.f32 %v8755_v33, %v1228_v61  ;;  %v973_v5 = vld [vmem:[%s10378_s2 + $0x110] sm:$0xff] }
 0x1b8   :  { %v8868_v16 = vmul.f32 %v1106_v60, %v944_v47  ;;  %v1080_v58 = vmul.f32 0.5, %v1079_v18  ;;  %6482 = vrsqrt.f32 %v8815_v27  ;;  %v8883_v31 = vmul.f32 %v1266_v13, %v8841_v40  ;;  %v10844_v18 = vld [vmem:[#allocation20_spill] sm:$0xff] }
 0x1b9   :  { %10838 = vst [vmem:[#allocation63_spill] sm:$0xff] %v8870_v21  ;;  %v8885_v47 = vpop.eup %6478  ;;  %v1396_v14 = vsel %vm8861_vm1, %v8562_v62, %v8779_v1  ;;  %v1368_v61 = vmul.f32 %v8843_v54, %v8728_v56  ;;  %v8901_v13 = vadd.f32 1e-05, %v901_v49  ;;  %v1406_v62 = vsel %vm8876_vm2, %v8587_v2, %v8790_v19  ;;  %v974_v2 = vld [vmem:[%s10378_s2 + $0x118] sm:$0xff]  ;;  %v8924_v19 = vpop.permute.xlu2 %1839 }
 0x1ba   :  { %10837 = vst [vmem:[#allocation65_spill] sm:$0xff] %v8868_v16  ;;  %v1646_v51 = vmul.f32 %v8868_v16, %v10844_v18  ;;  %v1071_v1 = vsub.f32 1.5, %v1070_v32  ;;  %v8909_v39 = vadd.f32 1e-05, %v902_v53  ;;  %v1661_v60 = vmul.f32 %v8870_v21, %v10845_v63  ;;  %v10846_v18 = vld [vmem:[#allocation27_spill] sm:$0xff] }
 0x1bb   :  { %10841 = vst [vmem:[#allocation66_spill] sm:$0xff] %v8883_v31  ;;  %v1542_v49 = vmul.f32 %v8666_v26, %v1541_v41  ;;  %vm1074_vm4 = vweird.f32 %v8707_v6  ;;  %vm1083_vm5 = vweird.f32 %v8627_v23  ;;  %v1239_v22 = vmul.f32 %v8804_v35, %v1238_v43 }
 0x1bc   :  { %1759 = vrot.lane.b32.xlu2 %v1646_v51, %s6753_s11  ;;  %v8926_v32 = vpop.eup %6480  ;;  %v1536_v41 = vsel %vm8895_vm3, %v8639_v11, %v1532_v29  ;;  %v1230_v53 = vmul.f32 0.5, %v1229_v17  ;;  %v1081_v25 = vsub.f32 1.5, %v1080_v58  ;;  %1789 = vrot.lane.b32.xlu1 %v1661_v60, %s6753_s11  ;;  %v1662_v43 = vmul.f32 %v8883_v31, %v10846_v18  ;;  %v8934_v51 = vpop.permute.xlu0 %1779  ;;  %v987_v11 = vld [vmem:[%s10378_s2 + $0x180] sm:$0xff] }
 0x1bd   :  { %v1378_v63 = vmul.f32 %v8885_v47, %v8768_v20  ;;  %v1369_v16 = vmul.f32 %v8843_v54, %v1368_v61  ;;  %6484 = vrsqrt.f32 %v8901_v13  ;;  %v8940_v21 = vmul.f32 %v1396_v14, %v973_v5 }
 0x1be   :  { %v8945_v29 = vpop.eup %6482  ;;  %v1072_v17 = vmul.f32 %v8707_v6, %v1071_v1  ;;  %vm1084_vm6 = vweird.f32 %v8723_v12  ;;  %6486 = vrsqrt.f32 %v8909_v39  ;;  %1791 = vrot.lane.b32.xlu0 %v1662_v43, %s6753_s11  ;;  %v8951_v58 = vmul.f32 %v1406_v62, %v974_v2  ;;  %v8973_v5 = vpop.permute.xlu1 %1811  ;;  %v10854_v43 = vld [vmem:[#allocation31_spill] sm:$0xff] }
 0x1bf   :  { %vm1073_vm8 = vweird.f32 %v8615_v0  ;;  %v1240_v28 = vmul.f32 0.5, %v1239_v22  ;;  %v1048_v61 = vmul.f32 %v8926_v32, %v8792_v15  ;;  %v1231_v62 = vsub.f32 1.5, %v1230_v53  ;;  %vm8977_vm10 = vmor %vm1083_vm5, %vm1084_vm6 }
 0x1c0   :  { %10847 = vst [vmem:[#allocation62_spill] sm:$0xff] %v8951_v58  ;;  %vm8966_vm9 = vmor %vm1073_vm8, %vm1074_vm4  ;;  %v1082_v60 = vmul.f32 %v8723_v12, %v1081_v25  ;;  %v8971_v48 = vmul.f32 %v1536_v41, %v987_v11  ;;  %v1379_v22 = vmul.f32 %v8885_v47, %v1378_v63  ;;  %v1370_v2 = vmul.f32 0.5, %v1369_v16  ;;  %v10855_v25 = vld [vmem:[#allocation29_spill] sm:$0xff]  ;;  %v988_v16 = vld [vmem:[%s10378_s2 + $0x188] sm:$0xff] }
 0x1c1   :  { %v1058_v18 = vmul.f32 %v8945_v29, %v8815_v27  ;;  %v1675_v53 = vmul.f32 %v8940_v21, %v10854_v43  ;;  %v1546_v41 = vsel %vm8957_vm7, %v8666_v26, %v1542_v49  ;;  %v1076_v23 = vsel %vm8966_vm9, %v8707_v6, %v1072_v17  ;;  %v941_v6 = vld [vmem:[%s10378_s2 + $0x10] sm:$0xff]  ;;  %v9007_v49 = vpop.permute.xlu2 %1805 }
 0x1c2   :  { %vm1233_vm11 = vweird.f32 %v8663_v24  ;;  %v1676_v63 = vmul.f32 %v8951_v58, %v10855_v25  ;;  %vm1234_vm12 = vweird.f32 %v8755_v33  ;;  %v1241_v43 = vsub.f32 1.5, %v1240_v28 }
 0x1c3   :  { %v8998_v11 = vpop.eup %6484  ;;  %vm1244_vm13 = vweird.f32 %v8804_v35  ;;  %v1049_v26 = vmul.f32 %v8926_v32, %v1048_v61  ;;  %v1232_v14 = vmul.f32 %v8755_v33, %v1231_v62  ;;  %v1086_v28 = vsel %vm8977_vm10, %v8723_v12, %v1082_v60  ;;  %v10856_v61 = vld [vmem:[#allocation26_spill] sm:$0xff]  ;;  %vm9044_vm0 = vmor %vm1233_vm11, %vm1234_vm12 }
 0x1c4   :  { %1817 = vrot.lane.b32.xlu2 %v1675_v53, %s6753_s11  ;;  %v9009_v17 = vpop.eup %6486  ;;  %vm1373_vm14 = vweird.f32 %v8728_v56  ;;  %1819 = vrot.lane.b32.xlu1 %v1676_v63, %s6753_s11  ;;  %v1689_v1 = vmul.f32 %v8971_v48, %v10856_v61  ;;  %v1380_v53 = vmul.f32 0.5, %v1379_v22  ;;  %v1371_v25 = vsub.f32 1.5, %v1370_v2  ;;  %v9025_v62 = vld [vmem:[%s10378_s2 + $0x18] sm:$0xff]  ;;  %v9032_v0 = vpop.permute.xlu0 %1837 }
 0x1c5   :  { %v1059_v58 = vmul.f32 %v8945_v29, %v1058_v18  ;;  %v9020_v31 = vmul.f32 %v1546_v41, %v988_v16  ;;  %v1208_v12 = vmul.f32 %v8998_v11, %v8901_v13  ;;  %v9030_v60 = vmul.f32 %v1076_v23, %v941_v6  ;;  %v10861_v6 = vld [vmem:[#allocation30_spill] sm:$0xff] }
 0x1c6   :  { %1845 = vrot.lane.b32.xlu0 %v1689_v1, %s6753_s11  ;;  %v1242_v22 = vmul.f32 %v8804_v35, %v1241_v43  ;;  %vm1374_vm15 = vweird.f32 %v8843_v54  ;;  %v1050_v2 = vmul.f32 0.5, %v1049_v26  ;;  %v1218_v18 = vmul.f32 %v9009_v17, %v8909_v39  ;;  %v9079_v23 = vpop.permute.xlu1 %1773 }
 0x1c7   :  { %v10506_v41 = vmov 1   ;;  %v10504_v63 = vmov 0   ;;  %vm1243_vm1 = vweird.f32 %v8710_v30  ;;  %v9050_v16 = vmul.f32 %v1086_v28, %v9025_v62  ;;  %vm9069_vm3 = vmor %vm1373_vm14, %vm1374_vm15 }
 0x1c8   :  { %6336 = vset.pattern.permute.xlu0 %v10506_v41  ;;  %6333 = vset.pattern.permute.xlu2 %v10504_v63  ;;  %vm9055_vm2 = vmor %vm1243_vm1, %vm1244_vm13  ;;  %v1372_v26 = vmul.f32 %v8843_v54, %v1371_v25  ;;  %v1060_v24 = vmul.f32 0.5, %v1059_v58  ;;  %v1690_v61 = vmul.f32 %v9020_v31, %v10861_v6  ;;  %v1236_v30 = vsel %vm9044_vm0, %v8755_v33, %v1232_v14  ;;  %v10864_v25 = vld [vmem:[#allocation28_spill] sm:$0xff]  ;;  %v957_v6 = vld [vmem:[%s10378_s2 + $0x90] sm:$0xff] }
 0x1c9   :  { %6334 = vset.pattern.permute.xlu1 %v10504_v63  ;;  %v1381_v28 = vsub.f32 1.5, %v1380_v53  ;;  %v1209_v63 = vmul.f32 %v8998_v11, %v1208_v12  ;;  %v1643_v58 = vmul.f32 %v9030_v60, %v10864_v25  ;;  %v1246_v33 = vsel %vm9055_vm2, %v8804_v35, %v1242_v22  ;;  %v958_v53 = vld [vmem:[%s10378_s2 + $0x98] sm:$0xff]  ;;  %v9089_v12 = vpop.permute.xlu2 %1835  ;;  %v10865_v25 = vld [vmem:[#allocation33_spill] sm:$0xff] }
 0x1ca   :  { %v1051_v56 = vsub.f32 1.5, %v1050_v2  ;;  %v1219_v14 = vmul.f32 %v9009_v17, %v1218_v18  ;;  %vm1383_vm4 = vweird.f32 %v8768_v20  ;;  %v1644_v41 = vmul.f32 %v9050_v16, %v10865_v25  ;;  %v9104_v18 = vld [vmem:[%s10378_s2 + $0x100] sm:$0xff] }
 0x1cb   :  { %vm1384_vm5 = vweird.f32 %v8885_v47  ;;  %v1376_v35 = vsel %vm9069_vm3, %v8843_v54, %v1372_v26  ;;  %v1061_v22 = vsub.f32 1.5, %v1060_v24  ;;  %v9099_v2 = vmul.f32 %v1236_v30, %v957_v6  ;;  %v10870_v30 = vld [vmem:[#allocation37_spill] sm:$0xff] }
 0x1cc   :  { %1847 = vrot.lane.b32.xlu2 %v1690_v61, %s6753_s11  ;;  %1753 = vrot.lane.b32.xlu1 %v1643_v58, %s6753_s11  ;;  %v1382_v43 = vmul.f32 %v8885_v47, %v1381_v28  ;;  %vm1054_vm6 = vweird.f32 %v8926_v32  ;;  %v1210_v61 = vmul.f32 0.5, %v1209_v63  ;;  %v9109_v58 = vmul.f32 %v1246_v33, %v958_v53  ;;  %vm9116_vm9 = vmor %vm1383_vm4, %vm1384_vm5  ;;  %v10873_v33 = vld [vmem:[#allocation35_spill] sm:$0xff] }
 0x1cd   :  { %v1052_v1 = vmul.f32 %v8926_v32, %v1051_v56  ;;  %vm1063_vm7 = vweird.f32 %v8815_v27  ;;  %vm1064_vm8 = vweird.f32 %v8945_v29  ;;  %v1220_v54 = vmul.f32 0.5, %v1219_v14  ;;  %v972_v14 = vld [vmem:[%s10378_s2 + $0x108] sm:$0xff] }
 0x1ce   :  { %1755 = vrot.lane.b32.xlu0 %v1644_v41, %s6753_s11  ;;  %vm1053_vm10 = vweird.f32 %v8792_v15  ;;  %v9122_v63 = vmul.f32 %v1376_v35, %v9104_v18  ;;  %v9124_v41 = vpop.permute.xlu0 %1775  ;;  %v1062_v27 = vmul.f32 %v8945_v29, %v1061_v22  ;;  %v1659_v20 = vmul.f32 %v9099_v2, %v10870_v30  ;;  %vm9136_vm12 = vmor %vm1063_vm7, %vm1064_vm8  ;;  %v10874_v22 = vld [vmem:[#allocation32_spill] sm:$0xff] }
 0x1cf   :  { %vm9126_vm11 = vmor %vm1053_vm10, %vm1054_vm6  ;;  %v1386_v28 = vsel %vm9116_vm9, %v8885_v47, %v1382_v43  ;;  %v1211_v6 = vsub.f32 1.5, %v1210_v61  ;;  %v1660_v56 = vmul.f32 %v9109_v58, %v10873_v33  ;;  %v1221_v25 = vsub.f32 1.5, %v1220_v54  ;;  %v939_v47 = vld [vmem:[%s10378_s2] sm:$0xff]  ;;  %v1808_v61 = vpop.permute.xlu1 %1807 }
 0x1d0   :  { %v1056_v53 = vsel %vm9126_vm11, %v8926_v32, %v1052_v1  ;;  %v1673_v43 = vmul.f32 %v9122_v63, %v10874_v22  ;;  %v1066_v26 = vsel %vm9136_vm12, %v8945_v29, %v1062_v27  ;;  %v9160_v32 = vmul.f32 %v1386_v28, %v972_v14  ;;  %v940_v1 = vld [vmem:[%s10378_s2 + $0x8] sm:$0xff]  ;;  %v955_v33 = vld [vmem:[%s10378_s2 + $0x80] sm:$0xff] }
 0x1d1   :  { %v9152_v35 = vpop.permute.xlu2 %1801  ;;  %v1212_v54 = vmul.f32 %v8998_v11, %v1211_v6  ;;  %vm1214_vm13 = vweird.f32 %v8998_v11  ;;  %v9168_v24 = vmul.f32 %v1056_v53, %v939_v47  ;;  %v1222_v30 = vmul.f32 %v9009_v17, %v1221_v25  ;;  %v10875_v27 = vld [vmem:[#allocation36_spill] sm:$0xff]  ;;  %v10876_v6 = vld [vmem:[#allocation34_spill] sm:$0xff]  ;;  %v10879_v22 = vld [vmem:[#allocation43_spill] sm:$0xff] }
 0x1d2   :  { %vm1224_vm14 = vweird.f32 %v9009_v17  ;;  %vm1213_vm15 = vweird.f32 %v8901_v13  ;;  %v9173_v29 = vmul.f32 %v1066_v26, %v940_v1  ;;  %vm1223_vm1 = vweird.f32 %v8909_v39  ;;  %v956_v39 = vld [vmem:[%s10378_s2 + $0x88] sm:$0xff]  ;;  %v10880_v26 = vld [vmem:[#allocation41_spill] sm:$0xff] }
 0x1d3   :  { %vm1215_vm0 = vmor %vm1213_vm15, %vm1214_vm13  ;;  %v1641_v15 = vmul.f32 %v9168_v24, %v10876_v6  ;;  %v10881_v6 = vld [vmem:[#allocation42_spill] sm:$0xff]  ;;  %vm4098_vm3 = vcmask 392192  }
 0x1d4   :  { %1785 = vrot.lane.b32.xlu2 %v1659_v20, %s6753_s11  ;;  %1787 = vrot.lane.b32.xlu1 %v1660_v56, %s6753_s11  ;;  %v1674_v20 = vmul.f32 %v9160_v32, %v10875_v27  ;;  %v1216_v28 = vsel %vm1215_vm0, %v8998_v11, %v1212_v54  ;;  %vm1225_vm2 = vmor %vm1223_vm1, %vm1224_vm14  ;;  %v10877_v11 = vld [vmem:[#allocation39_spill] sm:$0xff] }
 0x1d5   :  { %v1226_v13 = vsel %vm1225_vm2, %v9009_v17, %v1222_v30  ;;  %v1642_v53 = vmul.f32 %v9173_v29, %v10877_v11  ;;  %v9196_v25 = vmul.f32 %v1216_v28, %v955_v33  ;;  %v6488_v30 = vld [vmem:[%s10378_s2 + $0x178] sm:$0xff] }
 0x1d6   :  { %1813 = vrot.lane.b32.xlu0 %v1673_v43, %s6753_s11  ;;  %v9184_v56 = vpop.permute.xlu0 %1833  ;;  %v9199_v47 = vmul.f32 %v1226_v13, %v956_v39  ;;  %v1958_v27 = vsub.f32 %v6488_v30, %v8855_v50  ;;  %v10882_v13 = vld [vmem:[#allocation40_spill] sm:$0xff] }
 0x1d7   :  { %10878 = vst [vmem:[#allocation70_spill] sm:$0xff] %v9196_v25  ;;  %v9201_v17 = vpop.permute.xlu1 %1769  ;;  %v1657_v43 = vmul.f32 %v9196_v25, %v10879_v22 }
 0x1d8   :  { %v1658_v1 = vmul.f32 %v9199_v47, %v10880_v26 }
 0x1d9   :  { %v9191_v14 = vpop.permute.xlu2 %1831 }
 0x1dc   :  { %1815 = vrot.lane.b32.xlu2 %v1674_v20, %s6753_s11  ;;  %1749 = vrot.lane.b32.xlu1 %v1641_v15, %s6753_s11  ;;  %v6489_v15 = vld [vmem:[%s10378_s2 + $0x70] sm:$0xff] }
 0x1dd   :  { %v1925_v33 = vsub.f32 %v6489_v15, %v8721_v37  ;;  %v6491_v37 = vld [vmem:[%s10378_s2 + $0xe8] sm:$0xff] }
 0x1de   :  { %1751 = vrot.lane.b32.xlu0 %v1642_v53, %s6753_s11  ;;  %v9215_v20 = vpop.permute.xlu0 %1771  ;;  %v6490_v53 = vld [vmem:[%s10378_s2 + $0x170] sm:$0xff]  ;;  %v1940_v26 = vsub.f32 %v6491_v37, %v1808_v61 }
 0x1df   :  { %v1957_v22 = vsub.f32 %v6490_v53, %v8796_v55  ;;  %v6492_v55 = vld [vmem:[%s10378_s2 + $0x140] sm:$0xff]  ;;  %v10887_v53 = vld [vmem:[#allocation49_spill] sm:$0xff] }
 0x1e1   :  { %v9208_v54 = vpop.permute.xlu2 %1797  ;;  %v9217_v28 = vpop.permute.xlu1 %1803 }
 0x1e4   :  { %1781 = vrot.lane.b32.xlu2 %v1657_v43, %s6753_s11  ;;  %1783 = vrot.lane.b32.xlu1 %v1658_v1, %s6753_s11  ;;  %v10883_v43 = vld [vmem:[#allocation46_spill] sm:$0xff]  ;;  %v10884_v1 = vmov 1  }
 0x1e6   :  { %2688 = vperm.xlu0 %6336, %v1958_v27  }
 0x1e7   :  { %v1830_v50 = vpop.permute.xlu0 %1829 }
 0x1e8   :  { %v1951_v15 = vsub.f32 %v6492_v55, %v1830_v50 }
 0x1e9   :  { %v9225_v39 = vpop.permute.xlu2 %1827  ;;  %v9227_v11 = vpop.permute.xlu1 %1765 }
 0x1ec   :  { %2310 = vperm.xlu2 %6333, %v10881_v6   ;;  %2145 = vperm.xlu1 %6334, %v10882_v13   ;;  %v10885_v6 = vld [vmem:[#allocation47_spill] sm:$0xff]  ;;  %v10886_v13 = vmov 0  }
 0x1ee   :  { %2523 = vperm.xlu0 %6336, %v1925_v33  }
 0x1ef   :  { %v9240_v27 = vpop.permute.xlu0 %1767 }
 0x1f1   :  { %v9238_v30 = vpop.permute.xlu2 %1761 }
 0x1f4   :  { %2150 = vperm.xlu2 %6333, %v10883_v43   ;;  %6335 = vset.pattern.permute.xlu1 %v10884_v1 }
 0x1f5   :  { %2683 = vperm.xlu1 %6335, %v1957_v22   ;;  %v1800_v33 = vpop.permute.xlu1 %1799  ;;  %v6493_v22 = vld [vmem:[%s10378_s2 + $0xc8] sm:$0xff] }
 0x1f6   :  { %2598 = vperm.xlu0 %6336, %v1940_v26   ;;  %v1936_v43 = vsub.f32 %v6493_v22, %v1800_v33  ;;  %v6494_v26 = vld [vmem:[%s10378_s2 + $0x78] sm:$0xff]  ;;  %v6497_v22 = vld [vmem:[%s10378_s2 + $0x160] sm:$0xff] }
 0x1f9   :  { %v9251_v37 = vpop.permute.xlu0 %1825 }
 0x1fb   :  { %v1796_v61 = vpop.permute.xlu2 %1795 }
 0x1fc   :  { %2225 = vperm.xlu2 %6333, %v10885_v6   ;;  %v1926_v6 = vsub.f32 %v6494_v26, %v8934_v51  ;;  %v1934_v55 = vsub.f32 %v8573_v57, %v1796_v61  ;;  %v6496_v57 = vld [vmem:[%s10378_s2 + $0xf8] sm:$0xff] }
 0x1fd   :  { %6337 = vset.pattern.permute.xlu1 %v10886_v13 }
 0x1fe   :  { %2230 = vperm.xlu1 %6337, %v10887_v53   ;;  %2653 = vperm.xlu0 %6336, %v1951_v15   ;;  %v9255_v50 = vpop.permute.xlu1 %1853  ;;  %v1942_v53 = vsub.f32 %v6496_v57, %v8973_v5  ;;  %v6498_v5 = vld [vmem:[%s10378_s2 + $0x168] sm:$0xff] }
 0x1ff   :  { %v1956_v26 = vsub.f32 %v6498_v5, %v8924_v19  ;;  %v6499_v19 = vld [vmem:[%s10378_s2 + $0x60] sm:$0xff] }
 0x200   :  { %v1923_v57 = vsub.f32 %v6499_v19, %v9079_v23  ;;  %v6501_v19 = vld [vmem:[%s10378_s2 + $0xe0] sm:$0xff] }
 0x204   :  { %2295 = vperm.xlu2 %6333, %v7853_v45  }
 0x205   :  { %v9265_v33 = vpop.permute.xlu0 %1855 }
 0x206   :  { %2300 = vperm.xlu1 %6337, %v7855_v36   ;;  %2578 = vperm.xlu0 %6336, %v1936_v43   ;;  %v6495_v36 = vld [vmem:[%s10378_s2 + $0xf0] sm:$0xff] }
 0x207   :  { %v9263_v15 = vpop.permute.xlu2 %1849  ;;  %v9268_v45 = vpop.permute.xlu1 %1763  ;;  %v1941_v51 = vsub.f32 %v6495_v36, %v8802_v4  ;;  %v1955_v4 = vsub.f32 %v6497_v22, %v9032_v0 }
 0x20c   :  { %6338 = vset.pattern.permute.xlu2 %v10884_v1 }
 0x20d   :  { %2528 = vperm.xlu2 %6338, %v1926_v6  }
 0x20e   :  { %2135 = vperm.xlu1 %6337, %v7861_v34   ;;  %2568 = vperm.xlu0 %6336, %v1934_v55  }
 0x211   :  { %v9281_v34 = vpop.permute.xlu0 %1793 }
 0x215   :  { %2603 = vperm.xlu2 %6338, %v1941_v51  }
 0x216   :  { %v9278_v61 = vpop.permute.xlu2 %1759  ;;  %6339 = vset.pattern.permute.xlu1 %v10884_v1  ;;  %v9287_v43 = vpop.permute.xlu1 %1821 }
 0x217   :  { %2608 = vperm.xlu1 %6339, %v1942_v53  }
 0x21d   :  { %2673 = vperm.xlu2 %6338, %v1955_v4  }
 0x21e   :  { %v9293_v6 = vpop.permute.xlu2 %1817 }
 0x21f   :  { %2678 = vperm.xlu1 %6339, %v1956_v26   ;;  %v9295_v55 = vpop.permute.xlu0 %1823 }
 0x220   :  { %v9298_v36 = vpop.permute.xlu1 %1851 }
 0x225   :  { %6340 = vset.pattern.permute.xlu2 %v10886_v13 }
 0x226   :  { %2220 = vperm.xlu2 %6340, %v7955_v3   ;;  %v9301_v0 = vpop.permute.xlu2 %1847  ;;  %v6500_v3 = vld [vmem:[%s10378_s2 + $0x68] sm:$0xff] }
 0x227   :  { %6341 = vset.pattern.permute.xlu1 %v10886_v13 }
 0x228   :  { %2285 = vperm.xlu1 %6341, %v8024_v52   ;;  %v9305_v51 = vpop.permute.xlu0 %1757  ;;  %v1924_v52 = vsub.f32 %v6500_v3, %v9124_v41  ;;  %v6502_v3 = vld [vmem:[%s10378_s2 + $0x150] sm:$0xff] }
 0x22e   :  { %6342 = vset.pattern.permute.xlu2 %v10884_v1  ;;  %v9312_v53 = vpop.permute.xlu2 %1785  ;;  %v9314_v22 = vpop.permute.xlu1 %1789 }
 0x22f   :  { %2513 = vperm.xlu2 %6342, %v1923_v57   ;;  %v1939_v57 = vsub.f32 %v6501_v19, %v9007_v49 }
 0x230   :  { %6343 = vset.pattern.permute.xlu1 %v10884_v1  ;;  %v1792_v4 = vpop.permute.xlu0 %1791 }
 0x231   :  { %v1932_v5 = vsub.f32 %v8841_v40, %v1792_v4  ;;  %2518 = vperm.xlu1 %6343, %v1924_v52   ;;  %v1953_v52 = vsub.f32 %v6502_v3, %v9184_v56 }
 0x233   :  { %2558 = vperm.xlu0 %6336, %v1932_v5   ;;  %v6503_v5 = vld [vmem:[%s10378_s2 + $0x158] sm:$0xff] }
 0x234   :  { %v1954_v49 = vsub.f32 %v6503_v5, %v9089_v12  ;;  %v6504_v5 = vld [vmem:[%s10378_s2 + $0x50] sm:$0xff] }
 0x236   :  { %v9322_v23 = vpop.permute.xlu2 %1815  ;;  %v9324_v26 = vpop.permute.xlu1 %1819 }
 0x237   :  { %10888 = vst [vmem:[#allocation73_spill] sm:$0xff] %v9322_v23  ;;  %6344 = vset.pattern.permute.xlu2 %v10886_v13  ;;  %v6508_v23 = vld [vmem:[#allocation3 + $0xe0] sm:$0xff] }
 0x238   :  { %2130 = vperm.xlu2 %6344, %v8103_v59   ;;  %v9332_v41 = vpop.permute.xlu0 %1845 }
 0x239   :  { %2593 = vperm.xlu1 %6343, %v1939_v57  }
 0x23e   :  { %v9334_v40 = vpop.permute.xlu2 %1781  ;;  %v9340_v4 = vpop.permute.xlu1 %1753 }
 0x23f   :  { %10889 = vst [vmem:[#allocation69_spill] sm:$0xff] %v9334_v40 }
 0x240   :  { %6345 = vset.pattern.permute.xlu2 %v10884_v1  ;;  %v1756_v59 = vpop.permute.xlu0 %1755 }
 0x241   :  { %2663 = vperm.xlu2 %6345, %v1953_v52   ;;  %v1914_v19 = vsub.f32 %v9025_v62, %v1756_v59  ;;  %2668 = vperm.xlu1 %6343, %v1954_v49   ;;  %v1921_v49 = vsub.f32 %v6504_v5, %v9201_v17  ;;  %v6505_v59 = vld [vmem:[#allocation3 + $0x2f0] sm:$0xff]  ;;  %v6507_v17 = vld [vmem:[%s10378_s2 + $0x58] sm:$0xff] }
 0x242   :  { %v2059_v5 = vld [vmem:[#allocation6 + $0x2f0] sm:$0xff] }
 0x243   :  { %2468 = vperm.xlu0 %6336, %v1914_v19  }
 0x246   :  { %v2311_v57 = vpop.permute.xlu2 %2310  ;;  %v9348_v40 = vpop.permute.xlu1 %1787 }
 0x247   :  { %10890 = vst [vmem:[#allocation71_spill] sm:$0xff] %v9348_v40  ;;  %v2437_v19 = vmul.f32 %v6505_v59, %v2311_v57 }
 0x248   :  { %v1814_v56 = vpop.permute.xlu0 %1813 }
 0x249   :  { %6346 = vset.pattern.permute.xlu2 %v10886_v13  ;;  %v1943_v3 = vsub.f32 %v9104_v18, %v1814_v56  ;;  %6347 = vset.pattern.permute.xlu1 %v10886_v13  ;;  %v6506_v56 = vld [vmem:[#allocation3 + $0x2f8] sm:$0xff] }
 0x24a   :  { %2205 = vperm.xlu2 %6346, %v8109_v10   ;;  %2210 = vperm.xlu1 %6347, %v8134_v44   ;;  %v10893_v10 = vld [vmem:[#allocation38_spill] sm:$0xff] }
 0x24b   :  { %2613 = vperm.xlu0 %6336, %v1943_v3   ;;  %v2438_v3 = vmul.f32 %v6506_v56, %v2311_v57 }
 0x24e   :  { %v2151_v12 = vpop.permute.xlu2 %2150  ;;  %v9355_v52 = vpop.permute.xlu1 %1749 }
 0x24f   :  { %10891 = vst [vmem:[#allocation72_spill] sm:$0xff] %v9355_v52 }
 0x250   :  { %v9357_v62 = vpop.permute.xlu0 %1751 }
 0x251   :  { %10892 = vst [vmem:[#allocation68_spill] sm:$0xff] %v9357_v62 }
 0x252   :  { %2280 = vperm.xlu2 %6346, %v8211_v42   ;;  %6348 = vset.pattern.permute.xlu1 %v10884_v1  ;;  %v1922_v42 = vsub.f32 %v6507_v17, %v9215_v20 }
 0x253   :  { %2503 = vperm.xlu1 %6348, %v1921_v49   ;;  %6376 = vset.pattern.permute.xlu0 %v10886_v13  ;;  %v2060_v49 = vld [vmem:[#allocation6 + $0x2f8] sm:$0xff] }
 0x254   :  { %2305 = vperm.xlu0 %6376, %v10893_v10  }
 0x256   :  { %v9367_v44 = vpop.permute.xlu2 %2225  ;;  %v9369_v18 = vpop.permute.xlu1 %1783 }
 0x257   :  { %10894 = vst [vmem:[#allocation80_spill] sm:$0xff] %v9369_v18 }
 0x258   :  { %v2689_v62 = vpop.permute.xlu0 %2688 }
 0x259   :  { %v2815_v52 = vadd.f32 %v2689_v62, %v2437_v19  ;;  %v2816_v25 = vadd.f32 %v2689_v62, %v2438_v3  ;;  %v6509_v62 = vld [vmem:[#allocation3 + $0xe8] sm:$0xff] }
 0x25a   :  { %6349 = vset.pattern.permute.xlu2 %v10884_v1 }
 0x25b   :  { %2508 = vperm.xlu2 %6349, %v1922_v42   ;;  %v2923_v10 = vadd.f32 %v2815_v52, %v2059_v5  ;;  %v2924_v18 = vadd.f32 %v2816_v25, %v2060_v49  ;;  %6350 = vset.pattern.permute.xlu1 %v10886_v13  ;;  %v6510_v25 = vld [vmem:[%s10378_s2 + $0xd0] sm:$0xff]  ;;  %v6511_v49 = vld [vmem:[%s10378_s2 + $0xd8] sm:$0xff] }
 0x25c   :  { %2115 = vperm.xlu1 %6350, %v8213_v9   ;;  %2140 = vperm.xlu0 %6376, %v7941_v46   ;;  %v1937_v52 = vsub.f32 %v6510_v25, %v9152_v35  ;;  %v1993_v42 = vld [vmem:[#allocation6 + $0xe0] sm:$0xff]  ;;  %v1994_v9 = vld [vmem:[#allocation6 + $0xe8] sm:$0xff]  ;;  %v6512_v35 = vld [vmem:[#allocation3 + $0xf0] sm:$0xff] }
 0x25d   :  { %v3031_v57 = vmax.f32 %v2923_v10, 0.0  ;;  %v3032_v59 = vmax.f32 %v2924_v18, 0.0  ;;  %v1996_v25 = vld [vmem:[#allocation6 + $0xf8] sm:$0xff] }
 0x25e   :  { %v9379_v56 = vpop.permute.xlu2 %2295  ;;  %v2146_v20 = vpop.permute.xlu1 %2145 }
 0x25f   :  { %v3092_v17 = vpack.c.bf16 %v3032_v59, %v3031_v57  ;;  %v2371_v19 = vmul.f32 %v6508_v23, %v2146_v20  ;;  %v2372_v3 = vmul.f32 %v6509_v62, %v2146_v20  ;;  %v1938_v23 = vsub.f32 %v6511_v49, %v9217_v28  ;;  %v6513_v20 = vld [vmem:[#allocation3 + $0xf8] sm:$0xff] }
 0x260   :  { %v2524_v5 = vpop.permute.xlu0 %2523  ;;  %v2373_v59 = vmul.f32 %v6512_v35, %v2151_v12  ;;  %v2374_v62 = vmul.f32 %v6513_v20, %v2151_v12  ;;  %v10895_v20 = vld [vmem:[#allocation52_spill] sm:$0xff] }
 0x261   :  { %3146 = vst [vmem:[#allocation2 + $0x178] sm:$0xff] %v3092_v17  ;;  %v2749_v46 = vadd.f32 %v2524_v5, %v2371_v19  ;;  %v2750_v18 = vadd.f32 %v2524_v5, %v2372_v3  ;;  %v1995_v3 = vld [vmem:[#allocation6 + $0xf0] sm:$0xff] }
 0x263   :  { %2583 = vperm.xlu2 %6349, %v1937_v52   ;;  %v2857_v10 = vadd.f32 %v2749_v46, %v1993_v42  ;;  %v2858_v57 = vadd.f32 %v2750_v18, %v1994_v9  ;;  %v6514_v9 = vld [vmem:[%s10378_s2 + $0x148] sm:$0xff] }
 0x264   :  { %6351 = vset.pattern.permute.xlu1 %v10884_v1  ;;  %2215 = vperm.xlu0 %6376, %v7943_v7   ;;  %v1952_v7 = vsub.f32 %v6514_v9, %v9191_v14  ;;  %v2025_v14 = vld [vmem:[#allocation6 + $0x1e0] sm:$0xff] }
 0x265   :  { %v2965_v17 = vmax.f32 %v2857_v10, 0.0  ;;  %v2966_v19 = vmax.f32 %v2858_v57, 0.0  ;;  %2588 = vperm.xlu1 %6351, %v1938_v23   ;;  %v6515_v23 = vld [vmem:[#allocation3 + $0x1e0] sm:$0xff]  ;;  %v6516_v57 = vld [vmem:[#allocation3 + $0x1e8] sm:$0xff] }
 0x266   :  { %v2403_v10 = vmul.f32 %v6515_v23, %v9367_v44  ;;  %v2404_v35 = vmul.f32 %v6516_v57, %v9367_v44  ;;  %v6517_v9 = vld [vmem:[#allocation3 + $0x2c0] sm:$0xff]  ;;  %v10898_v23 = vld [vmem:[#allocation55_spill] sm:$0xff] }
 0x267   :  { %v2529_v52 = vpop.permute.xlu2 %2528  ;;  %v3059_v5 = vpack.c.bf16 %v2966_v19, %v2965_v17  ;;  %v9391_v40 = vpop.permute.xlu1 %2683 }
 0x268   :  { %v2751_v28 = vadd.f32 %v2529_v52, %v2373_v59  ;;  %v2752_v42 = vadd.f32 %v2529_v52, %v2374_v62  ;;  %v2026_v62 = vld [vmem:[#allocation6 + $0x1e8] sm:$0xff] }
 0x269   :  { %3113 = vst [vmem:[#allocation2 + $0x70] sm:$0xff] %v3059_v5  ;;  %v10896_v5 = vld [vmem:[#allocation53_spill] sm:$0xff] }
 0x26a   :  { %v2859_v46 = vadd.f32 %v2751_v28, %v1995_v3  ;;  %v2860_v12 = vadd.f32 %v2752_v42, %v1996_v25  ;;  %v10897_v42 = vld [vmem:[#allocation45_spill] sm:$0xff] }
 0x26b   :  { %2658 = vperm.xlu2 %6349, %v1952_v7   ;;  %v2431_v7 = vmul.f32 %v6517_v9, %v9379_v56 }
 0x26c   :  { %v2967_v18 = vmax.f32 %v2859_v46, 0.0  ;;  %v2968_v49 = vmax.f32 %v2860_v12, 0.0  ;;  %2290 = vperm.xlu0 %6376, %v8026_v38   ;;  %v6518_v46 = vld [vmem:[#allocation3 + $0x2c8] sm:$0xff] }
 0x26d   :  { %6352 = vset.pattern.permute.xlu1 %v10886_v13  ;;  %v2432_v12 = vmul.f32 %v6518_v46, %v9379_v56 }
 0x26e   :  { %v3060_v59 = vpack.c.bf16 %v2968_v49, %v2967_v18  ;;  %2195 = vperm.xlu1 %6352, %v10895_v20   ;;  %v2053_v49 = vld [vmem:[#allocation6 + $0x2c0] sm:$0xff] }
 0x26f   :  { %v2604_v17 = vpop.permute.xlu2 %2603 }
 0x270   :  { %3114 = vst [vmem:[#allocation2 + $0x78] sm:$0xff] %v3060_v59  ;;  %v2781_v19 = vadd.f32 %v2604_v17, %v2403_v10  ;;  %v2782_v3 = vadd.f32 %v2604_v17, %v2404_v35  ;;  %v9402_v25 = vpop.permute.xlu1 %2230  ;;  %v2054_v10 = vld [vmem:[#allocation6 + $0x2c8] sm:$0xff]  ;;  %v5950_v35 = vld [vmem:[#allocation2 + $0x70] sm:$0xf] }
 0x272   :  { %v2889_v38 = vadd.f32 %v2781_v19, %v2025_v14  ;;  %v2890_v52 = vadd.f32 %v2782_v3, %v2026_v62 }
 0x273   :  { %6353 = vset.pattern.permute.xlu2 %v10886_v13 }
 0x274   :  { %2200 = vperm.xlu2 %6353, %v10896_v5   ;;  %v2997_v44 = vmax.f32 %v2889_v38, 0.0  ;;  %v2998_v28 = vmax.f32 %v2890_v52, 0.0  ;;  %2125 = vperm.xlu0 %6376, %v10897_v42   ;;  %v10899_v38 = vld [vmem:[#allocation50_spill] sm:$0xff]  ;;  %v10900_v5 = vld [vmem:[#allocation44_spill] sm:$0xff] }
 0x276   :  { %v3075_v18 = vpack.c.bf16 %v2998_v28, %v2997_v44  ;;  %2265 = vperm.xlu1 %6352, %v10898_v23   ;;  %v10901_v28 = vld [vmem:[#allocation54_spill] sm:$0xff]  ;;  %v2599_v23 = vpop.permute.xlu0 %2598 }
 0x277   :  { %v2674_v57 = vpop.permute.xlu2 %2673  ;;  %v6285_v59 = vld [vmem:[#allocation2 + $0x74] sm:$0xf0] }
 0x278   :  { %3129 = vst [vmem:[#allocation2 + $0xf0] sm:$0xff] %v3075_v18  ;;  %v2809_v20 = vadd.f32 %v2674_v57, %v2431_v7  ;;  %v2810_v14 = vadd.f32 %v2674_v57, %v2432_v12  ;;  %v5951_v62 = vor.u32 %v6285_v59, %v5950_v35  ;;  %v9410_v17 = vpop.permute.xlu1 %2300  ;;  %v6519_v7 = vld [vmem:[#allocation3 + $0x1d0] sm:$0xff]  ;;  %v6520_v12 = vld [vmem:[#allocation3 + $0x1d8] sm:$0xff] }
 0x279   :  { %v6521_v57 = vld [vmem:[%s10378_s2 + $0x40] sm:$0xff] }
 0x27a   :  { %v2917_v19 = vadd.f32 %v2809_v20, %v2053_v49  ;;  %v2918_v3 = vadd.f32 %v2810_v14, %v2054_v10  ;;  %4180 = vmatpush.bf16.msra.mxu0 %v5951_v62  ;;  %v2023_v49 = vld [vmem:[#allocation6 + $0x1d0] sm:$0xff]  ;;  %v2024_v10 = vld [vmem:[#allocation6 + $0x1d8] sm:$0xff]  ;;  %v1919_v35 = vsub.f32 %v6521_v57, %v9227_v11  ;;  %v6523_v11 = vld [vmem:[#allocation3 + $0xc0] sm:$0xff] }
 0x27b   :  { %v10902_v14 = vld [vmem:[#allocation48_spill] sm:$0xff] }
 0x27c   :  { %2335 = vperm.xlu2 %6353, %v10899_v38   ;;  %v3025_v56 = vmax.f32 %v2917_v19, 0.0  ;;  %v3026_v52 = vmax.f32 %v2918_v3, 0.0  ;;  %2275 = vperm.xlu0 %6376, %v10900_v5   ;;  %v6522_v3 = vld [vmem:[%s10378_s2 + $0x48] sm:$0xff] }
 0x27d   :  { %v1920_v38 = vsub.f32 %v6522_v3, %v9240_v27  ;;  %v2027_v27 = vld [vmem:[#allocation6 + $0x1f0] sm:$0xff]  ;;  %v2028_v57 = vld [vmem:[#allocation6 + $0x1f8] sm:$0xff] }
 0x27e   :  { %v3089_v44 = vpack.c.bf16 %v3026_v52, %v3025_v56  ;;  %2340 = vperm.xlu1 %6352, %v10901_v28  }
 0x280   :  { %3143 = vst [vmem:[#allocation2 + $0x160] sm:$0xff] %v3089_v44  ;;  %v2221_v42 = vpop.permute.xlu2 %2220  ;;  %v2136_v9 = vpop.permute.xlu1 %2135  ;;  %v6524_v44 = vld [vmem:[#allocation3 + $0xc8] sm:$0xff] }
 0x281   :  { %v2401_v46 = vmul.f32 %v6519_v7, %v2221_v42  ;;  %v2402_v18 = vmul.f32 %v6520_v12, %v2221_v42  ;;  %v2367_v5 = vmul.f32 %v6523_v11, %v2136_v9  ;;  %v2368_v28 = vmul.f32 %v6524_v44, %v2136_v9  ;;  %v6525_v42 = vld [vmem:[#allocation3 + $0x1f0] sm:$0xff] }
 0x282   :  { %v2405_v7 = vmul.f32 %v6525_v42, %v9402_v25  ;;  %v10903_v11 = vld [vmem:[#allocation51_spill] sm:$0xff] }
 0x283   :  { %v2779_v59 = vadd.f32 %v2599_v23, %v2401_v46  ;;  %v2780_v20 = vadd.f32 %v2599_v23, %v2402_v18  ;;  %v6526_v46 = vld [vmem:[#allocation3 + $0x1f8] sm:$0xff]  ;;  %v1989_v23 = vld [vmem:[#allocation6 + $0xc0] sm:$0xff] }
 0x284   :  { %6354 = vset.pattern.permute.xlu2 %v10884_v1  ;;  %2120 = vperm.xlu0 %6376, %v10902_v14   ;;  %v2406_v12 = vmul.f32 %v6526_v46, %v9402_v25  ;;  %v6527_v25 = vld [vmem:[%s10378_s2 + $0xc0] sm:$0xff] }
 0x285   :  { %2493 = vperm.xlu2 %6354, %v1919_v35   ;;  %v2887_v62 = vadd.f32 %v2779_v59, %v2023_v49  ;;  %v2888_v19 = vadd.f32 %v2780_v20, %v2024_v10  ;;  %v1990_v49 = vld [vmem:[#allocation6 + $0xc8] sm:$0xff]  ;;  %v6528_v46 = vld [vmem:[#allocation3 + $0x2d0] sm:$0xff] }
 0x286   :  { %6355 = vset.pattern.permute.xlu1 %v10884_v1 }
 0x287   :  { %v2995_v56 = vmax.f32 %v2887_v62, 0.0  ;;  %v2996_v52 = vmax.f32 %v2888_v19, 0.0  ;;  %2498 = vperm.xlu1 %6355, %v1920_v38  }
 0x289   :  { %v3074_v18 = vpack.c.bf16 %v2996_v52, %v2995_v56  ;;  %v2514_v10 = vpop.permute.xlu2 %2513  ;;  %v2609_v35 = vpop.permute.xlu1 %2608  ;;  %v1935_v56 = vsub.f32 %v6527_v25, %v9208_v54  ;;  %v10904_v52 = vld [vmem:[#allocation61_spill] sm:$0xff] }
 0x28a   :  { %v2745_v59 = vadd.f32 %v2514_v10, %v2367_v5  ;;  %v2746_v20 = vadd.f32 %v2514_v10, %v2368_v28  ;;  %v2783_v14 = vadd.f32 %v2609_v35, %v2405_v7  ;;  %v2784_v62 = vadd.f32 %v2609_v35, %v2406_v12  ;;  %v2055_v10 = vld [vmem:[#allocation6 + $0x2d0] sm:$0xff] }
 0x28b   :  { %3128 = vst [vmem:[#allocation2 + $0xe8] sm:$0xff] %v3074_v18  ;;  %v2433_v12 = vmul.f32 %v6528_v46, %v9410_v17  ;;  %v6529_v18 = vld [vmem:[#allocation3 + $0x2d8] sm:$0xff] }
 0x28c   :  { %v2853_v9 = vadd.f32 %v2745_v59, %v1989_v23  ;;  %v2854_v19 = vadd.f32 %v2746_v20, %v1990_v49  ;;  %v2891_v3 = vadd.f32 %v2783_v14, %v2027_v27  ;;  %v2892_v38 = vadd.f32 %v2784_v62, %v2028_v57  ;;  %2270 = vperm.xlu0 %6376, %v10903_v11   ;;  %v2056_v27 = vld [vmem:[#allocation6 + $0x2d8] sm:$0xff]  ;;  %v9439_v20 = vpop.permute.xlu0 %2653  ;;  %v6530_v14 = vld [vmem:[%s10378_s2 + $0x130] sm:$0xff] }
 0x28d   :  { %6356 = vset.pattern.permute.xlu2 %v10886_v13  ;;  %v2434_v23 = vmul.f32 %v6529_v18, %v9410_v17  ;;  %v1949_v62 = vsub.f32 %v6530_v14, %v9251_v37 }
 0x28e   :  { %2110 = vperm.xlu2 %6356, %v10904_v52   ;;  %v2961_v5 = vmax.f32 %v2853_v9, 0.0  ;;  %v2962_v44 = vmax.f32 %v2854_v19, 0.0  ;;  %v2999_v28 = vmax.f32 %v2891_v3, 0.0  ;;  %v3000_v42 = vmax.f32 %v2892_v38, 0.0  ;;  %v10905_v19 = vld [vmem:[#allocation58_spill] sm:$0xff] }
 0x28f   :  { %2573 = vperm.xlu1 %6355, %v1935_v56   ;;  %v6531_v3 = vld [vmem:[%s10378_s2 + $0x138] sm:$0xff]  ;;  %v6014_v52 = vld [vmem:[#allocation2 + $0xf0] sm:$0xf] }
 0x290   :  { %v3057_v7 = vpack.c.bf16 %v2962_v44, %v2961_v5  ;;  %v3076_v49 = vpack.c.bf16 %v3000_v42, %v2999_v28  ;;  %v1950_v38 = vsub.f32 %v6531_v3, %v9225_v39  ;;  %v6534_v39 = vld [vmem:[%s10378_s2 + $0x1a0] sm:$0xff] }
 0x291   :  { %v2679_v57 = vpop.permute.xlu1 %2678 }
 0x292   :  { %3111 = vst [vmem:[#allocation2 + $0x60] sm:$0xff] %v3057_v7  ;;  %v9437_v54 = vpop.permute.xlu2 %2130  ;;  %v2811_v35 = vadd.f32 %v2679_v57, %v2433_v12  ;;  %v2812_v59 = vadd.f32 %v2679_v57, %v2434_v23  ;;  %v6532_v7 = vld [vmem:[#allocation3 + $0x2a0] sm:$0xff]  ;;  %v6533_v12 = vld [vmem:[#allocation3 + $0x2a8] sm:$0xff]  ;;  %v1963_v23 = vsub.f32 %v6534_v39, %v9255_v50  ;;  %v6535_v57 = vld [vmem:[%s10378_s2 + $0x1a8] sm:$0xff] }
 0x293   :  { %3130 = vst [vmem:[#allocation2 + $0xf8] sm:$0xff] %v3076_v49  ;;  %v10906_v49 = vld [vmem:[#allocation59_spill] sm:$0xff] }
 0x294   :  { %v2919_v9 = vadd.f32 %v2811_v35, %v2055_v10  ;;  %v2920_v17 = vadd.f32 %v2812_v59, %v2056_v27  ;;  %2105 = vperm.xlu0 %6376, %v10905_v19   ;;  %v9451_v42 = vpop.permute.xlu0 %2578  ;;  %v2049_v10 = vld [vmem:[#allocation6 + $0x2a0] sm:$0xff]  ;;  %v2050_v27 = vld [vmem:[#allocation6 + $0x2a8] sm:$0xff]  ;;  %v1964_v35 = vsub.f32 %v6535_v57, %v9265_v33  ;;  %v10912_v39 = vld [vmem:[#allocation63_spill] sm:$0xff] }
 0x295   :  { %v10907_v33 = vld [vmem:[#allocation57_spill] sm:$0xff] }
 0x296   :  { %6357 = vset.pattern.permute.xlu2 %v10884_v1  ;;  %v3027_v11 = vmax.f32 %v2919_v9, 0.0  ;;  %v3028_v25 = vmax.f32 %v2920_v17, 0.0 }
 0x297   :  { %2643 = vperm.xlu2 %6357, %v1949_v62   ;;  %2648 = vperm.xlu1 %6355, %v1950_v38  }
 0x298   :  { %v3090_v56 = vpack.c.bf16 %v3028_v25, %v3027_v11  ;;  %v10908_v25 = vld [vmem:[#allocation60_spill] sm:$0xff] }
 0x29a   :  { %v6301_v5 = vld [vmem:[#allocation2 + $0xf4] sm:$0xf0]  ;;  %3144 = vst [vmem:[#allocation2 + $0x168] sm:$0xff] %v3090_v56  ;;  %v2286_v37 = vpop.permute.xlu1 %2285 }
 0x29b   :  { %v6015_v44 = vor.u32 %v6301_v5, %v6014_v52  ;;  %v2664_v28 = vpop.permute.xlu2 %2663  ;;  %v2427_v46 = vmul.f32 %v6532_v7, %v2286_v37  ;;  %v2428_v18 = vmul.f32 %v6533_v12, %v2286_v37  ;;  %v10909_v5 = vld [vmem:[#allocation67_spill] sm:$0xff] }
 0x29c   :  { %2185 = vperm.xlu0 %6376, %v10906_v49   ;;  %v9465_v11 = vpop.permute.xlu0 %2568  ;;  %v1988_v49 = vld [vmem:[#allocation6 + $0xb8] sm:$0xff] }
 0x29d   :  { %4324 = vmatpush.bf16.msra.mxu1 %v6015_v44  ;;  %v2805_v59 = vadd.f32 %v2664_v28, %v2427_v46  ;;  %v2806_v14 = vadd.f32 %v2664_v28, %v2428_v18  ;;  %v10910_v44 = vld [vmem:[#allocation56_spill] sm:$0xff]  ;;  %v6536_v28 = vld [vmem:[#allocation3 + $0xb0] sm:$0xff] }
 0x29e   :  { %v2365_v7 = vmul.f32 %v6536_v28, %v9437_v54  ;;  %v6537_v46 = vld [vmem:[#allocation3 + $0xb8] sm:$0xff]  ;;  %v2018_v28 = vld [vmem:[#allocation6 + $0x1a8] sm:$0xff] }
 0x29f   :  { %2713 = vperm.xlu2 %6357, %v1963_v23   ;;  %v2913_v62 = vadd.f32 %v2805_v59, %v2049_v10  ;;  %v2914_v9 = vadd.f32 %v2806_v14, %v2050_v27  ;;  %2718 = vperm.xlu1 %6355, %v1964_v35   ;;  %v2366_v12 = vmul.f32 %v6537_v46, %v9437_v54  ;;  %v1987_v23 = vld [vmem:[#allocation6 + $0xb0] sm:$0xff]  ;;  %v6538_v59 = vld [vmem:[%s10378_s2 + $0x30] sm:$0xff]  ;;  %v6539_v54 = vld [vmem:[%s10378_s2 + $0x38] sm:$0xff] }
 0x2a0   :  { %v1917_v14 = vsub.f32 %v6538_v59, %v9238_v30  ;;  %v6543_v59 = vld [vmem:[#allocation3 + $0x290] sm:$0xff] }
 0x2a1   :  { %v3021_v17 = vmax.f32 %v2913_v62, 0.0  ;;  %v3022_v19 = vmax.f32 %v2914_v9, 0.0  ;;  %v1918_v62 = vsub.f32 %v6539_v54, %v9268_v45  ;;  %v2017_v45 = vld [vmem:[#allocation6 + $0x1a0] sm:$0xff]  ;;  %v6544_v54 = vld [vmem:[#allocation3 + $0x298] sm:$0xff] }
 0x2a3   :  { %v3087_v50 = vpack.c.bf16 %v3022_v19, %v3021_v17  ;;  %v9462_v3 = vpop.permute.xlu1 %2518 }
 0x2a4   :  { %v2206_v38 = vpop.permute.xlu2 %2205  ;;  %2330 = vperm.xlu0 %6376, %v8716_v8   ;;  %v10911_v8 = vld [vmem:[#allocation64_spill] sm:$0xff] }
 0x2a5   :  { %3141 = vst [vmem:[#allocation2 + $0x150] sm:$0xff] %v3087_v50  ;;  %v9474_v37 = vpop.permute.xlu0 %2558 }
 0x2a7   :  { %6358 = vset.pattern.permute.xlu2 %v10886_v13  ;;  %6359 = vset.pattern.permute.xlu1 %v10886_v13 }
 0x2a8   :  { %2190 = vperm.xlu2 %6358, %v10907_v33   ;;  %2255 = vperm.xlu1 %6359, %v10908_v25   ;;  %v6540_v33 = vld [vmem:[#allocation3 + $0x1a0] sm:$0xff] }
 0x2a9   :  { %v2395_v25 = vmul.f32 %v6540_v33, %v2206_v38 }
 0x2ab   :  { %v9471_v56 = vpop.permute.xlu1 %2593 }
 0x2ac   :  { %v2281_v52 = vpop.permute.xlu2 %2280  ;;  %2095 = vperm.xlu0 %6376, %v10909_v5   ;;  %v6541_v5 = vld [vmem:[#allocation3 + $0x1a8] sm:$0xff] }
 0x2ad   :  { %v2396_v30 = vmul.f32 %v6541_v5, %v2206_v38  ;;  %v6545_v5 = vld [vmem:[%s10378_s2 + $0x128] sm:$0xff] }
 0x2b0   :  { %2260 = vperm.xlu2 %6358, %v10910_v44   ;;  %2325 = vperm.xlu1 %6359, %v10911_v8  }
 0x2b3   :  { %v9480_v18 = vpop.permute.xlu1 %2668 }
 0x2b4   :  { %2175 = vperm.xlu0 %6376, %v10912_v39  }
 0x2b5   :  { %v2509_v10 = vpop.permute.xlu2 %2508  ;;  %v9483_v27 = vpop.permute.xlu0 %2468 }
 0x2b6   :  { %v2743_v57 = vadd.f32 %v2509_v10, %v2365_v7  ;;  %v2744_v35 = vadd.f32 %v2509_v10, %v2366_v12 }
 0x2b8   :  { %v2851_v9 = vadd.f32 %v2743_v57, %v1987_v23  ;;  %v2852_v17 = vadd.f32 %v2744_v35, %v1988_v49  ;;  %6360 = vset.pattern.permute.xlu2 %v10884_v1  ;;  %6361 = vset.pattern.permute.xlu1 %v10884_v1  ;;  %v6542_v23 = vld [vmem:[%s10378_s2 + $0xb0] sm:$0xff] }
 0x2b9   :  { %2483 = vperm.xlu2 %6360, %v1917_v14   ;;  %2488 = vperm.xlu1 %6361, %v1918_v62   ;;  %v1933_v49 = vsub.f32 %v6542_v23, %v9281_v34  ;;  %v10913_v35 = vld [vmem:[#allocation65_spill] sm:$0xff]  ;;  %v2425_v14 = vmul.f32 %v6543_v59, %v2281_v52  ;;  %v2426_v62 = vmul.f32 %v6544_v54, %v2281_v52 }
 0x2ba   :  { %v2959_v19 = vmax.f32 %v2851_v9, 0.0  ;;  %v2960_v50 = vmax.f32 %v2852_v17, 0.0  ;;  %v2047_v17 = vld [vmem:[#allocation6 + $0x290] sm:$0xff] }
 0x2bc   :  { %v3056_v44 = vpack.c.bf16 %v2960_v50, %v2959_v19  ;;  %v9495_v8 = vpop.permute.xlu1 %2210  ;;  %2320 = vperm.xlu0 %6376, %v9020_v31   ;;  %v2048_v19 = vld [vmem:[#allocation6 + $0x298] sm:$0xff] }
 0x2bd   :  { %v2584_v7 = vpop.permute.xlu2 %2583  ;;  %v9498_v46 = vpop.permute.xlu0 %2613 }
 0x2be   :  { %3110 = vst [vmem:[#allocation2 + $0x58] sm:$0xff] %v3056_v44  ;;  %v2773_v12 = vadd.f32 %v2584_v7, %v2395_v25  ;;  %v2774_v39 = vadd.f32 %v2584_v7, %v2396_v30  ;;  %v1948_v30 = vsub.f32 %v6545_v5, %v9295_v55 }
 0x2c0   :  { %v2881_v38 = vadd.f32 %v2773_v12, %v2017_v45  ;;  %v2882_v10 = vadd.f32 %v2774_v39, %v2018_v28  ;;  %v6546_v28 = vld [vmem:[#allocation3 + $0x2e0] sm:$0xff]  ;;  %v6548_v39 = vld [vmem:[%s10378_s2 + $0x120] sm:$0xff] }
 0x2c1   :  { %6362 = vset.pattern.permute.xlu2 %v10886_v13  ;;  %2563 = vperm.xlu1 %6361, %v1933_v49   ;;  %v1947_v23 = vsub.f32 %v6548_v39, %v9287_v43  ;;  %v2057_v49 = vld [vmem:[#allocation6 + $0x2e0] sm:$0xff]  ;;  %v1991_v39 = vld [vmem:[#allocation6 + $0xd0] sm:$0xff] }
 0x2c2   :  { %v2989_v57 = vmax.f32 %v2881_v38, 0.0  ;;  %v2990_v31 = vmax.f32 %v2882_v10, 0.0  ;;  %2100 = vperm.xlu2 %6362, %v10913_v35   ;;  %v2058_v38 = vld [vmem:[#allocation6 + $0x2e8] sm:$0xff] }
 0x2c4   :  { %v3071_v9 = vpack.c.bf16 %v2990_v31, %v2989_v57  ;;  %2085 = vperm.xlu0 %6376, %v9030_v60   ;;  %v6547_v60 = vld [vmem:[#allocation3 + $0x2e8] sm:$0xff] }
 0x2c5   :  { %v2659_v50 = vpop.permute.xlu2 %2658  ;;  %v9507_v34 = vpop.permute.xlu1 %2503 }
 0x2c6   :  { %3125 = vst [vmem:[#allocation2 + $0xd0] sm:$0xff] %v3071_v9  ;;  %v2803_v33 = vadd.f32 %v2659_v50, %v2425_v14  ;;  %v2804_v25 = vadd.f32 %v2659_v50, %v2426_v62  ;;  %v2306_v44 = vpop.permute.xlu0 %2305  ;;  %v6550_v50 = vld [vmem:[#allocation3 + $0x198] sm:$0xff] }
 0x2c7   :  { %v2435_v7 = vmul.f32 %v6546_v28, %v2306_v44  ;;  %v2436_v12 = vmul.f32 %v6547_v60, %v2306_v44  ;;  %v2015_v44 = vld [vmem:[#allocation6 + $0x190] sm:$0xff]  ;;  %v6553_v28 = vld [vmem:[%s10378_s2 + $0x190] sm:$0xff] }
 0x2c8   :  { %v2911_v45 = vadd.f32 %v2803_v33, %v2047_v17  ;;  %v2912_v52 = vadd.f32 %v2804_v25, %v2048_v19  ;;  %v6549_v17 = vld [vmem:[#allocation3 + $0x190] sm:$0xff]  ;;  %v6551_v25 = vld [vmem:[%s10378_s2 + $0x198] sm:$0xff] }
 0x2c9   :  { %v2813_v31 = vadd.f32 %v9391_v40, %v2435_v7  ;;  %v2814_v55 = vadd.f32 %v9391_v40, %v2436_v12  ;;  %2638 = vperm.xlu1 %6361, %v1948_v30   ;;  %v1962_v5 = vsub.f32 %v6551_v25, %v9298_v36  ;;  %v1961_v7 = vsub.f32 %v6553_v28, %v9263_v15  ;;  %v1992_v36 = vld [vmem:[#allocation6 + $0xd8] sm:$0xff] }
 0x2ca   :  { %v3019_v10 = vmax.f32 %v2911_v45, 0.0  ;;  %v3020_v57 = vmax.f32 %v2912_v52, 0.0  ;;  %6363 = vset.pattern.permute.xlu2 %v10884_v1  ;;  %v6552_v45 = vld [vmem:[#allocation3 + $0xd0] sm:$0xff] }
 0x2cb   :  { %2633 = vperm.xlu2 %6363, %v1947_v23   ;;  %v2921_v59 = vadd.f32 %v2813_v31, %v2057_v49  ;;  %v2922_v14 = vadd.f32 %v2814_v55, %v2058_v38  ;;  %v6554_v23 = vld [vmem:[#allocation3 + $0xd8] sm:$0xff] }
 0x2cc   :  { %v3086_v35 = vpack.c.bf16 %v3020_v57, %v3019_v10  ;;  %2165 = vperm.xlu0 %6376, %v9099_v2   ;;  %v2016_v2 = vld [vmem:[#allocation6 + $0x198] sm:$0xff] }
 0x2cd   :  { %v3029_v54 = vmax.f32 %v2921_v59, 0.0  ;;  %v3030_v43 = vmax.f32 %v2922_v14, 0.0 }
 0x2ce   :  { %3140 = vst [vmem:[#allocation2 + $0x148] sm:$0xff] %v3086_v35  ;;  %v2201_v62 = vpop.permute.xlu2 %2200  ;;  %v9521_v9 = vpop.permute.xlu1 %2115 }
 0x2cf   :  { %v2393_v19 = vmul.f32 %v6549_v17, %v2201_v62  ;;  %v2394_v33 = vmul.f32 %v6550_v50, %v2201_v62  ;;  %v2141_v40 = vpop.permute.xlu0 %2140  ;;  %v3091_v30 = vpack.c.bf16 %v3030_v43, %v3029_v54  ;;  %v6555_v54 = vld [vmem:[#allocation3 + $0x1b0] sm:$0xff]  ;;  %v6556_v62 = vld [vmem:[#allocation3 + $0x1b8] sm:$0xff] }
 0x2d0   :  { %v2369_v52 = vmul.f32 %v6552_v45, %v2141_v40  ;;  %v2370_v49 = vmul.f32 %v6554_v23, %v2141_v40  ;;  %v2397_v43 = vmul.f32 %v6555_v54, %v9495_v8  ;;  %v2398_v17 = vmul.f32 %v6556_v62, %v9495_v8  ;;  %v2020_v40 = vld [vmem:[#allocation6 + $0x1b8] sm:$0xff]  ;;  %v6560_v54 = vld [vmem:[#allocation3 + $0x88] sm:$0xff] }
 0x2d1   :  { %v2771_v60 = vadd.f32 %v9451_v42, %v2393_v19  ;;  %v2772_v12 = vadd.f32 %v9451_v42, %v2394_v33  ;;  %3145 = vst [vmem:[#allocation2 + $0x170] sm:$0xff] %v3091_v30  ;;  %2708 = vperm.xlu1 %6361, %v1962_v5   ;;  %v6557_v5 = vld [vmem:[#allocation3 + $0x1c0] sm:$0xff] }
 0x2d2   :  { %v2747_v38 = vadd.f32 %v9462_v3, %v2369_v52  ;;  %v2748_v31 = vadd.f32 %v9462_v3, %v2370_v49  ;;  %v2019_v3 = vld [vmem:[#allocation6 + $0x1b0] sm:$0xff]  ;;  %v6315_v49 = vld [vmem:[#allocation2 + $0x164] sm:$0xf0] }
 0x2d3   :  { %v2879_v10 = vadd.f32 %v2771_v60, %v2015_v44  ;;  %v2880_v57 = vadd.f32 %v2772_v12, %v2016_v2  ;;  %2703 = vperm.xlu2 %6363, %v1961_v7   ;;  %v6558_v44 = vld [vmem:[#allocation3 + $0x1c8] sm:$0xff]  ;;  %v2021_v7 = vld [vmem:[#allocation6 + $0x1c0] sm:$0xff] }
 0x2d4   :  { %v2855_v55 = vadd.f32 %v2747_v38, %v1991_v39  ;;  %v2856_v59 = vadd.f32 %v2748_v31, %v1992_v36  ;;  %2160 = vperm.xlu0 %6376, %v9199_v47   ;;  %v6317_v47 = vld [vmem:[#allocation2 + $0x174] sm:$0xf0] }
 0x2d5   :  { %v2987_v35 = vmax.f32 %v2879_v10, 0.0  ;;  %v2988_v15 = vmax.f32 %v2880_v57, 0.0  ;;  %v2022_v60 = vld [vmem:[#allocation6 + $0x1c8] sm:$0xff] }
 0x2d6   :  { %v2963_v42 = vmax.f32 %v2855_v55, 0.0  ;;  %v9536_v14 = vpop.permute.xlu2 %2335  ;;  %v2964_v50 = vmax.f32 %v2856_v59, 0.0  ;;  %v10914_v31 = vld [vmem:[#allocation66_spill] sm:$0xff]  ;;  %v6070_v55 = vld [vmem:[#allocation2 + $0x160] sm:$0xf]  ;;  %v6559_v59 = vld [vmem:[#allocation3 + $0x80] sm:$0xff] }
 0x2d7   :  { %v3070_v19 = vpack.c.bf16 %v2988_v15, %v2987_v35  ;;  %v2216_v33 = vpop.permute.xlu0 %2215  ;;  %v2589_v25 = vpop.permute.xlu1 %2588 }
 0x2d8   :  { %v2399_v30 = vmul.f32 %v6557_v5, %v2216_v33  ;;  %v2400_v2 = vmul.f32 %v6558_v44, %v2216_v33  ;;  %v3058_v45 = vpack.c.bf16 %v2964_v50, %v2963_v42  ;;  %v2775_v52 = vadd.f32 %v2589_v25, %v2397_v43  ;;  %v6078_v12 = vld [vmem:[#allocation2 + $0x170] sm:$0xf]  ;;  %v1982_v50 = vld [vmem:[#allocation6 + $0x88] sm:$0xff] }
 0x2d9   :  { %3124 = vst [vmem:[#allocation2 + $0xc8] sm:$0xff] %v3070_v19  ;;  %v2776_v28 = vadd.f32 %v2589_v25, %v2398_v17  ;;  %6365 = vset.pattern.permute.xlu1 %v10886_v13  ;;  %v6079_v23 = vor.u32 %v6317_v47, %v6078_v12  ;;  %v2359_v42 = vmul.f32 %v6559_v59, %v9521_v9  ;;  %v1981_v19 = vld [vmem:[#allocation6 + $0x80] sm:$0xff]  ;;  %v6562_v47 = vld [vmem:[#allocation3 + $0x2b8] sm:$0xff]  ;;  %v5942_v12 = vld [vmem:[#allocation2 + $0x60] sm:$0xf] }
 0x2da   :  { %v2777_v8 = vadd.f32 %v9471_v56, %v2399_v30  ;;  %v2778_v39 = vadd.f32 %v9471_v56, %v2400_v2  ;;  %3112 = vst [vmem:[#allocation2 + $0x68] sm:$0xff] %v3058_v45  ;;  %v2883_v36 = vadd.f32 %v2775_v52, %v2019_v3  ;;  %2245 = vperm.xlu1 %6365, %v8940_v21   ;;  %v6561_v30 = vld [vmem:[#allocation3 + $0x2b0] sm:$0xff] }
 0x2db   :  { %v2884_v38 = vadd.f32 %v2776_v28, %v2020_v40  ;;  %6364 = vset.pattern.permute.xlu2 %v10886_v13  ;;  %4468 = vmatpush.bf16.msra.mxu2 %v6079_v23  ;;  %v6071_v56 = vor.u32 %v6315_v49, %v6070_v55  ;;  %v2360_v43 = vmul.f32 %v6560_v54, %v9521_v9  ;;  %v2051_v2 = vld [vmem:[#allocation6 + $0x2b0] sm:$0xff] }
 0x2dc   :  { %v2885_v10 = vadd.f32 %v2777_v8, %v2021_v7  ;;  %v2886_v57 = vadd.f32 %v2778_v39, %v2022_v60  ;;  %2180 = vperm.xlu2 %6364, %v10914_v31   ;;  %v2991_v35 = vmax.f32 %v2883_v36, 0.0  ;;  %6379 = vset.pattern.permute.xlu0 %v10884_v1  ;;  %v2052_v7 = vld [vmem:[#allocation6 + $0x2b8] sm:$0xff] }
 0x2dd   :  { %v2992_v15 = vmax.f32 %v2884_v38, 0.0 }
 0x2de   :  { %v2993_v21 = vmax.f32 %v2885_v10, 0.0  ;;  %v2994_v62 = vmax.f32 %v2886_v57, 0.0  ;;  %v10915_v10 = vld [vmem:[#allocation62_spill] sm:$0xff] }
 0x2df   :  { %v3072_v17 = vpack.c.bf16 %v2992_v15, %v2991_v35  ;;  %v2494_v33 = vpop.permute.xlu2 %2493  ;;  %v2291_v3 = vpop.permute.xlu0 %2290  ;;  %4469 = vmatpush.bf16.msra.mxu2 %v6071_v56  ;;  %v6563_v56 = vld [vmem:[#allocation3 + $0xa0] sm:$0xff] }
 0x2e0   :  { %v3073_v40 = vpack.c.bf16 %v2994_v62, %v2993_v21  ;;  %v2737_v25 = vadd.f32 %v2494_v33, %v2359_v42  ;;  %v2738_v5 = vadd.f32 %v2494_v33, %v2360_v43  ;;  %v2429_v44 = vmul.f32 %v6561_v30, %v2291_v3  ;;  %v9549_v52 = vpop.permute.xlu1 %2195  ;;  %v6564_v42 = vld [vmem:[#allocation3 + $0xa8] sm:$0xff]  ;;  %v1985_v43 = vld [vmem:[#allocation6 + $0xa0] sm:$0xff] }
 0x2e1   :  { %3126 = vst [vmem:[#allocation2 + $0xd8] sm:$0xff] %v3072_v17  ;;  %v2430_v45 = vmul.f32 %v6562_v47, %v2291_v3  ;;  %v6283_v8 = vld [vmem:[#allocation2 + $0x64] sm:$0xf0]  ;;  %v1986_v21 = vld [vmem:[#allocation6 + $0xa8] sm:$0xff] }
 0x2e2   :  { %3127 = vst [vmem:[#allocation2 + $0xe0] sm:$0xff] %v3073_v40  ;;  %v2845_v9 = vadd.f32 %v2737_v25, %v1981_v19  ;;  %v2846_v28 = vadd.f32 %v2738_v5, %v1982_v50  ;;  %v2807_v60 = vadd.f32 %v9480_v18, %v2429_v44  ;;  %2315 = vperm.xlu1 %6365, %v8971_v48   ;;  %v6565_v19 = vld [vmem:[%s10378_s2 + $0x28] sm:$0xff]  ;;  %v6566_v25 = vld [vmem:[%s10378_s2 + $0x20] sm:$0xff] }
 0x2e3   :  { %v2808_v39 = vadd.f32 %v9480_v18, %v2430_v45  ;;  %v5943_v23 = vor.u32 %v6283_v8, %v5942_v12  ;;  %v1916_v50 = vsub.f32 %v6565_v19, %v9278_v61  ;;  %v6299_v40 = vld [vmem:[#allocation2 + $0xe4] sm:$0xf0]  ;;  %v1915_v5 = vsub.f32 %v6566_v25, %v9305_v51  ;;  %v5998_v45 = vld [vmem:[#allocation2 + $0xd0] sm:$0xf]  ;;  %v6568_v12 = vld [vmem:[#allocation3 + $0x288] sm:$0xff] }
 0x2e4   :  { %v2953_v49 = vmax.f32 %v2845_v9, 0.0  ;;  %v2954_v36 = vmax.f32 %v2846_v28, 0.0  ;;  %v2915_v38 = vadd.f32 %v2807_v60, %v2051_v2  ;;  %2250 = vperm.xlu2 %6364, %v10915_v10   ;;  %v6567_v60 = vld [vmem:[#allocation3 + $0x280] sm:$0xff]  ;;  %v2046_v10 = vld [vmem:[#allocation6 + $0x288] sm:$0xff] }
 0x2e5   :  { %v2916_v57 = vadd.f32 %v2808_v39, %v2052_v7  ;;  %4181 = vmatpush.bf16.msra.mxu0 %v5943_v23  ;;  %v6569_v39 = vld [vmem:[#allocation3 + $0x260] sm:$0xff] }
 0x2e6   :  { %v3053_v31 = vpack.c.bf16 %v2954_v36, %v2953_v49  ;;  %v3023_v55 = vmax.f32 %v2915_v38, 0.0  ;;  %v6570_v49 = vld [vmem:[#allocation3 + $0x268] sm:$0xff]  ;;  %v2045_v38 = vld [vmem:[#allocation6 + $0x280] sm:$0xff] }
 0x2e7   :  { %v3024_v35 = vmax.f32 %v2916_v57, 0.0  ;;  %v2126_v15 = vpop.permute.xlu0 %2125 }
 0x2e8   :  { %3107 = vst [vmem:[#allocation2 + $0x40] sm:$0xff] %v3053_v31  ;;  %v2363_v59 = vmul.f32 %v6563_v56, %v2126_v15  ;;  %v2364_v54 = vmul.f32 %v6564_v42, %v2126_v15  ;;  %v9555_v18 = vpop.permute.xlu2 %2110  ;;  %v2266_v62 = vpop.permute.xlu1 %2265  ;;  %v6297_v61 = vld [vmem:[#allocation2 + $0xd4] sm:$0xf0]  ;;  %v2041_v42 = vld [vmem:[#allocation6 + $0x260] sm:$0xff] }
 0x2e9   :  { %v3088_v48 = vpack.c.bf16 %v3024_v35, %v3023_v55  ;;  %v6006_v17 = vld [vmem:[#allocation2 + $0xe0] sm:$0xf]  ;;  %v5999_v28 = vor.u32 %v6297_v61, %v5998_v45  ;;  %v2419_v23 = vmul.f32 %v6569_v39, %v2266_v62  ;;  %v2420_v36 = vmul.f32 %v6570_v49, %v2266_v62  ;;  %v6062_v55 = vld [vmem:[#allocation2 + $0x150] sm:$0xf]  ;;  %v6575_v45 = vld [vmem:[#allocation3 + $0x98] sm:$0xff] }
 0x2ea   :  { %v2741_v33 = vadd.f32 %v9507_v34, %v2363_v59  ;;  %v2742_v3 = vadd.f32 %v9507_v34, %v2364_v54  ;;  %6367 = vset.pattern.permute.xlu1 %v10884_v1  ;;  %v6007_v30 = vor.u32 %v6299_v40, %v6006_v17  ;;  %v6571_v35 = vld [vmem:[%s10378_s2 + $0xa0] sm:$0xff]  ;;  %v2042_v54 = vld [vmem:[#allocation6 + $0x268] sm:$0xff]  ;;  %v6572_v40 = vld [vmem:[#allocation3 + $0x340] sm:$0xff] }
 0x2eb   :  { %3142 = vst [vmem:[#allocation2 + $0x158] sm:$0xff] %v3088_v48  ;;  %2478 = vperm.xlu1 %6367, %v1916_v50   ;;  %v1931_v15 = vsub.f32 %v6571_v35, %v9314_v22  ;;  %v1983_v49 = vld [vmem:[#allocation6 + $0x90] sm:$0xff] }
 0x2ec   :  { %v2849_v44 = vadd.f32 %v2741_v33, %v1985_v43  ;;  %v2850_v2 = vadd.f32 %v2742_v3, %v1986_v21  ;;  %6366 = vset.pattern.permute.xlu2 %v10884_v1  ;;  %4325 = vmatpush.bf16.msra.mxu1 %v6007_v30 }
 0x2ed   :  { %2473 = vperm.xlu2 %6366, %v1915_v5  }
 0x2ee   :  { %v2957_v34 = vmax.f32 %v2849_v44, 0.0  ;;  %v2958_v47 = vmax.f32 %v2850_v2, 0.0  ;;  %v6573_v44 = vld [vmem:[#allocation3 + $0x348] sm:$0xff] }
 0x2ef   :  { %v2276_v9 = vpop.permute.xlu0 %2275  ;;  %v2448_v2 = vmul.f32 %v6573_v44, %v9536_v14 }
 0x2f0   :  { %v3055_v7 = vpack.c.bf16 %v2958_v47, %v2957_v34  ;;  %v2423_v51 = vmul.f32 %v6567_v60, %v2276_v9  ;;  %v2424_v8 = vmul.f32 %v6568_v12, %v2276_v9  ;;  %v9569_v57 = vpop.permute.xlu1 %2340  ;;  %4326 = vmatpush.bf16.msra.mxu1 %v5999_v28  ;;  %v6574_v34 = vld [vmem:[#allocation3 + $0x90] sm:$0xff]  ;;  %v6281_v28 = vld [vmem:[#allocation2 + $0x54] sm:$0xf0]  ;;  %v2069_v60 = vld [vmem:[#allocation6 + $0x340] sm:$0xff] }
 0x2f1   :  { %v2644_v31 = vpop.permute.xlu2 %2643 }
 0x2f2   :  { %3109 = vst [vmem:[#allocation2 + $0x50] sm:$0xff] %v3055_v7  ;;  %v2801_v56 = vadd.f32 %v9439_v20, %v2423_v51  ;;  %v2802_v59 = vadd.f32 %v9439_v20, %v2424_v8  ;;  %v6313_v48 = vld [vmem:[#allocation2 + $0x154] sm:$0xf0]  ;;  %v2797_v43 = vadd.f32 %v2644_v31, %v2419_v23  ;;  %v2798_v21 = vadd.f32 %v2644_v31, %v2420_v36  ;;  %v1984_v36 = vld [vmem:[#allocation6 + $0x98] sm:$0xff] }
 0x2f3   :  { %v6063_v62 = vor.u32 %v6313_v48, %v6062_v55  ;;  %2553 = vperm.xlu1 %6367, %v1931_v15   ;;  %v2447_v20 = vmul.f32 %v6572_v40, %v9536_v14  ;;  %v2070_v51 = vld [vmem:[#allocation6 + $0x348] sm:$0xff]  ;;  %v6311_v40 = vld [vmem:[#allocation2 + $0x144] sm:$0xf0] }
 0x2f4   :  { %v2909_v17 = vadd.f32 %v2801_v56, %v2045_v38  ;;  %v2910_v19 = vadd.f32 %v2802_v59, %v2046_v10  ;;  %v2905_v50 = vadd.f32 %v2797_v43, %v2041_v42  ;;  %v2906_v33 = vadd.f32 %v2798_v21, %v2042_v54  ;;  %v6576_v8 = vld [vmem:[%s10378_s2 + $0x118] sm:$0xff]  ;;  %v6577_v56 = vld [vmem:[%s10378_s2 + $0x110] sm:$0xff] }
 0x2f5   :  { %6368 = vset.pattern.permute.xlu2 %v10886_v13  ;;  %4470 = vmatpush.bf16.msra.mxu2 %v6063_v62  ;;  %v1946_v39 = vsub.f32 %v6576_v8, %v9324_v26  ;;  %v1945_v26 = vsub.f32 %v6577_v56, %v9293_v6  ;;  %v6580_v6 = vld [vmem:[%s10378_s2 + $0x188] sm:$0xff]  ;;  %v2043_v56 = vld [vmem:[#allocation6 + $0x270] sm:$0xff] }
 0x2f6   :  { %v3017_v22 = vmax.f32 %v2909_v17, 0.0  ;;  %v3018_v3 = vmax.f32 %v2910_v19, 0.0  ;;  %2090 = vperm.xlu2 %6368, %v9050_v16   ;;  %v3013_v25 = vmax.f32 %v2905_v50, 0.0  ;;  %v3014_v5 = vmax.f32 %v2906_v33, 0.0  ;;  %v6578_v17 = vld [vmem:[#allocation3 + $0x180] sm:$0xff]  ;;  %v6579_v50 = vld [vmem:[#allocation3 + $0x188] sm:$0xff] }
 0x2f7   :  { %v2121_v30 = vpop.permute.xlu0 %2120  ;;  %v2391_v19 = vmul.f32 %v6578_v17, %v9549_v52  ;;  %v2392_v33 = vmul.f32 %v6579_v50, %v9549_v52 }
 0x2f8   :  { %v3085_v61 = vpack.c.bf16 %v3018_v3, %v3017_v22  ;;  %v2361_v47 = vmul.f32 %v6574_v34, %v2121_v30  ;;  %v2362_v9 = vmul.f32 %v6575_v45, %v2121_v30  ;;  %v3083_v7 = vpack.c.bf16 %v3014_v5, %v3013_v25  ;;  %v2013_v25 = vld [vmem:[#allocation6 + $0x180] sm:$0xff]  ;;  %v2014_v5 = vld [vmem:[#allocation6 + $0x188] sm:$0xff]  ;;  %v6582_v45 = vld [vmem:[#allocation3 + $0x178] sm:$0xff] }
 0x2f9   :  { %v2714_v12 = vpop.permute.xlu2 %2713  ;;  %v5934_v16 = vld [vmem:[#allocation2 + $0x50] sm:$0xf]  ;;  %v2499_v38 = vpop.permute.xlu1 %2498 }
 0x2fa   :  { %3139 = vst [vmem:[#allocation2 + $0x140] sm:$0xff] %v3085_v61  ;;  %v2825_v23 = vadd.f32 %v2714_v12, %v2447_v20  ;;  %v2826_v14 = vadd.f32 %v2714_v12, %v2448_v2  ;;  %v5935_v10 = vor.u32 %v6281_v28, %v5934_v16  ;;  %v2739_v31 = vadd.f32 %v2499_v38, %v2361_v47  ;;  %v6581_v47 = vld [vmem:[#allocation3 + $0x170] sm:$0xff] }
 0x2fb   :  { %3137 = vst [vmem:[#allocation2 + $0x130] sm:$0xff] %v3083_v7  ;;  %v2740_v55 = vadd.f32 %v2499_v38, %v2362_v9  ;;  %2628 = vperm.xlu1 %6367, %v1946_v39   ;;  %v1960_v20 = vsub.f32 %v6580_v6, %v9301_v0  ;;  %v6583_v28 = vld [vmem:[%s10378_s2 + $0x180] sm:$0xff]  ;;  %v6587_v6 = vld [vmem:[#allocation3 + $0x358] sm:$0xff] }
 0x2fc   :  { %v2933_v35 = vadd.f32 %v2825_v23, %v2069_v60  ;;  %v2934_v15 = vadd.f32 %v2826_v14, %v2070_v51  ;;  %4182 = vmatpush.bf16.msra.mxu0 %v5935_v10  ;;  %v2847_v59 = vadd.f32 %v2739_v31, %v1983_v49  ;;  %v1959_v7 = vsub.f32 %v6583_v28, %v9332_v41  ;;  %v2011_v0 = vld [vmem:[#allocation6 + $0x170] sm:$0xff]  ;;  %v2012_v60 = vld [vmem:[#allocation6 + $0x178] sm:$0xff]  ;;  %v1978_v28 = vld [vmem:[#allocation6 + $0x68] sm:$0xff] }
 0x2fd   :  { %v2848_v42 = vadd.f32 %v2740_v55, %v1984_v36  ;;  %v6584_v38 = vld [vmem:[#allocation3 + $0x270] sm:$0xff]  ;;  %v6585_v31 = vld [vmem:[#allocation3 + $0x278] sm:$0xff] }
 0x2fe   :  { %v3041_v54 = vmax.f32 %v2933_v35, 0.0  ;;  %v3042_v48 = vmax.f32 %v2934_v15, 0.0  ;;  %6369 = vset.pattern.permute.xlu2 %v10884_v1  ;;  %v2955_v43 = vmax.f32 %v2847_v59, 0.0 }
 0x2ff   :  { %v2956_v21 = vmax.f32 %v2848_v42, 0.0  ;;  %2623 = vperm.xlu2 %6369, %v1945_v26   ;;  %v2271_v51 = vpop.permute.xlu0 %2270  ;;  %v2044_v26 = vld [vmem:[#allocation6 + $0x278] sm:$0xff] }
 0x300   :  { %v3097_v62 = vpack.c.bf16 %v3042_v48, %v3041_v54  ;;  %v2421_v10 = vmul.f32 %v6584_v38, %v2271_v51  ;;  %v2422_v41 = vmul.f32 %v6585_v31, %v2271_v51 }
 0x301   :  { %v3054_v22 = vpack.c.bf16 %v2956_v21, %v2955_v43  ;;  %v6054_v3 = vld [vmem:[#allocation2 + $0x140] sm:$0xf]  ;;  %v2574_v30 = vpop.permute.xlu1 %2573 }
 0x302   :  { %3151 = vst [vmem:[#allocation2 + $0x1a0] sm:$0xff] %v3097_v62  ;;  %v2191_v44 = vpop.permute.xlu2 %2190  ;;  %v6055_v2 = vor.u32 %v6311_v40, %v6054_v3  ;;  %v2769_v61 = vadd.f32 %v2574_v30, %v2391_v19  ;;  %v2770_v34 = vadd.f32 %v2574_v30, %v2392_v33  ;;  %v5926_v21 = vld [vmem:[#allocation2 + $0x40] sm:$0xf]  ;;  %v6588_v30 = vld [vmem:[#allocation3 + $0x60] sm:$0xff] }
 0x303   :  { %3108 = vst [vmem:[#allocation2 + $0x48] sm:$0xff] %v3054_v22  ;;  %v2389_v52 = vmul.f32 %v6581_v47, %v2191_v44  ;;  %v2390_v9 = vmul.f32 %v6582_v45, %v2191_v44  ;;  %2698 = vperm.xlu1 %6367, %v1960_v20   ;;  %v6586_v3 = vld [vmem:[#allocation3 + $0x350] sm:$0xff]  ;;  %v2450_v20 = vmul.f32 %v6587_v6, %v9569_v57 }
 0x304   :  { %4471 = vmatpush.bf16.msra.mxu2 %v6055_v2  ;;  %v2877_v12 = vadd.f32 %v2769_v61, %v2013_v25  ;;  %v2878_v16 = vadd.f32 %v2770_v34, %v2014_v5  ;;  %v2449_v40 = vmul.f32 %v6586_v3, %v9569_v57  ;;  %v6295_v5 = vld [vmem:[#allocation2 + $0xc4] sm:$0xf0]  ;;  %v6589_v2 = vld [vmem:[#allocation3 + $0x68] sm:$0xff]  ;;  %v2071_v61 = vld [vmem:[#allocation6 + $0x350] sm:$0xff] }
 0x305   :  { %v2767_v8 = vadd.f32 %v9465_v11, %v2389_v52  ;;  %v2768_v39 = vadd.f32 %v9465_v11, %v2390_v9  ;;  %v2072_v34 = vld [vmem:[#allocation6 + $0x358] sm:$0xff]  ;;  %v6590_v57 = vld [vmem:[%s10378_s2 + $0x10] sm:$0xff] }
 0x306   :  { %v2985_v23 = vmax.f32 %v2877_v12, 0.0  ;;  %v2986_v14 = vmax.f32 %v2878_v16, 0.0 }
 0x307   :  { %v2875_v49 = vadd.f32 %v2767_v8, %v2011_v0  ;;  %v2876_v36 = vadd.f32 %v2768_v39, %v2012_v60  ;;  %2693 = vperm.xlu2 %6369, %v1959_v7   ;;  %v2106_v50 = vpop.permute.xlu0 %2105  ;;  %v1913_v60 = vsub.f32 %v6590_v57, %v9340_v4 }
 0x308   :  { %v3069_v55 = vpack.c.bf16 %v2986_v14, %v2985_v23  ;;  %v2355_v44 = vmul.f32 %v6588_v30, %v2106_v50 }
 0x309   :  { %v2983_v35 = vmax.f32 %v2875_v49, 0.0  ;;  %v2984_v15 = vmax.f32 %v2876_v36, 0.0  ;;  %v2649_v59 = vpop.permute.xlu1 %2648 }
 0x30a   :  { %v9602_v42 = vpop.permute.xlu2 %2260  ;;  %v6279_v54 = vld [vmem:[#allocation2 + $0x44] sm:$0xf0]  ;;  %3123 = vst [vmem:[#allocation2 + $0xc0] sm:$0xff] %v3069_v55  ;;  %v2799_v48 = vadd.f32 %v2649_v59, %v2421_v10  ;;  %v2800_v43 = vadd.f32 %v2649_v59, %v2422_v41  ;;  %v6046_v41 = vld [vmem:[#allocation2 + $0x130] sm:$0xf] }
 0x30b   :  { %v3068_v11 = vpack.c.bf16 %v2984_v15, %v2983_v35  ;;  %6371 = vset.pattern.permute.xlu1 %v10886_v13  ;;  %v5927_v62 = vor.u32 %v6279_v54, %v5926_v21  ;;  %v6591_v54 = vld [vmem:[#allocation3 + $0x240] sm:$0xff] }
 0x30c   :  { %v2907_v17 = vadd.f32 %v2799_v48, %v2043_v56  ;;  %v2908_v19 = vadd.f32 %v2800_v43, %v2044_v26  ;;  %2235 = vperm.xlu1 %6371, %v9122_v63   ;;  %v2356_v63 = vmul.f32 %v6589_v2, %v2106_v50  ;;  %v6102_v56 = vld [vmem:[#allocation2 + $0x1a0] sm:$0xf]  ;;  %v6592_v48 = vld [vmem:[#allocation3 + $0x248] sm:$0xff]  ;;  %v2037_v21 = vld [vmem:[#allocation6 + $0x240] sm:$0xff] }
 0x30d   :  { %3122 = vst [vmem:[#allocation2 + $0xb8] sm:$0xff] %v3068_v11  ;;  %4183 = vmatpush.bf16.msra.mxu0 %v5927_v62  ;;  %v2038_v62 = vld [vmem:[#allocation6 + $0x248] sm:$0xff]  ;;  %v6597_v2 = vld [vmem:[#allocation3 + $0x320] sm:$0xff] }
 0x30e   :  { %v3015_v33 = vmax.f32 %v2907_v17, 0.0  ;;  %v3016_v22 = vmax.f32 %v2908_v19, 0.0 }
 0x30f   :  { %6370 = vset.pattern.permute.xlu2 %v10886_v13 }
 0x310   :  { %2170 = vperm.xlu2 %6370, %v9109_v58   ;;  %v3084_v25 = vpack.c.bf16 %v3016_v22, %v3015_v33  ;;  %v1977_v58 = vld [vmem:[#allocation6 + $0x60] sm:$0xff]  ;;  %v6594_v33 = vld [vmem:[%s10378_s2 + $0x98] sm:$0xff]  ;;  %v10916_v22 = vld [vmem:[#allocation71_spill] sm:$0xff] }
 0x311   :  { %v2719_v47 = vpop.permute.xlu1 %2718  ;;  %v5990_v52 = vld [vmem:[#allocation2 + $0xc0] sm:$0xf]  ;;  %v1930_v3 = vsub.f32 %v6594_v33, %v10916_v22  ;;  %v6604_v33 = vld [vmem:[#allocation3 + $0x158] sm:$0xff] }
 0x312   :  { %3138 = vst [vmem:[#allocation2 + $0x138] sm:$0xff] %v3084_v25  ;;  %v2827_v45 = vadd.f32 %v2719_v47, %v2449_v40  ;;  %v2828_v9 = vadd.f32 %v2719_v47, %v2450_v20  ;;  %v5991_v0 = vor.u32 %v6295_v5, %v5990_v52  ;;  %v6595_v5 = vld [vmem:[#allocation3 + $0x70] sm:$0xff] }
 0x313   :  { %v2484_v7 = vpop.permute.xlu2 %2483  ;;  %v2357_v30 = vmul.f32 %v6595_v5, %v9555_v18  ;;  %v1979_v52 = vld [vmem:[#allocation6 + $0x70] sm:$0xff] }
 0x314   :  { %v2733_v51 = vadd.f32 %v2484_v7, %v2355_v44  ;;  %v2734_v12 = vadd.f32 %v2484_v7, %v2356_v63  ;;  %v2935_v16 = vadd.f32 %v2827_v45, %v2071_v61  ;;  %v2936_v8 = vadd.f32 %v2828_v9, %v2072_v34  ;;  %6372 = vset.pattern.permute.xlu1 %v10884_v1  ;;  %v6598_v61 = vld [vmem:[#allocation3 + $0x328] sm:$0xff]  ;;  %v1980_v45 = vld [vmem:[#allocation6 + $0x78] sm:$0xff]  ;;  %v2065_v7 = vld [vmem:[#allocation6 + $0x320] sm:$0xff] }
 0x315   :  { %4327 = vmatpush.bf16.msra.mxu1 %v5991_v0  ;;  %2463 = vperm.xlu1 %6372, %v1913_v60   ;;  %v2066_v0 = vld [vmem:[#allocation6 + $0x328] sm:$0xff] }
 0x316   :  { %v2841_v39 = vadd.f32 %v2733_v51, %v1977_v58  ;;  %v2842_v23 = vadd.f32 %v2734_v12, %v1978_v28  ;;  %v3043_v14 = vmax.f32 %v2935_v16, 0.0  ;;  %v3044_v49 = vmax.f32 %v2936_v8, 0.0  ;;  %v10917_v12 = vld [vmem:[#allocation73_spill] sm:$0xff]  ;;  %v2186_v8 = vpop.permute.xlu0 %2185 }
 0x318   :  { %v2949_v36 = vmax.f32 %v2841_v39, 0.0  ;;  %v2950_v38 = vmax.f32 %v2842_v23, 0.0  ;;  %2240 = vperm.xlu2 %6370, %v9160_v32   ;;  %v3098_v10 = vpack.c.bf16 %v3044_v49, %v3043_v14 }
 0x319   :  { %v6309_v4 = vld [vmem:[#allocation2 + $0x134] sm:$0xf0] }
 0x31a   :  { %v3051_v31 = vpack.c.bf16 %v2950_v38, %v2949_v36  ;;  %3152 = vst [vmem:[#allocation2 + $0x1a8] sm:$0xff] %v3098_v10  ;;  %v2256_v55 = vpop.permute.xlu1 %2255  ;;  %v6047_v35 = vor.u32 %v6309_v4, %v6046_v41  ;;  %v10918_v41 = vld [vmem:[#allocation70_spill] sm:$0xff]  ;;  %v6600_v4 = vld [vmem:[#allocation3 + $0x160] sm:$0xff] }
 0x31b   :  { %v2415_v11 = vmul.f32 %v6591_v54, %v2256_v55  ;;  %v2416_v43 = vmul.f32 %v6592_v48, %v2256_v55  ;;  %v2387_v55 = vmul.f32 %v6600_v4, %v2186_v8  ;;  %v2010_v54 = vld [vmem:[#allocation6 + $0x168] sm:$0xff] }
 0x31c   :  { %3105 = vst [vmem:[#allocation2 + $0x30] sm:$0xff] %v3051_v31  ;;  %v9616_v15 = vpop.permute.xlu2 %2100  ;;  %4472 = vmatpush.bf16.msra.mxu2 %v6047_v35  ;;  %v6601_v35 = vld [vmem:[#allocation3 + $0x168] sm:$0xff] }
 0x31d   :  { %6373 = vset.pattern.permute.xlu1 %v10886_v13 }
 0x31e   :  { %2080 = vperm.xlu1 %6373, %v9173_v29   ;;  %v6593_v29 = vld [vmem:[%s10378_s2 + $0x90] sm:$0xff]  ;;  %v2331_v5 = vpop.permute.xlu0 %2330 }
 0x320   :  { %2075 = vperm.xlu2 %6370, %v9168_v24   ;;  %v1929_v24 = vsub.f32 %v6593_v29, %v9312_v53  ;;  %v6596_v53 = vld [vmem:[#allocation3 + $0x78] sm:$0xff]  ;;  %v6603_v29 = vld [vmem:[#allocation3 + $0x150] sm:$0xff] }
 0x321   :  { %v6323_v26 = vld [vmem:[#allocation2 + $0x1a4] sm:$0xf0]  ;;  %v2358_v44 = vmul.f32 %v6596_v53, %v9555_v18 }
 0x322   :  { %v2326_v32 = vpop.permute.xlu1 %2325  ;;  %v6103_v59 = vor.u32 %v6323_v26, %v6102_v56  ;;  %v6599_v18 = vld [vmem:[%s10378_s2 + $0x108] sm:$0xff]  ;;  %v2388_v56 = vmul.f32 %v6601_v35, %v2186_v8 }
 0x323   :  { %v2443_v63 = vmul.f32 %v6597_v2, %v2326_v32  ;;  %v2444_v34 = vmul.f32 %v6598_v61, %v2326_v32  ;;  %v1944_v16 = vsub.f32 %v6599_v18, %v10917_v12  ;;  %v5918_v18 = vld [vmem:[#allocation2 + $0x30] sm:$0xf] }
 0x324   :  { %4617 = vmatpush.bf16.msra.mxu3 %v6103_v59  ;;  %v2009_v59 = vld [vmem:[#allocation6 + $0x160] sm:$0xff] }
 0x325   :  { %v2634_v17 = vpop.permute.xlu2 %2633 }
 0x326   :  { %v2793_v19 = vadd.f32 %v2634_v17, %v2415_v11  ;;  %v2794_v50 = vadd.f32 %v2634_v17, %v2416_v43  ;;  %6375 = vset.pattern.permute.xlu1 %v10884_v1 }
 0x327   :  { %2548 = vperm.xlu1 %6375, %v1930_v3   ;;  %v6605_v3 = vld [vmem:[%s10378_s2 + $0x8] sm:$0xff] }
 0x328   :  { %v2901_v40 = vadd.f32 %v2793_v19, %v2037_v21  ;;  %v2902_v6 = vadd.f32 %v2794_v50, %v2038_v62  ;;  %6374 = vset.pattern.permute.xlu2 %v10884_v1  ;;  %v10919_v21 = vld [vmem:[#allocation72_spill] sm:$0xff] }
 0x329   :  { %2543 = vperm.xlu2 %6374, %v1929_v24  }
 0x32a   :  { %v3009_v20 = vmax.f32 %v2901_v40, 0.0  ;;  %v3010_v25 = vmax.f32 %v2902_v6, 0.0  ;;  %v10920_v40 = vld [vmem:[#allocation68_spill] sm:$0xff] }
 0x32b   :  { %v2489_v9 = vpop.permute.xlu1 %2488  ;;  %v1912_v6 = vsub.f32 %v6605_v3, %v10920_v40 }
 0x32c   :  { %v3081_v47 = vpack.c.bf16 %v3010_v25, %v3009_v20  ;;  %v2735_v58 = vadd.f32 %v2489_v9, %v2357_v30  ;;  %v2736_v28 = vadd.f32 %v2489_v9, %v2358_v44  ;;  %v2007_v20 = vld [vmem:[#allocation6 + $0x150] sm:$0xff]  ;;  %v2008_v25 = vld [vmem:[#allocation6 + $0x158] sm:$0xff] }
 0x32d   :  { %v2704_v57 = vpop.permute.xlu2 %2703 }
 0x32e   :  { %3135 = vst [vmem:[#allocation2 + $0x120] sm:$0xff] %v3081_v47  ;;  %v2821_v60 = vadd.f32 %v2704_v57, %v2443_v63  ;;  %v2822_v51 = vadd.f32 %v2704_v57, %v2444_v34  ;;  %v2843_v39 = vadd.f32 %v2735_v58, %v1979_v52  ;;  %v2844_v23 = vadd.f32 %v2736_v28, %v1980_v45  ;;  %v6606_v63 = vld [vmem:[#allocation3 + $0x250] sm:$0xff]  ;;  %v6607_v34 = vld [vmem:[#allocation3 + $0x258] sm:$0xff] }
 0x32f   :  { %6377 = vset.pattern.permute.xlu1 %v10886_v13  ;;  %v6602_v13 = vld [vmem:[%s10378_s2] sm:$0xff]  ;;  %v2417_v61 = vmul.f32 %v6606_v63, %v9602_v42  ;;  %v2418_v47 = vmul.f32 %v6607_v34, %v9602_v42  ;;  %v2040_v28 = vld [vmem:[#allocation6 + $0x258] sm:$0xff] }
 0x330   :  { %v2929_v14 = vadd.f32 %v2821_v60, %v2065_v7  ;;  %v2930_v49 = vadd.f32 %v2822_v51, %v2066_v0  ;;  %v2951_v36 = vmax.f32 %v2843_v39, 0.0  ;;  %v2952_v38 = vmax.f32 %v2844_v23, 0.0  ;;  %2155 = vperm.xlu1 %6377, %v10918_v41   ;;  %v2039_v58 = vld [vmem:[#allocation6 + $0x250] sm:$0xff] }
 0x331   :  { %2618 = vperm.xlu2 %6374, %v1944_v16   ;;  %v1911_v62 = vsub.f32 %v6602_v13, %v10919_v21  ;;  %v6608_v42 = vld [vmem:[%s10378_s2 + $0x80] sm:$0xff]  ;;  %v10921_v16 = vld [vmem:[#allocation69_spill] sm:$0xff] }
 0x332   :  { %v3037_v10 = vmax.f32 %v2929_v14, 0.0  ;;  %v3038_v31 = vmax.f32 %v2930_v49, 0.0  ;;  %v3052_v26 = vpack.c.bf16 %v2952_v38, %v2951_v36  ;;  %v1927_v8 = vsub.f32 %v6608_v42, %v10921_v16  ;;  %v6609_v49 = vld [vmem:[%s10378_s2 + $0x88] sm:$0xff]  ;;  %v6610_v41 = vld [vmem:[#allocation3 + $0x330] sm:$0xff]  ;;  %s6756_s2 = smov [#allocation9]  }
 0x333   :  { %v2564_v11 = vpop.permute.xlu1 %2563  ;;  %v10922_v36 = vld [vmem:[#allocation80_spill] sm:$0xff]  ;;  %v2445_v4 = vmul.f32 %v6610_v41, %v2331_v5  ;;  %v2034_v41 = vld [vmem:[#allocation6 + $0x228] sm:$0xff]  ;;  %s5444_s28 = sshll.u32 %s6756_s2, 4  ;;  %s5445_s28 = int_to_ptr.vmem [resolvable:$true] %s5444_s28 }
 0x334   :  { %v3095_v32 = vpack.c.bf16 %v3038_v31, %v3037_v10  ;;  %3106 = vst [vmem:[#allocation2 + $0x38] sm:$0xff] %v3052_v26  ;;  %v2765_v48 = vadd.f32 %v2564_v11, %v2387_v55  ;;  %v2766_v43 = vadd.f32 %v2564_v11, %v2388_v56  ;;  %v1928_v38 = vsub.f32 %v6609_v49, %v10922_v36  ;;  %v6611_v55 = vld [vmem:[#allocation3 + $0x338] sm:$0xff]  ;;  %v2096_v56 = vpop.permute.xlu0 %2095  ;;  %v6617_v36 = vld [vmem:[#allocation3 + $0x228] sm:$0xff] }
 0x335   :  { %v2446_v35 = vmul.f32 %v6611_v55, %v2331_v5  ;;  %v6038_v63 = vld [vmem:[#allocation2 + $0x120] sm:$0xf] }
 0x336   :  { %3149 = vst [vmem:[#allocation2 + $0x190] sm:$0xff] %v3095_v32  ;;  %v2181_v17 = vpop.permute.xlu2 %2180  ;;  %v2873_v19 = vadd.f32 %v2765_v48, %v2009_v59  ;;  %v2874_v50 = vadd.f32 %v2766_v43, %v2010_v54  ;;  %v6293_v32 = vld [vmem:[#allocation2 + $0xb4] sm:$0xf0]  ;;  %v2067_v59 = vld [vmem:[#allocation6 + $0x330] sm:$0xff]  ;;  %v2068_v54 = vld [vmem:[#allocation6 + $0x338] sm:$0xff] }
 0x337   :  { %v2385_v24 = vmul.f32 %v6603_v29, %v2181_v17  ;;  %v2386_v22 = vmul.f32 %v6604_v33, %v2181_v17  ;;  %v1973_v33 = vld [vmem:[#allocation6 + $0x40] sm:$0xff] }
 0x338   :  { %v2981_v30 = vmax.f32 %v2873_v19, 0.0  ;;  %v2982_v53 = vmax.f32 %v2874_v50, 0.0  ;;  %6378 = vset.pattern.permute.xlu1 %v10884_v1  ;;  %v6613_v19 = vld [vmem:[#allocation3 + $0x48] sm:$0xff] }
 0x339   :  { %v2763_v44 = vadd.f32 %v9474_v37, %v2385_v24  ;;  %v2764_v2 = vadd.f32 %v9474_v37, %v2386_v22  ;;  %2453 = vperm.xlu2 %6374, %v1911_v62   ;;  %2458 = vperm.xlu1 %6378, %v1912_v6   ;;  %v6612_v62 = vld [vmem:[#allocation3 + $0x40] sm:$0xff]  ;;  %v2352_v50 = vmul.f32 %v6613_v19, %v2096_v56  ;;  %v1974_v22 = vld [vmem:[#allocation6 + $0x48] sm:$0xff] }
 0x33a   :  { %v3067_v52 = vpack.c.bf16 %v2982_v53, %v2981_v30  ;;  %v2351_v17 = vmul.f32 %v6612_v62, %v2096_v56  ;;  %v6620_v19 = vld [vmem:[#allocation3 + $0x300] sm:$0xff] }
 0x33b   :  { %v2871_v45 = vadd.f32 %v2763_v44, %v2007_v20  ;;  %v2872_v9 = vadd.f32 %v2764_v2, %v2008_v25  ;;  %v2639_v7 = vpop.permute.xlu1 %2638  ;;  %v6277_v0 = vld [vmem:[#allocation2 + $0x34] sm:$0xf0] }
 0x33c   :  { %3121 = vst [vmem:[#allocation2 + $0xb0] sm:$0xff] %v3067_v52  ;;  %v2795_v60 = vadd.f32 %v2639_v7, %v2417_v61  ;;  %v2796_v51 = vadd.f32 %v2639_v7, %v2418_v47  ;;  %v5919_v1 = vor.u32 %v6277_v0, %v5918_v18  ;;  %v1971_v0 = vld [vmem:[#allocation6 + $0x30] sm:$0xff] }
 0x33d   :  { %v2979_v57 = vmax.f32 %v2871_v45, 0.0  ;;  %v2980_v37 = vmax.f32 %v2872_v9, 0.0  ;;  %v6614_v9 = vld [vmem:[#allocation3 + $0x30] sm:$0xff] }
 0x33e   :  { %v9652_v12 = vpop.permute.xlu2 %2250  ;;  %v2903_v23 = vadd.f32 %v2795_v60, %v2039_v58  ;;  %v2904_v14 = vadd.f32 %v2796_v51, %v2040_v28  ;;  %4184 = vmatpush.bf16.msra.mxu0 %v5919_v1  ;;  %v6615_v28 = vld [vmem:[#allocation3 + $0x38] sm:$0xff]  ;;  %v6094_v51 = vld [vmem:[#allocation2 + $0x190] sm:$0xf] }
 0x33f   :  { %v3066_v39 = vpack.c.bf16 %v2980_v37, %v2979_v57  ;;  %v1972_v57 = vld [vmem:[#allocation6 + $0x38] sm:$0xff] }
 0x340   :  { %v3011_v10 = vmax.f32 %v2903_v23, 0.0  ;;  %v3012_v31 = vmax.f32 %v2904_v14, 0.0  ;;  %v6616_v14 = vld [vmem:[#allocation3 + $0x220] sm:$0xff] }
 0x341   :  { %3120 = vst [vmem:[#allocation2 + $0xa8] sm:$0xff] %v3066_v39  ;;  %2533 = vperm.xlu2 %6374, %v1927_v8   ;;  %2538 = vperm.xlu1 %6378, %v1928_v38  }
 0x342   :  { %v3082_v26 = vpack.c.bf16 %v3012_v31, %v3011_v10  ;;  %v2033_v31 = vld [vmem:[#allocation6 + $0x220] sm:$0xff] }
 0x343   :  { %v2709_v11 = vpop.permute.xlu1 %2708  ;;  %v5982_v48 = vld [vmem:[#allocation2 + $0xb0] sm:$0xf] }
 0x344   :  { %3136 = vst [vmem:[#allocation2 + $0x128] sm:$0xff] %v3082_v26  ;;  %v2823_v43 = vadd.f32 %v2709_v11, %v2445_v4  ;;  %v2824_v13 = vadd.f32 %v2709_v11, %v2446_v35  ;;  %v5983_v21 = vor.u32 %v6293_v32, %v5982_v48  ;;  %v6618_v26 = vld [vmem:[#allocation3 + $0x50] sm:$0xff] }
 0x345   :  { %v2353_v32 = vmul.f32 %v6618_v26, %v9616_v15 }
 0x346   :  { %v2931_v29 = vadd.f32 %v2823_v43, %v2067_v59  ;;  %v2932_v24 = vadd.f32 %v2824_v13, %v2068_v54  ;;  %4328 = vmatpush.bf16.msra.mxu1 %v5983_v21  ;;  %v6619_v59 = vld [vmem:[#allocation3 + $0x58] sm:$0xff]  ;;  %v1975_v43 = vld [vmem:[#allocation6 + $0x50] sm:$0xff] }
 0x347   :  { %v2474_v3 = vpop.permute.xlu2 %2473  ;;  %v2354_v54 = vmul.f32 %v6619_v59, %v9616_v15  ;;  %v1976_v13 = vld [vmem:[#allocation6 + $0x58] sm:$0xff] }
 0x348   :  { %v2729_v40 = vadd.f32 %v2474_v3, %v2351_v17  ;;  %v2730_v6 = vadd.f32 %v2474_v3, %v2352_v50  ;;  %v3039_v20 = vmax.f32 %v2931_v29, 0.0  ;;  %v3040_v25 = vmax.f32 %v2932_v24, 0.0  ;;  %v6621_v29 = vld [vmem:[#allocation3 + $0x308] sm:$0xff] }
 0x34a   :  { %v2837_v5 = vadd.f32 %v2729_v40, %v1973_v33  ;;  %v2838_v30 = vadd.f32 %v2730_v6, %v1974_v22  ;;  %v3096_v53 = vpack.c.bf16 %v3040_v25, %v3039_v20  ;;  %v2176_v22 = vpop.permute.xlu0 %2175  ;;  %v2061_v6 = vld [vmem:[#allocation6 + $0x300] sm:$0xff]  ;;  %v2062_v20 = vld [vmem:[#allocation6 + $0x308] sm:$0xff] }
 0x34b   :  { %v6307_v61 = vld [vmem:[#allocation2 + $0x124] sm:$0xf0] }
 0x34c   :  { %v2945_v44 = vmax.f32 %v2837_v5, 0.0  ;;  %v2946_v2 = vmax.f32 %v2838_v30, 0.0  ;;  %3150 = vst [vmem:[#allocation2 + $0x198] sm:$0xff] %v3096_v53  ;;  %v2246_v34 = vpop.permute.xlu1 %2245  ;;  %v6039_v47 = vor.u32 %v6307_v61, %v6038_v63  ;;  %v6622_v63 = vld [vmem:[#allocation3 + $0x140] sm:$0xff] }
 0x34d   :  { %v2411_v49 = vmul.f32 %v6616_v14, %v2246_v34  ;;  %v2412_v38 = vmul.f32 %v6617_v36, %v2246_v34  ;;  %v2383_v61 = vmul.f32 %v6622_v63, %v2176_v22  ;;  %v6623_v34 = vld [vmem:[#allocation3 + $0x148] sm:$0xff]  ;;  %v2035_v36 = vld [vmem:[#allocation6 + $0x230] sm:$0xff] }
 0x34e   :  { %v3049_v52 = vpack.c.bf16 %v2946_v2, %v2945_v44  ;;  %4473 = vmatpush.bf16.msra.mxu2 %v6039_v47  ;;  %v2384_v47 = vmul.f32 %v6623_v34, %v2176_v22 }
 0x350   :  { %3103 = vst [vmem:[#allocation2 + $0x20] sm:$0xff] %v3049_v52  ;;  %v2091_v45 = vpop.permute.xlu2 %2090 }
 0x351   :  { %v2349_v58 = vmul.f32 %v6614_v9, %v2091_v45  ;;  %v2350_v7 = vmul.f32 %v6615_v28, %v2091_v45  ;;  %v2006_v28 = vld [vmem:[#allocation6 + $0x148] sm:$0xff] }
 0x353   :  { %v2727_v37 = vadd.f32 %v9483_v27, %v2349_v58  ;;  %v2728_v60 = vadd.f32 %v9483_v27, %v2350_v7  ;;  %v6321_v18 = vld [vmem:[#allocation2 + $0x194] sm:$0xf0]  ;;  %v2005_v58 = vld [vmem:[#allocation6 + $0x140] sm:$0xff] }
 0x354   :  { %v2316_v16 = vpop.permute.xlu1 %2315  ;;  %v6095_v8 = vor.u32 %v6321_v18, %v6094_v51 }
 0x355   :  { %v2835_v1 = vadd.f32 %v2727_v37, %v1971_v0  ;;  %v2836_v42 = vadd.f32 %v2728_v60, %v1972_v57  ;;  %v2439_v50 = vmul.f32 %v6620_v19, %v2316_v16  ;;  %v2440_v24 = vmul.f32 %v6621_v29, %v2316_v16 }
 0x356   :  { %4618 = vmatpush.bf16.msra.mxu3 %v6095_v8  ;;  %v6624_v8 = vld [vmem:[#allocation3 + $0x230] sm:$0xff] }
 0x357   :  { %v2943_v39 = vmax.f32 %v2835_v1, 0.0  ;;  %v2944_v23 = vmax.f32 %v2836_v42, 0.0  ;;  %v2321_v1 = vpop.permute.xlu0 %2320 }
 0x359   :  { %v3048_v10 = vpack.c.bf16 %v2944_v23, %v2943_v39  ;;  %v2624_v4 = vpop.permute.xlu2 %2623  ;;  %v2413_v39 = vmul.f32 %v6624_v8, %v9652_v12  ;;  %v6625_v23 = vld [vmem:[#allocation3 + $0x238] sm:$0xff]  ;;  %v5952_v8 = vld [vmem:[#allocation2 + $0x78] sm:$0xf0] }
 0x35a   :  { %v2789_v55 = vadd.f32 %v2624_v4, %v2411_v49  ;;  %v2790_v35 = vadd.f32 %v2624_v4, %v2412_v38  ;;  %v2414_v14 = vmul.f32 %v6625_v23, %v9652_v12  ;;  %v2036_v38 = vld [vmem:[#allocation6 + $0x238] sm:$0xff] }
 0x35b   :  { %3102 = vst [vmem:[#allocation2 + $0x18] sm:$0xff] %v3048_v10  ;;  %v6627_v12 = vld [vmem:[#allocation3 + $0x318] sm:$0xff] }
 0x35c   :  { %v2897_v27 = vadd.f32 %v2789_v55, %v2033_v31  ;;  %v2898_v56 = vadd.f32 %v2790_v35, %v2034_v41  ;;  %v5910_v31 = vld [vmem:[#allocation2 + $0x20] sm:$0xf] }
 0x35d   :  { %v2479_v21 = vpop.permute.xlu1 %2478 }
 0x35e   :  { %v3005_v11 = vmax.f32 %v2897_v27, 0.0  ;;  %v3006_v48 = vmax.f32 %v2898_v56, 0.0  ;;  %v2731_v62 = vadd.f32 %v2479_v21, %v2353_v32  ;;  %v2732_v17 = vadd.f32 %v2479_v21, %v2354_v54  ;;  %v6626_v54 = vld [vmem:[#allocation3 + $0x310] sm:$0xff]  ;;  %v6291_v21 = vld [vmem:[#allocation2 + $0xa4] sm:$0xf0] }
 0x360   :  { %v3079_v33 = vpack.c.bf16 %v3006_v48, %v3005_v11  ;;  %v2839_v3 = vadd.f32 %v2731_v62, %v1975_v43  ;;  %v2840_v40 = vadd.f32 %v2732_v17, %v1976_v13  ;;  %v2441_v11 = vmul.f32 %v6626_v54, %v2321_v1  ;;  %v2086_v43 = vpop.permute.xlu0 %2085  ;;  %v2063_v62 = vld [vmem:[#allocation6 + $0x310] sm:$0xff]  ;;  %v2064_v17 = vld [vmem:[#allocation6 + $0x318] sm:$0xff] }
 0x361   :  { %v2694_v25 = vpop.permute.xlu2 %2693  ;;  %v2442_v48 = vmul.f32 %v6627_v12, %v2321_v1 }
 0x362   :  { %3133 = vst [vmem:[#allocation2 + $0x110] sm:$0xff] %v3079_v33  ;;  %v2817_v15 = vadd.f32 %v2694_v25, %v2439_v50  ;;  %v2818_v5 = vadd.f32 %v2694_v25, %v2440_v24  ;;  %v2947_v30 = vmax.f32 %v2839_v3, 0.0  ;;  %v2948_v53 = vmax.f32 %v2840_v40, 0.0 }
 0x364   :  { %v2925_v44 = vadd.f32 %v2817_v15, %v2061_v6  ;;  %v2926_v2 = vadd.f32 %v2818_v5, %v2062_v20  ;;  %v3050_v52 = vpack.c.bf16 %v2948_v53, %v2947_v30 }
 0x365   :  { %v2554_v7 = vpop.permute.xlu1 %2553 }
 0x366   :  { %v3033_v45 = vmax.f32 %v2925_v44, 0.0  ;;  %v3034_v9 = vmax.f32 %v2926_v2, 0.0  ;;  %3104 = vst [vmem:[#allocation2 + $0x28] sm:$0xff] %v3050_v52  ;;  %v2761_v0 = vadd.f32 %v2554_v7, %v2383_v61  ;;  %v2762_v57 = vadd.f32 %v2554_v7, %v2384_v47  ;;  %v6628_v2 = vld [vmem:[#allocation3 + $0x200] sm:$0xff]  ;;  %v6629_v61 = vld [vmem:[#allocation3 + $0x208] sm:$0xff] }
 0x367   :  { %v2029_v47 = vld [vmem:[#allocation6 + $0x200] sm:$0xff]  ;;  %v2030_v52 = vld [vmem:[#allocation6 + $0x208] sm:$0xff] }
 0x368   :  { %v3093_v37 = vpack.c.bf16 %v3034_v9, %v3033_v45  ;;  %v2869_v60 = vadd.f32 %v2761_v0, %v2005_v58  ;;  %v2870_v51 = vadd.f32 %v2762_v57, %v2006_v28  ;;  %v2166_v30 = vpop.permute.xlu0 %2165  ;;  %v6630_v45 = vld [vmem:[#allocation3 + $0x120] sm:$0xff]  ;;  %v6631_v58 = vld [vmem:[#allocation3 + $0x128] sm:$0xff] }
 0x369   :  { %v6030_v15 = vld [vmem:[#allocation2 + $0x110] sm:$0xf]  ;;  %v2379_v9 = vmul.f32 %v6630_v45, %v2166_v30  ;;  %v2380_v28 = vmul.f32 %v6631_v58, %v2166_v30  ;;  %v6280_v30 = vld [vmem:[#allocation2 + $0x54] sm:$0xf]  ;;  %v6637_v58 = vld [vmem:[#allocation3 + $0x8] sm:$0xff] }
 0x36a   :  { %3147 = vst [vmem:[#allocation2 + $0x180] sm:$0xff] %v3093_v37  ;;  %v9666_v18 = vpop.permute.xlu2 %2170  ;;  %v2977_v42 = vmax.f32 %v2869_v60, 0.0  ;;  %v2978_v16 = vmax.f32 %v2870_v51, 0.0  ;;  %v2001_v57 = vld [vmem:[#allocation6 + $0x120] sm:$0xff]  ;;  %v2002_v37 = vld [vmem:[#allocation6 + $0x128] sm:$0xff] }
 0x36b   :  { %v6636_v45 = vld [vmem:[#allocation3] sm:$0xff] }
 0x36c   :  { %v3065_v49 = vpack.c.bf16 %v2978_v16, %v2977_v42 }
 0x36d   :  { %v2629_v10 = vpop.permute.xlu1 %2628  ;;  %v6275_v41 = vld [vmem:[#allocation2 + $0x24] sm:$0xf0] }
 0x36e   :  { %3119 = vst [vmem:[#allocation2 + $0xa0] sm:$0xff] %v3065_v49  ;;  %v2791_v4 = vadd.f32 %v2629_v10, %v2413_v39  ;;  %v2792_v55 = vadd.f32 %v2629_v10, %v2414_v14  ;;  %v5911_v35 = vor.u32 %v6275_v41, %v5910_v31  ;;  %v6632_v10 = vld [vmem:[#allocation3 + $0x20] sm:$0xff]  ;;  %v6633_v41 = vld [vmem:[#allocation3 + $0x28] sm:$0xff] }
 0x36f   :  { %v2347_v31 = vmul.f32 %v6632_v10, %v2086_v43 }
 0x370   :  { %v2899_v27 = vadd.f32 %v2791_v4, %v2035_v36  ;;  %v2900_v56 = vadd.f32 %v2792_v55, %v2036_v38  ;;  %4185 = vmatpush.bf16.msra.mxu0 %v5911_v35  ;;  %v2348_v4 = vmul.f32 %v6633_v41, %v2086_v43  ;;  %v6638_v41 = vld [vmem:[#allocation3 + $0x130] sm:$0xff] }
 0x371   :  { %v6086_v36 = vld [vmem:[#allocation2 + $0x180] sm:$0xf] }
 0x372   :  { %v9670_v26 = vpop.permute.xlu2 %2240  ;;  %v3007_v32 = vmax.f32 %v2899_v27, 0.0  ;;  %v3008_v59 = vmax.f32 %v2900_v56, 0.0 }
 0x374   :  { %v3080_v13 = vpack.c.bf16 %v3008_v59, %v3007_v32  ;;  %v1969_v32 = vld [vmem:[#allocation6 + $0x20] sm:$0xff]  ;;  %v1970_v59 = vld [vmem:[#allocation6 + $0x28] sm:$0xff] }
 0x375   :  { %v2699_v19 = vpop.permute.xlu1 %2698  ;;  %v5974_v50 = vld [vmem:[#allocation2 + $0xa0] sm:$0xf] }
 0x376   :  { %3134 = vst [vmem:[#allocation2 + $0x118] sm:$0xff] %v3080_v13  ;;  %v2819_v29 = vadd.f32 %v2699_v19, %v2441_v11  ;;  %v2820_v24 = vadd.f32 %v2699_v19, %v2442_v48  ;;  %v5975_v33 = vor.u32 %v6291_v21, %v5974_v50  ;;  %v5944_v13 = vld [vmem:[#allocation2 + $0x68] sm:$0xf0]  ;;  %v6634_v21 = vld [vmem:[#allocation3 + $0x210] sm:$0xff] }
 0x378   :  { %v2927_v22 = vadd.f32 %v2819_v29, %v2063_v62  ;;  %v2928_v3 = vadd.f32 %v2820_v24, %v2064_v17  ;;  %4329 = vmatpush.bf16.msra.mxu1 %v5975_v33  ;;  %v2409_v62 = vmul.f32 %v6634_v21, %v9670_v26  ;;  %v6635_v17 = vld [vmem:[#allocation3 + $0x218] sm:$0xff]  ;;  %v2031_v24 = vld [vmem:[#allocation6 + $0x210] sm:$0xff] }
 0x379   :  { %v2410_v19 = vmul.f32 %v6635_v17, %v9670_v26  ;;  %v2032_v33 = vld [vmem:[#allocation6 + $0x218] sm:$0xff]  ;;  %v6322_v17 = vld [vmem:[#allocation2 + $0x1a4] sm:$0xf] }
 0x37a   :  { %v9672_v40 = vpop.permute.xlu2 %2075  ;;  %v3035_v6 = vmax.f32 %v2927_v22, 0.0  ;;  %v3036_v20 = vmax.f32 %v2928_v3, 0.0  ;;  %v6282_v3 = vld [vmem:[#allocation2 + $0x64] sm:$0xf] }
 0x37c   :  { %v3094_v25 = vpack.c.bf16 %v3036_v20, %v3035_v6 }
 0x37d   :  { %v6305_v5 = vld [vmem:[#allocation2 + $0x114] sm:$0xf0] }
 0x37e   :  { %3148 = vst [vmem:[#allocation2 + $0x188] sm:$0xff] %v3094_v25  ;;  %v2236_v53 = vpop.permute.xlu1 %2235  ;;  %v6031_v44 = vor.u32 %v6305_v5, %v6030_v15  ;;  %v5947_v25 = vor.u32 %v6282_v3, %v5944_v13 }
 0x37f   :  { %v2407_v63 = vmul.f32 %v6628_v2, %v2236_v53  ;;  %v2408_v34 = vmul.f32 %v6629_v61, %v2236_v53  ;;  %v5936_v2 = vld [vmem:[#allocation2 + $0x58] sm:$0xf0] }
 0x380   :  { %4474 = vmatpush.bf16.msra.mxu2 %v6031_v44 }
 0x381   :  { %v2785_v7 = vadd.f32 %v9498_v46, %v2407_v63  ;;  %v2786_v0 = vadd.f32 %v9498_v46, %v2408_v34  ;;  %v6284_v46 = vld [vmem:[#allocation2 + $0x74] sm:$0xf]  ;;  %v5939_v34 = vor.u32 %v6280_v30, %v5936_v2 }
 0x382   :  { %v5955_v11 = vor.u32 %v6284_v46, %v5952_v8  ;;  %v6320_v30 = vld [vmem:[#allocation2 + $0x194] sm:$0xf] }
 0x383   :  { %v2544_v60 = vpop.permute.xlu2 %2543  ;;  %v2893_v51 = vadd.f32 %v2785_v7, %v2029_v47  ;;  %v2894_v1 = vadd.f32 %v2786_v0, %v2030_v52  ;;  %v5928_v52 = vld [vmem:[#allocation2 + $0x48] sm:$0xf0]  ;;  %v1965_v0 = vld [vmem:[#allocation6] sm:$0xff] }
 0x384   :  { %v2757_v42 = vadd.f32 %v2544_v60, %v2379_v9  ;;  %v2758_v16 = vadd.f32 %v2544_v60, %v2380_v28  ;;  %v2343_v9 = vmul.f32 %v6636_v45, %v9672_v40  ;;  %v2344_v28 = vmul.f32 %v6637_v58, %v9672_v40  ;;  %v6278_v60 = vld [vmem:[#allocation2 + $0x44] sm:$0xf]  ;;  %v6273_v40 = vld [vmem:[#allocation2 + $0x14] sm:$0xf0] }
 0x385   :  { %v3001_v39 = vmax.f32 %v2893_v51, 0.0  ;;  %v3002_v23 = vmax.f32 %v2894_v1, 0.0  ;;  %v6319_v38 = vld [vmem:[#allocation2 + $0x184] sm:$0xf0]  ;;  %v6088_v2 = vld [vmem:[#allocation2 + $0x188] sm:$0xf0] }
 0x386   :  { %v2865_v14 = vadd.f32 %v2757_v42, %v2001_v57  ;;  %v2866_v49 = vadd.f32 %v2758_v16, %v2002_v37  ;;  %v6087_v55 = vor.u32 %v6319_v38, %v6086_v36  ;;  %v1966_v57 = vld [vmem:[#allocation6 + $0x8] sm:$0xff]  ;;  %v5931_v42 = vor.u32 %v6278_v60, %v5928_v52 }
 0x387   :  { %v3077_v35 = vpack.c.bf16 %v3002_v23, %v3001_v39  ;;  %v2464_v54 = vpop.permute.xlu1 %2463  ;;  %v5920_v16 = vld [vmem:[#allocation2 + $0x38] sm:$0xf0]  ;;  %v6276_v23 = vld [vmem:[#allocation2 + $0x34] sm:$0xf] }
 0x388   :  { %v2973_v27 = vmax.f32 %v2865_v14, 0.0  ;;  %v2974_v56 = vmax.f32 %v2866_v49, 0.0  ;;  %v2725_v12 = vadd.f32 %v2464_v54, %v2347_v31  ;;  %v2726_v48 = vadd.f32 %v2464_v54, %v2348_v4  ;;  %4619 = vmatpush.bf16.msra.mxu3 %v6087_v55  ;;  %v5912_v31 = vld [vmem:[#allocation2 + $0x28] sm:$0xf0]  ;;  %v6641_v45 = vld [vmem:[#allocation3 + $0x108] sm:$0xff] }
 0x389   :  { %3131 = vst [vmem:[#allocation2 + $0x100] sm:$0xff] %v3077_v35  ;;  %v5923_v36 = vor.u32 %v6276_v23, %v5920_v16  ;;  %v2381_v4 = vmul.f32 %v6638_v41, %v9666_v18  ;;  %v6639_v55 = vld [vmem:[#allocation3 + $0x138] sm:$0xff]  ;;  %v6642_v23 = vld [vmem:[#allocation3 + $0x10] sm:$0xff] }
 0x38a   :  { %v3063_v43 = vpack.c.bf16 %v2974_v56, %v2973_v27  ;;  %v2833_v50 = vadd.f32 %v2725_v12, %v1969_v32  ;;  %v2834_v29 = vadd.f32 %v2726_v48, %v1970_v59  ;;  %v2382_v46 = vmul.f32 %v6639_v55, %v9666_v18  ;;  %v2003_v27 = vld [vmem:[#allocation6 + $0x130] sm:$0xff]  ;;  %v6104_v32 = vld [vmem:[#allocation2 + $0x1a8] sm:$0xf0] }
 0x38b   :  { %v2619_v22 = vpop.permute.xlu2 %2618  ;;  %v6274_v56 = vld [vmem:[#allocation2 + $0x24] sm:$0xf]  ;;  %v2004_v59 = vld [vmem:[#allocation6 + $0x138] sm:$0xff] }
 0x38c   :  { %4756 = vmatpush.bf16.msrb.mxu3 %v5955_v11  ;;  %3117 = vst [vmem:[#allocation2 + $0x90] sm:$0xff] %v3063_v43  ;;  %v2787_v6 = vadd.f32 %v2619_v22, %v2409_v62  ;;  %v2788_v20 = vadd.f32 %v2619_v22, %v2410_v19  ;;  %v2941_v15 = vmax.f32 %v2833_v50, 0.0  ;;  %v2942_v5 = vmax.f32 %v2834_v29, 0.0  ;;  %v6096_v50 = vld [vmem:[#allocation2 + $0x198] sm:$0xf0]  ;;  %v1968_v41 = vld [vmem:[#allocation6 + $0x18] sm:$0xff] }
 0x38d   :  { %v5915_v62 = vor.u32 %v6274_v56, %v5912_v31  ;;  %v6107_v19 = vor.u32 %v6322_v17, %v6104_v32  ;;  %v5904_v22 = vld [vmem:[#allocation2 + $0x18] sm:$0xf0] }
 0x38e   :  { %v2895_v53 = vadd.f32 %v2787_v6, %v2031_v24  ;;  %v2896_v44 = vadd.f32 %v2788_v20, %v2032_v33  ;;  %v3047_v26 = vpack.c.bf16 %v2942_v5, %v2941_v15  ;;  %v6163_v24 = vld [vmem:[#allocation8 + $0xc] sm:$0xf]  ;;  %v5472_v33 = vld [vmem:[#allocation8 + $0x18] sm:$0xf0]  ;;  %v5470_v6 = vld [vmem:[#allocation8 + $0x8] sm:$0xf] }
 0x38f   :  { %v9684_v3 = vor.u32 %v6163_v24, %v5472_v33  ;;  %v6165_v20 = vld [vmem:[#allocation8 + $0x14] sm:$0xf0] }
 0x390   :  { %4757 = vmatpush.bf16.msrb.mxu3 %v5947_v25  ;;  %v3003_v63 = vmax.f32 %v2895_v53, 0.0  ;;  %v3004_v61 = vmax.f32 %v2896_v44, 0.0  ;;  %3101 = vst [vmem:[#allocation2 + $0x10] sm:$0xff] %v3047_v26  ;;  %v9678_v47 = vpop.permute.xlu1 %2080  ;;  %v6022_v11 = vld [vmem:[#allocation2 + $0x100] sm:$0xf]  ;;  %v9686_v53 = vor.u32 %v6165_v20, %v5470_v6  ;;  %v6099_v44 = vor.u32 %v6320_v30, %v6096_v50 }
 0x391   :  { %6108 = vmatmul.msk.bf16.vlgmr.msra.gmra.mxu3 %vm4098_vm3, %v9684_v3  ;;  %v6016_v20 = vld [vmem:[#allocation2 + $0xf8] sm:$0xf0] }
 0x392   :  { %v3078_v7 = vpack.c.bf16 %v3004_v61, %v3003_v63  ;;  %v6318_v61 = vld [vmem:[#allocation2 + $0x184] sm:$0xf] }
 0x393   :  { %v2454_v37 = vpop.permute.xlu2 %2453  ;;  %v6091_v58 = vor.u32 %v6318_v61, %v6088_v2  ;;  %v6164_v2 = vld [vmem:[#allocation8 + $0xc] sm:$0xf0] }
 0x394   :  { %4758 = vmatpush.bf16.msrb.mxu3 %v5939_v34  ;;  %3132 = vst [vmem:[#allocation2 + $0x108] sm:$0xff] %v3078_v7  ;;  %v2721_v51 = vadd.f32 %v2454_v37, %v2343_v9  ;;  %v2722_v1 = vadd.f32 %v2454_v37, %v2344_v28  ;;  %v6640_v34 = vld [vmem:[#allocation3 + $0x100] sm:$0xff] }
 0x395   :  { %v1997_v7 = vld [vmem:[#allocation6 + $0x100] sm:$0xff] }
 0x396   :  { %v2829_v8 = vadd.f32 %v2721_v51, %v1965_v0  ;;  %v2830_v39 = vadd.f32 %v2722_v1, %v1966_v57  ;;  %v1998_v0 = vld [vmem:[#allocation6 + $0x108] sm:$0xff]  ;;  %v5966_v1 = vld [vmem:[#allocation2 + $0x90] sm:$0xf] }
 0x397   :  { %v5902_v38 = vld [vmem:[#allocation2 + $0x10] sm:$0xf]  ;;  %v6272_v43 = vld [vmem:[#allocation2 + $0x14] sm:$0xf] }
 0x398   :  { %4759 = vmatpush.bf16.msrb.mxu3 %v5931_v42  ;;  %v2937_v14 = vmax.f32 %v2829_v8, 0.0  ;;  %v2938_v49 = vmax.f32 %v2830_v39, 0.0  ;;  %v5903_v10 = vor.u32 %v6273_v40, %v5902_v38  ;;  %v5907_v5 = vor.u32 %v6272_v43, %v5904_v22  ;;  %v6167_v39 = vld [vmem:[#allocation8 + $0x2c] sm:$0xf]  ;;  %v1967_v38 = vld [vmem:[#allocation6 + $0x10] sm:$0xff]  ;;  %v2000_v43 = vld [vmem:[#allocation6 + $0x118] sm:$0xff] }
 0x399   :  { %v2549_v54 = vpop.permute.xlu1 %2548 }
 0x39a   :  { %v3045_v35 = vpack.c.bf16 %v2938_v49, %v2937_v14  ;;  %4186 = vmatpush.bf16.msra.mxu0 %v5903_v10  ;;  %v2759_v48 = vadd.f32 %v2549_v54, %v2381_v4  ;;  %v2760_v13 = vadd.f32 %v2549_v54, %v2382_v46  ;;  %v2345_v14 = vmul.f32 %v6642_v23, %v9678_v47  ;;  %v6643_v49 = vld [vmem:[#allocation3 + $0x18] sm:$0xff]  ;;  %v5486_v46 = vld [vmem:[#allocation8 + $0x28] sm:$0xf] }
 0x39b   :  { %v6303_v12 = vld [vmem:[#allocation2 + $0x104] sm:$0xf0]  ;;  %v2534_v28 = vpop.permute.xlu2 %2533  ;;  %v5488_v10 = vld [vmem:[#allocation8 + $0x38] sm:$0xf0] }
 0x39c   :  { %4760 = vmatpush.bf16.msrb.mxu3 %v5923_v36  ;;  %3099 = vst [vmem:[#allocation2] sm:$0xff] %v3045_v35  ;;  %v6023_v21 = vor.u32 %v6303_v12, %v6022_v11  ;;  %v2867_v18 = vadd.f32 %v2759_v48, %v2003_v27  ;;  %v2868_v29 = vadd.f32 %v2760_v13, %v2004_v59  ;;  %v6169_v35 = vld [vmem:[#allocation8 + $0x34] sm:$0xf0]  ;;  %v2161_v11 = vpop.permute.xlu0 %2160  ;;  %v6644_v48 = vld [vmem:[#allocation3 + $0x110] sm:$0xff] }
 0x39d   :  { %v2346_v36 = vmul.f32 %v6643_v49, %v9678_v47  ;;  %v9693_v55 = vor.u32 %v6167_v39, %v5488_v10  ;;  %v9695_v32 = vor.u32 %v6169_v35, %v5486_v46  ;;  %v2377_v13 = vmul.f32 %v6644_v48, %v2161_v11  ;;  %v6296_v49 = vld [vmem:[#allocation2 + $0xd4] sm:$0xf]  ;;  %v5992_v46 = vld [vmem:[#allocation2 + $0xc8] sm:$0xf0]  ;;  %v6168_v48 = vld [vmem:[#allocation8 + $0x2c] sm:$0xf0] }
 0x39e   :  { %4475 = vmatpush.bf16.msra.mxu2 %v6023_v21  ;;  %v2975_v25 = vmax.f32 %v2867_v18, 0.0  ;;  %v2976_v15 = vmax.f32 %v2868_v29, 0.0  ;;  %v6645_v21 = vld [vmem:[#allocation3 + $0x118] sm:$0xff]  ;;  %v6292_v35 = vld [vmem:[#allocation2 + $0xb4] sm:$0xf] }
 0x3a0   :  { %4761 = vmatpush.bf16.msrb.mxu3 %v5915_v62  ;;  %v3064_v26 = vpack.c.bf16 %v2976_v15, %v2975_v25  ;;  %v2378_v62 = vmul.f32 %v6645_v21, %v2161_v11  ;;  %v5462_v25 = vld [vmem:[#allocation8] sm:$0xf]  ;;  %v6171_v15 = vld [vmem:[#allocation8 + $0x4c] sm:$0xf]  ;;  %v5520_v11 = vld [vmem:[#allocation8 + $0x78] sm:$0xf0] }
 0x3a1   :  { %4476 = vmatmul.bf16.vlgmr.msra.gmra.mxu2 %v9686_v53  ;;  %6109 = vmatmul.msk.bf16.gmra.mxu3 %vm4098_vm3, %v9693_v55  ;;  %v5984_v21 = vld [vmem:[#allocation2 + $0xb8] sm:$0xf0] }
 0x3a2   :  { %5193 = vmatpush.bf16.msrb.mxu2 %v6107_v19  ;;  %3118 = vst [vmem:[#allocation2 + $0x98] sm:$0xff] %v3064_v26  ;;  %v2156_v63 = vpop.permute.xlu1 %2155  ;;  %v1999_v19 = vld [vmem:[#allocation6 + $0x110] sm:$0xff] }
 0x3a3   :  { %v2375_v52 = vmul.f32 %v6640_v34, %v2156_v63  ;;  %v2376_v9 = vmul.f32 %v6641_v45, %v2156_v63  ;;  %v6270_v26 = vld [vmem:[#allocation2 + $0x4] sm:$0xf] }
 0x3a4   :  { %4762 = vmatpush.bf16.msrb.mxu3 %v5907_v5  ;;  %v5504_v5 = vld [vmem:[#allocation8 + $0x58] sm:$0xf0] }
 0x3a5   :  { %v2753_v57 = vadd.f32 %v2534_v28, %v2375_v52  ;;  %v2754_v37 = vadd.f32 %v2534_v28, %v2376_v9  ;;  %v9700_v34 = vor.u32 %v6171_v15, %v5504_v5  ;;  %v5502_v52 = vld [vmem:[#allocation8 + $0x48] sm:$0xf]  ;;  %v6173_v28 = vld [vmem:[#allocation8 + $0x54] sm:$0xf0]  ;;  %v6166_v5 = vld [vmem:[#allocation8 + $0x24] sm:$0xf] }
 0x3a6   :  { %5194 = vmatpush.bf16.msrb.mxu2 %v6099_v44  ;;  %v5894_v44 = vld [vmem:[#allocation2] sm:$0xf] }
 0x3a7   :  { %v2861_v60 = vadd.f32 %v2753_v57, %v1997_v7  ;;  %v2862_v51 = vadd.f32 %v2754_v37, %v1998_v0  ;;  %v9702_v0 = vor.u32 %v6164_v2, %v5462_v25  ;;  %v9704_v57 = vor.u32 %v6173_v28, %v5502_v52  ;;  %v6298_v37 = vld [vmem:[#allocation2 + $0xe4] sm:$0xf]  ;;  %v6048_v25 = vld [vmem:[#allocation2 + $0x138] sm:$0xf0] }
 0x3a8   :  { %v6032_v28 = vld [vmem:[#allocation2 + $0x118] sm:$0xf0] }
 0x3a9   :  { %v2969_v42 = vmax.f32 %v2861_v60, 0.0  ;;  %v2970_v16 = vmax.f32 %v2862_v51, 0.0  ;;  %v6289_v8 = vld [vmem:[#allocation2 + $0x94] sm:$0xf0]  ;;  %v6008_v60 = vld [vmem:[#allocation2 + $0xe8] sm:$0xf0] }
 0x3aa   :  { %5195 = vmatpush.bf16.msrb.mxu2 %v6091_v58  ;;  %v5967_v40 = vor.u32 %v6289_v8, %v5966_v1  ;;  %v6300_v58 = vld [vmem:[#allocation2 + $0xf4] sm:$0xf]  ;;  %v6011_v51 = vor.u32 %v6298_v37, %v6008_v60  ;;  %v5464_v8 = vld [vmem:[#allocation8 + $0x10] sm:$0xf0]  ;;  %v5968_v15 = vld [vmem:[#allocation2 + $0x98] sm:$0xf0] }
 0x3ab   :  { %v3061_v31 = vpack.c.bf16 %v2970_v16, %v2969_v42  ;;  %v2459_v4 = vpop.permute.xlu1 %2458  ;;  %v6019_v7 = vor.u32 %v6300_v58, %v6016_v20  ;;  %v6316_v1 = vld [vmem:[#allocation2 + $0x174] sm:$0xf]  ;;  %v6000_v42 = vld [vmem:[#allocation2 + $0xd8] sm:$0xf0]  ;;  %v6306_v58 = vld [vmem:[#allocation2 + $0x124] sm:$0xf] }
 0x3ac   :  { %v2723_v27 = vadd.f32 %v2459_v4, %v2345_v14  ;;  %v2724_v56 = vadd.f32 %v2459_v4, %v2346_v36  ;;  %4330 = vmatpush.bf16.msra.mxu1 %v5967_v40  ;;  %v6162_v16 = vld [vmem:[#allocation8 + $0x4] sm:$0xf]  ;;  %v6080_v36 = vld [vmem:[#allocation2 + $0x178] sm:$0xf0]  ;;  %v6314_v4 = vld [vmem:[#allocation2 + $0x164] sm:$0xf] }
 0x3ad   :  { %3115 = vst [vmem:[#allocation2 + $0x80] sm:$0xff] %v3061_v31  ;;  %v6083_v40 = vor.u32 %v6316_v1, %v6080_v36  ;;  %v9710_v10 = vor.u32 %v6162_v16, %v5464_v8  ;;  %v6294_v31 = vld [vmem:[#allocation2 + $0xc4] sm:$0xf]  ;;  %v6179_v60 = vld [vmem:[#allocation8 + $0x8c] sm:$0xf] }
 0x3ae   :  { %v2831_v59 = vadd.f32 %v2723_v27, %v1967_v38  ;;  %v2832_v54 = vadd.f32 %v2724_v56, %v1968_v41  ;;  %v6003_v38 = vor.u32 %v6296_v49, %v6000_v42  ;;  %v6072_v41 = vld [vmem:[#allocation2 + $0x168] sm:$0xf0]  ;;  %v6064_v27 = vld [vmem:[#allocation2 + $0x158] sm:$0xf0]  ;;  %v5995_v56 = vor.u32 %v6294_v31, %v5992_v46  ;;  %v5534_v1 = vld [vmem:[#allocation8 + $0x88] sm:$0xf] }
 0x3af   :  { %v5494_v42 = vld [vmem:[#allocation8 + $0x40] sm:$0xf]  ;;  %v6172_v16 = vld [vmem:[#allocation8 + $0x4c] sm:$0xf0]  ;;  %v6181_v8 = vld [vmem:[#allocation8 + $0x94] sm:$0xf0] }
 0x3b0   :  { %v2939_v47 = vmax.f32 %v2831_v59, 0.0  ;;  %v2940_v12 = vmax.f32 %v2832_v54, 0.0  ;;  %v6075_v59 = vor.u32 %v6314_v4, %v6072_v41  ;;  %v6175_v54 = vld [vmem:[#allocation8 + $0x6c] sm:$0xf]  ;;  %v9730_v36 = vor.u32 %v6172_v16, %v5494_v42  ;;  %v6170_v41 = vld [vmem:[#allocation8 + $0x44] sm:$0xf] }
 0x3b1   :  { %4481 = vmatmul.bf16.gmra.mxu2 %v9695_v32  ;;  %6110 = vmatmul.msk.bf16.gmra.mxu3 %vm4098_vm3, %v9700_v34  ;;  %v5496_v4 = vld [vmem:[#allocation8 + $0x50] sm:$0xf0]  ;;  %v5598_v42 = vld [vmem:[#allocation8 + $0x108] sm:$0xf]  ;;  %v5558_v16 = vld [vmem:[#allocation8 + $0xc0] sm:$0xf] }
 0x3b2   :  { %v3046_v17 = vpack.c.bf16 %v2940_v12, %v2939_v47  ;;  %v5518_v47 = vld [vmem:[#allocation8 + $0x68] sm:$0xf]  ;;  %v5478_v12 = vld [vmem:[#allocation8 + $0x20] sm:$0xf]  ;;  %v9736_v46 = vor.u32 %v6170_v41, %v5496_v4  ;;  %v5560_v41 = vld [vmem:[#allocation8 + $0xd0] sm:$0xf0] }
 0x3b3   :  { %v2539_v50 = vpop.permute.xlu1 %2538 }
 0x3b4   :  { %3100 = vst [vmem:[#allocation2 + $0x8] sm:$0xff] %v3046_v17  ;;  %v2755_v18 = vadd.f32 %v2539_v50, %v2377_v13  ;;  %v2756_v29 = vadd.f32 %v2539_v50, %v2378_v62  ;;  %v5958_v39 = vld [vmem:[#allocation2 + $0x80] sm:$0xf]  ;;  %v6177_v13 = vld [vmem:[#allocation8 + $0x74] sm:$0xf0]  ;;  %v9713_v17 = vor.u32 %v6175_v54, %v5520_v11 }
 0x3b5   :  { %v6312_v62 = vld [vmem:[#allocation2 + $0x154] sm:$0xf]  ;;  %v6176_v54 = vld [vmem:[#allocation8 + $0x6c] sm:$0xf0]  ;;  %v6185_v11 = vld [vmem:[#allocation8 + $0xb4] sm:$0xf0] }
 0x3b6   :  { %v2863_v24 = vadd.f32 %v2755_v18, %v1999_v19  ;;  %v2864_v33 = vadd.f32 %v2756_v29, %v2000_v43  ;;  %v9715_v19 = vor.u32 %v6177_v13, %v5518_v47  ;;  %v5987_v43 = vor.u32 %v6292_v35, %v5984_v21  ;;  %v6290_v29 = vld [vmem:[#allocation2 + $0xa4] sm:$0xf]  ;;  %v6183_v35 = vld [vmem:[#allocation8 + $0xac] sm:$0xf]  ;;  %v6174_v13 = vld [vmem:[#allocation8 + $0x64] sm:$0xf] }
 0x3b7   :  { %v6067_v50 = vor.u32 %v6312_v62, %v6064_v27  ;;  %v9717_v18 = vor.u32 %v6168_v48, %v5478_v12  ;;  %v5552_v27 = vld [vmem:[#allocation8 + $0xb8] sm:$0xf0]  ;;  %v5512_v21 = vld [vmem:[#allocation8 + $0x70] sm:$0xf0] }
 0x3b8   :  { %v2971_v22 = vmax.f32 %v2863_v24, 0.0  ;;  %v2972_v6 = vmax.f32 %v2864_v33, 0.0  ;;  %v6310_v24 = vld [vmem:[#allocation2 + $0x144] sm:$0xf]  ;;  %v5976_v33 = vld [vmem:[#allocation2 + $0xa8] sm:$0xf0]  ;;  %v9739_v47 = vor.u32 %v6183_v35, %v5552_v27  ;;  %v9749_v62 = vor.u32 %v6174_v13, %v5512_v21 }
 0x3b9   :  { %v6199_v21 = vld [vmem:[#allocation8 + $0x12c] sm:$0xf] }
 0x3ba   :  { %v3062_v30 = vpack.c.bf16 %v2972_v6, %v2971_v22  ;;  %v6056_v22 = vld [vmem:[#allocation2 + $0x148] sm:$0xf0]  ;;  %v5979_v6 = vor.u32 %v6290_v29, %v5976_v33  ;;  %v5566_v29 = vld [vmem:[#allocation8 + $0xc8] sm:$0xf]  ;;  %v6180_v33 = vld [vmem:[#allocation8 + $0x8c] sm:$0xf0] }
 0x3bb   :  { %v6271_v63 = vld [vmem:[#allocation2 + $0x4] sm:$0xf0]  ;;  %v5896_v61 = vld [vmem:[#allocation2 + $0x8] sm:$0xf0]  ;;  %v6059_v20 = vor.u32 %v6310_v24, %v6056_v22  ;;  %v5526_v24 = vld [vmem:[#allocation8 + $0x80] sm:$0xf] }
 0x3bc   :  { %3116 = vst [vmem:[#allocation2 + $0x88] sm:$0xff] %v3062_v30  ;;  %v5895_v45 = vor.u32 %v6271_v63, %v5894_v44  ;;  %v5899_v9 = vor.u32 %v6270_v26, %v5896_v61  ;;  %v5480_v30 = vld [vmem:[#allocation8 + $0x30] sm:$0xf0]  ;;  %v6288_v44 = vld [vmem:[#allocation2 + $0x94] sm:$0xf] }
 0x3bd   :  { %v6308_v26 = vld [vmem:[#allocation2 + $0x134] sm:$0xf]  ;;  %v5971_v2 = vor.u32 %v6288_v44, %v5968_v15  ;;  %v9723_v61 = vor.u32 %v6166_v5, %v5480_v30  ;;  %v6189_v22 = vld [vmem:[#allocation8 + $0xd4] sm:$0xf0]  ;;  %v5528_v5 = vld [vmem:[#allocation8 + $0x90] sm:$0xf0] }
 0x3be   :  { %4187 = vmatpush.bf16.msra.mxu0 %v5895_v45  ;;  %4763 = vmatpush.bf16.msrb.mxu3 %v5899_v9  ;;  %v6051_v63 = vor.u32 %v6308_v26, %v6048_v25  ;;  %v6040_v45 = vld [vmem:[#allocation2 + $0x128] sm:$0xf0]  ;;  %v6286_v9 = vld [vmem:[#allocation2 + $0x84] sm:$0xf]  ;;  %v9756_v25 = vor.u32 %v6180_v33, %v5526_v24  ;;  %v6178_v15 = vld [vmem:[#allocation8 + $0x84] sm:$0xf] }
 0x3bf   :  { %v6043_v37 = vor.u32 %v6306_v58, %v6040_v45  ;;  %v9762_v30 = vor.u32 %v6178_v15, %v5528_v5  ;;  %v6191_v44 = vld [vmem:[#allocation8 + $0xec] sm:$0xf]  ;;  %v5584_v26 = vld [vmem:[#allocation8 + $0xf8] sm:$0xf0]  ;;  %v6193_v45 = vld [vmem:[#allocation8 + $0xf4] sm:$0xf0] }
 0x3c0   :  { %v5576_v15 = vld [vmem:[#allocation8 + $0xf0] sm:$0xf0] }
 0x3c1   :  { %4486 = vmatmul.bf16.gmra.mxu2 %v9704_v57  ;;  %4188 = vmatmul.bf16.vlgmr.msra.gmra.mxu0 %v9702_v0 }
 0x3c2   :  { %4900 = vmatpush.bf16.msrb.mxu0 %v6019_v7  ;;  %6111 = vmatmul.msk.bf16.gmra.mxu3 %vm4098_vm3, %v9713_v17 }
 0x3c3   :  { %v6287_v23 = vld [vmem:[#allocation2 + $0x84] sm:$0xf0]  ;;  %v5960_v52 = vld [vmem:[#allocation2 + $0x88] sm:$0xf0] }
 0x3c4   :  { %v5959_v14 = vor.u32 %v6287_v23, %v5958_v39  ;;  %v5963_v7 = vor.u32 %v6286_v9, %v5960_v52  ;;  %v6304_v39 = vld [vmem:[#allocation2 + $0x114] sm:$0xf]  ;;  %v6184_v52 = vld [vmem:[#allocation8 + $0xac] sm:$0xf0]  ;;  %v9765_v9 = vor.u32 %v6191_v44, %v5584_v26 }
 0x3c5   :  { %v6035_v49 = vor.u32 %v6304_v39, %v6032_v28  ;;  %v6197_v39 = vld [vmem:[#allocation8 + $0x114] sm:$0xf0] }
 0x3c6   :  { %4901 = vmatpush.bf16.msrb.mxu0 %v6011_v51  ;;  %4331 = vmatpush.bf16.msra.mxu1 %v5959_v14  ;;  %v5536_v51 = vld [vmem:[#allocation8 + $0x98] sm:$0xf0]  ;;  %v9728_v14 = vor.u32 %v6181_v8, %v5534_v1  ;;  %v6188_v8 = vld [vmem:[#allocation8 + $0xcc] sm:$0xf0] }
 0x3c7   :  { %v9726_v23 = vor.u32 %v6179_v60, %v5536_v51  ;;  %v6195_v51 = vld [vmem:[#allocation8 + $0x10c] sm:$0xf]  ;;  %v5600_v1 = vld [vmem:[#allocation8 + $0x118] sm:$0xf0] }
 0x3c9   :  { %4332 = vmatmul.bf16.vlgmr.msra.gmra.mxu1 %v9710_v10 }
 0x3ca   :  { %4902 = vmatpush.bf16.msrb.mxu0 %v6003_v38  ;;  %5044 = vmatpush.bf16.msrb.mxu1 %v6083_v40  ;;  %v6024_v38 = vld [vmem:[#allocation2 + $0x108] sm:$0xf0]  ;;  %v6302_v40 = vld [vmem:[#allocation2 + $0x104] sm:$0xf] }
 0x3cb   :  { %v6027_v31 = vor.u32 %v6302_v40, %v6024_v38  ;;  %v9780_v38 = vor.u32 %v6197_v39, %v5598_v42  ;;  %v9782_v40 = vor.u32 %v6188_v8, %v5558_v16  ;;  %v5630_v42 = vld [vmem:[#allocation8 + $0x148] sm:$0xf]  ;;  %v6205_v16 = vld [vmem:[#allocation8 + $0x154] sm:$0xf0] }
 0x3cc   :  { %v9816_v39 = vor.u32 %v6205_v16, %v5630_v42 }
 0x3cd   :  { %10923 = vst [vmem:[#allocation78_spill] sm:$0xff] %v9780_v38 }
 0x3ce   :  { %4903 = vmatpush.bf16.msrb.mxu0 %v5995_v56  ;;  %5045 = vmatpush.bf16.msrb.mxu1 %v6075_v59  ;;  %v5550_v56 = vld [vmem:[#allocation8 + $0xa8] sm:$0xf]  ;;  %v5510_v59 = vld [vmem:[#allocation8 + $0x60] sm:$0xf]  ;;  %10926 = vst [vmem:[#allocation76_spill] sm:$0xff] %v9816_v39 }
 0x3cf   :  { %v9741_v12 = vor.u32 %v6185_v11, %v5550_v56  ;;  %v9743_v48 = vor.u32 %v6176_v54, %v5510_v59  ;;  %v5574_v56 = vld [vmem:[#allocation8 + $0xe0] sm:$0xf]  ;;  %v6192_v59 = vld [vmem:[#allocation8 + $0xec] sm:$0xf0] }
 0x3d0   :  { %v9793_v11 = vor.u32 %v6192_v59, %v5574_v56 }
 0x3d1   :  { %4491 = vmatmul.bf16.gmra.mxu2 %v9715_v19  ;;  %4193 = vmatmul.bf16.gmra.mxu0 %v9717_v18 }
 0x3d2   :  { %4904 = vmatpush.bf16.msrb.mxu0 %v5987_v43  ;;  %5046 = vmatpush.bf16.msrb.mxu1 %v6067_v50  ;;  %v6187_v43 = vld [vmem:[#allocation8 + $0xcc] sm:$0xf]  ;;  %v5568_v50 = vld [vmem:[#allocation8 + $0xd8] sm:$0xf0] }
 0x3d3   :  { %6112 = vmatmul.msk.bf16.gmra.mxu3 %vm4098_vm3, %v9726_v23 }
 0x3d6   :  { %4905 = vmatpush.bf16.msrb.mxu0 %v5979_v6  ;;  %5047 = vmatpush.bf16.msrb.mxu1 %v6059_v20  ;;  %v9752_v6 = vor.u32 %v6187_v43, %v5568_v50  ;;  %v9754_v20 = vor.u32 %v6189_v22, %v5566_v29  ;;  %v5616_v43 = vld [vmem:[#allocation8 + $0x138] sm:$0xf0]  ;;  %v5614_v50 = vld [vmem:[#allocation8 + $0x128] sm:$0xf]  ;;  %v6201_v29 = vld [vmem:[#allocation8 + $0x134] sm:$0xf0] }
 0x3d7   :  { %v9795_v24 = vor.u32 %v6199_v21, %v5616_v43  ;;  %v9797_v33 = vor.u32 %v6201_v29, %v5614_v50  ;;  %v6190_v22 = vld [vmem:[#allocation8 + $0xe4] sm:$0xf] }
 0x3d8   :  { %v9805_v44 = vor.u32 %v6190_v22, %v5576_v15  ;;  %v5606_v15 = vld [vmem:[#allocation8 + $0x120] sm:$0xf] }
 0x3d9   :  { %4337 = vmatmul.bf16.gmra.mxu1 %v9723_v61  ;;  %10924 = vst [vmem:[#allocation77_spill] sm:$0xff] %v9797_v33 }
 0x3da   :  { %4906 = vmatpush.bf16.msrb.mxu0 %v5971_v2  ;;  %5048 = vmatpush.bf16.msrb.mxu1 %v6051_v63  ;;  %v5582_v2 = vld [vmem:[#allocation8 + $0xe8] sm:$0xf]  ;;  %v5542_v63 = vld [vmem:[#allocation8 + $0xa0] sm:$0xf] }
 0x3db   :  { %v9767_v58 = vor.u32 %v6193_v45, %v5582_v2  ;;  %v9769_v28 = vor.u32 %v6184_v52, %v5542_v63  ;;  %v5590_v2 = vld [vmem:[#allocation8 + $0x100] sm:$0xf]  ;;  %v6196_v63 = vld [vmem:[#allocation8 + $0x10c] sm:$0xf0] }
 0x3dc   :  { %v9810_v45 = vor.u32 %v6196_v63, %v5590_v2  ;;  %v6200_v2 = vld [vmem:[#allocation8 + $0x12c] sm:$0xf0] }
 0x3de   :  { %4907 = vmatpush.bf16.msrb.mxu0 %v5963_v7  ;;  %5049 = vmatpush.bf16.msrb.mxu1 %v6043_v37  ;;  %v6182_v7 = vld [vmem:[#allocation8 + $0xa4] sm:$0xf]  ;;  %v5544_v37 = vld [vmem:[#allocation8 + $0xb0] sm:$0xf0] }
 0x3df   :  { %v9775_v60 = vor.u32 %v6182_v7, %v5544_v37  ;;  %v6203_v37 = vld [vmem:[#allocation8 + $0x14c] sm:$0xf] }
 0x3e1   :  { %4496 = vmatmul.bf16.gmra.mxu2 %v9728_v14  ;;  %4198 = vmatmul.bf16.gmra.mxu0 %v9730_v36 }
 0x3e2   :  { %5050 = vmatpush.bf16.msrb.mxu1 %v6035_v49  ;;  %v9778_v49 = vor.u32 %v6195_v51, %v5600_v1  ;;  %v5632_v1 = vld [vmem:[#allocation8 + $0x158] sm:$0xf0] }
 0x3e3   :  { %6113 = vmatmul.msk.bf16.gmra.mxu3 %vm4098_vm3, %v9739_v47  ;;  %v9814_v8 = vor.u32 %v6203_v37, %v5632_v1  ;;  %v9831_v1 = vor.u32 %v6200_v2, %v5606_v15 }
 0x3e5   :  { %10925 = vst [vmem:[#allocation79_spill] sm:$0xff] %v9814_v8 }
 0x3e6   :  { %5051 = vmatpush.bf16.msrb.mxu1 %v6027_v31  ;;  %v6186_v31 = vld [vmem:[#allocation8 + $0xc4] sm:$0xf] }
 0x3e7   :  { %v9788_v27 = vor.u32 %v6186_v31, %v5560_v41  ;;  %v6194_v31 = vld [vmem:[#allocation8 + $0x104] sm:$0xf]  ;;  %v5592_v41 = vld [vmem:[#allocation8 + $0x110] sm:$0xf0] }
 0x3e8   :  { %v9824_v59 = vor.u32 %v6194_v31, %v5592_v41  ;;  %v6207_v41 = vld [vmem:[#allocation8 + $0x16c] sm:$0xf] }
 0x3e9   :  { %4342 = vmatmul.bf16.gmra.mxu1 %v9736_v46 }
 0x3f1   :  { %4501 = vmatmul.bf16.gmra.mxu2 %v9741_v12  ;;  %4203 = vmatmul.bf16.gmra.mxu0 %v9743_v48 }
 0x3f3   :  { %6114 = vmatmul.msk.bf16.gmra.mxu3 %vm4098_vm3, %v9752_v6 }
 0x3f9   :  { %4347 = vmatmul.bf16.gmra.mxu1 %v9749_v62 }
 0x401   :  { %4506 = vmatmul.bf16.gmra.mxu2 %v9754_v20  ;;  %4208 = vmatmul.bf16.gmra.mxu0 %v9756_v25 }
 0x403   :  { %6115 = vmatmul.msk.bf16.gmra.mxu3 %vm4098_vm3, %v9765_v9 }
 0x409   :  { %4352 = vmatmul.bf16.gmra.mxu1 %v9762_v30 }
 0x411   :  { %4511 = vmatmul.bf16.gmra.mxu2 %v9767_v58  ;;  %4213 = vmatmul.bf16.gmra.mxu0 %v9769_v28 }
 0x413   :  { %6116 = vmatmul.msk.bf16.gmra.mxu3 %vm4098_vm3, %v9778_v49 }
 0x414   :  { %v4621_v4 = vpop.f32.mrf.mxu3 }
 0x419   :  { %4357 = vmatmul.bf16.gmra.mxu1 %v9775_v60 }
 0x41c   :  { %v9791_v54 = vpop.f32.mrf.mxu3 }
 0x421   :  { %4516 = vmatmul.bf16.gmra.mxu2 %v9780_v38  ;;  %4218 = vmatmul.bf16.gmra.mxu0 %v9782_v40 }
 0x423   :  { %6117 = vmatmul.msk.bf16.gmra.mxu3 %vm4098_vm3, %v9795_v24 }
 0x424   :  { %v4477_v35 = vpop.f32.mrf.mxu2  ;;  %v9802_v5 = vpop.f32.mrf.mxu3 }
 0x429   :  { %4362 = vmatmul.bf16.gmra.mxu1 %v9788_v27 }
 0x42c   :  { %v4479_v13 = vpop.f32.mrf.mxu2  ;;  %v9808_v52 = vpop.f32.mrf.mxu3 }
 0x431   :  { %4223 = vmatmul.bf16.gmra.mxu0 %v9793_v11  ;;  %4521 = vmatmul.bf16.gmra.mxu2 %v9797_v33  ;;  %v5646_v33 = vld [vmem:[#allocation8 + $0x168] sm:$0xf] }
 0x433   :  { %6118 = vmatmul.msk.bf16.gmra.mxu3 %vm4098_vm3, %v9814_v8  ;;  %v5662_v8 = vld [vmem:[#allocation8 + $0x188] sm:$0xf] }
 0x434   :  { %v4482_v26 = vpop.f32.mrf.mxu2  ;;  %v9821_v56 = vpop.f32.mrf.mxu3 }
 0x439   :  { %4367 = vmatmul.bf16.gmra.mxu1 %v9805_v44 }
 0x43c   :  { %v9812_v7 = vpop.f32.mrf.mxu2  ;;  %v9829_v63 = vpop.f32.mrf.mxu3 }
 0x43e   :  { %v4189_v51 = vpop.f32.mrf.mxu0 }
 0x441   :  { %4228 = vmatmul.bf16.gmra.mxu0 %v9810_v45  ;;  %4526 = vmatmul.bf16.gmra.mxu2 %v9816_v39  ;;  %v5648_v39 = vld [vmem:[#allocation8 + $0x178] sm:$0xf0] }
 0x444   :  { %v9826_v21 = vpop.f32.mrf.mxu2 }
 0x445   :  { %v9844_v2 = vpop.f32.mrf.mxu3 }
 0x446   :  { %v4191_v43 = vpop.f32.mrf.mxu0  ;;  %v4333_v50 = vpop.f32.mrf.mxu1 }
 0x447   :  { %v4334_v29 = vadd.f32 %v4333_v50, %v4189_v51  ;;  %v9835_v51 = vor.u32 %v6207_v41, %v5648_v39  ;;  %v6204_v41 = vld [vmem:[#allocation8 + $0x14c] sm:$0xf0] }
 0x449   :  { %v4478_v22 = vadd.f32 %v4477_v35, %v4334_v29  ;;  %4372 = vmatmul.bf16.gmra.mxu1 %v9824_v59  ;;  %10927 = vst [vmem:[#allocation75_spill] sm:$0xff] %v9835_v51  ;;  %v6209_v35 = vld [vmem:[#allocation8 + $0x174] sm:$0xf0]  ;;  %6119 = vmatmul.msk.bf16.gmra.mxu3 %vm4098_vm3, %v9835_v51  ;;  %v5664_v51 = vld [vmem:[#allocation8 + $0x198] sm:$0xf0] }
 0x44a   :  { %v9837_v50 = vor.u32 %v6209_v35, %v5646_v33 }
 0x44b   :  { %v4622_v37 = vadd.f32 %v4621_v4, %v4478_v22  ;;  %v6198_v4 = vld [vmem:[#allocation8 + $0x124] sm:$0xf]  ;;  %v5608_v22 = vld [vmem:[#allocation8 + $0x130] sm:$0xf0] }
 0x44c   :  { %v9833_v42 = vpop.f32.mrf.mxu2  ;;  %10928 = vst [vmem:[#allocation74_spill] sm:$0xff] %v9837_v50  ;;  %v9846_v39 = vor.u32 %v6198_v4, %v5608_v22 }
 0x44d   :  { %5332 = vst [vmem:[#allocation9] sm:$0xff] %v4622_v37 }
 0x44e   :  { %v4194_v16 = vpop.f32.mrf.mxu0  ;;  %v4335_v31 = vpop.f32.mrf.mxu1  ;;  %10929 = vst [vmem:[#allocation13_spill] sm:$0xff] %v9846_v39 }
 0x44f   :  { %v4336_v38 = vadd.f32 %v4335_v31, %v4191_v43  ;;  %v5622_v31 = vld [vmem:[#allocation8 + $0x140] sm:$0xf] }
 0x451   :  { %v4480_v29 = vadd.f32 %v4479_v13, %v4336_v38  ;;  %4233 = vmatmul.bf16.gmra.mxu0 %v9831_v1  ;;  %4531 = vmatmul.bf16.gmra.mxu2 %v9837_v50  ;;  %v9852_v50 = vpop.f32.mrf.mxu3 }
 0x453   :  { %v4624_v15 = vadd.f32 %v9791_v54, %v4480_v29  ;;  %v9854_v54 = vor.u32 %v6204_v41, %v5622_v31  ;;  %v5624_v31 = vld [vmem:[#allocation8 + $0x150] sm:$0xf0] }
 0x454   :  { %v9848_v43 = vpop.f32.mrf.mxu2 }
 0x455   :  { %5334 = vst [vmem:[#allocation9 + $0x10] sm:$0xff] %v4624_v15  ;;  %v6211_v15 = vld [vmem:[#allocation8 + $0x18c] sm:$0xf] }
 0x456   :  { %v4196_v33 = vpop.f32.mrf.mxu0  ;;  %v4338_v38 = vpop.f32.mrf.mxu1  ;;  %10930 = vst [vmem:[#allocation16_spill] sm:$0xff] %v9854_v54 }
 0x457   :  { %v4339_v13 = vadd.f32 %v4338_v38, %v4194_v16  ;;  %v6213_v38 = vld [vmem:[#allocation8 + $0x194] sm:$0xf0] }
 0x459   :  { %v4483_v37 = vadd.f32 %v4482_v26, %v4339_v13  ;;  %4377 = vmatmul.bf16.gmra.mxu1 %v9846_v39  ;;  %v9858_v26 = vor.u32 %v6211_v15, %v5664_v51  ;;  %v9860_v13 = vor.u32 %v6213_v38, %v5662_v8  ;;  %v6208_v38 = vld [vmem:[#allocation8 + $0x16c] sm:$0xf0]  ;;  %v5680_v39 = vld [vmem:[#allocation8 + $0x1b8] sm:$0xf0] }
 0x45b   :  { %v4627_v35 = vadd.f32 %v9802_v5, %v4483_v37  ;;  %10931 = vst [vmem:[#allocation17_spill] sm:$0xff] %v9858_v26  ;;  %6120 = vmatmul.msk.bf16.gmra.mxu3 %vm4098_vm3, %v9858_v26  ;;  %v6202_v37 = vld [vmem:[#allocation8 + $0x144] sm:$0xf] }
 0x45c   :  { %v9856_v29 = vpop.f32.mrf.mxu2  ;;  %10932 = vst [vmem:[#allocation19_spill] sm:$0xff] %v9860_v13  ;;  %v9870_v51 = vor.u32 %v6202_v37, %v5624_v31 }
 0x45d   :  { %5336 = vst [vmem:[#allocation9 + $0x20] sm:$0xff] %v4627_v35  ;;  %v9868_v35 = vpop.f32.mrf.mxu3 }
 0x45e   :  { %v4199_v4 = vpop.f32.mrf.mxu0  ;;  %v4340_v22 = vpop.f32.mrf.mxu1  ;;  %10933 = vst [vmem:[#allocation15_spill] sm:$0xff] %v9870_v51 }
 0x45f   :  { %v4341_v16 = vadd.f32 %v4340_v22, %v4196_v33 }
 0x461   :  { %v4485_v5 = vadd.f32 %v9812_v7, %v4341_v16  ;;  %4238 = vmatmul.bf16.gmra.mxu0 %v9854_v54  ;;  %4536 = vmatmul.bf16.gmra.mxu2 %v9860_v13  ;;  %v5638_v16 = vld [vmem:[#allocation8 + $0x160] sm:$0xf]  ;;  %v5886_v54 = vld [vmem:[#allocation8 + $0x348] sm:$0xf] }
 0x463   :  { %v4629_v41 = vadd.f32 %v9808_v52, %v4485_v5  ;;  %v9879_v52 = vor.u32 %v6208_v38, %v5638_v16 }
 0x464   :  { %v9872_v8 = vpop.f32.mrf.mxu2 }
 0x465   :  { %5338 = vst [vmem:[#allocation9 + $0x30] sm:$0xff] %v4629_v41  ;;  %v9877_v26 = vpop.f32.mrf.mxu3  ;;  %v6215_v41 = vld [vmem:[#allocation8 + $0x1ac] sm:$0xf] }
 0x466   :  { %v4201_v33 = vpop.f32.mrf.mxu0  ;;  %v4343_v7 = vpop.f32.mrf.mxu1  ;;  %10934 = vst [vmem:[#allocation14_spill] sm:$0xff] %v9879_v52 }
 0x467   :  { %v4344_v22 = vadd.f32 %v4343_v7, %v4199_v4  ;;  %v5678_v4 = vld [vmem:[#allocation8 + $0x1a8] sm:$0xf] }
 0x469   :  { %v4488_v15 = vadd.f32 %v9826_v21, %v4344_v22  ;;  %4382 = vmatmul.bf16.gmra.mxu1 %v9870_v51  ;;  %v9883_v21 = vor.u32 %v6215_v41, %v5680_v39  ;;  %v6217_v22 = vld [vmem:[#allocation8 + $0x1b4] sm:$0xf0] }
 0x46a   :  { %v9885_v51 = vor.u32 %v6217_v22, %v5678_v4  ;;  %v6212_v22 = vld [vmem:[#allocation8 + $0x18c] sm:$0xf0] }
 0x46b   :  { %v4632_v13 = vadd.f32 %v9821_v56, %v4488_v15  ;;  %10935 = vst [vmem:[#allocation18_spill] sm:$0xff] %v9883_v21  ;;  %6121 = vmatmul.msk.bf16.gmra.mxu3 %vm4098_vm3, %v9883_v21  ;;  %v5640_v15 = vld [vmem:[#allocation8 + $0x170] sm:$0xf0] }
 0x46c   :  { %v9881_v5 = vpop.f32.mrf.mxu2  ;;  %10936 = vst [vmem:[#allocation22_spill] sm:$0xff] %v9885_v51 }
 0x46d   :  { %5340 = vst [vmem:[#allocation9 + $0x40] sm:$0xff] %v4632_v13  ;;  %v6206_v13 = vld [vmem:[#allocation8 + $0x164] sm:$0xf]  ;;  %v9893_v38 = vpop.f32.mrf.mxu3 }
 0x46e   :  { %v4204_v37 = vpop.f32.mrf.mxu0  ;;  %v4345_v31 = vpop.f32.mrf.mxu1  ;;  %v9895_v39 = vor.u32 %v6206_v13, %v5640_v15 }
 0x46f   :  { %v4346_v7 = vadd.f32 %v4345_v31, %v4201_v33 }
 0x470   :  { %10937 = vst [vmem:[#allocation23_spill] sm:$0xff] %v9895_v39 }
 0x471   :  { %v4490_v56 = vadd.f32 %v9833_v42, %v4346_v7  ;;  %4243 = vmatmul.bf16.gmra.mxu0 %v9879_v52  ;;  %4541 = vmatmul.bf16.gmra.mxu2 %v9885_v51  ;;  %v5654_v7 = vld [vmem:[#allocation8 + $0x180] sm:$0xf]  ;;  %v5696_v52 = vld [vmem:[#allocation8 + $0x1d8] sm:$0xf0] }
 0x473   :  { %v4634_v16 = vadd.f32 %v9829_v63, %v4490_v56  ;;  %v9904_v63 = vor.u32 %v6212_v22, %v5654_v7 }
 0x474   :  { %v9897_v33 = vpop.f32.mrf.mxu2 }
 0x475   :  { %5342 = vst [vmem:[#allocation9 + $0x50] sm:$0xff] %v4634_v16  ;;  %v9902_v21 = vpop.f32.mrf.mxu3  ;;  %v6219_v16 = vld [vmem:[#allocation8 + $0x1cc] sm:$0xf] }
 0x476   :  { %v4206_v31 = vpop.f32.mrf.mxu0  ;;  %v4348_v42 = vpop.f32.mrf.mxu1  ;;  %10938 = vst [vmem:[#allocation25_spill] sm:$0xff] %v9904_v63 }
 0x477   :  { %v4349_v41 = vadd.f32 %v4348_v42, %v4204_v37  ;;  %v5694_v37 = vld [vmem:[#allocation8 + $0x1c8] sm:$0xf] }
 0x479   :  { %v4493_v4 = vadd.f32 %v9848_v43, %v4349_v41  ;;  %4387 = vmatmul.bf16.gmra.mxu1 %v9895_v39  ;;  %v9908_v43 = vor.u32 %v6219_v16, %v5696_v52  ;;  %v6221_v41 = vld [vmem:[#allocation8 + $0x1d4] sm:$0xf0] }
 0x47a   :  { %v9910_v39 = vor.u32 %v6221_v41, %v5694_v37  ;;  %v6216_v41 = vld [vmem:[#allocation8 + $0x1ac] sm:$0xf0] }
 0x47b   :  { %v4637_v51 = vadd.f32 %v9844_v2, %v4493_v4  ;;  %10939 = vst [vmem:[#allocation21_spill] sm:$0xff] %v9908_v43  ;;  %6122 = vmatmul.msk.bf16.gmra.mxu3 %vm4098_vm3, %v9908_v43  ;;  %v5656_v4 = vld [vmem:[#allocation8 + $0x190] sm:$0xf0] }
 0x47c   :  { %v9906_v56 = vpop.f32.mrf.mxu2  ;;  %10940 = vst [vmem:[#allocation20_spill] sm:$0xff] %v9910_v39 }
 0x47d   :  { %5344 = vst [vmem:[#allocation9 + $0x60] sm:$0xff] %v4637_v51  ;;  %v6210_v51 = vld [vmem:[#allocation8 + $0x184] sm:$0xf]  ;;  %v9918_v22 = vpop.f32.mrf.mxu3 }
 0x47e   :  { %v4209_v13 = vpop.f32.mrf.mxu0  ;;  %v4350_v15 = vpop.f32.mrf.mxu1  ;;  %v9920_v52 = vor.u32 %v6210_v51, %v5656_v4 }
 0x47f   :  { %v4351_v42 = vadd.f32 %v4350_v15, %v4206_v31 }
 0x480   :  { %10941 = vst [vmem:[#allocation24_spill] sm:$0xff] %v9920_v52 }
 0x481   :  { %v4495_v2 = vadd.f32 %v9856_v29, %v4351_v42  ;;  %4248 = vmatmul.bf16.gmra.mxu0 %v9904_v63  ;;  %4546 = vmatmul.bf16.gmra.mxu2 %v9910_v39  ;;  %v5670_v42 = vld [vmem:[#allocation8 + $0x1a0] sm:$0xf]  ;;  %v5712_v63 = vld [vmem:[#allocation8 + $0x1f8] sm:$0xf0] }
 0x483   :  { %v4639_v7 = vadd.f32 %v9852_v50, %v4495_v2  ;;  %v9929_v50 = vor.u32 %v6216_v41, %v5670_v42 }
 0x484   :  { %v9922_v31 = vpop.f32.mrf.mxu2 }
 0x485   :  { %5346 = vst [vmem:[#allocation9 + $0x70] sm:$0xff] %v4639_v7  ;;  %v9927_v43 = vpop.f32.mrf.mxu3  ;;  %v6223_v7 = vld [vmem:[#allocation8 + $0x1ec] sm:$0xf] }
 0x486   :  { %v4211_v15 = vpop.f32.mrf.mxu0  ;;  %v4353_v29 = vpop.f32.mrf.mxu1  ;;  %10942 = vst [vmem:[#allocation27_spill] sm:$0xff] %v9929_v50 }
 0x487   :  { %v4354_v16 = vadd.f32 %v4353_v29, %v4209_v13  ;;  %v5710_v13 = vld [vmem:[#allocation8 + $0x1e8] sm:$0xf] }
 0x489   :  { %v4498_v37 = vadd.f32 %v9872_v8, %v4354_v16  ;;  %4392 = vmatmul.bf16.gmra.mxu1 %v9920_v52  ;;  %v9933_v8 = vor.u32 %v6223_v7, %v5712_v63  ;;  %v6225_v16 = vld [vmem:[#allocation8 + $0x1f4] sm:$0xf0] }
 0x48a   :  { %v9935_v52 = vor.u32 %v6225_v16, %v5710_v13  ;;  %v6220_v16 = vld [vmem:[#allocation8 + $0x1cc] sm:$0xf0] }
 0x48b   :  { %v4642_v39 = vadd.f32 %v9868_v35, %v4498_v37  ;;  %10943 = vst [vmem:[#allocation31_spill] sm:$0xff] %v9933_v8  ;;  %6123 = vmatmul.msk.bf16.gmra.mxu3 %vm4098_vm3, %v9933_v8  ;;  %v5672_v37 = vld [vmem:[#allocation8 + $0x1b0] sm:$0xf0] }
 0x48c   :  { %v9931_v2 = vpop.f32.mrf.mxu2  ;;  %10944 = vst [vmem:[#allocation29_spill] sm:$0xff] %v9935_v52 }
 0x48d   :  { %5348 = vst [vmem:[#allocation9 + $0x80] sm:$0xff] %v4642_v39  ;;  %v6214_v39 = vld [vmem:[#allocation8 + $0x1a4] sm:$0xf]  ;;  %v9943_v41 = vpop.f32.mrf.mxu3 }
 0x48e   :  { %v4214_v51 = vpop.f32.mrf.mxu0  ;;  %v4355_v4 = vpop.f32.mrf.mxu1  ;;  %v9945_v63 = vor.u32 %v6214_v39, %v5672_v37 }
 0x48f   :  { %v4356_v29 = vadd.f32 %v4355_v4, %v4211_v15 }
 0x490   :  { %10945 = vst [vmem:[#allocation26_spill] sm:$0xff] %v9945_v63 }
 0x491   :  { %v4500_v35 = vadd.f32 %v9881_v5, %v4356_v29  ;;  %4253 = vmatmul.bf16.gmra.mxu0 %v9929_v50  ;;  %4551 = vmatmul.bf16.gmra.mxu2 %v9935_v52  ;;  %v5686_v29 = vld [vmem:[#allocation8 + $0x1c0] sm:$0xf]  ;;  %v5728_v50 = vld [vmem:[#allocation8 + $0x218] sm:$0xf0] }
 0x493   :  { %v4644_v42 = vadd.f32 %v9877_v26, %v4500_v35  ;;  %v9954_v26 = vor.u32 %v6220_v16, %v5686_v29 }
 0x494   :  { %v9947_v15 = vpop.f32.mrf.mxu2 }
 0x495   :  { %5350 = vst [vmem:[#allocation9 + $0x90] sm:$0xff] %v4644_v42  ;;  %v9952_v8 = vpop.f32.mrf.mxu3  ;;  %v6227_v42 = vld [vmem:[#allocation8 + $0x20c] sm:$0xf] }
 0x496   :  { %v4216_v4 = vpop.f32.mrf.mxu0  ;;  %v4358_v5 = vpop.f32.mrf.mxu1  ;;  %10946 = vst [vmem:[#allocation30_spill] sm:$0xff] %v9954_v26 }
 0x497   :  { %v4359_v7 = vadd.f32 %v4358_v5, %v4214_v51  ;;  %v5726_v51 = vld [vmem:[#allocation8 + $0x208] sm:$0xf] }
 0x499   :  { %v4503_v13 = vadd.f32 %v9897_v33, %v4359_v7  ;;  %4397 = vmatmul.bf16.gmra.mxu1 %v9945_v63  ;;  %v9958_v33 = vor.u32 %v6227_v42, %v5728_v50  ;;  %v6229_v7 = vld [vmem:[#allocation8 + $0x214] sm:$0xf0] }
 0x49a   :  { %v9960_v63 = vor.u32 %v6229_v7, %v5726_v51  ;;  %v6224_v7 = vld [vmem:[#allocation8 + $0x1ec] sm:$0xf0] }
 0x49b   :  { %v4647_v52 = vadd.f32 %v9893_v38, %v4503_v13  ;;  %10947 = vst [vmem:[#allocation28_spill] sm:$0xff] %v9958_v33  ;;  %6124 = vmatmul.msk.bf16.gmra.mxu3 %vm4098_vm3, %v9958_v33  ;;  %v5688_v13 = vld [vmem:[#allocation8 + $0x1d0] sm:$0xf0] }
 0x49c   :  { %v9956_v35 = vpop.f32.mrf.mxu2  ;;  %10948 = vst [vmem:[#allocation33_spill] sm:$0xff] %v9960_v63 }
 0x49d   :  { %5352 = vst [vmem:[#allocation9 + $0xa0] sm:$0xff] %v4647_v52  ;;  %v6218_v52 = vld [vmem:[#allocation8 + $0x1c4] sm:$0xf]  ;;  %v9968_v16 = vpop.f32.mrf.mxu3 }
 0x49e   :  { %v4219_v39 = vpop.f32.mrf.mxu0  ;;  %v4360_v37 = vpop.f32.mrf.mxu1  ;;  %v9970_v50 = vor.u32 %v6218_v52, %v5688_v13 }
 0x49f   :  { %v4361_v5 = vadd.f32 %v4360_v37, %v4216_v4 }
 0x4a0   :  { %10949 = vst [vmem:[#allocation37_spill] sm:$0xff] %v9970_v50 }
 0x4a1   :  { %v4505_v38 = vadd.f32 %v9906_v56, %v4361_v5  ;;  %4258 = vmatmul.bf16.gmra.mxu0 %v9954_v26  ;;  %4556 = vmatmul.bf16.gmra.mxu2 %v9960_v63  ;;  %v5702_v5 = vld [vmem:[#allocation8 + $0x1e0] sm:$0xf]  ;;  %v5744_v26 = vld [vmem:[#allocation8 + $0x238] sm:$0xf0] }
 0x4a3   :  { %v4649_v29 = vadd.f32 %v9902_v21, %v4505_v38  ;;  %v9979_v21 = vor.u32 %v6224_v7, %v5702_v5 }
 0x4a4   :  { %v9972_v4 = vpop.f32.mrf.mxu2 }
 0x4a5   :  { %5354 = vst [vmem:[#allocation9 + $0xb0] sm:$0xff] %v4649_v29  ;;  %v9977_v33 = vpop.f32.mrf.mxu3  ;;  %v6231_v29 = vld [vmem:[#allocation8 + $0x22c] sm:$0xf] }
 0x4a6   :  { %v4221_v37 = vpop.f32.mrf.mxu0  ;;  %v4363_v56 = vpop.f32.mrf.mxu1  ;;  %10950 = vst [vmem:[#allocation35_spill] sm:$0xff] %v9979_v21 }
 0x4a7   :  { %v4364_v42 = vadd.f32 %v4363_v56, %v4219_v39  ;;  %v5742_v39 = vld [vmem:[#allocation8 + $0x228] sm:$0xf] }
 0x4a9   :  { %v4508_v51 = vadd.f32 %v9922_v31, %v4364_v42  ;;  %4402 = vmatmul.bf16.gmra.mxu1 %v9970_v50  ;;  %v9983_v31 = vor.u32 %v6231_v29, %v5744_v26  ;;  %v6233_v42 = vld [vmem:[#allocation8 + $0x234] sm:$0xf0] }
 0x4aa   :  { %v9985_v50 = vor.u32 %v6233_v42, %v5742_v39  ;;  %v6228_v42 = vld [vmem:[#allocation8 + $0x20c] sm:$0xf0] }
 0x4ab   :  { %v4652_v63 = vadd.f32 %v9918_v22, %v4508_v51  ;;  %10951 = vst [vmem:[#allocation32_spill] sm:$0xff] %v9983_v31  ;;  %6125 = vmatmul.msk.bf16.gmra.mxu3 %vm4098_vm3, %v9983_v31  ;;  %v5704_v51 = vld [vmem:[#allocation8 + $0x1f0] sm:$0xf0] }
 0x4ac   :  { %v9981_v38 = vpop.f32.mrf.mxu2  ;;  %10952 = vst [vmem:[#allocation36_spill] sm:$0xff] %v9985_v50 }
 0x4ad   :  { %5356 = vst [vmem:[#allocation9 + $0xc0] sm:$0xff] %v4652_v63  ;;  %v6222_v63 = vld [vmem:[#allocation8 + $0x1e4] sm:$0xf]  ;;  %v9993_v7 = vpop.f32.mrf.mxu3 }
 0x4ae   :  { %v4224_v52 = vpop.f32.mrf.mxu0  ;;  %v4365_v13 = vpop.f32.mrf.mxu1  ;;  %v9995_v26 = vor.u32 %v6222_v63, %v5704_v51 }
 0x4af   :  { %v4366_v56 = vadd.f32 %v4365_v13, %v4221_v37 }
 0x4b0   :  { %10953 = vst [vmem:[#allocation34_spill] sm:$0xff] %v9995_v26 }
 0x4b1   :  { %v4510_v22 = vadd.f32 %v9931_v2, %v4366_v56  ;;  %4263 = vmatmul.bf16.gmra.mxu0 %v9979_v21  ;;  %4561 = vmatmul.bf16.gmra.mxu2 %v9985_v50  ;;  %v5718_v56 = vld [vmem:[#allocation8 + $0x200] sm:$0xf]  ;;  %v5760_v21 = vld [vmem:[#allocation8 + $0x258] sm:$0xf0] }
 0x4b3   :  { %v4654_v5 = vadd.f32 %v9927_v43, %v4510_v22  ;;  %v10004_v43 = vor.u32 %v6228_v42, %v5718_v56 }
 0x4b4   :  { %v9997_v37 = vpop.f32.mrf.mxu2 }
 0x4b5   :  { %5358 = vst [vmem:[#allocation9 + $0xd0] sm:$0xff] %v4654_v5  ;;  %v10002_v31 = vpop.f32.mrf.mxu3  ;;  %v6235_v5 = vld [vmem:[#allocation8 + $0x24c] sm:$0xf] }
 0x4b6   :  { %v4226_v13 = vpop.f32.mrf.mxu0  ;;  %v4368_v2 = vpop.f32.mrf.mxu1  ;;  %10954 = vst [vmem:[#allocation39_spill] sm:$0xff] %v10004_v43 }
 0x4b7   :  { %v4369_v29 = vadd.f32 %v4368_v2, %v4224_v52  ;;  %v5758_v52 = vld [vmem:[#allocation8 + $0x248] sm:$0xf] }
 0x4b9   :  { %v4513_v39 = vadd.f32 %v9947_v15, %v4369_v29  ;;  %4407 = vmatmul.bf16.gmra.mxu1 %v9995_v26  ;;  %v10008_v15 = vor.u32 %v6235_v5, %v5760_v21  ;;  %v6237_v29 = vld [vmem:[#allocation8 + $0x254] sm:$0xf0] }
 0x4ba   :  { %v10010_v26 = vor.u32 %v6237_v29, %v5758_v52  ;;  %v6232_v29 = vld [vmem:[#allocation8 + $0x22c] sm:$0xf0] }
 0x4bb   :  { %v4657_v50 = vadd.f32 %v9943_v41, %v4513_v39  ;;  %10955 = vst [vmem:[#allocation43_spill] sm:$0xff] %v10008_v15  ;;  %6126 = vmatmul.msk.bf16.gmra.mxu3 %vm4098_vm3, %v10008_v15  ;;  %v5720_v39 = vld [vmem:[#allocation8 + $0x210] sm:$0xf0] }
 0x4bc   :  { %v10006_v22 = vpop.f32.mrf.mxu2  ;;  %10956 = vst [vmem:[#allocation41_spill] sm:$0xff] %v10010_v26 }
 0x4bd   :  { %5360 = vst [vmem:[#allocation9 + $0xe0] sm:$0xff] %v4657_v50  ;;  %v6226_v50 = vld [vmem:[#allocation8 + $0x204] sm:$0xf]  ;;  %v10018_v42 = vpop.f32.mrf.mxu3 }
 0x4be   :  { %v4229_v63 = vpop.f32.mrf.mxu0  ;;  %v4370_v51 = vpop.f32.mrf.mxu1  ;;  %v10020_v21 = vor.u32 %v6226_v50, %v5720_v39 }
 0x4bf   :  { %v4371_v2 = vadd.f32 %v4370_v51, %v4226_v13 }
 0x4c0   :  { %10957 = vst [vmem:[#allocation42_spill] sm:$0xff] %v10020_v21 }
 0x4c1   :  { %v4515_v41 = vadd.f32 %v9956_v35, %v4371_v2  ;;  %4268 = vmatmul.bf16.gmra.mxu0 %v10004_v43  ;;  %4566 = vmatmul.bf16.gmra.mxu2 %v10010_v26  ;;  %v5734_v2 = vld [vmem:[#allocation8 + $0x220] sm:$0xf]  ;;  %v5776_v43 = vld [vmem:[#allocation8 + $0x278] sm:$0xf0] }
 0x4c3   :  { %v4659_v56 = vadd.f32 %v9952_v8, %v4515_v41  ;;  %v10029_v8 = vor.u32 %v6232_v29, %v5734_v2 }
 0x4c4   :  { %v10022_v13 = vpop.f32.mrf.mxu2 }
 0x4c5   :  { %5362 = vst [vmem:[#allocation9 + $0xf0] sm:$0xff] %v4659_v56  ;;  %v10027_v15 = vpop.f32.mrf.mxu3  ;;  %v6239_v56 = vld [vmem:[#allocation8 + $0x26c] sm:$0xf] }
 0x4c6   :  { %v4231_v51 = vpop.f32.mrf.mxu0  ;;  %v4373_v35 = vpop.f32.mrf.mxu1  ;;  %10958 = vst [vmem:[#allocation40_spill] sm:$0xff] %v10029_v8 }
 0x4c7   :  { %v4374_v5 = vadd.f32 %v4373_v35, %v4229_v63  ;;  %v5774_v63 = vld [vmem:[#allocation8 + $0x268] sm:$0xf] }
 0x4c9   :  { %v4518_v52 = vadd.f32 %v9972_v4, %v4374_v5  ;;  %4412 = vmatmul.bf16.gmra.mxu1 %v10020_v21  ;;  %v10033_v4 = vor.u32 %v6239_v56, %v5776_v43  ;;  %v6241_v5 = vld [vmem:[#allocation8 + $0x274] sm:$0xf0] }
 0x4ca   :  { %v10035_v21 = vor.u32 %v6241_v5, %v5774_v63  ;;  %v6236_v5 = vld [vmem:[#allocation8 + $0x24c] sm:$0xf0] }
 0x4cb   :  { %v4662_v26 = vadd.f32 %v9968_v16, %v4518_v52  ;;  %10959 = vst [vmem:[#allocation46_spill] sm:$0xff] %v10033_v4  ;;  %6127 = vmatmul.msk.bf16.gmra.mxu3 %vm4098_vm3, %v10033_v4  ;;  %v5736_v52 = vld [vmem:[#allocation8 + $0x230] sm:$0xf0] }
 0x4cc   :  { %v10031_v41 = vpop.f32.mrf.mxu2  ;;  %10960 = vst [vmem:[#allocation47_spill] sm:$0xff] %v10035_v21 }
 0x4cd   :  { %5364 = vst [vmem:[#allocation9 + $0x100] sm:$0xff] %v4662_v26  ;;  %v6230_v26 = vld [vmem:[#allocation8 + $0x224] sm:$0xf]  ;;  %v10043_v29 = vpop.f32.mrf.mxu3 }
 0x4ce   :  { %v4234_v50 = vpop.f32.mrf.mxu0  ;;  %v4375_v39 = vpop.f32.mrf.mxu1  ;;  %v10045_v43 = vor.u32 %v6230_v26, %v5736_v52 }
 0x4cf   :  { %v4376_v35 = vadd.f32 %v4375_v39, %v4231_v51 }
 0x4d0   :  { %10961 = vst [vmem:[#allocation49_spill] sm:$0xff] %v10045_v43 }
 0x4d1   :  { %v4520_v16 = vadd.f32 %v9981_v38, %v4376_v35  ;;  %4273 = vmatmul.bf16.gmra.mxu0 %v10029_v8  ;;  %4571 = vmatmul.bf16.gmra.mxu2 %v10035_v21  ;;  %v5750_v35 = vld [vmem:[#allocation8 + $0x240] sm:$0xf]  ;;  %v5792_v8 = vld [vmem:[#allocation8 + $0x298] sm:$0xf0] }
 0x4d3   :  { %v4664_v2 = vadd.f32 %v9977_v33, %v4520_v16  ;;  %v10054_v33 = vor.u32 %v6236_v5, %v5750_v35 }
 0x4d4   :  { %v10047_v51 = vpop.f32.mrf.mxu2 }
 0x4d5   :  { %5366 = vst [vmem:[#allocation9 + $0x110] sm:$0xff] %v4664_v2  ;;  %v10052_v4 = vpop.f32.mrf.mxu3  ;;  %v6243_v2 = vld [vmem:[#allocation8 + $0x28c] sm:$0xf] }
 0x4d6   :  { %v4236_v39 = vpop.f32.mrf.mxu0  ;;  %v4378_v38 = vpop.f32.mrf.mxu1  ;;  %10962 = vst [vmem:[#allocation38_spill] sm:$0xff] %v10054_v33 }
 0x4d7   :  { %v4379_v56 = vadd.f32 %v4378_v38, %v4234_v50  ;;  %v5790_v50 = vld [vmem:[#allocation8 + $0x288] sm:$0xf] }
 0x4d9   :  { %v4523_v63 = vadd.f32 %v9997_v37, %v4379_v56  ;;  %4417 = vmatmul.bf16.gmra.mxu1 %v10045_v43  ;;  %v10058_v37 = vor.u32 %v6243_v2, %v5792_v8  ;;  %v6245_v56 = vld [vmem:[#allocation8 + $0x294] sm:$0xf0] }
 0x4da   :  { %v10060_v43 = vor.u32 %v6245_v56, %v5790_v50  ;;  %v6240_v56 = vld [vmem:[#allocation8 + $0x26c] sm:$0xf0] }
 0x4db   :  { %v4667_v21 = vadd.f32 %v9993_v7, %v4523_v63  ;;  %10963 = vst [vmem:[#allocation52_spill] sm:$0xff] %v10058_v37  ;;  %6128 = vmatmul.msk.bf16.gmra.mxu3 %vm4098_vm3, %v10058_v37  ;;  %v5752_v63 = vld [vmem:[#allocation8 + $0x250] sm:$0xf0] }
 0x4dc   :  { %v10056_v16 = vpop.f32.mrf.mxu2  ;;  %10964 = vst [vmem:[#allocation53_spill] sm:$0xff] %v10060_v43 }
 0x4dd   :  { %5368 = vst [vmem:[#allocation9 + $0x120] sm:$0xff] %v4667_v21  ;;  %v6234_v21 = vld [vmem:[#allocation8 + $0x244] sm:$0xf] }
 0x4de   :  { %v4239_v26 = vpop.f32.mrf.mxu0  ;;  %v4380_v52 = vpop.f32.mrf.mxu1  ;;  %v10070_v8 = vor.u32 %v6234_v21, %v5752_v63 }
 0x4df   :  { %v4381_v38 = vadd.f32 %v4380_v52, %v4236_v39  ;;  %v10068_v5 = vpop.f32.mrf.mxu3 }
 0x4e0   :  { %10965 = vst [vmem:[#allocation45_spill] sm:$0xff] %v10070_v8 }
 0x4e1   :  { %v4525_v7 = vadd.f32 %v10006_v22, %v4381_v38  ;;  %4278 = vmatmul.bf16.gmra.mxu0 %v10054_v33  ;;  %4576 = vmatmul.bf16.gmra.mxu2 %v10060_v43  ;;  %v5766_v38 = vld [vmem:[#allocation8 + $0x260] sm:$0xf]  ;;  %v5808_v33 = vld [vmem:[#allocation8 + $0x2b8] sm:$0xf0] }
 0x4e3   :  { %v4669_v35 = vadd.f32 %v10002_v31, %v4525_v7  ;;  %v10079_v31 = vor.u32 %v6240_v56, %v5766_v38 }
 0x4e4   :  { %v10072_v39 = vpop.f32.mrf.mxu2 }
 0x4e5   :  { %5370 = vst [vmem:[#allocation9 + $0x130] sm:$0xff] %v4669_v35  ;;  %v6247_v35 = vld [vmem:[#allocation8 + $0x2ac] sm:$0xf] }
 0x4e6   :  { %v4241_v52 = vpop.f32.mrf.mxu0  ;;  %v4383_v22 = vpop.f32.mrf.mxu1  ;;  %10966 = vst [vmem:[#allocation55_spill] sm:$0xff] %v10079_v31 }
 0x4e7   :  { %v4384_v2 = vadd.f32 %v4383_v22, %v4239_v26  ;;  %v10077_v37 = vpop.f32.mrf.mxu3  ;;  %v5806_v26 = vld [vmem:[#allocation8 + $0x2a8] sm:$0xf] }
 0x4e9   :  { %v4528_v50 = vadd.f32 %v10022_v13, %v4384_v2  ;;  %4422 = vmatmul.bf16.gmra.mxu1 %v10070_v8  ;;  %v10083_v13 = vor.u32 %v6247_v35, %v5808_v33  ;;  %v6249_v2 = vld [vmem:[#allocation8 + $0x2b4] sm:$0xf0] }
 0x4ea   :  { %v10085_v8 = vor.u32 %v6249_v2, %v5806_v26  ;;  %v6244_v2 = vld [vmem:[#allocation8 + $0x28c] sm:$0xf0] }
 0x4eb   :  { %v4672_v43 = vadd.f32 %v10018_v42, %v4528_v50  ;;  %10967 = vst [vmem:[#allocation50_spill] sm:$0xff] %v10083_v13  ;;  %6129 = vmatmul.msk.bf16.gmra.mxu3 %vm4098_vm3, %v10083_v13  ;;  %v5768_v50 = vld [vmem:[#allocation8 + $0x270] sm:$0xf0] }
 0x4ec   :  { %v10081_v7 = vpop.f32.mrf.mxu2  ;;  %10968 = vst [vmem:[#allocation44_spill] sm:$0xff] %v10085_v8 }
 0x4ed   :  { %5372 = vst [vmem:[#allocation9 + $0x140] sm:$0xff] %v4672_v43  ;;  %v6238_v43 = vld [vmem:[#allocation8 + $0x264] sm:$0xf] }
 0x4ee   :  { %v4244_v21 = vpop.f32.mrf.mxu0  ;;  %v4385_v63 = vpop.f32.mrf.mxu1  ;;  %v10095_v33 = vor.u32 %v6238_v43, %v5768_v50 }
 0x4ef   :  { %v4386_v22 = vadd.f32 %v4385_v63, %v4241_v52  ;;  %v10093_v56 = vpop.f32.mrf.mxu3 }
 0x4f0   :  { %10969 = vst [vmem:[#allocation54_spill] sm:$0xff] %v10095_v33 }
 0x4f1   :  { %v4530_v42 = vadd.f32 %v10031_v41, %v4386_v22  ;;  %4283 = vmatmul.bf16.gmra.mxu0 %v10079_v31  ;;  %4581 = vmatmul.bf16.gmra.mxu2 %v10085_v8  ;;  %v5782_v22 = vld [vmem:[#allocation8 + $0x280] sm:$0xf]  ;;  %v5824_v31 = vld [vmem:[#allocation8 + $0x2d8] sm:$0xf0] }
 0x4f3   :  { %v4674_v38 = vadd.f32 %v10027_v15, %v4530_v42  ;;  %v10104_v15 = vor.u32 %v6244_v2, %v5782_v22 }
 0x4f4   :  { %v10097_v52 = vpop.f32.mrf.mxu2 }
 0x4f5   :  { %5374 = vst [vmem:[#allocation9 + $0x150] sm:$0xff] %v4674_v38  ;;  %v6251_v38 = vld [vmem:[#allocation8 + $0x2cc] sm:$0xf] }
 0x4f6   :  { %v4246_v63 = vpop.f32.mrf.mxu0  ;;  %v4388_v41 = vpop.f32.mrf.mxu1  ;;  %10970 = vst [vmem:[#allocation48_spill] sm:$0xff] %v10104_v15 }
 0x4f7   :  { %v4389_v35 = vadd.f32 %v4388_v41, %v4244_v21  ;;  %v10102_v13 = vpop.f32.mrf.mxu3  ;;  %v5822_v21 = vld [vmem:[#allocation8 + $0x2c8] sm:$0xf] }
 0x4f9   :  { %v4533_v26 = vadd.f32 %v10047_v51, %v4389_v35  ;;  %4427 = vmatmul.bf16.gmra.mxu1 %v10095_v33  ;;  %v10108_v51 = vor.u32 %v6251_v38, %v5824_v31  ;;  %v6253_v35 = vld [vmem:[#allocation8 + $0x2d4] sm:$0xf0] }
 0x4fa   :  { %v10110_v33 = vor.u32 %v6253_v35, %v5822_v21  ;;  %v6248_v35 = vld [vmem:[#allocation8 + $0x2ac] sm:$0xf0] }
 0x4fb   :  { %v4677_v8 = vadd.f32 %v10043_v29, %v4533_v26  ;;  %10971 = vst [vmem:[#allocation51_spill] sm:$0xff] %v10108_v51  ;;  %6130 = vmatmul.msk.bf16.gmra.mxu3 %vm4098_vm3, %v10108_v51  ;;  %v5784_v26 = vld [vmem:[#allocation8 + $0x290] sm:$0xf0] }
 0x4fc   :  { %v10106_v42 = vpop.f32.mrf.mxu2  ;;  %10972 = vst [vmem:[#allocation61_spill] sm:$0xff] %v10110_v33 }
 0x4fd   :  { %5376 = vst [vmem:[#allocation9 + $0x160] sm:$0xff] %v4677_v8  ;;  %v6242_v8 = vld [vmem:[#allocation8 + $0x284] sm:$0xf] }
 0x4fe   :  { %v4249_v43 = vpop.f32.mrf.mxu0  ;;  %v4390_v50 = vpop.f32.mrf.mxu1  ;;  %v10120_v31 = vor.u32 %v6242_v8, %v5784_v26 }
 0x4ff   :  { %v4391_v41 = vadd.f32 %v4390_v50, %v4246_v63  ;;  %v10118_v2 = vpop.f32.mrf.mxu3 }
 0x500   :  { %10973 = vst [vmem:[#allocation58_spill] sm:$0xff] %v10120_v31 }
 0x501   :  { %v4535_v29 = vadd.f32 %v10056_v16, %v4391_v41  ;;  %4288 = vmatmul.bf16.gmra.mxu0 %v10104_v15  ;;  %4586 = vmatmul.bf16.gmra.mxu2 %v10110_v33  ;;  %v5798_v41 = vld [vmem:[#allocation8 + $0x2a0] sm:$0xf]  ;;  %v5840_v15 = vld [vmem:[#allocation8 + $0x2f8] sm:$0xf0] }
 0x503   :  { %v4679_v22 = vadd.f32 %v10052_v4, %v4535_v29  ;;  %v10129_v4 = vor.u32 %v6248_v35, %v5798_v41 }
 0x504   :  { %v10122_v63 = vpop.f32.mrf.mxu2 }
 0x505   :  { %5378 = vst [vmem:[#allocation9 + $0x170] sm:$0xff] %v4679_v22  ;;  %v6255_v22 = vld [vmem:[#allocation8 + $0x2ec] sm:$0xf] }
 0x506   :  { %v4251_v50 = vpop.f32.mrf.mxu0  ;;  %v4393_v16 = vpop.f32.mrf.mxu1  ;;  %10974 = vst [vmem:[#allocation59_spill] sm:$0xff] %v10129_v4 }
 0x507   :  { %v4394_v38 = vadd.f32 %v4393_v16, %v4249_v43  ;;  %v10127_v51 = vpop.f32.mrf.mxu3  ;;  %v5838_v43 = vld [vmem:[#allocation8 + $0x2e8] sm:$0xf] }
 0x509   :  { %v4538_v21 = vadd.f32 %v10072_v39, %v4394_v38  ;;  %4432 = vmatmul.bf16.gmra.mxu1 %v10120_v31  ;;  %v10133_v39 = vor.u32 %v6255_v22, %v5840_v15  ;;  %v6257_v38 = vld [vmem:[#allocation8 + $0x2f4] sm:$0xf0] }
 0x50a   :  { %v10135_v31 = vor.u32 %v6257_v38, %v5838_v43  ;;  %v6252_v38 = vld [vmem:[#allocation8 + $0x2cc] sm:$0xf0] }
 0x50b   :  { %v4682_v33 = vadd.f32 %v10068_v5, %v4538_v21  ;;  %10975 = vst [vmem:[#allocation57_spill] sm:$0xff] %v10133_v39  ;;  %6131 = vmatmul.msk.bf16.gmra.mxu3 %vm4098_vm3, %v10133_v39  ;;  %v5800_v21 = vld [vmem:[#allocation8 + $0x2b0] sm:$0xf0] }
 0x50c   :  { %v10131_v29 = vpop.f32.mrf.mxu2  ;;  %10976 = vst [vmem:[#allocation60_spill] sm:$0xff] %v10135_v31 }
 0x50d   :  { %5380 = vst [vmem:[#allocation9 + $0x180] sm:$0xff] %v4682_v33  ;;  %v6246_v33 = vld [vmem:[#allocation8 + $0x2a4] sm:$0xf] }
 0x50e   :  { %v4254_v8 = vpop.f32.mrf.mxu0  ;;  %v4395_v26 = vpop.f32.mrf.mxu1  ;;  %v10145_v15 = vor.u32 %v6246_v33, %v5800_v21 }
 0x50f   :  { %v4396_v16 = vadd.f32 %v4395_v26, %v4251_v50  ;;  %v10143_v35 = vpop.f32.mrf.mxu3 }
 0x510   :  { %10977 = vst [vmem:[#allocation67_spill] sm:$0xff] %v10145_v15 }
 0x511   :  { %v4540_v5 = vadd.f32 %v10081_v7, %v4396_v16  ;;  %4293 = vmatmul.bf16.gmra.mxu0 %v10129_v4  ;;  %4591 = vmatmul.bf16.gmra.mxu2 %v10135_v31  ;;  %v5814_v16 = vld [vmem:[#allocation8 + $0x2c0] sm:$0xf]  ;;  %v5856_v4 = vld [vmem:[#allocation8 + $0x318] sm:$0xf0] }
 0x513   :  { %v4684_v41 = vadd.f32 %v10077_v37, %v4540_v5  ;;  %v10154_v37 = vor.u32 %v6252_v38, %v5814_v16 }
 0x514   :  { %v10147_v50 = vpop.f32.mrf.mxu2 }
 0x515   :  { %5382 = vst [vmem:[#allocation9 + $0x190] sm:$0xff] %v4684_v41  ;;  %v6259_v41 = vld [vmem:[#allocation8 + $0x30c] sm:$0xf] }
 0x516   :  { %v4256_v26 = vpop.f32.mrf.mxu0  ;;  %v4398_v7 = vpop.f32.mrf.mxu1  ;;  %10978 = vst [vmem:[#allocation56_spill] sm:$0xff] %v10154_v37 }
 0x517   :  { %v4399_v22 = vadd.f32 %v4398_v7, %v4254_v8  ;;  %v10152_v39 = vpop.f32.mrf.mxu3  ;;  %v5854_v8 = vld [vmem:[#allocation8 + $0x308] sm:$0xf] }
 0x519   :  { %v4543_v43 = vadd.f32 %v10097_v52, %v4399_v22  ;;  %4437 = vmatmul.bf16.gmra.mxu1 %v10145_v15  ;;  %v10158_v52 = vor.u32 %v6259_v41, %v5856_v4  ;;  %v6261_v22 = vld [vmem:[#allocation8 + $0x314] sm:$0xf0] }
 0x51a   :  { %v10160_v15 = vor.u32 %v6261_v22, %v5854_v8  ;;  %v6256_v22 = vld [vmem:[#allocation8 + $0x2ec] sm:$0xf0] }
 0x51b   :  { %v4687_v31 = vadd.f32 %v10093_v56, %v4543_v43  ;;  %10979 = vst [vmem:[#allocation64_spill] sm:$0xff] %v10158_v52  ;;  %6132 = vmatmul.msk.bf16.gmra.mxu3 %vm4098_vm3, %v10158_v52  ;;  %v5816_v43 = vld [vmem:[#allocation8 + $0x2d0] sm:$0xf0] }
 0x51c   :  { %v10156_v5 = vpop.f32.mrf.mxu2  ;;  %10980 = vst [vmem:[#allocation63_spill] sm:$0xff] %v10160_v15 }
 0x51d   :  { %5384 = vst [vmem:[#allocation9 + $0x1a0] sm:$0xff] %v4687_v31  ;;  %v6250_v31 = vld [vmem:[#allocation8 + $0x2c4] sm:$0xf] }
 0x51e   :  { %v4259_v33 = vpop.f32.mrf.mxu0  ;;  %v4400_v21 = vpop.f32.mrf.mxu1  ;;  %v10170_v4 = vor.u32 %v6250_v31, %v5816_v43 }
 0x51f   :  { %v4401_v7 = vadd.f32 %v4400_v21, %v4256_v26  ;;  %v10168_v38 = vpop.f32.mrf.mxu3 }
 0x520   :  { %10981 = vst [vmem:[#allocation65_spill] sm:$0xff] %v10170_v4 }
 0x521   :  { %v4545_v56 = vadd.f32 %v10106_v42, %v4401_v7  ;;  %4298 = vmatmul.bf16.gmra.mxu0 %v10154_v37  ;;  %4596 = vmatmul.bf16.gmra.mxu2 %v10160_v15  ;;  %v5830_v7 = vld [vmem:[#allocation8 + $0x2e0] sm:$0xf]  ;;  %v5872_v37 = vld [vmem:[#allocation8 + $0x338] sm:$0xf0] }
 0x523   :  { %v4689_v16 = vadd.f32 %v10102_v13, %v4545_v56  ;;  %v10179_v13 = vor.u32 %v6256_v22, %v5830_v7 }
 0x524   :  { %v10172_v26 = vpop.f32.mrf.mxu2 }
 0x525   :  { %5386 = vst [vmem:[#allocation9 + $0x1b0] sm:$0xff] %v4689_v16  ;;  %v6263_v16 = vld [vmem:[#allocation8 + $0x32c] sm:$0xf] }
 0x526   :  { %v4261_v21 = vpop.f32.mrf.mxu0  ;;  %v4403_v42 = vpop.f32.mrf.mxu1  ;;  %10982 = vst [vmem:[#allocation66_spill] sm:$0xff] %v10179_v13 }
 0x527   :  { %v4404_v41 = vadd.f32 %v4403_v42, %v4259_v33  ;;  %v10177_v52 = vpop.f32.mrf.mxu3  ;;  %v5870_v33 = vld [vmem:[#allocation8 + $0x328] sm:$0xf] }
 0x529   :  { %v4548_v8 = vadd.f32 %v10122_v63, %v4404_v41  ;;  %4442 = vmatmul.bf16.gmra.mxu1 %v10170_v4  ;;  %v10183_v63 = vor.u32 %v6263_v16, %v5872_v37  ;;  %v6265_v41 = vld [vmem:[#allocation8 + $0x334] sm:$0xf0] }
 0x52a   :  { %v10185_v4 = vor.u32 %v6265_v41, %v5870_v33  ;;  %v6260_v41 = vld [vmem:[#allocation8 + $0x30c] sm:$0xf0] }
 0x52b   :  { %v4692_v15 = vadd.f32 %v10118_v2, %v4548_v8  ;;  %10983 = vst [vmem:[#allocation62_spill] sm:$0xff] %v10183_v63  ;;  %6133 = vmatmul.msk.bf16.gmra.mxu3 %vm4098_vm3, %v10183_v63  ;;  %v5832_v8 = vld [vmem:[#allocation8 + $0x2f0] sm:$0xf0] }
 0x52c   :  { %v10181_v56 = vpop.f32.mrf.mxu2  ;;  %10984 = vst [vmem:[#allocation71_spill] sm:$0xff] %v10185_v4 }
 0x52d   :  { %5388 = vst [vmem:[#allocation9 + $0x1c0] sm:$0xff] %v4692_v15  ;;  %v6254_v15 = vld [vmem:[#allocation8 + $0x2e4] sm:$0xf] }
 0x52e   :  { %v4264_v31 = vpop.f32.mrf.mxu0  ;;  %v4405_v43 = vpop.f32.mrf.mxu1  ;;  %v10195_v37 = vor.u32 %v6254_v15, %v5832_v8 }
 0x52f   :  { %v4406_v42 = vadd.f32 %v4405_v43, %v4261_v21  ;;  %v10193_v22 = vpop.f32.mrf.mxu3 }
 0x530   :  { %10985 = vst [vmem:[#allocation73_spill] sm:$0xff] %v10195_v37 }
 0x531   :  { %v4550_v2 = vadd.f32 %v10131_v29, %v4406_v42  ;;  %4303 = vmatmul.bf16.gmra.mxu0 %v10179_v13  ;;  %4601 = vmatmul.bf16.gmra.mxu2 %v10185_v4  ;;  %v5846_v42 = vld [vmem:[#allocation8 + $0x300] sm:$0xf]  ;;  %v5888_v13 = vld [vmem:[#allocation8 + $0x358] sm:$0xf0] }
 0x533   :  { %v4694_v7 = vadd.f32 %v10127_v51, %v4550_v2  ;;  %v10202_v51 = vor.u32 %v6260_v41, %v5846_v42 }
 0x534   :  { %v4562_v21 = vpop.f32.mrf.mxu2 }
 0x535   :  { %5390 = vst [vmem:[#allocation9 + $0x1d0] sm:$0xff] %v4694_v7  ;;  %v6267_v7 = vld [vmem:[#allocation8 + $0x34c] sm:$0xf] }
 0x536   :  { %v4266_v43 = vpop.f32.mrf.mxu0  ;;  %v4408_v16 = vpop.f32.mrf.mxu1 }
 0x537   :  { %v4409_v29 = vadd.f32 %v4408_v16, %v4264_v31  ;;  %v10200_v4 = vpop.f32.mrf.mxu3  ;;  %v10204_v16 = vor.u32 %v6267_v7, %v5888_v13  ;;  %v5862_v7 = vld [vmem:[#allocation8 + $0x320] sm:$0xf] }
 0x539   :  { %v4553_v33 = vadd.f32 %v10147_v50, %v4409_v29  ;;  %4447 = vmatmul.bf16.gmra.mxu1 %v10195_v37  ;;  %10986 = vst [vmem:[#allocation70_spill] sm:$0xff] %v10204_v16  ;;  %v6269_v50 = vld [vmem:[#allocation8 + $0x354] sm:$0xf0] }
 0x53a   :  { %v10206_v29 = vor.u32 %v6269_v50, %v5886_v54 }
 0x53b   :  { %v4697_v63 = vadd.f32 %v10143_v35, %v4553_v33  ;;  %6134 = vmatmul.msk.bf16.gmra.mxu3 %vm4098_vm3, %v10204_v16  ;;  %v6258_v35 = vld [vmem:[#allocation8 + $0x304] sm:$0xf] }
 0x53c   :  { %v4564_v2 = vpop.f32.mrf.mxu2  ;;  %10987 = vst [vmem:[#allocation72_spill] sm:$0xff] %v10206_v29 }
 0x53d   :  { %5392 = vst [vmem:[#allocation9 + $0x1e0] sm:$0xff] %v4697_v63  ;;  %v5848_v63 = vld [vmem:[#allocation8 + $0x310] sm:$0xf0] }
 0x53e   :  { %v4269_v15 = vpop.f32.mrf.mxu0  ;;  %v4410_v8 = vpop.f32.mrf.mxu1  ;;  %v10214_v13 = vor.u32 %v6258_v35, %v5848_v63 }
 0x53f   :  { %v4411_v31 = vadd.f32 %v4410_v8, %v4266_v43  ;;  %v4711_v42 = vpop.f32.mrf.mxu3 }
 0x541   :  { %v4555_v37 = vadd.f32 %v10156_v5, %v4411_v31  ;;  %4308 = vmatmul.bf16.gmra.mxu0 %v10202_v51  ;;  %4606 = vmatmul.bf16.gmra.mxu2 %v10206_v29  ;;  %v6264_v31 = vld [vmem:[#allocation8 + $0x32c] sm:$0xf0] }
 0x542   :  { %v10219_v29 = vor.u32 %v6264_v31, %v5862_v7 }
 0x543   :  { %v4699_v33 = vadd.f32 %v10152_v39, %v4555_v37 }
 0x544   :  { %v4567_v43 = vpop.f32.mrf.mxu2 }
 0x545   :  { %5394 = vst [vmem:[#allocation9 + $0x1f0] sm:$0xff] %v4699_v33 }
 0x546   :  { %v4271_v54 = vpop.f32.mrf.mxu0  ;;  %v4413_v41 = vpop.f32.mrf.mxu1 }
 0x547   :  { %v4414_v8 = vadd.f32 %v4413_v41, %v4269_v15  ;;  %v4713_v16 = vpop.f32.mrf.mxu3  ;;  %v5864_v15 = vld [vmem:[#allocation8 + $0x330] sm:$0xf0] }
 0x549   :  { %v4558_v5 = vadd.f32 %v10172_v26, %v4414_v8  ;;  %4452 = vmatmul.bf16.gmra.mxu1 %v10214_v13  ;;  %v6262_v26 = vld [vmem:[#allocation8 + $0x324] sm:$0xf] }
 0x54a   :  { %v10227_v8 = vor.u32 %v6262_v26, %v5864_v15 }
 0x54b   :  { %v4702_v50 = vadd.f32 %v10168_v38, %v4558_v5  ;;  %4764 = vmatmul.bf16.vlgmr.msrb.gmra.mxu3 %v9702_v0  ;;  %v6268_v0 = vld [vmem:[#allocation8 + $0x34c] sm:$0xf0] }
 0x54c   :  { %v4569_v39 = vpop.f32.mrf.mxu2  ;;  %10988 = vst [vmem:[#allocation68_spill] sm:$0xff] %v10227_v8 }
 0x54d   :  { %5396 = vst [vmem:[#allocation9 + $0x200] sm:$0xff] %v4702_v50  ;;  %v5878_v50 = vld [vmem:[#allocation8 + $0x340] sm:$0xf] }
 0x54e   :  { %v4274_v37 = vpop.f32.mrf.mxu0  ;;  %v4415_v35 = vpop.f32.mrf.mxu1 }
 0x54f   :  { %v4416_v63 = vadd.f32 %v4415_v35, %v4271_v54  ;;  %v4716_v41 = vpop.f32.mrf.mxu3 }
 0x551   :  { %v4560_v33 = vadd.f32 %v10181_v56, %v4416_v63  ;;  %4313 = vmatmul.bf16.gmra.mxu0 %v10219_v29  ;;  %6135 = vmatmul.msk.bf16.vlgmr.msrb.gmra.mxu2 %vm4098_vm3, %v9684_v3  ;;  %v10231_v3 = vor.u32 %v6268_v0, %v5878_v50 }
 0x553   :  { %v4704_v38 = vadd.f32 %v10177_v52, %v4560_v33  ;;  %10989 = vst [vmem:[#allocation69_spill] sm:$0xff] %v10231_v3 }
 0x554   :  { %v4572_v5 = vpop.f32.mrf.mxu2 }
 0x555   :  { %5398 = vst [vmem:[#allocation9 + $0x210] sm:$0xff] %v4704_v38 }
 0x556   :  { %v4276_v7 = vpop.f32.mrf.mxu0  ;;  %v4418_v54 = vpop.f32.mrf.mxu1 }
 0x557   :  { %v4419_v31 = vadd.f32 %v4418_v54, %v4274_v37  ;;  %v4718_v63 = vpop.f32.mrf.mxu3  ;;  %v5880_v37 = vld [vmem:[#allocation8 + $0x350] sm:$0xf0] }
 0x559   :  { %v4563_v56 = vadd.f32 %v4562_v21, %v4419_v31  ;;  %4457 = vmatmul.bf16.gmra.mxu1 %v10227_v8  ;;  %v6266_v21 = vld [vmem:[#allocation8 + $0x344] sm:$0xf] }
 0x55a   :  { %v10238_v31 = vor.u32 %v6266_v21, %v5880_v37 }
 0x55b   :  { %v4707_v35 = vadd.f32 %v10193_v22, %v4563_v56  ;;  %4769 = vmatmul.bf16.gmra.mxu3 %v9717_v18 }
 0x55c   :  { %v4574_v52 = vpop.f32.mrf.mxu2 }
 0x55d   :  { %5400 = vst [vmem:[#allocation9 + $0x220] sm:$0xff] %v4707_v35 }
 0x55e   :  { %v4279_v33 = vpop.f32.mrf.mxu0  ;;  %v4420_v38 = vpop.f32.mrf.mxu1 }
 0x55f   :  { %v4421_v26 = vadd.f32 %v4420_v38, %v4276_v7  ;;  %v4721_v54 = vpop.f32.mrf.mxu3 }
 0x561   :  { %v4565_v15 = vadd.f32 %v4564_v2, %v4421_v26  ;;  %4318 = vmatmul.bf16.gmra.mxu0 %v10231_v3  ;;  %6136 = vmatmul.msk.bf16.gmra.mxu2 %vm4098_vm3, %v9693_v55 }
 0x563   :  { %v4709_v22 = vadd.f32 %v10200_v4, %v4565_v15 }
 0x564   :  { %v4577_v56 = vpop.f32.mrf.mxu2 }
 0x565   :  { %5402 = vst [vmem:[#allocation9 + $0x230] sm:$0xff] %v4709_v22 }
 0x566   :  { %v4281_v50 = vpop.f32.mrf.mxu0  ;;  %v4423_v0 = vpop.f32.mrf.mxu1 }
 0x567   :  { %v4424_v7 = vadd.f32 %v4423_v0, %v4279_v33  ;;  %v4723_v18 = vpop.f32.mrf.mxu3 }
 0x569   :  { %v4568_v2 = vadd.f32 %v4567_v43, %v4424_v7  ;;  %4462 = vmatmul.bf16.gmra.mxu1 %v10238_v31 }
 0x56b   :  { %v4712_v35 = vadd.f32 %v4711_v42, %v4568_v2  ;;  %4774 = vmatmul.bf16.gmra.mxu3 %v9730_v36 }
 0x56c   :  { %v4579_v38 = vpop.f32.mrf.mxu2 }
 0x56d   :  { %5404 = vst [vmem:[#allocation9 + $0x240] sm:$0xff] %v4712_v35 }
 0x56e   :  { %v4284_v26 = vpop.f32.mrf.mxu0  ;;  %v4425_v8 = vpop.f32.mrf.mxu1 }
 0x56f   :  { %v4426_v55 = vadd.f32 %v4425_v8, %v4281_v50  ;;  %v4726_v33 = vpop.f32.mrf.mxu3 }
 0x571   :  { %v4570_v3 = vadd.f32 %v4569_v39, %v4426_v55  ;;  %4908 = vmatmul.bf16.vlgmr.msrb.gmra.mxu0 %v9710_v10  ;;  %6137 = vmatmul.msk.bf16.gmra.mxu2 %vm4098_vm3, %v9700_v34 }
 0x573   :  { %v4714_v4 = vadd.f32 %v4713_v16, %v4570_v3 }
 0x574   :  { %v4582_v43 = vpop.f32.mrf.mxu2 }
 0x575   :  { %5406 = vst [vmem:[#allocation9 + $0x250] sm:$0xff] %v4714_v4 }
 0x576   :  { %v4286_v15 = vpop.f32.mrf.mxu0  ;;  %v4428_v42 = vpop.f32.mrf.mxu1 }
 0x577   :  { %v4429_v21 = vadd.f32 %v4428_v42, %v4284_v26  ;;  %v4728_v8 = vpop.f32.mrf.mxu3 }
 0x579   :  { %v4573_v37 = vadd.f32 %v4572_v5, %v4429_v21  ;;  %5052 = vmatmul.bf16.vlgmr.msrb.gmra.mxu1 %v9686_v53 }
 0x57b   :  { %v4717_v22 = vadd.f32 %v4716_v41, %v4573_v37  ;;  %4779 = vmatmul.bf16.gmra.mxu3 %v9743_v48 }
 0x57c   :  { %v4584_v39 = vpop.f32.mrf.mxu2 }
 0x57d   :  { %5408 = vst [vmem:[#allocation9 + $0x260] sm:$0xff] %v4717_v22 }
 0x57e   :  { %v4289_v10 = vpop.f32.mrf.mxu0  ;;  %v4430_v50 = vpop.f32.mrf.mxu1 }
 0x57f   :  { %v4431_v36 = vadd.f32 %v4430_v50, %v4286_v15  ;;  %v4731_v16 = vpop.f32.mrf.mxu3 }
 0x581   :  { %v4575_v0 = vadd.f32 %v4574_v52, %v4431_v36  ;;  %4913 = vmatmul.bf16.gmra.mxu0 %v9723_v61  ;;  %6138 = vmatmul.msk.bf16.gmra.mxu2 %vm4098_vm3, %v9713_v17 }
 0x583   :  { %v4719_v34 = vadd.f32 %v4718_v63, %v4575_v0 }
 0x584   :  { %v4587_v5 = vpop.f32.mrf.mxu2 }
 0x585   :  { %5410 = vst [vmem:[#allocation9 + $0x270] sm:$0xff] %v4719_v34 }
 0x586   :  { %v4291_v53 = vpop.f32.mrf.mxu0  ;;  %v4433_v41 = vpop.f32.mrf.mxu1 }
 0x587   :  { %v4434_v3 = vadd.f32 %v4433_v41, %v4289_v10  ;;  %v4733_v35 = vpop.f32.mrf.mxu3 }
 0x589   :  { %v4578_v7 = vadd.f32 %v4577_v56, %v4434_v3  ;;  %5057 = vmatmul.bf16.gmra.mxu1 %v9695_v32 }
 0x58b   :  { %v4722_v2 = vadd.f32 %v4721_v54, %v4578_v7  ;;  %4784 = vmatmul.bf16.gmra.mxu3 %v9756_v25 }
 0x58c   :  { %v4589_v52 = vpop.f32.mrf.mxu2 }
 0x58d   :  { %5412 = vst [vmem:[#allocation9 + $0x280] sm:$0xff] %v4722_v2 }
 0x58e   :  { %v4294_v61 = vpop.f32.mrf.mxu0  ;;  %v4435_v26 = vpop.f32.mrf.mxu1 }
 0x58f   :  { %v4436_v48 = vadd.f32 %v4435_v26, %v4291_v53  ;;  %v4736_v63 = vpop.f32.mrf.mxu3 }
 0x591   :  { %v4580_v55 = vadd.f32 %v4579_v38, %v4436_v48  ;;  %4918 = vmatmul.bf16.gmra.mxu0 %v9736_v46  ;;  %6139 = vmatmul.msk.bf16.gmra.mxu2 %vm4098_vm3, %v9726_v23 }
 0x593   :  { %v4724_v17 = vadd.f32 %v4723_v18, %v4580_v55 }
 0x594   :  { %v4592_v56 = vpop.f32.mrf.mxu2 }
 0x595   :  { %5414 = vst [vmem:[#allocation9 + $0x290] sm:$0xff] %v4724_v17 }
 0x596   :  { %v4296_v32 = vpop.f32.mrf.mxu0  ;;  %v4438_v54 = vpop.f32.mrf.mxu1 }
 0x597   :  { %v4439_v4 = vadd.f32 %v4438_v54, %v4294_v61  ;;  %v4738_v21 = vpop.f32.mrf.mxu3 }
 0x599   :  { %v4583_v15 = vadd.f32 %v4582_v43, %v4439_v4  ;;  %5062 = vmatmul.bf16.gmra.mxu1 %v9704_v57 }
 0x59b   :  { %v4727_v42 = vadd.f32 %v4726_v33, %v4583_v15  ;;  %4789 = vmatmul.bf16.gmra.mxu3 %v9769_v28 }
 0x59c   :  { %v4594_v38 = vpop.f32.mrf.mxu2 }
 0x59d   :  { %5416 = vst [vmem:[#allocation9 + $0x2a0] sm:$0xff] %v4727_v42 }
 0x59e   :  { %v4299_v46 = vpop.f32.mrf.mxu0  ;;  %v4440_v37 = vpop.f32.mrf.mxu1 }
 0x59f   :  { %v4441_v25 = vadd.f32 %v4440_v37, %v4296_v32  ;;  %v4741_v18 = vpop.f32.mrf.mxu3 }
 0x5a1   :  { %v4585_v22 = vadd.f32 %v4584_v39, %v4441_v25  ;;  %4923 = vmatmul.bf16.gmra.mxu0 %v9749_v62  ;;  %6140 = vmatmul.msk.bf16.gmra.mxu2 %vm4098_vm3, %v9739_v47 }
 0x5a3   :  { %v4729_v23 = vadd.f32 %v4728_v8, %v4585_v22 }
 0x5a4   :  { %v4597_v43 = vpop.f32.mrf.mxu2 }
 0x5a5   :  { %5418 = vst [vmem:[#allocation9 + $0x2b0] sm:$0xff] %v4729_v23 }
 0x5a6   :  { %v4301_v57 = vpop.f32.mrf.mxu0  ;;  %v4443_v33 = vpop.f32.mrf.mxu1 }
 0x5a7   :  { %v4444_v10 = vadd.f32 %v4443_v33, %v4299_v46  ;;  %v4743_v0 = vpop.f32.mrf.mxu3 }
 0x5a9   :  { %v4588_v50 = vadd.f32 %v4587_v5, %v4444_v10  ;;  %5067 = vmatmul.bf16.gmra.mxu1 %v9715_v19 }
 0x5ab   :  { %v4732_v36 = vadd.f32 %v4731_v16, %v4588_v50  ;;  %4794 = vmatmul.bf16.gmra.mxu3 %v9782_v40 }
 0x5ac   :  { %v4599_v39 = vpop.f32.mrf.mxu2 }
 0x5ad   :  { %5420 = vst [vmem:[#allocation9 + $0x2c0] sm:$0xff] %v4732_v36 }
 0x5ae   :  { %v4304_v62 = vpop.f32.mrf.mxu0  ;;  %v4445_v34 = vpop.f32.mrf.mxu1 }
 0x5af   :  { %v4446_v28 = vadd.f32 %v4445_v34, %v4301_v57  ;;  %v4746_v8 = vpop.f32.mrf.mxu3 }
 0x5b1   :  { %v4590_v53 = vadd.f32 %v4589_v52, %v4446_v28  ;;  %4928 = vmatmul.bf16.gmra.mxu0 %v9762_v30  ;;  %6141 = vmatmul.msk.bf16.gmra.mxu2 %vm4098_vm3, %v9752_v6 }
 0x5b3   :  { %v4734_v47 = vadd.f32 %v4733_v35, %v4590_v53  ;;  %v10991_v53 = vld [vmem:[#allocation79_spill] sm:$0xff] }
 0x5b4   :  { %v4602_v5 = vpop.f32.mrf.mxu2 }
 0x5b5   :  { %5422 = vst [vmem:[#allocation9 + $0x2d0] sm:$0xff] %v4734_v47 }
 0x5b6   :  { %v4306_v19 = vpop.f32.mrf.mxu0  ;;  %v4448_v16 = vpop.f32.mrf.mxu1 }
 0x5b7   :  { %v4449_v41 = vadd.f32 %v4448_v16, %v4304_v62  ;;  %v4748_v2 = vpop.f32.mrf.mxu3 }
 0x5b9   :  { %v4593_v3 = vadd.f32 %v4592_v56, %v4449_v41  ;;  %5072 = vmatmul.bf16.gmra.mxu1 %v9728_v14 }
 0x5bb   :  { %v4737_v7 = vadd.f32 %v4736_v63, %v4593_v3  ;;  %4799 = vmatmul.bf16.gmra.mxu3 %v9793_v11 }
 0x5bc   :  { %v4604_v52 = vpop.f32.mrf.mxu2 }
 0x5bd   :  { %5424 = vst [vmem:[#allocation9 + $0x2e0] sm:$0xff] %v4737_v7  ;;  %v10992_v7 = vld [vmem:[#allocation78_spill] sm:$0xff] }
 0x5be   :  { %v4309_v30 = vpop.f32.mrf.mxu0  ;;  %v4450_v61 = vpop.f32.mrf.mxu1 }
 0x5bf   :  { %v4451_v40 = vadd.f32 %v4450_v61, %v4306_v19  ;;  %v4751_v35 = vpop.f32.mrf.mxu3 }
 0x5c1   :  { %v4595_v26 = vadd.f32 %v4594_v38, %v4451_v40  ;;  %4933 = vmatmul.bf16.gmra.mxu0 %v9775_v60  ;;  %6142 = vmatmul.msk.bf16.gmra.mxu2 %vm4098_vm3, %v9765_v9 }
 0x5c3   :  { %v4739_v6 = vadd.f32 %v4738_v21, %v4595_v26 }
 0x5c4   :  { %v4607_v48 = vpop.f32.mrf.mxu2 }
 0x5c5   :  { %5426 = vst [vmem:[#allocation9 + $0x2f0] sm:$0xff] %v4739_v6  ;;  %v10993_v6 = vld [vmem:[#allocation13_spill] sm:$0xff] }
 0x5c6   :  { %v4311_v14 = vpop.f32.mrf.mxu0  ;;  %v4453_v55 = vpop.f32.mrf.mxu1 }
 0x5c7   :  { %v4454_v17 = vadd.f32 %v4453_v55, %v4309_v30  ;;  %v4753_v32 = vpop.f32.mrf.mxu3 }
 0x5c9   :  { %v4598_v63 = vadd.f32 %v4597_v43, %v4454_v17  ;;  %5077 = vmatmul.bf16.gmra.mxu1 %v9741_v12 }
 0x5cb   :  { %v4742_v56 = vadd.f32 %v4741_v18, %v4598_v63  ;;  %4804 = vmatmul.bf16.gmra.mxu3 %v9810_v45 }
 0x5cc   :  { %v4609_v54 = vpop.f32.mrf.mxu2 }
 0x5cd   :  { %5428 = vst [vmem:[#allocation9 + $0x300] sm:$0xff] %v4742_v56 }
 0x5ce   :  { %v4314_v60 = vpop.f32.mrf.mxu0  ;;  %v4455_v4 = vpop.f32.mrf.mxu1 }
 0x5cf   :  { %v4456_v11 = vadd.f32 %v4455_v4, %v4311_v14  ;;  %v4765_v42 = vpop.f32.mrf.mxu3 }
 0x5d1   :  { %v4600_v15 = vadd.f32 %v4599_v39, %v4456_v11  ;;  %4938 = vmatmul.bf16.gmra.mxu0 %v9788_v27  ;;  %6143 = vmatmul.msk.bf16.gmra.mxu2 %vm4098_vm3, %v9778_v49 }
 0x5d3   :  { %v4744_v9 = vadd.f32 %v4743_v0, %v4600_v15 }
 0x5d4   :  { %v5197_v21 = vpop.f32.mrf.mxu2 }
 0x5d5   :  { %5430 = vst [vmem:[#allocation9 + $0x310] sm:$0xff] %v4744_v9 }
 0x5d6   :  { %v4316_v12 = vpop.f32.mrf.mxu0  ;;  %v4458_v38 = vpop.f32.mrf.mxu1 }
 0x5d7   :  { %v4459_v46 = vadd.f32 %v4458_v38, %v4314_v60  ;;  %v4767_v22 = vpop.f32.mrf.mxu3  ;;  %v10996_v60 = vld [vmem:[#allocation77_spill] sm:$0xff]  ;;  %v10997_v38 = vld [vmem:[#allocation15_spill] sm:$0xff] }
 0x5d9   :  { %v4603_v37 = vadd.f32 %v4602_v5, %v4459_v46  ;;  %5082 = vmatmul.bf16.gmra.mxu1 %v9754_v20  ;;  %v10998_v46 = vld [vmem:[#allocation25_spill] sm:$0xff] }
 0x5db   :  { %v4747_v25 = vadd.f32 %v4746_v8, %v4603_v37  ;;  %4809 = vmatmul.bf16.gmra.mxu3 %v9831_v1  ;;  %v10999_v37 = vld [vmem:[#allocation17_spill] sm:$0xff] }
 0x5dc   :  { %v5199_v23 = vpop.f32.mrf.mxu2 }
 0x5dd   :  { %5432 = vst [vmem:[#allocation9 + $0x320] sm:$0xff] %v4747_v25 }
 0x5de   :  { %v4319_v27 = vpop.f32.mrf.mxu0  ;;  %v4460_v18 = vpop.f32.mrf.mxu1 }
 0x5df   :  { %v4461_v45 = vadd.f32 %v4460_v18, %v4316_v12  ;;  %v4770_v57 = vpop.f32.mrf.mxu3 }
 0x5e1   :  { %v4605_v43 = vadd.f32 %v4604_v52, %v4461_v45  ;;  %4943 = vmatmul.bf16.gmra.mxu0 %v9805_v44  ;;  %6144 = vmatmul.msk.bf16.gmra.mxu2 %vm4098_vm3, %v9795_v24  ;;  %v10990_v24 = vld [vmem:[#allocation16_spill] sm:$0xff] }
 0x5e3   :  { %v4749_v49 = vadd.f32 %v4748_v2, %v4605_v43 }
 0x5e4   :  { %v5202_v33 = vpop.f32.mrf.mxu2 }
 0x5e5   :  { %5434 = vst [vmem:[#allocation9 + $0x330] sm:$0xff] %v4749_v49  ;;  %v11000_v49 = vld [vmem:[#allocation76_spill] sm:$0xff] }
 0x5e6   :  { %v4321_v20 = vpop.f32.mrf.mxu0  ;;  %v4463_v10 = vpop.f32.mrf.mxu1 }
 0x5e7   :  { %v4464_v50 = vadd.f32 %v4463_v10, %v4319_v27  ;;  %v4772_v39 = vpop.f32.mrf.mxu3 }
 0x5e9   :  { %v4608_v36 = vadd.f32 %v4607_v48, %v4464_v50  ;;  %5087 = vmatmul.bf16.gmra.mxu1 %v9767_v58  ;;  %v10995_v48 = vld [vmem:[#allocation75_spill] sm:$0xff] }
 0x5eb   :  { %v4752_v0 = vadd.f32 %v4751_v35, %v4608_v36  ;;  %4814 = vmatmul.bf16.gmra.mxu3 %v10990_v24  ;;  %v10994_v35 = vld [vmem:[#allocation14_spill] sm:$0xff] }
 0x5ec   :  { %v5204_v62 = vpop.f32.mrf.mxu2 }
 0x5ed   :  { %5436 = vst [vmem:[#allocation9 + $0x340] sm:$0xff] %v4752_v0 }
 0x5ee   :  { %v4465_v44 = vpop.f32.mrf.mxu1  ;;  %v4909_v34 = vpop.f32.mrf.mxu0 }
 0x5ef   :  { %v4466_v1 = vadd.f32 %v4465_v44, %v4321_v20  ;;  %v4910_v8 = vadd.f32 %v4909_v34, %v4765_v42  ;;  %v4775_v5 = vpop.f32.mrf.mxu3  ;;  %v11003_v44 = vld [vmem:[#allocation18_spill] sm:$0xff] }
 0x5f1   :  { %v4610_v28 = vadd.f32 %v4609_v54, %v4466_v1  ;;  %4948 = vmatmul.bf16.gmra.mxu0 %v9824_v59  ;;  %6145 = vmatmul.msk.bf16.gmra.mxu2 %vm4098_vm3, %v10991_v53 }
 0x5f3   :  { %v4754_v47 = vadd.f32 %v4753_v32, %v4610_v28 }
 0x5f4   :  { %v5207_v58 = vpop.f32.mrf.mxu2 }
 0x5f5   :  { %5438 = vst [vmem:[#allocation9 + $0x350] sm:$0xff] %v4754_v47 }
 0x5f6   :  { %v4911_v19 = vpop.f32.mrf.mxu0  ;;  %v5053_v16 = vpop.f32.mrf.mxu1 }
 0x5f7   :  { %v5054_v41 = vadd.f32 %v5053_v16, %v4910_v8  ;;  %v4777_v2 = vpop.f32.mrf.mxu3  ;;  %v4912_v52 = vadd.f32 %v4911_v19, %v4767_v22 }
 0x5f9   :  { %v5198_v3 = vadd.f32 %v5197_v21, %v5054_v41  ;;  %5092 = vmatmul.bf16.gmra.mxu1 %v10992_v7 }
 0x5fb   :  { %5333 = vst [vmem:[#allocation9 + $0x8] sm:$0xff] %v5198_v3  ;;  %4819 = vmatmul.bf16.gmra.mxu3 %v10994_v35 }
 0x5fc   :  { %v5209_v59 = vpop.f32.mrf.mxu2 }
 0x5fe   :  { %v4914_v30 = vpop.f32.mrf.mxu0  ;;  %v5055_v61 = vpop.f32.mrf.mxu1 }
 0x5ff   :  { %v5056_v40 = vadd.f32 %v5055_v61, %v4912_v52  ;;  %v4915_v14 = vadd.f32 %v4914_v30, %v4770_v57  ;;  %v4780_v55 = vpop.f32.mrf.mxu3  ;;  %v11005_v52 = vld [vmem:[#allocation24_spill] sm:$0xff]  ;;  %v11007_v30 = vld [vmem:[#allocation21_spill] sm:$0xff] }
 0x601   :  { %v5200_v26 = vadd.f32 %v5199_v23, %v5056_v40  ;;  %4953 = vmatmul.bf16.gmra.mxu0 %v10993_v6  ;;  %6146 = vmatmul.msk.bf16.gmra.mxu2 %vm4098_vm3, %v10995_v48 }
 0x603   :  { %5335 = vst [vmem:[#allocation9 + $0x18] sm:$0xff] %v5200_v26 }
 0x604   :  { %v5212_v17 = vpop.f32.mrf.mxu2 }
 0x606   :  { %v4916_v63 = vpop.f32.mrf.mxu0  ;;  %v5058_v56 = vpop.f32.mrf.mxu1 }
 0x607   :  { %v5059_v32 = vadd.f32 %v5058_v56, %v4915_v14  ;;  %v4782_v4 = vpop.f32.mrf.mxu3  ;;  %v4917_v11 = vadd.f32 %v4916_v63, %v4772_v39  ;;  %v11001_v39 = vld [vmem:[#allocation23_spill] sm:$0xff] }
 0x609   :  { %v5203_v54 = vadd.f32 %v5202_v33, %v5059_v32  ;;  %5097 = vmatmul.bf16.gmra.mxu1 %v10996_v60 }
 0x60b   :  { %5337 = vst [vmem:[#allocation9 + $0x28] sm:$0xff] %v5203_v54  ;;  %4824 = vmatmul.bf16.gmra.mxu3 %v10998_v46 }
 0x60c   :  { %v5214_v15 = vpop.f32.mrf.mxu2 }
 0x60e   :  { %v4919_v9 = vpop.f32.mrf.mxu0  ;;  %v5060_v42 = vpop.f32.mrf.mxu1 }
 0x60f   :  { %v5061_v21 = vadd.f32 %v5060_v42, %v4917_v11  ;;  %v4920_v25 = vadd.f32 %v4919_v9, %v4775_v5  ;;  %v4785_v22 = vpop.f32.mrf.mxu3  ;;  %v11004_v5 = vld [vmem:[#allocation74_spill] sm:$0xff]  ;;  %v11011_v9 = vld [vmem:[#allocation31_spill] sm:$0xff] }
 0x610   :  { %v11009_v11 = vld [vmem:[#allocation26_spill] sm:$0xff] }
 0x611   :  { %v5205_v12 = vadd.f32 %v5204_v62, %v5061_v21  ;;  %4958 = vmatmul.bf16.gmra.mxu0 %v10997_v38  ;;  %6147 = vmatmul.msk.bf16.gmra.mxu2 %vm4098_vm3, %v10999_v37  ;;  %v11002_v62 = vld [vmem:[#allocation27_spill] sm:$0xff] }
 0x613   :  { %5339 = vst [vmem:[#allocation9 + $0x38] sm:$0xff] %v5205_v12 }
 0x614   :  { %v5217_v23 = vpop.f32.mrf.mxu2 }
 0x616   :  { %v4921_v27 = vpop.f32.mrf.mxu0  ;;  %v5063_v18 = vpop.f32.mrf.mxu1 }
 0x617   :  { %v5064_v45 = vadd.f32 %v5063_v18, %v4920_v25  ;;  %v4787_v57 = vpop.f32.mrf.mxu3  ;;  %v4922_v33 = vadd.f32 %v4921_v27, %v4777_v2 }
 0x619   :  { %v5208_v43 = vadd.f32 %v5207_v58, %v5064_v45  ;;  %5102 = vmatmul.bf16.gmra.mxu1 %v11000_v49 }
 0x61b   :  { %5341 = vst [vmem:[#allocation9 + $0x48] sm:$0xff] %v5208_v43  ;;  %4829 = vmatmul.bf16.gmra.mxu3 %v11002_v62 }
 0x61c   :  { %v5219_v20 = vpop.f32.mrf.mxu2 }
 0x61e   :  { %v4924_v10 = vpop.f32.mrf.mxu0  ;;  %v5065_v50 = vpop.f32.mrf.mxu1 }
 0x61f   :  { %v5066_v36 = vadd.f32 %v5065_v50, %v4922_v33  ;;  %v4925_v34 = vadd.f32 %v4924_v10, %v4780_v55  ;;  %v4790_v1 = vpop.f32.mrf.mxu3  ;;  %v11008_v55 = vld [vmem:[#allocation19_spill] sm:$0xff]  ;;  %v11013_v33 = vld [vmem:[#allocation37_spill] sm:$0xff]  ;;  %v11015_v10 = vld [vmem:[#allocation28_spill] sm:$0xff] }
 0x621   :  { %v5210_v0 = vadd.f32 %v5209_v59, %v5066_v36  ;;  %4963 = vmatmul.bf16.gmra.mxu0 %v11001_v39  ;;  %6148 = vmatmul.msk.bf16.gmra.mxu2 %vm4098_vm3, %v11003_v44  ;;  %v11006_v59 = vld [vmem:[#allocation30_spill] sm:$0xff] }
 0x623   :  { %5343 = vst [vmem:[#allocation9 + $0x58] sm:$0xff] %v5210_v0 }
 0x624   :  { %v5222_v28 = vpop.f32.mrf.mxu2 }
 0x626   :  { %v4926_v24 = vpop.f32.mrf.mxu0  ;;  %v5068_v53 = vpop.f32.mrf.mxu1 }
 0x627   :  { %v5069_v47 = vadd.f32 %v5068_v53, %v4925_v34  ;;  %v4792_v58 = vpop.f32.mrf.mxu3  ;;  %v4927_v19 = vadd.f32 %v4926_v24, %v4782_v4 }
 0x629   :  { %v5213_v8 = vadd.f32 %v5212_v17, %v5069_v47  ;;  %5107 = vmatmul.bf16.gmra.mxu1 %v11004_v5 }
 0x62b   :  { %5345 = vst [vmem:[#allocation9 + $0x68] sm:$0xff] %v5213_v8  ;;  %4834 = vmatmul.bf16.gmra.mxu3 %v11006_v59 }
 0x62c   :  { %v5224_v16 = vpop.f32.mrf.mxu2 }
 0x62e   :  { %v4929_v41 = vpop.f32.mrf.mxu0  ;;  %v5070_v3 = vpop.f32.mrf.mxu1 }
 0x62f   :  { %v5071_v7 = vadd.f32 %v5070_v3, %v4927_v19  ;;  %v4930_v61 = vadd.f32 %v4929_v41, %v4785_v22  ;;  %v4795_v40 = vpop.f32.mrf.mxu3  ;;  %v11012_v22 = vld [vmem:[#allocation22_spill] sm:$0xff]  ;;  %v11019_v41 = vld [vmem:[#allocation32_spill] sm:$0xff] }
 0x630   :  { %v11017_v19 = vld [vmem:[#allocation34_spill] sm:$0xff] }
 0x631   :  { %v5215_v2 = vadd.f32 %v5214_v15, %v5071_v7  ;;  %4968 = vmatmul.bf16.gmra.mxu0 %v11005_v52  ;;  %6149 = vmatmul.msk.bf16.gmra.mxu2 %vm4098_vm3, %v11007_v30  ;;  %v11010_v15 = vld [vmem:[#allocation35_spill] sm:$0xff] }
 0x633   :  { %5347 = vst [vmem:[#allocation9 + $0x78] sm:$0xff] %v5215_v2 }
 0x634   :  { %v5227_v26 = vpop.f32.mrf.mxu2 }
 0x636   :  { %v4931_v6 = vpop.f32.mrf.mxu0  ;;  %v5073_v35 = vpop.f32.mrf.mxu1 }
 0x637   :  { %v5074_v48 = vadd.f32 %v5073_v35, %v4930_v61  ;;  %v4797_v17 = vpop.f32.mrf.mxu3  ;;  %v4932_v63 = vadd.f32 %v4931_v6, %v4787_v57 }
 0x639   :  { %v5218_v14 = vadd.f32 %v5217_v23, %v5074_v48  ;;  %5112 = vmatmul.bf16.gmra.mxu1 %v11008_v55 }
 0x63b   :  { %5349 = vst [vmem:[#allocation9 + $0x88] sm:$0xff] %v5218_v14  ;;  %4839 = vmatmul.bf16.gmra.mxu3 %v11010_v15 }
 0x63c   :  { %v5229_v56 = vpop.f32.mrf.mxu2 }
 0x63e   :  { %v4934_v32 = vpop.f32.mrf.mxu0  ;;  %v5075_v54 = vpop.f32.mrf.mxu1 }
 0x63f   :  { %v5076_v60 = vadd.f32 %v5075_v54, %v4932_v63  ;;  %v4935_v42 = vadd.f32 %v4934_v32, %v4790_v1  ;;  %v4800_v21 = vpop.f32.mrf.mxu3  ;;  %v11016_v1 = vld [vmem:[#allocation20_spill] sm:$0xff]  ;;  %v11021_v63 = vld [vmem:[#allocation42_spill] sm:$0xff]  ;;  %v11023_v32 = vld [vmem:[#allocation43_spill] sm:$0xff] }
 0x641   :  { %v5220_v4 = vadd.f32 %v5219_v20, %v5076_v60  ;;  %4973 = vmatmul.bf16.gmra.mxu0 %v11009_v11  ;;  %6150 = vmatmul.msk.bf16.gmra.mxu2 %vm4098_vm3, %v11011_v9  ;;  %v11014_v20 = vld [vmem:[#allocation39_spill] sm:$0xff] }
 0x643   :  { %5351 = vst [vmem:[#allocation9 + $0x98] sm:$0xff] %v5220_v4 }
 0x644   :  { %v5232_v12 = vpop.f32.mrf.mxu2 }
 0x646   :  { %v4936_v38 = vpop.f32.mrf.mxu0  ;;  %v5078_v46 = vpop.f32.mrf.mxu1 }
 0x647   :  { %v5079_v37 = vadd.f32 %v5078_v46, %v4935_v42  ;;  %v4802_v23 = vpop.f32.mrf.mxu3  ;;  %v4937_v27 = vadd.f32 %v4936_v38, %v4792_v58 }
 0x649   :  { %v5223_v25 = vadd.f32 %v5222_v28, %v5079_v37  ;;  %5117 = vmatmul.bf16.gmra.mxu1 %v11012_v22 }
 0x64b   :  { %5353 = vst [vmem:[#allocation9 + $0xa8] sm:$0xff] %v5223_v25  ;;  %4844 = vmatmul.bf16.gmra.mxu3 %v11014_v20 }
 0x64c   :  { %v5234_v18 = vpop.f32.mrf.mxu2 }
 0x64e   :  { %v4939_v45 = vpop.f32.mrf.mxu0  ;;  %v5080_v43 = vpop.f32.mrf.mxu1 }
 0x64f   :  { %v5081_v49 = vadd.f32 %v5080_v43, %v4937_v27  ;;  %v4940_v50 = vadd.f32 %v4939_v45, %v4795_v40  ;;  %v4805_v36 = vpop.f32.mrf.mxu3  ;;  %v11020_v40 = vld [vmem:[#allocation29_spill] sm:$0xff]  ;;  %v11027_v45 = vld [vmem:[#allocation46_spill] sm:$0xff] }
 0x650   :  { %v11025_v27 = vld [vmem:[#allocation49_spill] sm:$0xff] }
 0x651   :  { %v5225_v57 = vadd.f32 %v5224_v16, %v5081_v49  ;;  %4978 = vmatmul.bf16.gmra.mxu0 %v11013_v33  ;;  %6151 = vmatmul.msk.bf16.gmra.mxu2 %vm4098_vm3, %v11015_v10  ;;  %v11018_v16 = vld [vmem:[#allocation40_spill] sm:$0xff] }
 0x653   :  { %5355 = vst [vmem:[#allocation9 + $0xb8] sm:$0xff] %v5225_v57 }
 0x654   :  { %v5237_v0 = vpop.f32.mrf.mxu2 }
 0x656   :  { %v4941_v39 = vpop.f32.mrf.mxu0  ;;  %v5083_v62 = vpop.f32.mrf.mxu1 }
 0x657   :  { %v5084_v44 = vadd.f32 %v5083_v62, %v4940_v50  ;;  %v4807_v28 = vpop.f32.mrf.mxu3  ;;  %v4942_v24 = vadd.f32 %v4941_v39, %v4797_v17 }
 0x659   :  { %v5228_v34 = vadd.f32 %v5227_v26, %v5084_v44  ;;  %5122 = vmatmul.bf16.gmra.mxu1 %v11016_v1 }
 0x65b   :  { %5357 = vst [vmem:[#allocation9 + $0xc8] sm:$0xff] %v5228_v34  ;;  %4849 = vmatmul.bf16.gmra.mxu3 %v11018_v16 }
 0x65c   :  { %v5239_v53 = vpop.f32.mrf.mxu2 }
 0x65e   :  { %v4944_v47 = vpop.f32.mrf.mxu0  ;;  %v5085_v8 = vpop.f32.mrf.mxu1 }
 0x65f   :  { %v5086_v5 = vadd.f32 %v5085_v8, %v4942_v24  ;;  %v4945_v3 = vadd.f32 %v4944_v47, %v4800_v21  ;;  %v4810_v7 = vpop.f32.mrf.mxu3  ;;  %v11024_v21 = vld [vmem:[#allocation33_spill] sm:$0xff]  ;;  %v11031_v47 = vld [vmem:[#allocation52_spill] sm:$0xff] }
 0x660   :  { %v11029_v24 = vld [vmem:[#allocation45_spill] sm:$0xff] }
 0x661   :  { %v5230_v58 = vadd.f32 %v5229_v56, %v5086_v5  ;;  %4983 = vmatmul.bf16.gmra.mxu0 %v11017_v19  ;;  %6152 = vmatmul.msk.bf16.gmra.mxu2 %vm4098_vm3, %v11019_v41  ;;  %v11022_v56 = vld [vmem:[#allocation38_spill] sm:$0xff] }
 0x663   :  { %5359 = vst [vmem:[#allocation9 + $0xd8] sm:$0xff] %v5230_v58 }
 0x664   :  { %v5242_v2 = vpop.f32.mrf.mxu2 }
 0x666   :  { %v4946_v52 = vpop.f32.mrf.mxu0  ;;  %v5088_v59 = vpop.f32.mrf.mxu1 }
 0x667   :  { %v5089_v30 = vadd.f32 %v5088_v59, %v4945_v3  ;;  %v4812_v26 = vpop.f32.mrf.mxu3  ;;  %v4947_v6 = vadd.f32 %v4946_v52, %v4802_v23 }
 0x669   :  { %v5233_v61 = vadd.f32 %v5232_v12, %v5089_v30  ;;  %5127 = vmatmul.bf16.gmra.mxu1 %v11020_v40 }
 0x66b   :  { %5361 = vst [vmem:[#allocation9 + $0xe8] sm:$0xff] %v5233_v61  ;;  %4854 = vmatmul.bf16.gmra.mxu3 %v11022_v56 }
 0x66c   :  { %v5244_v35 = vpop.f32.mrf.mxu2 }
 0x66e   :  { %v4949_v48 = vpop.f32.mrf.mxu0  ;;  %v5090_v14 = vpop.f32.mrf.mxu1 }
 0x66f   :  { %v5091_v55 = vadd.f32 %v5090_v14, %v4947_v6  ;;  %v4950_v54 = vadd.f32 %v4949_v48, %v4805_v36  ;;  %v4815_v60 = vpop.f32.mrf.mxu3  ;;  %v11028_v36 = vld [vmem:[#allocation36_spill] sm:$0xff]  ;;  %v11033_v6 = vld [vmem:[#allocation54_spill] sm:$0xff] }
 0x670   :  { %v11035_v48 = vld [vmem:[#allocation50_spill] sm:$0xff] }
 0x671   :  { %v5235_v17 = vadd.f32 %v5234_v18, %v5091_v55  ;;  %4988 = vmatmul.bf16.gmra.mxu0 %v11021_v63  ;;  %6153 = vmatmul.msk.bf16.gmra.mxu2 %vm4098_vm3, %v11023_v32  ;;  %v11026_v18 = vld [vmem:[#allocation55_spill] sm:$0xff] }
 0x673   :  { %5363 = vst [vmem:[#allocation9 + $0xf8] sm:$0xff] %v5235_v17 }
 0x674   :  { %v5247_v4 = vpop.f32.mrf.mxu2 }
 0x676   :  { %v4951_v11 = vpop.f32.mrf.mxu0  ;;  %v5093_v15 = vpop.f32.mrf.mxu1 }
 0x677   :  { %v5094_v9 = vadd.f32 %v5093_v15, %v4950_v54  ;;  %v4817_v12 = vpop.f32.mrf.mxu3  ;;  %v4952_v38 = vadd.f32 %v4951_v11, %v4807_v28 }
 0x679   :  { %v5238_v42 = vadd.f32 %v5237_v0, %v5094_v9  ;;  %5132 = vmatmul.bf16.gmra.mxu1 %v11024_v21 }
 0x67b   :  { %5365 = vst [vmem:[#allocation9 + $0x108] sm:$0xff] %v5238_v42  ;;  %4859 = vmatmul.bf16.gmra.mxu3 %v11026_v18 }
 0x67c   :  { %v5249_v46 = vpop.f32.mrf.mxu2 }
 0x67e   :  { %v4954_v37 = vpop.f32.mrf.mxu0  ;;  %v5095_v25 = vpop.f32.mrf.mxu1 }
 0x67f   :  { %v5096_v22 = vadd.f32 %v5095_v25, %v4952_v38  ;;  %v4955_v43 = vadd.f32 %v4954_v37, %v4810_v7  ;;  %v4820_v49 = vpop.f32.mrf.mxu3  ;;  %v11032_v7 = vld [vmem:[#allocation41_spill] sm:$0xff]  ;;  %v11037_v38 = vld [vmem:[#allocation58_spill] sm:$0xff]  ;;  %v11039_v37 = vld [vmem:[#allocation51_spill] sm:$0xff] }
 0x681   :  { %v5240_v23 = vadd.f32 %v5239_v53, %v5096_v22  ;;  %4993 = vmatmul.bf16.gmra.mxu0 %v11025_v27  ;;  %6154 = vmatmul.msk.bf16.gmra.mxu2 %vm4098_vm3, %v11027_v45  ;;  %v11030_v53 = vld [vmem:[#allocation48_spill] sm:$0xff] }
 0x683   :  { %5367 = vst [vmem:[#allocation9 + $0x118] sm:$0xff] %v5240_v23 }
 0x684   :  { %v5252_v57 = vpop.f32.mrf.mxu2 }
 0x686   :  { %v4956_v33 = vpop.f32.mrf.mxu0  ;;  %v5098_v20 = vpop.f32.mrf.mxu1 }
 0x687   :  { %v5099_v10 = vadd.f32 %v5098_v20, %v4955_v43  ;;  %v4822_v0 = vpop.f32.mrf.mxu3  ;;  %v4957_v39 = vadd.f32 %v4956_v33, %v4812_v26 }
 0x689   :  { %v5243_v50 = vadd.f32 %v5242_v2, %v5099_v10  ;;  %5137 = vmatmul.bf16.gmra.mxu1 %v11028_v36 }
 0x68b   :  { %5369 = vst [vmem:[#allocation9 + $0x128] sm:$0xff] %v5243_v50  ;;  %4864 = vmatmul.bf16.gmra.mxu3 %v11030_v53 }
 0x68c   :  { %v5254_v62 = vpop.f32.mrf.mxu2 }
 0x68e   :  { %v4959_v44 = vpop.f32.mrf.mxu0  ;;  %v5100_v34 = vpop.f32.mrf.mxu1 }
 0x68f   :  { %v5101_v1 = vadd.f32 %v5100_v34, %v4957_v39  ;;  %v4960_v8 = vadd.f32 %v4959_v44, %v4815_v60  ;;  %v4825_v5 = vpop.f32.mrf.mxu3  ;;  %v11036_v60 = vld [vmem:[#allocation47_spill] sm:$0xff]  ;;  %v11043_v44 = vld [vmem:[#allocation57_spill] sm:$0xff] }
 0x690   :  { %v11041_v39 = vld [vmem:[#allocation67_spill] sm:$0xff] }
 0x691   :  { %v5245_v28 = vadd.f32 %v5244_v35, %v5101_v1  ;;  %4998 = vmatmul.bf16.gmra.mxu0 %v11029_v24  ;;  %6155 = vmatmul.msk.bf16.gmra.mxu2 %vm4098_vm3, %v11031_v47  ;;  %v11034_v35 = vld [vmem:[#allocation59_spill] sm:$0xff] }
 0x693   :  { %5371 = vst [vmem:[#allocation9 + $0x138] sm:$0xff] %v5245_v28 }
 0x694   :  { %v5257_v58 = vpop.f32.mrf.mxu2 }
 0x696   :  { %v4961_v19 = vpop.f32.mrf.mxu0  ;;  %v5103_v16 = vpop.f32.mrf.mxu1 }
 0x697   :  { %v5104_v41 = vadd.f32 %v5103_v16, %v4960_v8  ;;  %v4827_v2 = vpop.f32.mrf.mxu3  ;;  %v4962_v52 = vadd.f32 %v4961_v19, %v4817_v12 }
 0x699   :  { %v5248_v3 = vadd.f32 %v5247_v4, %v5104_v41  ;;  %5142 = vmatmul.bf16.gmra.mxu1 %v11032_v7 }
 0x69b   :  { %5373 = vst [vmem:[#allocation9 + $0x148] sm:$0xff] %v5248_v3  ;;  %4869 = vmatmul.bf16.gmra.mxu3 %v11034_v35 }
 0x69c   :  { %v5259_v59 = vpop.f32.mrf.mxu2 }
 0x69e   :  { %v4964_v30 = vpop.f32.mrf.mxu0  ;;  %v5105_v61 = vpop.f32.mrf.mxu1 }
 0x69f   :  { %v5106_v40 = vadd.f32 %v5105_v61, %v4962_v52  ;;  %v4965_v14 = vadd.f32 %v4964_v30, %v4820_v49  ;;  %v4830_v55 = vpop.f32.mrf.mxu3  ;;  %v11040_v49 = vld [vmem:[#allocation53_spill] sm:$0xff] }
 0x6a0   :  { %v11045_v52 = vld [vmem:[#allocation65_spill] sm:$0xff] }
 0x6a1   :  { %v5250_v26 = vadd.f32 %v5249_v46, %v5106_v40  ;;  %5003 = vmatmul.bf16.gmra.mxu0 %v11033_v6  ;;  %6156 = vmatmul.msk.bf16.gmra.mxu2 %vm4098_vm3, %v11035_v48  ;;  %v11038_v46 = vld [vmem:[#allocation56_spill] sm:$0xff] }
 0x6a3   :  { %5375 = vst [vmem:[#allocation9 + $0x158] sm:$0xff] %v5250_v26 }
 0x6a4   :  { %v5262_v17 = vpop.f32.mrf.mxu2 }
 0x6a6   :  { %v4966_v63 = vpop.f32.mrf.mxu0  ;;  %v5108_v56 = vpop.f32.mrf.mxu1 }
 0x6a7   :  { %v5109_v32 = vadd.f32 %v5108_v56, %v4965_v14  ;;  %v4832_v4 = vpop.f32.mrf.mxu3  ;;  %v4967_v11 = vadd.f32 %v4966_v63, %v4822_v0  ;;  %v11047_v14 = vld [vmem:[#allocation61_spill] sm:$0xff] }
 0x6a9   :  { %v5253_v54 = vadd.f32 %v5252_v57, %v5109_v32  ;;  %5147 = vmatmul.bf16.gmra.mxu1 %v11036_v60  ;;  %v11048_v60 = vld [vmem:[#allocation73_spill] sm:$0xff] }
 0x6ab   :  { %5377 = vst [vmem:[#allocation9 + $0x168] sm:$0xff] %v5253_v54  ;;  %4874 = vmatmul.bf16.gmra.mxu3 %v11038_v46  ;;  %v11050_v46 = vld [vmem:[#allocation60_spill] sm:$0xff] }
 0x6ac   :  { %v5264_v15 = vpop.f32.mrf.mxu2 }
 0x6ae   :  { %v4969_v9 = vpop.f32.mrf.mxu0  ;;  %v5110_v42 = vpop.f32.mrf.mxu1 }
 0x6af   :  { %v5111_v21 = vadd.f32 %v5110_v42, %v4967_v11  ;;  %v4970_v25 = vadd.f32 %v4969_v9, %v4825_v5  ;;  %v4835_v22 = vpop.f32.mrf.mxu3  ;;  %v11044_v5 = vld [vmem:[#allocation44_spill] sm:$0xff] }
 0x6b1   :  { %v5255_v12 = vadd.f32 %v5254_v62, %v5111_v21  ;;  %5008 = vmatmul.bf16.gmra.mxu0 %v11037_v38  ;;  %6157 = vmatmul.msk.bf16.gmra.mxu2 %vm4098_vm3, %v11039_v37  ;;  %v11042_v62 = vld [vmem:[#allocation66_spill] sm:$0xff] }
 0x6b3   :  { %5379 = vst [vmem:[#allocation9 + $0x178] sm:$0xff] %v5255_v12 }
 0x6b4   :  { %v5267_v23 = vpop.f32.mrf.mxu2 }
 0x6b6   :  { %v4971_v27 = vpop.f32.mrf.mxu0  ;;  %v5113_v18 = vpop.f32.mrf.mxu1 }
 0x6b7   :  { %v5114_v45 = vadd.f32 %v5113_v18, %v4970_v25  ;;  %v4837_v57 = vpop.f32.mrf.mxu3  ;;  %v4972_v33 = vadd.f32 %v4971_v27, %v4827_v2 }
 0x6b9   :  { %v5258_v43 = vadd.f32 %v5257_v58, %v5114_v45  ;;  %5152 = vmatmul.bf16.gmra.mxu1 %v11040_v49  ;;  %v11051_v45 = vld [vmem:[#allocation69_spill] sm:$0xff] }
 0x6bb   :  { %5381 = vst [vmem:[#allocation9 + $0x188] sm:$0xff] %v5258_v43  ;;  %4879 = vmatmul.bf16.gmra.mxu3 %v11042_v62  ;;  %v11052_v43 = vld [vmem:[#allocation70_spill] sm:$0xff] }
 0x6bc   :  { %v5269_v20 = vpop.f32.mrf.mxu2 }
 0x6be   :  { %v4974_v10 = vpop.f32.mrf.mxu0  ;;  %v5115_v50 = vpop.f32.mrf.mxu1 }
 0x6bf   :  { %v5116_v36 = vadd.f32 %v5115_v50, %v4972_v33  ;;  %v4975_v34 = vadd.f32 %v4974_v10, %v4830_v55  ;;  %v4840_v1 = vpop.f32.mrf.mxu3 }
 0x6c1   :  { %v5260_v0 = vadd.f32 %v5259_v59, %v5116_v36  ;;  %5013 = vmatmul.bf16.gmra.mxu0 %v11041_v39  ;;  %6158 = vmatmul.msk.bf16.gmra.mxu2 %vm4098_vm3, %v11043_v44  ;;  %v11046_v59 = vld [vmem:[#allocation64_spill] sm:$0xff] }
 0x6c3   :  { %5383 = vst [vmem:[#allocation9 + $0x198] sm:$0xff] %v5260_v0  ;;  %v11053_v0 = vld [vmem:[#allocation63_spill] sm:$0xff] }
 0x6c4   :  { %v5272_v28 = vpop.f32.mrf.mxu2 }
 0x6c6   :  { %v4976_v24 = vpop.f32.mrf.mxu0  ;;  %v5118_v53 = vpop.f32.mrf.mxu1 }
 0x6c7   :  { %v5119_v47 = vadd.f32 %v5118_v53, %v4975_v34  ;;  %v4842_v58 = vpop.f32.mrf.mxu3  ;;  %v4977_v19 = vadd.f32 %v4976_v24, %v4832_v4  ;;  %v11049_v4 = vld [vmem:[#allocation62_spill] sm:$0xff]  ;;  %v11054_v24 = vld [vmem:[#allocation68_spill] sm:$0xff] }
 0x6c9   :  { %v5263_v8 = vadd.f32 %v5262_v17, %v5119_v47  ;;  %5157 = vmatmul.bf16.gmra.mxu1 %v11044_v5 }
 0x6cb   :  { %5385 = vst [vmem:[#allocation9 + $0x1a8] sm:$0xff] %v5263_v8  ;;  %4884 = vmatmul.bf16.gmra.mxu3 %v10202_v51 }
 0x6cc   :  { %v5274_v16 = vpop.f32.mrf.mxu2 }
 0x6ce   :  { %v4979_v41 = vpop.f32.mrf.mxu0  ;;  %v5120_v3 = vpop.f32.mrf.mxu1 }
 0x6cf   :  { %v5121_v7 = vadd.f32 %v5120_v3, %v4977_v19  ;;  %v4980_v30 = vadd.f32 %v4979_v41, %v4835_v22  ;;  %v4845_v61 = vpop.f32.mrf.mxu3 }
 0x6d1   :  { %v5265_v2 = vadd.f32 %v5264_v15, %v5121_v7  ;;  %5018 = vmatmul.bf16.gmra.mxu0 %v11045_v52  ;;  %6159 = vmatmul.msk.bf16.gmra.mxu2 %vm4098_vm3, %v11046_v59 }
 0x6d3   :  { %5387 = vst [vmem:[#allocation9 + $0x1b8] sm:$0xff] %v5265_v2 }
 0x6d4   :  { %v5277_v40 = vpop.f32.mrf.mxu2 }
 0x6d6   :  { %v4981_v26 = vpop.f32.mrf.mxu0  ;;  %v5123_v6 = vpop.f32.mrf.mxu1 }
 0x6d7   :  { %v5124_v35 = vadd.f32 %v5123_v6, %v4980_v30  ;;  %v4847_v55 = vpop.f32.mrf.mxu3  ;;  %v4982_v17 = vadd.f32 %v4981_v26, %v4837_v57 }
 0x6d9   :  { %v5268_v48 = vadd.f32 %v5267_v23, %v5124_v35  ;;  %5162 = vmatmul.bf16.gmra.mxu1 %v11047_v14  ;;  %v11056_v14 = vld [vmem:[#allocation72_spill] sm:$0xff] }
 0x6db   :  { %5389 = vst [vmem:[#allocation9 + $0x1c8] sm:$0xff] %v5268_v48  ;;  %4889 = vmatmul.bf16.gmra.mxu3 %v10219_v29 }
 0x6dc   :  { %v5279_v63 = vpop.f32.mrf.mxu2 }
 0x6de   :  { %v4984_v56 = vpop.f32.mrf.mxu0  ;;  %v5125_v32 = vpop.f32.mrf.mxu1 }
 0x6df   :  { %v5126_v51 = vadd.f32 %v5125_v32, %v4982_v17  ;;  %v4985_v11 = vadd.f32 %v4984_v56, %v4840_v1  ;;  %v4850_v15 = vpop.f32.mrf.mxu3 }
 0x6e1   :  { %v5270_v54 = vadd.f32 %v5269_v20, %v5126_v51  ;;  %5023 = vmatmul.bf16.gmra.mxu0 %v11048_v60  ;;  %6160 = vmatmul.msk.bf16.gmra.mxu2 %vm4098_vm3, %v11049_v4 }
 0x6e3   :  { %5391 = vst [vmem:[#allocation9 + $0x1d8] sm:$0xff] %v5270_v54 }
 0x6e4   :  { %v5282_v9 = vpop.f32.mrf.mxu2 }
 0x6e6   :  { %v4986_v42 = vpop.f32.mrf.mxu0  ;;  %v5128_v21 = vpop.f32.mrf.mxu1 }
 0x6e7   :  { %v5129_v12 = vadd.f32 %v5128_v21, %v4985_v11  ;;  %v4852_v37 = vpop.f32.mrf.mxu3  ;;  %v4987_v25 = vadd.f32 %v4986_v42, %v4842_v58 }
 0x6e9   :  { %v5273_v38 = vadd.f32 %v5272_v28, %v5129_v12  ;;  %5167 = vmatmul.bf16.gmra.mxu1 %v11050_v46 }
 0x6eb   :  { %5393 = vst [vmem:[#allocation9 + $0x1e8] sm:$0xff] %v5273_v38  ;;  %4894 = vmatmul.bf16.gmra.mxu3 %v11051_v45 }
 0x6ec   :  { %v5284_v22 = vpop.f32.mrf.mxu2 }
 0x6ee   :  { %v4989_v23 = vpop.f32.mrf.mxu0  ;;  %v5130_v27 = vpop.f32.mrf.mxu1 }
 0x6ef   :  { %v5131_v29 = vadd.f32 %v5130_v27, %v4987_v25  ;;  %v4990_v49 = vadd.f32 %v4989_v23, %v4845_v61  ;;  %v4855_v57 = vpop.f32.mrf.mxu3 }
 0x6f1   :  { %v5275_v18 = vadd.f32 %v5274_v16, %v5131_v29  ;;  %5028 = vmatmul.bf16.gmra.mxu0 %v10214_v13  ;;  %6161 = vmatmul.msk.bf16.gmra.mxu2 %vm4098_vm3, %v11052_v43  ;;  %v11055_v16 = vld [vmem:[#allocation71_spill] sm:$0xff] }
 0x6f3   :  { %5395 = vst [vmem:[#allocation9 + $0x1f8] sm:$0xff] %v5275_v18 }
 0x6f4   :  { %v5287_v33 = vpop.f32.mrf.mxu2 }
 0x6f6   :  { %v4991_v20 = vpop.f32.mrf.mxu0  ;;  %v5133_v10 = vpop.f32.mrf.mxu1 }
 0x6f7   :  { %v5134_v50 = vadd.f32 %v5133_v10, %v4990_v49  ;;  %v4857_v39 = vpop.f32.mrf.mxu3  ;;  %v4992_v62 = vadd.f32 %v4991_v20, %v4847_v55 }
 0x6f9   :  { %v5278_v36 = vadd.f32 %v5277_v40, %v5134_v50  ;;  %5172 = vmatmul.bf16.gmra.mxu1 %v11053_v0 }
 0x6fb   :  { %5397 = vst [vmem:[#allocation9 + $0x208] sm:$0xff] %v5278_v36 }
 0x6fc   :  { %v5289_v1 = vpop.f32.mrf.mxu2 }
 0x6fe   :  { %v4994_v44 = vpop.f32.mrf.mxu0  ;;  %v5135_v13 = vpop.f32.mrf.mxu1 }
 0x6ff   :  { %v5136_v34 = vadd.f32 %v5135_v13, %v4992_v62  ;;  %v4995_v53 = vadd.f32 %v4994_v44, %v4850_v15  ;;  %v4860_v47 = vpop.f32.mrf.mxu3 }
 0x701   :  { %v5280_v28 = vadd.f32 %v5279_v63, %v5136_v34  ;;  %5033 = vmatmul.bf16.gmra.mxu0 %v11054_v24 }
 0x703   :  { %5399 = vst [vmem:[#allocation9 + $0x218] sm:$0xff] %v5280_v28 }
 0x704   :  { %v5292_v41 = vpop.f32.mrf.mxu2 }
 0x706   :  { %v4996_v8 = vpop.f32.mrf.mxu0  ;;  %v5138_v5 = vpop.f32.mrf.mxu1 }
 0x707   :  { %v5139_v58 = vadd.f32 %v5138_v5, %v4995_v53  ;;  %v4997_v3 = vadd.f32 %v4996_v8, %v4852_v37  ;;  %v4862_v59 = vpop.f32.mrf.mxu3 }
 0x709   :  { %v5283_v19 = vadd.f32 %v5282_v9, %v5139_v58  ;;  %5177 = vmatmul.bf16.gmra.mxu1 %v11055_v16 }
 0x70b   :  { %5401 = vst [vmem:[#allocation9 + $0x228] sm:$0xff] %v5283_v19 }
 0x70c   :  { %v5294_v40 = vpop.f32.mrf.mxu2 }
 0x70e   :  { %v4999_v7 = vpop.f32.mrf.mxu0  ;;  %v5140_v2 = vpop.f32.mrf.mxu1 }
 0x70f   :  { %v5141_v52 = vadd.f32 %v5140_v2, %v4997_v3  ;;  %v5000_v61 = vadd.f32 %v4999_v7, %v4855_v57  ;;  %v4865_v55 = vpop.f32.mrf.mxu3 }
 0x711   :  { %v5285_v30 = vadd.f32 %v5284_v22, %v5141_v52  ;;  %5038 = vmatmul.bf16.gmra.mxu0 %v10238_v31 }
 0x713   :  { %5403 = vst [vmem:[#allocation9 + $0x238] sm:$0xff] %v5285_v30 }
 0x714   :  { %v5297_v63 = vpop.f32.mrf.mxu2 }
 0x716   :  { %v5001_v26 = vpop.f32.mrf.mxu0  ;;  %v5143_v6 = vpop.f32.mrf.mxu1 }
 0x717   :  { %v5144_v35 = vadd.f32 %v5143_v6, %v5000_v61  ;;  %v5002_v17 = vadd.f32 %v5001_v26, %v4857_v39  ;;  %v4867_v31 = vpop.f32.mrf.mxu3 }
 0x719   :  { %v5288_v48 = vadd.f32 %v5287_v33, %v5144_v35  ;;  %5182 = vmatmul.bf16.gmra.mxu1 %v11056_v14 }
 0x71b   :  { %5405 = vst [vmem:[#allocation9 + $0x248] sm:$0xff] %v5288_v48 }
 0x71c   :  { %v5299_v9 = vpop.f32.mrf.mxu2 }
 0x71e   :  { %v5004_v56 = vpop.f32.mrf.mxu0  ;;  %v5145_v32 = vpop.f32.mrf.mxu1 }
 0x71f   :  { %v5146_v51 = vadd.f32 %v5145_v32, %v5002_v17  ;;  %v5005_v60 = vadd.f32 %v5004_v56, %v4860_v47  ;;  %v4870_v12 = vpop.f32.mrf.mxu3 }
 0x721   :  { %v5290_v54 = vadd.f32 %v5289_v1, %v5146_v51 }
 0x723   :  { %5407 = vst [vmem:[#allocation9 + $0x258] sm:$0xff] %v5290_v54 }
 0x724   :  { %v5302_v22 = vpop.f32.mrf.mxu2 }
 0x726   :  { %v5006_v4 = vpop.f32.mrf.mxu0  ;;  %v5148_v11 = vpop.f32.mrf.mxu1 }
 0x727   :  { %v5149_v15 = vadd.f32 %v5148_v11, %v5005_v60  ;;  %v5007_v21 = vadd.f32 %v5006_v4, %v4862_v59  ;;  %v4872_v45 = vpop.f32.mrf.mxu3 }
 0x729   :  { %v5293_v42 = vadd.f32 %v5292_v41, %v5149_v15 }
 0x72b   :  { %5409 = vst [vmem:[#allocation9 + $0x268] sm:$0xff] %v5293_v42 }
 0x72c   :  { %v5304_v49 = vpop.f32.mrf.mxu2 }
 0x72e   :  { %v5009_v38 = vpop.f32.mrf.mxu0  ;;  %v5150_v46 = vpop.f32.mrf.mxu1 }
 0x72f   :  { %v5151_v37 = vadd.f32 %v5150_v46, %v5007_v21  ;;  %v5010_v23 = vadd.f32 %v5009_v38, %v4865_v55  ;;  %v4875_v36 = vpop.f32.mrf.mxu3 }
 0x731   :  { %v5295_v25 = vadd.f32 %v5294_v40, %v5151_v37 }
 0x733   :  { %5411 = vst [vmem:[#allocation9 + $0x278] sm:$0xff] %v5295_v25 }
 0x734   :  { %v5307_v39 = vpop.f32.mrf.mxu2 }
 0x736   :  { %v5011_v27 = vpop.f32.mrf.mxu0  ;;  %v5153_v29 = vpop.f32.mrf.mxu1 }
 0x737   :  { %v5154_v18 = vadd.f32 %v5153_v29, %v5010_v23  ;;  %v5012_v57 = vadd.f32 %v5011_v27, %v4867_v31  ;;  %v4877_v1 = vpop.f32.mrf.mxu3 }
 0x739   :  { %v5298_v43 = vadd.f32 %v5297_v63, %v5154_v18 }
 0x73b   :  { %5413 = vst [vmem:[#allocation9 + $0x288] sm:$0xff] %v5298_v43 }
 0x73c   :  { %v5309_v8 = vpop.f32.mrf.mxu2 }
 0x73e   :  { %v5014_v33 = vpop.f32.mrf.mxu0  ;;  %v5155_v20 = vpop.f32.mrf.mxu1 }
 0x73f   :  { %v5156_v10 = vadd.f32 %v5155_v20, %v5012_v57  ;;  %v5015_v0 = vadd.f32 %v5014_v33, %v4870_v12  ;;  %v4880_v19 = vpop.f32.mrf.mxu3 }
 0x741   :  { %v5300_v50 = vadd.f32 %v5299_v9, %v5156_v10 }
 0x743   :  { %5415 = vst [vmem:[#allocation9 + $0x298] sm:$0xff] %v5300_v50 }
 0x744   :  { %v5312_v2 = vpop.f32.mrf.mxu2 }
 0x746   :  { %v5016_v62 = vpop.f32.mrf.mxu0  ;;  %v5158_v44 = vpop.f32.mrf.mxu1 }
 0x747   :  { %v5159_v13 = vadd.f32 %v5158_v44, %v5015_v0  ;;  %v5017_v28 = vadd.f32 %v5016_v62, %v4872_v45  ;;  %v4882_v40 = vpop.f32.mrf.mxu3 }
 0x749   :  { %v5303_v34 = vadd.f32 %v5302_v22, %v5159_v13 }
 0x74b   :  { %5417 = vst [vmem:[#allocation9 + $0x2a8] sm:$0xff] %v5303_v34 }
 0x74c   :  { %v5314_v35 = vpop.f32.mrf.mxu2 }
 0x74e   :  { %v5019_v24 = vpop.f32.mrf.mxu0  ;;  %v5160_v53 = vpop.f32.mrf.mxu1 }
 0x74f   :  { %v5161_v47 = vadd.f32 %v5160_v53, %v5017_v28  ;;  %v5020_v58 = vadd.f32 %v5019_v24, %v4875_v36  ;;  %v4885_v63 = vpop.f32.mrf.mxu3 }
 0x751   :  { %v5305_v5 = vadd.f32 %v5304_v49, %v5161_v47 }
 0x753   :  { %5419 = vst [vmem:[#allocation9 + $0x2b8] sm:$0xff] %v5305_v5 }
 0x754   :  { %v5317_v32 = vpop.f32.mrf.mxu2 }
 0x756   :  { %v5021_v16 = vpop.f32.mrf.mxu0  ;;  %v5163_v41 = vpop.f32.mrf.mxu1 }
 0x757   :  { %v5164_v3 = vadd.f32 %v5163_v41, %v5020_v58  ;;  %v5022_v52 = vadd.f32 %v5021_v16, %v4877_v1  ;;  %v4887_v11 = vpop.f32.mrf.mxu3 }
 0x759   :  { %v5308_v7 = vadd.f32 %v5307_v39, %v5164_v3 }
 0x75b   :  { %5421 = vst [vmem:[#allocation9 + $0x2c8] sm:$0xff] %v5308_v7 }
 0x75c   :  { %v5319_v21 = vpop.f32.mrf.mxu2 }
 0x75e   :  { %v5024_v59 = vpop.f32.mrf.mxu0  ;;  %v5165_v30 = vpop.f32.mrf.mxu1 }
 0x75f   :  { %v5166_v61 = vadd.f32 %v5165_v30, %v5022_v52  ;;  %v5025_v6 = vadd.f32 %v5024_v59, %v4880_v19  ;;  %v4890_v46 = vpop.f32.mrf.mxu3 }
 0x761   :  { %v5310_v26 = vadd.f32 %v5309_v8, %v5166_v61 }
 0x763   :  { %5423 = vst [vmem:[#allocation9 + $0x2d8] sm:$0xff] %v5310_v26 }
 0x764   :  { %v5322_v27 = vpop.f32.mrf.mxu2 }
 0x766   :  { %v5026_v48 = vpop.f32.mrf.mxu0  ;;  %v5168_v14 = vpop.f32.mrf.mxu1 }
 0x767   :  { %v5169_v55 = vadd.f32 %v5168_v14, %v5025_v6  ;;  %v5027_v56 = vadd.f32 %v5026_v48, %v4882_v40  ;;  %v4892_v49 = vpop.f32.mrf.mxu3 }
 0x769   :  { %v5313_v17 = vadd.f32 %v5312_v2, %v5169_v55 }
 0x76b   :  { %5425 = vst [vmem:[#allocation9 + $0x2e8] sm:$0xff] %v5313_v17 }
 0x76c   :  { %v5324_v33 = vpop.f32.mrf.mxu2 }
 0x76e   :  { %v5029_v51 = vpop.f32.mrf.mxu0  ;;  %v5170_v54 = vpop.f32.mrf.mxu1 }
 0x76f   :  { %v5171_v60 = vadd.f32 %v5170_v54, %v5027_v56  ;;  %v5030_v4 = vadd.f32 %v5029_v51, %v4885_v63  ;;  %v4895_v39 = vpop.f32.mrf.mxu3 }
 0x771   :  { %v5315_v31 = vadd.f32 %v5314_v35, %v5171_v60 }
 0x773   :  { %5427 = vst [vmem:[#allocation9 + $0x2f8] sm:$0xff] %v5315_v31 }
 0x774   :  { %v5327_v44 = vpop.f32.mrf.mxu2 }
 0x776   :  { %v5031_v15 = vpop.f32.mrf.mxu0  ;;  %v5173_v9 = vpop.f32.mrf.mxu1 }
 0x777   :  { %v5174_v42 = vadd.f32 %v5173_v9, %v5030_v4  ;;  %v5032_v38 = vadd.f32 %v5031_v15, %v4887_v11  ;;  %v4897_v24 = vpop.f32.mrf.mxu3 }
 0x779   :  { %v5318_v12 = vadd.f32 %v5317_v32, %v5174_v42 }
 0x77b   :  { %5429 = vst [vmem:[#allocation9 + $0x308] sm:$0xff] %v5318_v12 }
 0x77c   :  { %v5329_v5 = vpop.f32.mrf.mxu2 }
 0x77e   :  { %v5034_v37 = vpop.f32.mrf.mxu0  ;;  %v5175_v25 = vpop.f32.mrf.mxu1 }
 0x77f   :  { %v5176_v22 = vadd.f32 %v5175_v25, %v5032_v38  ;;  %v5035_v29 = vadd.f32 %v5034_v37, %v4890_v46 }
 0x781   :  { %v5320_v23 = vadd.f32 %v5319_v21, %v5176_v22 }
 0x783   :  { %5431 = vst [vmem:[#allocation9 + $0x318] sm:$0xff] %v5320_v23 }
 0x786   :  { %v5036_v18 = vpop.f32.mrf.mxu0  ;;  %v5178_v45 = vpop.f32.mrf.mxu1 }
 0x787   :  { %v5179_v43 = vadd.f32 %v5178_v45, %v5035_v29  ;;  %v5037_v20 = vadd.f32 %v5036_v18, %v4892_v49 }
 0x789   :  { %v5323_v57 = vadd.f32 %v5322_v27, %v5179_v43 }
 0x78b   :  { %5433 = vst [vmem:[#allocation9 + $0x328] sm:$0xff] %v5323_v57 }
 0x78e   :  { %v5180_v10 = vpop.f32.mrf.mxu1  ;;  %v5039_v36 = vpop.f32.mrf.mxu0 }
 0x78f   :  { %v5181_v50 = vadd.f32 %v5180_v10, %v5037_v20  ;;  %v5040_v62 = vadd.f32 %v5039_v36, %v4895_v39 }
 0x791   :  { %v5325_v0 = vadd.f32 %v5324_v33, %v5181_v50 }
 0x793   :  { %5435 = vst [vmem:[#allocation9 + $0x338] sm:$0xff] %v5325_v0 }
 0x796   :  { %v5183_v13 = vpop.f32.mrf.mxu1  ;;  %v5041_v28 = vpop.f32.mrf.mxu0 }
 0x797   :  { %v5184_v34 = vadd.f32 %v5183_v13, %v5040_v62  ;;  %v5042_v53 = vadd.f32 %v5041_v28, %v4897_v24 }
 0x799   :  { %v5328_v1 = vadd.f32 %v5327_v44, %v5184_v34 }
 0x79b   :  { %5437 = vst [vmem:[#allocation9 + $0x348] sm:$0xff] %v5328_v1 }
 0x79e   :  { %v5185_v47 = vpop.f32.mrf.mxu1 }
 0x79f   :  { %v5186_v8 = vadd.f32 %v5185_v47, %v5042_v53 }
 0x7a1   :  { %v5330_v58 = vadd.f32 %v5329_v5, %v5186_v8 }
 0x7a3   :  { %5439 = vst [vmem:[#allocation9 + $0x358] sm:$0xff] %v5330_v58 }
 0x7a4   :  { %5452 = dma.vmem_to_hbm [thread:$0]  %s5445_s28, 13824, %s5447_s29, [#allocation5], %s6749_s23, %s6749_s23, %s6750_s24  }
 0x7a5   :  { %6746 = dma.done.wait [#allocation5], 13824  }
 0x7a6   :  { %6747 = vsyncadd [#allocation5], 4294953472 }
 0x7a7   :  { %5457 = vsyncpa [#allocation4], 1 }
 0x7a8   :  { %5458 = vsyncpa [#allocation7], 1 }
 0x7a9   :  { %5459 = vsyncpa [#allocation5], 1 }

</bundles_post_ra>
